<compile_context>
chip_gen: v7x
topology: tpu7x:2x2x1
jax: 0.10.0
libtpu: 0.0.40
codegen_flags: <defaults>
</compile_context>

<pallas_src>
import math
import jax
import jax.numpy as jnp
import numpy as np
from jax import lax
from jax.experimental import pallas as pl
from jax.experimental.pallas import tpu as pltpu

# ----- small, module-consistent shapes -----
T = 16            # number of object queries (tgt length)
S = 16            # memory length (HW tokens)
B = 2             # batch
D = 32            # d_model
H = 4             # nheads
DH = D // H       # head dim
FF = 64           # dim_feedforward
EPS = 1e-5

# Column offsets inside the packed (D, 8D+FF) weight slab / (1, 8D+FF) bias slab.
_SA_QK = (0 * D, 2 * D)        # [Wq*scale | Wk] fused (shared input tgt+query_pos)
_SA_V  = (2 * D, 3 * D)
_SA_O  = (3 * D, 4 * D)
_CA_Q  = (4 * D, 5 * D)
_CA_K  = (5 * D, 6 * D)
_CA_V  = (6 * D, 7 * D)
_CA_O  = (7 * D, 8 * D)
_FF1   = (8 * D, 8 * D + FF)


# ---------------- in-kernel helpers ----------------
def _layer_norm(x, w, b):
    mean = jnp.mean(x, axis=-1, keepdims=True)
    var = jnp.mean((x - mean) ** 2, axis=-1, keepdims=True)   # biased, like PyTorch
    return (x - mean) * lax.rsqrt(var + EPS) * w + b


def _mha(q, k, v, wo):
    """Multi-head attention core. q: (Lq, D), k/v: (Lk, D), wo: (D, D) stored (in, out).
    The 1/sqrt(DH) scale is already folded into the q projection.
    Per-head outputs are accumulated through wo (no lane concatenate)."""
    acc = None
    for h in range(H):                                   # static unroll over heads
        sl = slice(h * DH, (h + 1) * DH)
        # contract last dims directly -> no materialized k.T (XLU transpose)
        s = lax.dot_general(q[:, sl], k[:, sl], (((1,), (1,)), ((), ())),
                            preferred_element_type=jnp.float32)      # (Lq, Lk)
        s = s - jnp.max(s, axis=-1, keepdims=True)
        p = jnp.exp(s)
        p = p / jnp.sum(p, axis=-1, keepdims=True)                   # exact softmax
        oh = jnp.dot(p, v[:, sl], preferred_element_type=jnp.float32)    # (Lq, DH)
        c = jnp.dot(oh, wo[sl, :], preferred_element_type=jnp.float32)   # (Lq, D)
        acc = c if acc is None else acc + c
    return acc


# ---------------- the fused decoder-layer kernel ----------------
def decoder_layer_kernel(tgt_ref, mem_ref, qpos_ref, pos_ref,
                         w_in_ref, b_in_ref, w2_ref, bln_ref, out_ref):
    w2 = w2_ref[...]                         # (FF, D)
    b2   = bln_ref[0:1, :]                   # (1, D)
    ln1w = bln_ref[1:2, :]; ln1b = bln_ref[2:3, :]
    ln2w = bln_ref[3:4, :]; ln2b = bln_ref[4:5, :]
    ln3w = bln_ref[5:6, :]; ln3b = bln_ref[6:7, :]

    def wcol(c):
        return w_in_ref[:, c[0]:c[1]]        # (D, n) static slice of the weight slab

    def bcol(c):
        return b_in_ref[:, c[0]:c[1]]        # (1, n) static slice of the bias slab

    for b in range(B):                       # static unroll over batch (no grid)
        tgt  = tgt_ref[:, b, :]              # (T, D)
        mem  = mem_ref[:, b, :]              # (S, D)
        qpos = qpos_ref[:, b, :]             # (T, D)
        pos  = pos_ref[:, b, :]              # (S, D)

        # ---- self-attention: q = k = tgt + query_pos, v = tgt ----
        qk_in = tgt + qpos
        qk = jnp.dot(qk_in, wcol(_SA_QK),
                     preferred_element_type=jnp.float32) + bcol(_SA_QK)   # (T, 2D)
        v = jnp.dot(tgt, wcol(_SA_V),
                    preferred_element_type=jnp.float32) + bcol(_SA_V)     # (T, D)
        a = _mha(qk[:, :D], qk[:, D:], v, wcol(_SA_O)) + bcol(_SA_O)
        x = _layer_norm(tgt + a, ln1w, ln1b)

        # ---- cross-attention: q = x + query_pos, k = memory + pos, v = memory ----
        q2 = jnp.dot(x + qpos, wcol(_CA_Q),
                     preferred_element_type=jnp.float32) + bcol(_CA_Q)
        k2 = jnp.dot(mem + pos, wcol(_CA_K),
                     preferred_element_type=jnp.float32) + bcol(_CA_K)
        v2 = jnp.dot(mem, wcol(_CA_V),
                     preferred_element_type=jnp.float32) + bcol(_CA_V)
        a2 = _mha(q2, k2, v2, wcol(_CA_O)) + bcol(_CA_O)
        x = _layer_norm(x + a2, ln2w, ln2b)

        # ---- feed-forward (relu) ----
        hid = jnp.maximum(
            jnp.dot(x, wcol(_FF1), preferred_element_type=jnp.float32) + bcol(_FF1),
            0.0)
        ffn = jnp.dot(hid, w2, preferred_element_type=jnp.float32) + b2
        out_ref[:, b, :] = _layer_norm(x + ffn, ln3w, ln3b)


# ---------------- pallas_call wrapper ----------------
_VMEM_SPEC = pl.BlockSpec(memory_space=pltpu.MemorySpace.VMEM)   # whole array, VMEM


def decoder_layer_call(tgt, mem, qpos, pos, w_in, b_in, w2, bln):
    return pl.pallas_call(
        decoder_layer_kernel,
        out_shape=jax.ShapeDtypeStruct((T, B, D), jnp.float32),
        in_specs=[_VMEM_SPEC] * 8,
        out_specs=_VMEM_SPEC,
    )(tgt, mem, qpos, pos, w_in, b_in, w2, bln)


@jax.jit
def transformer_decoder_layer(tgt_tbd, mem_sbd, qpos_tbd, pos_sbd, kparams):
    # Inputs stay in PyTorch (L, N, E) layout -- no transposes anywhere.
    w_in, b_in, w2, bln = kparams
    return decoder_layer_call(tgt_tbd, mem_sbd, qpos_tbd, pos_sbd,
                              w_in, b_in, w2, bln)


# ---------------- parameters ----------------
def make_torch_params(key):
    """PyTorch-layout params: Linear weight (out, in), bias (out,)."""
    ks = jax.random.split(key, 20)
    w = lambda k, o, i: (0.02 * jax.random.normal(k, (o, i))).astype(jnp.float32)
    b = lambda k, o: (0.02 * jax.random.normal(k, (o,))).astype(jnp.float32)
    return dict(
        sa_wq=w(ks[0], D, D), sa_bq=b(ks[1], D),
        sa_wk=w(ks[2], D, D), sa_bk=b(ks[3], D),
        sa_wv=w(ks[4], D, D), sa_bv=b(ks[5], D),
        sa_wo=w(ks[6], D, D), sa_bo=b(ks[7], D),
        ca_wq=w(ks[8], D, D), ca_bq=b(ks[9], D),
        ca_wk=w(ks[10], D, D), ca_bk=b(ks[11], D),
        ca_wv=w(ks[12], D, D), ca_bv=b(ks[13], D),
        ca_wo=w(ks[14], D, D), ca_bo=b(ks[15], D),
        w1=w(ks[16], FF, D), b1=b(ks[17], FF),
        w2=w(ks[18], D, FF), b2=b(ks[19], D),
        ln1w=jnp.ones((D,), jnp.float32), ln1b=jnp.zeros((D,), jnp.float32),
        ln2w=jnp.ones((D,), jnp.float32), ln2b=jnp.zeros((D,), jnp.float32),
        ln3w=jnp.ones((D,), jnp.float32), ln3b=jnp.zeros((D,), jnp.float32),
    )


def kernel_params(p):
    """Glue (not compute): transpose Linear weights to (in, out), fold 1/sqrt(DH)
    into the q projections, and pack everything into 4 slabs."""
    scale = 1.0 / math.sqrt(DH)
    w_in = jnp.concatenate([
        (p["sa_wq"] * scale).T, p["sa_wk"].T, p["sa_wv"].T, p["sa_wo"].T,
        (p["ca_wq"] * scale).T, p["ca_wk"].T, p["ca_wv"].T, p["ca_wo"].T,
        p["w1"].T,
    ], axis=1)                                                     # (D, 8D+FF)
    b_in = jnp.concatenate([
        p["sa_bq"] * scale, p["sa_bk"], p["sa_bv"], p["sa_bo"],
        p["ca_bq"] * scale, p["ca_bk"], p["ca_bv"], p["ca_bo"],
        p["b1"],
    ]).reshape(1, -1)                                              # (1, 8D+FF)
    w2 = p["w2"].T                                                 # (FF, D)
    bln = jnp.stack([p["b2"], p["ln1w"], p["ln1b"],
                     p["ln2w"], p["ln2b"], p["ln3w"], p["ln3b"]])  # (7, D)
    return (w_in, b_in, w2, bln)


# ---------------- pure-JAX reference (PyTorch forward_post semantics) ----------------
def _ref_ln(x, w, b):
    mean = jnp.mean(x, axis=-1, keepdims=True)
    var = jnp.mean((x - mean) ** 2, axis=-1, keepdims=True)
    return (x - mean) / jnp.sqrt(var + EPS) * w + b


def _ref_mha(q_in, k_in, v_in, wq, bq, wk, bk, wv, bv, wo, bo):
    q = q_in @ wq.T + bq
    k = k_in @ wk.T + bk
    v = v_in @ wv.T + bv
    scale = 1.0 / math.sqrt(DH)
    outs = []
    for h in range(H):
        sl = slice(h * DH, (h + 1) * DH)
        s = (q[..., sl] * scale) @ jnp.swapaxes(k[..., sl], -1, -2)
        pr = jax.nn.softmax(s, axis=-1)
        outs.append(pr @ v[..., sl])
    return jnp.concatenate(outs, axis=-1) @ wo.T + bo


def ref_decoder_layer(tgt_tbd, mem_sbd, qpos_tbd, pos_sbd, p):
    tgt = jnp.transpose(tgt_tbd, (1, 0, 2))
    mem = jnp.transpose(mem_sbd, (1, 0, 2))
    qpos = jnp.transpose(qpos_tbd, (1, 0, 2))
    pos = jnp.transpose(pos_sbd, (1, 0, 2))

    a = _ref_mha(tgt + qpos, tgt + qpos, tgt,
                 p["sa_wq"], p["sa_bq"], p["sa_wk"], p["sa_bk"],
                 p["sa_wv"], p["sa_bv"], p["sa_wo"], p["sa_bo"])
    x = _ref_ln(tgt + a, p["ln1w"], p["ln1b"])
    a2 = _ref_mha(x + qpos, mem + pos, mem,
                  p["ca_wq"], p["ca_bq"], p["ca_wk"], p["ca_bk"],
                  p["ca_wv"], p["ca_bv"], p["ca_wo"], p["ca_bo"])
    x = _ref_ln(x + a2, p["ln2w"], p["ln2b"])
    ffn = jnp.maximum(x @ p["w1"].T + p["b1"], 0.0) @ p["w2"].T + p["b2"]
    x = _ref_ln(x + ffn, p["ln3w"], p["ln3b"])
    return jnp.transpose(x, (1, 0, 2))


if __name__ == "__main__":
    key = jax.random.PRNGKey(0)
    k1, k2, k3, k4, kp = jax.random.split(key, 5)
    tgt = jax.random.normal(k1, (T, B, D), dtype=jnp.float32)
    memory = jax.random.normal(k2, (S, B, D), dtype=jnp.float32)
    query_pos = jax.random.normal(k3, (T, B, D), dtype=jnp.float32)
    pos = jax.random.normal(k4, (S, B, D), dtype=jnp.float32)

    torch_params = make_torch_params(kp)
    kparams = kernel_params(torch_params)

    out = transformer_decoder_layer(tgt, memory, query_pos, pos, kparams)
    out = jax.block_until_ready(out)

    ref = jax.block_until_ready(
        ref_decoder_layer(tgt, memory, query_pos, pos, torch_params))

    # tolerance covers MXU vs. XLA-default matmul precision differences
    np.testing.assert_allclose(np.asarray(out), np.asarray(ref),
                               rtol=5e-3, atol=5e-3)
    assert out.shape == (T, B, D)
    print("KERNEL_OK")
</pallas_src>

<mosaic_0001>
module attributes {stable_mosaic.version = 11 : i64} {
  func.func @decoder_layer_kernel(%arg0: memref<16x2x32xf32, #tpu.memory_space<vmem>>, %arg1: memref<16x2x32xf32, #tpu.memory_space<vmem>>, %arg2: memref<16x2x32xf32, #tpu.memory_space<vmem>>, %arg3: memref<16x2x32xf32, #tpu.memory_space<vmem>>, %arg4: memref<32x320xf32, #tpu.memory_space<vmem>>, %arg5: memref<1x320xf32, #tpu.memory_space<vmem>>, %arg6: memref<64x32xf32, #tpu.memory_space<vmem>>, %arg7: memref<7x32xf32, #tpu.memory_space<vmem>>, %arg8: memref<16x2x32xf32, #tpu.memory_space<vmem>>) attributes {dimension_semantics = [], scalar_prefetch = 0 : i64, scratch_operands = 0 : i64, tpu.core_type = #tpu.core_type<tc>} {
    %c0 = arith.constant 0 : index
    %c0_0 = arith.constant 0 : index
    %0 = vector.load %arg6[%c0, %c0_0] : memref<64x32xf32, #tpu.memory_space<vmem>>, vector<64x32xf32>
    %c0_1 = arith.constant 0 : index
    %c0_2 = arith.constant 0 : index
    %1 = vector.load %arg7[%c0_1, %c0_2] : memref<7x32xf32, #tpu.memory_space<vmem>>, vector<1x32xf32>
    %c1 = arith.constant 1 : index
    %c0_3 = arith.constant 0 : index
    %2 = vector.load %arg7[%c1, %c0_3] : memref<7x32xf32, #tpu.memory_space<vmem>>, vector<1x32xf32>
    %c2 = arith.constant 2 : index
    %c0_4 = arith.constant 0 : index
    %3 = vector.load %arg7[%c2, %c0_4] : memref<7x32xf32, #tpu.memory_space<vmem>>, vector<1x32xf32>
    %c3 = arith.constant 3 : index
    %c0_5 = arith.constant 0 : index
    %4 = vector.load %arg7[%c3, %c0_5] : memref<7x32xf32, #tpu.memory_space<vmem>>, vector<1x32xf32>
    %c4 = arith.constant 4 : index
    %c0_6 = arith.constant 0 : index
    %5 = vector.load %arg7[%c4, %c0_6] : memref<7x32xf32, #tpu.memory_space<vmem>>, vector<1x32xf32>
    %c5 = arith.constant 5 : index
    %c0_7 = arith.constant 0 : index
    %6 = vector.load %arg7[%c5, %c0_7] : memref<7x32xf32, #tpu.memory_space<vmem>>, vector<1x32xf32>
    %c6 = arith.constant 6 : index
    %c0_8 = arith.constant 0 : index
    %7 = vector.load %arg7[%c6, %c0_8] : memref<7x32xf32, #tpu.memory_space<vmem>>, vector<1x32xf32>
    %c0_9 = arith.constant 0 : index
    %c0_10 = arith.constant 0 : index
    %c0_11 = arith.constant 0 : index
    %8 = vector.load %arg0[%c0_9, %c0_10, %c0_11] : memref<16x2x32xf32, #tpu.memory_space<vmem>>, vector<16x1x32xf32>
    %9 = vector.shape_cast %8 : vector<16x1x32xf32> to vector<16x32xf32>
    %c0_12 = arith.constant 0 : index
    %c0_13 = arith.constant 0 : index
    %c0_14 = arith.constant 0 : index
    %10 = vector.load %arg1[%c0_12, %c0_13, %c0_14] : memref<16x2x32xf32, #tpu.memory_space<vmem>>, vector<16x1x32xf32>
    %11 = vector.shape_cast %10 : vector<16x1x32xf32> to vector<16x32xf32>
    %c0_15 = arith.constant 0 : index
    %c0_16 = arith.constant 0 : index
    %c0_17 = arith.constant 0 : index
    %12 = vector.load %arg2[%c0_15, %c0_16, %c0_17] : memref<16x2x32xf32, #tpu.memory_space<vmem>>, vector<16x1x32xf32>
    %13 = vector.shape_cast %12 : vector<16x1x32xf32> to vector<16x32xf32>
    %c0_18 = arith.constant 0 : index
    %c0_19 = arith.constant 0 : index
    %c0_20 = arith.constant 0 : index
    %14 = vector.load %arg3[%c0_18, %c0_19, %c0_20] : memref<16x2x32xf32, #tpu.memory_space<vmem>>, vector<16x1x32xf32>
    %15 = vector.shape_cast %14 : vector<16x1x32xf32> to vector<16x32xf32>
    %16 = arith.addf %9, %13 : vector<16x32xf32>
    %c0_21 = arith.constant 0 : index
    %c0_22 = arith.constant 0 : index
    %17 = vector.load %arg4[%c0_21, %c0_22] : memref<32x320xf32, #tpu.memory_space<vmem>>, vector<32x64xf32>
    %cst = arith.constant dense<0.000000e+00> : vector<16x64xf32>
    %18 = tpu.matmul %16, %17, %cst {dimension_numbers = #tpu.dot_dimension_numbers<[1], [0], [0], [1], [0, 0, 1, 1], [], []>} : vector<16x32xf32>, vector<32x64xf32>, vector<16x64xf32> -> vector<16x64xf32>
    %c0_23 = arith.constant 0 : index
    %c0_24 = arith.constant 0 : index
    %19 = vector.load %arg5[%c0_23, %c0_24] : memref<1x320xf32, #tpu.memory_space<vmem>>, vector<1x64xf32>
    %20 = vector.broadcast %19 : vector<1x64xf32> to vector<16x64xf32>
    %21 = arith.addf %18, %20 : vector<16x64xf32>
    %c0_25 = arith.constant 0 : index
    %c64 = arith.constant 64 : index
    %22 = vector.load %arg4[%c0_25, %c64] : memref<32x320xf32, #tpu.memory_space<vmem>>, vector<32x32xf32>
    %cst_26 = arith.constant dense<0.000000e+00> : vector<16x32xf32>
    %23 = tpu.matmul %9, %22, %cst_26 {dimension_numbers = #tpu.dot_dimension_numbers<[1], [0], [0], [1], [0, 0, 1, 1], [], []>} : vector<16x32xf32>, vector<32x32xf32>, vector<16x32xf32> -> vector<16x32xf32>
    %c0_27 = arith.constant 0 : index
    %c64_28 = arith.constant 64 : index
    %24 = vector.load %arg5[%c0_27, %c64_28] : memref<1x320xf32, #tpu.memory_space<vmem>>, vector<1x32xf32>
    %25 = vector.broadcast %24 : vector<1x32xf32> to vector<16x32xf32>
    %26 = arith.addf %23, %25 : vector<16x32xf32>
    %27 = vector.extract_strided_slice %21 {offsets = [0, 0], sizes = [16, 32], strides = [1, 1]} : vector<16x64xf32> to vector<16x32xf32>
    %28 = vector.extract_strided_slice %21 {offsets = [0, 32], sizes = [16, 32], strides = [1, 1]} : vector<16x64xf32> to vector<16x32xf32>
    %c0_29 = arith.constant 0 : index
    %c96 = arith.constant 96 : index
    %29 = vector.load %arg4[%c0_29, %c96] : memref<32x320xf32, #tpu.memory_space<vmem>>, vector<32x32xf32>
    %30 = vector.extract_strided_slice %27 {offsets = [0, 0], sizes = [16, 8], strides = [1, 1]} : vector<16x32xf32> to vector<16x8xf32>
    %31 = vector.extract_strided_slice %28 {offsets = [0, 0], sizes = [16, 8], strides = [1, 1]} : vector<16x32xf32> to vector<16x8xf32>
    %cst_30 = arith.constant dense<0.000000e+00> : vector<16x16xf32>
    %32 = tpu.matmul %30, %31, %cst_30 {dimension_numbers = #tpu.dot_dimension_numbers<[1], [1], [0], [0], [0, 0, 1, 0], [], []>} : vector<16x8xf32>, vector<16x8xf32>, vector<16x16xf32> -> vector<16x16xf32>
    %cst_31 = arith.constant dense<0xFF800000> : vector<16xf32>
    %33 = vector.multi_reduction <maximumf>, %32, %cst_31 [1] : vector<16x16xf32> to vector<16xf32>
    %34 = vector.shape_cast %33 : vector<16xf32> to vector<16x1xf32>
    %35 = vector.broadcast %34 : vector<16x1xf32> to vector<16x16xf32>
    %36 = arith.subf %32, %35 : vector<16x16xf32>
    %37 = math.exp %36 : vector<16x16xf32>
    %cst_32 = arith.constant dense<0.000000e+00> : vector<16xf32>
    %38 = vector.multi_reduction <add>, %37, %cst_32 [1] : vector<16x16xf32> to vector<16xf32>
    %39 = vector.shape_cast %38 : vector<16xf32> to vector<16x1xf32>
    %40 = vector.broadcast %39 : vector<16x1xf32> to vector<16x16xf32>
    %41 = arith.divf %37, %40 : vector<16x16xf32>
    %42 = vector.extract_strided_slice %26 {offsets = [0, 0], sizes = [16, 8], strides = [1, 1]} : vector<16x32xf32> to vector<16x8xf32>
    %cst_33 = arith.constant dense<0.000000e+00> : vector<16x8xf32>
    %43 = tpu.matmul %41, %42, %cst_33 {dimension_numbers = #tpu.dot_dimension_numbers<[1], [0], [0], [1], [0, 0, 1, 1], [], []>} : vector<16x16xf32>, vector<16x8xf32>, vector<16x8xf32> -> vector<16x8xf32>
    %44 = vector.extract_strided_slice %29 {offsets = [0, 0], sizes = [8, 32], strides = [1, 1]} : vector<32x32xf32> to vector<8x32xf32>
    %cst_34 = arith.constant dense<0.000000e+00> : vector<16x32xf32>
    %45 = tpu.matmul %43, %44, %cst_34 {dimension_numbers = #tpu.dot_dimension_numbers<[1], [0], [0], [1], [0, 0, 1, 1], [], []>} : vector<16x8xf32>, vector<8x32xf32>, vector<16x32xf32> -> vector<16x32xf32>
    %46 = vector.extract_strided_slice %27 {offsets = [0, 8], sizes = [16, 8], strides = [1, 1]} : vector<16x32xf32> to vector<16x8xf32>
    %47 = vector.extract_strided_slice %28 {offsets = [0, 8], sizes = [16, 8], strides = [1, 1]} : vector<16x32xf32> to vector<16x8xf32>
    %cst_35 = arith.constant dense<0.000000e+00> : vector<16x16xf32>
    %48 = tpu.matmul %46, %47, %cst_35 {dimension_numbers = #tpu.dot_dimension_numbers<[1], [1], [0], [0], [0, 0, 1, 0], [], []>} : vector<16x8xf32>, vector<16x8xf32>, vector<16x16xf32> -> vector<16x16xf32>
    %cst_36 = arith.constant dense<0xFF800000> : vector<16xf32>
    %49 = vector.multi_reduction <maximumf>, %48, %cst_36 [1] : vector<16x16xf32> to vector<16xf32>
    %50 = vector.shape_cast %49 : vector<16xf32> to vector<16x1xf32>
    %51 = vector.broadcast %50 : vector<16x1xf32> to vector<16x16xf32>
    %52 = arith.subf %48, %51 : vector<16x16xf32>
    %53 = math.exp %52 : vector<16x16xf32>
    %cst_37 = arith.constant dense<0.000000e+00> : vector<16xf32>
    %54 = vector.multi_reduction <add>, %53, %cst_37 [1] : vector<16x16xf32> to vector<16xf32>
    %55 = vector.shape_cast %54 : vector<16xf32> to vector<16x1xf32>
    %56 = vector.broadcast %55 : vector<16x1xf32> to vector<16x16xf32>
    %57 = arith.divf %53, %56 : vector<16x16xf32>
    %58 = vector.extract_strided_slice %26 {offsets = [0, 8], sizes = [16, 8], strides = [1, 1]} : vector<16x32xf32> to vector<16x8xf32>
    %cst_38 = arith.constant dense<0.000000e+00> : vector<16x8xf32>
    %59 = tpu.matmul %57, %58, %cst_38 {dimension_numbers = #tpu.dot_dimension_numbers<[1], [0], [0], [1], [0, 0, 1, 1], [], []>} : vector<16x16xf32>, vector<16x8xf32>, vector<16x8xf32> -> vector<16x8xf32>
    %60 = vector.extract_strided_slice %29 {offsets = [8, 0], sizes = [8, 32], strides = [1, 1]} : vector<32x32xf32> to vector<8x32xf32>
    %cst_39 = arith.constant dense<0.000000e+00> : vector<16x32xf32>
    %61 = tpu.matmul %59, %60, %cst_39 {dimension_numbers = #tpu.dot_dimension_numbers<[1], [0], [0], [1], [0, 0, 1, 1], [], []>} : vector<16x8xf32>, vector<8x32xf32>, vector<16x32xf32> -> vector<16x32xf32>
    %62 = arith.addf %45, %61 : vector<16x32xf32>
    %63 = vector.extract_strided_slice %27 {offsets = [0, 16], sizes = [16, 8], strides = [1, 1]} : vector<16x32xf32> to vector<16x8xf32>
    %64 = vector.extract_strided_slice %28 {offsets = [0, 16], sizes = [16, 8], strides = [1, 1]} : vector<16x32xf32> to vector<16x8xf32>
    %cst_40 = arith.constant dense<0.000000e+00> : vector<16x16xf32>
    %65 = tpu.matmul %63, %64, %cst_40 {dimension_numbers = #tpu.dot_dimension_numbers<[1], [1], [0], [0], [0, 0, 1, 0], [], []>} : vector<16x8xf32>, vector<16x8xf32>, vector<16x16xf32> -> vector<16x16xf32>
    %cst_41 = arith.constant dense<0xFF800000> : vector<16xf32>
    %66 = vector.multi_reduction <maximumf>, %65, %cst_41 [1] : vector<16x16xf32> to vector<16xf32>
    %67 = vector.shape_cast %66 : vector<16xf32> to vector<16x1xf32>
    %68 = vector.broadcast %67 : vector<16x1xf32> to vector<16x16xf32>
    %69 = arith.subf %65, %68 : vector<16x16xf32>
    %70 = math.exp %69 : vector<16x16xf32>
    %cst_42 = arith.constant dense<0.000000e+00> : vector<16xf32>
    %71 = vector.multi_reduction <add>, %70, %cst_42 [1] : vector<16x16xf32> to vector<16xf32>
    %72 = vector.shape_cast %71 : vector<16xf32> to vector<16x1xf32>
    %73 = vector.broadcast %72 : vector<16x1xf32> to vector<16x16xf32>
    %74 = arith.divf %70, %73 : vector<16x16xf32>
    %75 = vector.extract_strided_slice %26 {offsets = [0, 16], sizes = [16, 8], strides = [1, 1]} : vector<16x32xf32> to vector<16x8xf32>
    %cst_43 = arith.constant dense<0.000000e+00> : vector<16x8xf32>
    %76 = tpu.matmul %74, %75, %cst_43 {dimension_numbers = #tpu.dot_dimension_numbers<[1], [0], [0], [1], [0, 0, 1, 1], [], []>} : vector<16x16xf32>, vector<16x8xf32>, vector<16x8xf32> -> vector<16x8xf32>
    %77 = vector.extract_strided_slice %29 {offsets = [16, 0], sizes = [8, 32], strides = [1, 1]} : vector<32x32xf32> to vector<8x32xf32>
    %cst_44 = arith.constant dense<0.000000e+00> : vector<16x32xf32>
    %78 = tpu.matmul %76, %77, %cst_44 {dimension_numbers = #tpu.dot_dimension_numbers<[1], [0], [0], [1], [0, 0, 1, 1], [], []>} : vector<16x8xf32>, vector<8x32xf32>, vector<16x32xf32> -> vector<16x32xf32>
    %79 = arith.addf %62, %78 : vector<16x32xf32>
    %80 = vector.extract_strided_slice %27 {offsets = [0, 24], sizes = [16, 8], strides = [1, 1]} : vector<16x32xf32> to vector<16x8xf32>
    %81 = vector.extract_strided_slice %28 {offsets = [0, 24], sizes = [16, 8], strides = [1, 1]} : vector<16x32xf32> to vector<16x8xf32>
    %cst_45 = arith.constant dense<0.000000e+00> : vector<16x16xf32>
    %82 = tpu.matmul %80, %81, %cst_45 {dimension_numbers = #tpu.dot_dimension_numbers<[1], [1], [0], [0], [0, 0, 1, 0], [], []>} : vector<16x8xf32>, vector<16x8xf32>, vector<16x16xf32> -> vector<16x16xf32>
    %cst_46 = arith.constant dense<0xFF800000> : vector<16xf32>
    %83 = vector.multi_reduction <maximumf>, %82, %cst_46 [1] : vector<16x16xf32> to vector<16xf32>
    %84 = vector.shape_cast %83 : vector<16xf32> to vector<16x1xf32>
    %85 = vector.broadcast %84 : vector<16x1xf32> to vector<16x16xf32>
    %86 = arith.subf %82, %85 : vector<16x16xf32>
    %87 = math.exp %86 : vector<16x16xf32>
    %cst_47 = arith.constant dense<0.000000e+00> : vector<16xf32>
    %88 = vector.multi_reduction <add>, %87, %cst_47 [1] : vector<16x16xf32> to vector<16xf32>
    %89 = vector.shape_cast %88 : vector<16xf32> to vector<16x1xf32>
    %90 = vector.broadcast %89 : vector<16x1xf32> to vector<16x16xf32>
    %91 = arith.divf %87, %90 : vector<16x16xf32>
    %92 = vector.extract_strided_slice %26 {offsets = [0, 24], sizes = [16, 8], strides = [1, 1]} : vector<16x32xf32> to vector<16x8xf32>
    %cst_48 = arith.constant dense<0.000000e+00> : vector<16x8xf32>
    %93 = tpu.matmul %91, %92, %cst_48 {dimension_numbers = #tpu.dot_dimension_numbers<[1], [0], [0], [1], [0, 0, 1, 1], [], []>} : vector<16x16xf32>, vector<16x8xf32>, vector<16x8xf32> -> vector<16x8xf32>
    %94 = vector.extract_strided_slice %29 {offsets = [24, 0], sizes = [8, 32], strides = [1, 1]} : vector<32x32xf32> to vector<8x32xf32>
    %cst_49 = arith.constant dense<0.000000e+00> : vector<16x32xf32>
    %95 = tpu.matmul %93, %94, %cst_49 {dimension_numbers = #tpu.dot_dimension_numbers<[1], [0], [0], [1], [0, 0, 1, 1], [], []>} : vector<16x8xf32>, vector<8x32xf32>, vector<16x32xf32> -> vector<16x32xf32>
    %96 = arith.addf %79, %95 : vector<16x32xf32>
    %c0_50 = arith.constant 0 : index
    %c96_51 = arith.constant 96 : index
    %97 = vector.load %arg5[%c0_50, %c96_51] : memref<1x320xf32, #tpu.memory_space<vmem>>, vector<1x32xf32>
    %98 = vector.broadcast %97 : vector<1x32xf32> to vector<16x32xf32>
    %99 = arith.addf %96, %98 : vector<16x32xf32>
    %100 = arith.addf %9, %99 : vector<16x32xf32>
    %cst_52 = arith.constant dense<0.000000e+00> : vector<16xf32>
    %101 = vector.multi_reduction <add>, %100, %cst_52 [1] : vector<16x32xf32> to vector<16xf32>
    %102 = vector.shape_cast %101 : vector<16xf32> to vector<16x1xf32>
    %cst_53 = arith.constant 3.200000e+01 : f32
    %103 = vector.broadcast %cst_53 : f32 to vector<16x1xf32>
    %104 = arith.divf %102, %103 : vector<16x1xf32>
    %105 = vector.broadcast %104 : vector<16x1xf32> to vector<16x32xf32>
    %106 = arith.subf %100, %105 : vector<16x32xf32>
    %107 = arith.mulf %106, %106 : vector<16x32xf32>
    %cst_54 = arith.constant dense<0.000000e+00> : vector<16xf32>
    %108 = vector.multi_reduction <add>, %107, %cst_54 [1] : vector<16x32xf32> to vector<16xf32>
    %109 = vector.shape_cast %108 : vector<16xf32> to vector<16x1xf32>
    %cst_55 = arith.constant 3.200000e+01 : f32
    %110 = vector.broadcast %cst_55 : f32 to vector<16x1xf32>
    %111 = arith.divf %109, %110 : vector<16x1xf32>
    %112 = vector.broadcast %104 : vector<16x1xf32> to vector<16x32xf32>
    %113 = arith.subf %100, %112 : vector<16x32xf32>
    %cst_56 = arith.constant 9.99999974E-6 : f32
    %114 = vector.broadcast %cst_56 : f32 to vector<16x1xf32>
    %115 = arith.addf %111, %114 : vector<16x1xf32>
    %116 = math.rsqrt %115 : vector<16x1xf32>
    %117 = vector.broadcast %116 : vector<16x1xf32> to vector<16x32xf32>
    %118 = arith.mulf %113, %117 : vector<16x32xf32>
    %119 = vector.broadcast %2 : vector<1x32xf32> to vector<16x32xf32>
    %120 = arith.mulf %118, %119 : vector<16x32xf32>
    %121 = vector.broadcast %3 : vector<1x32xf32> to vector<16x32xf32>
    %122 = arith.addf %120, %121 : vector<16x32xf32>
    %123 = arith.addf %122, %13 : vector<16x32xf32>
    %c0_57 = arith.constant 0 : index
    %c128 = arith.constant 128 : index
    %124 = vector.load %arg4[%c0_57, %c128] : memref<32x320xf32, #tpu.memory_space<vmem>>, vector<32x32xf32>
    %cst_58 = arith.constant dense<0.000000e+00> : vector<16x32xf32>
    %125 = tpu.matmul %123, %124, %cst_58 {dimension_numbers = #tpu.dot_dimension_numbers<[1], [0], [0], [1], [0, 0, 1, 1], [], []>} : vector<16x32xf32>, vector<32x32xf32>, vector<16x32xf32> -> vector<16x32xf32>
    %c0_59 = arith.constant 0 : index
    %c128_60 = arith.constant 128 : index
    %126 = vector.load %arg5[%c0_59, %c128_60] : memref<1x320xf32, #tpu.memory_space<vmem>>, vector<1x32xf32>
    %127 = vector.broadcast %126 : vector<1x32xf32> to vector<16x32xf32>
    %128 = arith.addf %125, %127 : vector<16x32xf32>
    %129 = arith.addf %11, %15 : vector<16x32xf32>
    %c0_61 = arith.constant 0 : index
    %c160 = arith.constant 160 : index
    %130 = vector.load %arg4[%c0_61, %c160] : memref<32x320xf32, #tpu.memory_space<vmem>>, vector<32x32xf32>
    %cst_62 = arith.constant dense<0.000000e+00> : vector<16x32xf32>
    %131 = tpu.matmul %129, %130, %cst_62 {dimension_numbers = #tpu.dot_dimension_numbers<[1], [0], [0], [1], [0, 0, 1, 1], [], []>} : vector<16x32xf32>, vector<32x32xf32>, vector<16x32xf32> -> vector<16x32xf32>
    %c0_63 = arith.constant 0 : index
    %c160_64 = arith.constant 160 : index
    %132 = vector.load %arg5[%c0_63, %c160_64] : memref<1x320xf32, #tpu.memory_space<vmem>>, vector<1x32xf32>
    %133 = vector.broadcast %132 : vector<1x32xf32> to vector<16x32xf32>
    %134 = arith.addf %131, %133 : vector<16x32xf32>
    %c0_65 = arith.constant 0 : index
    %c192 = arith.constant 192 : index
    %135 = vector.load %arg4[%c0_65, %c192] : memref<32x320xf32, #tpu.memory_space<vmem>>, vector<32x32xf32>
    %cst_66 = arith.constant dense<0.000000e+00> : vector<16x32xf32>
    %136 = tpu.matmul %11, %135, %cst_66 {dimension_numbers = #tpu.dot_dimension_numbers<[1], [0], [0], [1], [0, 0, 1, 1], [], []>} : vector<16x32xf32>, vector<32x32xf32>, vector<16x32xf32> -> vector<16x32xf32>
    %c0_67 = arith.constant 0 : index
    %c192_68 = arith.constant 192 : index
    %137 = vector.load %arg5[%c0_67, %c192_68] : memref<1x320xf32, #tpu.memory_space<vmem>>, vector<1x32xf32>
    %138 = vector.broadcast %137 : vector<1x32xf32> to vector<16x32xf32>
    %139 = arith.addf %136, %138 : vector<16x32xf32>
    %c0_69 = arith.constant 0 : index
    %c224 = arith.constant 224 : index
    %140 = vector.load %arg4[%c0_69, %c224] : memref<32x320xf32, #tpu.memory_space<vmem>>, vector<32x32xf32>
    %141 = vector.extract_strided_slice %128 {offsets = [0, 0], sizes = [16, 8], strides = [1, 1]} : vector<16x32xf32> to vector<16x8xf32>
    %142 = vector.extract_strided_slice %134 {offsets = [0, 0], sizes = [16, 8], strides = [1, 1]} : vector<16x32xf32> to vector<16x8xf32>
    %cst_70 = arith.constant dense<0.000000e+00> : vector<16x16xf32>
    %143 = tpu.matmul %141, %142, %cst_70 {dimension_numbers = #tpu.dot_dimension_numbers<[1], [1], [0], [0], [0, 0, 1, 0], [], []>} : vector<16x8xf32>, vector<16x8xf32>, vector<16x16xf32> -> vector<16x16xf32>
    %cst_71 = arith.constant dense<0xFF800000> : vector<16xf32>
    %144 = vector.multi_reduction <maximumf>, %143, %cst_71 [1] : vector<16x16xf32> to vector<16xf32>
    %145 = vector.shape_cast %144 : vector<16xf32> to vector<16x1xf32>
    %146 = vector.broadcast %145 : vector<16x1xf32> to vector<16x16xf32>
    %147 = arith.subf %143, %146 : vector<16x16xf32>
    %148 = math.exp %147 : vector<16x16xf32>
    %cst_72 = arith.constant dense<0.000000e+00> : vector<16xf32>
    %149 = vector.multi_reduction <add>, %148, %cst_72 [1] : vector<16x16xf32> to vector<16xf32>
    %150 = vector.shape_cast %149 : vector<16xf32> to vector<16x1xf32>
    %151 = vector.broadcast %150 : vector<16x1xf32> to vector<16x16xf32>
    %152 = arith.divf %148, %151 : vector<16x16xf32>
    %153 = vector.extract_strided_slice %139 {offsets = [0, 0], sizes = [16, 8], strides = [1, 1]} : vector<16x32xf32> to vector<16x8xf32>
    %cst_73 = arith.constant dense<0.000000e+00> : vector<16x8xf32>
    %154 = tpu.matmul %152, %153, %cst_73 {dimension_numbers = #tpu.dot_dimension_numbers<[1], [0], [0], [1], [0, 0, 1, 1], [], []>} : vector<16x16xf32>, vector<16x8xf32>, vector<16x8xf32> -> vector<16x8xf32>
    %155 = vector.extract_strided_slice %140 {offsets = [0, 0], sizes = [8, 32], strides = [1, 1]} : vector<32x32xf32> to vector<8x32xf32>
    %cst_74 = arith.constant dense<0.000000e+00> : vector<16x32xf32>
    %156 = tpu.matmul %154, %155, %cst_74 {dimension_numbers = #tpu.dot_dimension_numbers<[1], [0], [0], [1], [0, 0, 1, 1], [], []>} : vector<16x8xf32>, vector<8x32xf32>, vector<16x32xf32> -> vector<16x32xf32>
    %157 = vector.extract_strided_slice %128 {offsets = [0, 8], sizes = [16, 8], strides = [1, 1]} : vector<16x32xf32> to vector<16x8xf32>
    %158 = vector.extract_strided_slice %134 {offsets = [0, 8], sizes = [16, 8], strides = [1, 1]} : vector<16x32xf32> to vector<16x8xf32>
    %cst_75 = arith.constant dense<0.000000e+00> : vector<16x16xf32>
    %159 = tpu.matmul %157, %158, %cst_75 {dimension_numbers = #tpu.dot_dimension_numbers<[1], [1], [0], [0], [0, 0, 1, 0], [], []>} : vector<16x8xf32>, vector<16x8xf32>, vector<16x16xf32> -> vector<16x16xf32>
    %cst_76 = arith.constant dense<0xFF800000> : vector<16xf32>
    %160 = vector.multi_reduction <maximumf>, %159, %cst_76 [1] : vector<16x16xf32> to vector<16xf32>
    %161 = vector.shape_cast %160 : vector<16xf32> to vector<16x1xf32>
    %162 = vector.broadcast %161 : vector<16x1xf32> to vector<16x16xf32>
    %163 = arith.subf %159, %162 : vector<16x16xf32>
    %164 = math.exp %163 : vector<16x16xf32>
    %cst_77 = arith.constant dense<0.000000e+00> : vector<16xf32>
    %165 = vector.multi_reduction <add>, %164, %cst_77 [1] : vector<16x16xf32> to vector<16xf32>
    %166 = vector.shape_cast %165 : vector<16xf32> to vector<16x1xf32>
    %167 = vector.broadcast %166 : vector<16x1xf32> to vector<16x16xf32>
    %168 = arith.divf %164, %167 : vector<16x16xf32>
    %169 = vector.extract_strided_slice %139 {offsets = [0, 8], sizes = [16, 8], strides = [1, 1]} : vector<16x32xf32> to vector<16x8xf32>
    %cst_78 = arith.constant dense<0.000000e+00> : vector<16x8xf32>
    %170 = tpu.matmul %168, %169, %cst_78 {dimension_numbers = #tpu.dot_dimension_numbers<[1], [0], [0], [1], [0, 0, 1, 1], [], []>} : vector<16x16xf32>, vector<16x8xf32>, vector<16x8xf32> -> vector<16x8xf32>
    %171 = vector.extract_strided_slice %140 {offsets = [8, 0], sizes = [8, 32], strides = [1, 1]} : vector<32x32xf32> to vector<8x32xf32>
    %cst_79 = arith.constant dense<0.000000e+00> : vector<16x32xf32>
    %172 = tpu.matmul %170, %171, %cst_79 {dimension_numbers = #tpu.dot_dimension_numbers<[1], [0], [0], [1], [0, 0, 1, 1], [], []>} : vector<16x8xf32>, vector<8x32xf32>, vector<16x32xf32> -> vector<16x32xf32>
    %173 = arith.addf %156, %172 : vector<16x32xf32>
    %174 = vector.extract_strided_slice %128 {offsets = [0, 16], sizes = [16, 8], strides = [1, 1]} : vector<16x32xf32> to vector<16x8xf32>
    %175 = vector.extract_strided_slice %134 {offsets = [0, 16], sizes = [16, 8], strides = [1, 1]} : vector<16x32xf32> to vector<16x8xf32>
    %cst_80 = arith.constant dense<0.000000e+00> : vector<16x16xf32>
    %176 = tpu.matmul %174, %175, %cst_80 {dimension_numbers = #tpu.dot_dimension_numbers<[1], [1], [0], [0], [0, 0, 1, 0], [], []>} : vector<16x8xf32>, vector<16x8xf32>, vector<16x16xf32> -> vector<16x16xf32>
    %cst_81 = arith.constant dense<0xFF800000> : vector<16xf32>
    %177 = vector.multi_reduction <maximumf>, %176, %cst_81 [1] : vector<16x16xf32> to vector<16xf32>
    %178 = vector.shape_cast %177 : vector<16xf32> to vector<16x1xf32>
    %179 = vector.broadcast %178 : vector<16x1xf32> to vector<16x16xf32>
    %180 = arith.subf %176, %179 : vector<16x16xf32>
    %181 = math.exp %180 : vector<16x16xf32>
    %cst_82 = arith.constant dense<0.000000e+00> : vector<16xf32>
    %182 = vector.multi_reduction <add>, %181, %cst_82 [1] : vector<16x16xf32> to vector<16xf32>
    %183 = vector.shape_cast %182 : vector<16xf32> to vector<16x1xf32>
    %184 = vector.broadcast %183 : vector<16x1xf32> to vector<16x16xf32>
    %185 = arith.divf %181, %184 : vector<16x16xf32>
    %186 = vector.extract_strided_slice %139 {offsets = [0, 16], sizes = [16, 8], strides = [1, 1]} : vector<16x32xf32> to vector<16x8xf32>
    %cst_83 = arith.constant dense<0.000000e+00> : vector<16x8xf32>
    %187 = tpu.matmul %185, %186, %cst_83 {dimension_numbers = #tpu.dot_dimension_numbers<[1], [0], [0], [1], [0, 0, 1, 1], [], []>} : vector<16x16xf32>, vector<16x8xf32>, vector<16x8xf32> -> vector<16x8xf32>
    %188 = vector.extract_strided_slice %140 {offsets = [16, 0], sizes = [8, 32], strides = [1, 1]} : vector<32x32xf32> to vector<8x32xf32>
    %cst_84 = arith.constant dense<0.000000e+00> : vector<16x32xf32>
    %189 = tpu.matmul %187, %188, %cst_84 {dimension_numbers = #tpu.dot_dimension_numbers<[1], [0], [0], [1], [0, 0, 1, 1], [], []>} : vector<16x8xf32>, vector<8x32xf32>, vector<16x32xf32> -> vector<16x32xf32>
    %190 = arith.addf %173, %189 : vector<16x32xf32>
    %191 = vector.extract_strided_slice %128 {offsets = [0, 24], sizes = [16, 8], strides = [1, 1]} : vector<16x32xf32> to vector<16x8xf32>
    %192 = vector.extract_strided_slice %134 {offsets = [0, 24], sizes = [16, 8], strides = [1, 1]} : vector<16x32xf32> to vector<16x8xf32>
    %cst_85 = arith.constant dense<0.000000e+00> : vector<16x16xf32>
    %193 = tpu.matmul %191, %192, %cst_85 {dimension_numbers = #tpu.dot_dimension_numbers<[1], [1], [0], [0], [0, 0, 1, 0], [], []>} : vector<16x8xf32>, vector<16x8xf32>, vector<16x16xf32> -> vector<16x16xf32>
    %cst_86 = arith.constant dense<0xFF800000> : vector<16xf32>
    %194 = vector.multi_reduction <maximumf>, %193, %cst_86 [1] : vector<16x16xf32> to vector<16xf32>
    %195 = vector.shape_cast %194 : vector<16xf32> to vector<16x1xf32>
    %196 = vector.broadcast %195 : vector<16x1xf32> to vector<16x16xf32>
    %197 = arith.subf %193, %196 : vector<16x16xf32>
    %198 = math.exp %197 : vector<16x16xf32>
    %cst_87 = arith.constant dense<0.000000e+00> : vector<16xf32>
    %199 = vector.multi_reduction <add>, %198, %cst_87 [1] : vector<16x16xf32> to vector<16xf32>
    %200 = vector.shape_cast %199 : vector<16xf32> to vector<16x1xf32>
    %201 = vector.broadcast %200 : vector<16x1xf32> to vector<16x16xf32>
    %202 = arith.divf %198, %201 : vector<16x16xf32>
    %203 = vector.extract_strided_slice %139 {offsets = [0, 24], sizes = [16, 8], strides = [1, 1]} : vector<16x32xf32> to vector<16x8xf32>
    %cst_88 = arith.constant dense<0.000000e+00> : vector<16x8xf32>
    %204 = tpu.matmul %202, %203, %cst_88 {dimension_numbers = #tpu.dot_dimension_numbers<[1], [0], [0], [1], [0, 0, 1, 1], [], []>} : vector<16x16xf32>, vector<16x8xf32>, vector<16x8xf32> -> vector<16x8xf32>
    %205 = vector.extract_strided_slice %140 {offsets = [24, 0], sizes = [8, 32], strides = [1, 1]} : vector<32x32xf32> to vector<8x32xf32>
    %cst_89 = arith.constant dense<0.000000e+00> : vector<16x32xf32>
    %206 = tpu.matmul %204, %205, %cst_89 {dimension_numbers = #tpu.dot_dimension_numbers<[1], [0], [0], [1], [0, 0, 1, 1], [], []>} : vector<16x8xf32>, vector<8x32xf32>, vector<16x32xf32> -> vector<16x32xf32>
    %207 = arith.addf %190, %206 : vector<16x32xf32>
    %c0_90 = arith.constant 0 : index
    %c224_91 = arith.constant 224 : index
    %208 = vector.load %arg5[%c0_90, %c224_91] : memref<1x320xf32, #tpu.memory_space<vmem>>, vector<1x32xf32>
    %209 = vector.broadcast %208 : vector<1x32xf32> to vector<16x32xf32>
    %210 = arith.addf %207, %209 : vector<16x32xf32>
    %211 = arith.addf %122, %210 : vector<16x32xf32>
    %cst_92 = arith.constant dense<0.000000e+00> : vector<16xf32>
    %212 = vector.multi_reduction <add>, %211, %cst_92 [1] : vector<16x32xf32> to vector<16xf32>
    %213 = vector.shape_cast %212 : vector<16xf32> to vector<16x1xf32>
    %cst_93 = arith.constant 3.200000e+01 : f32
    %214 = vector.broadcast %cst_93 : f32 to vector<16x1xf32>
    %215 = arith.divf %213, %214 : vector<16x1xf32>
    %216 = vector.broadcast %215 : vector<16x1xf32> to vector<16x32xf32>
    %217 = arith.subf %211, %216 : vector<16x32xf32>
    %218 = arith.mulf %217, %217 : vector<16x32xf32>
    %cst_94 = arith.constant dense<0.000000e+00> : vector<16xf32>
    %219 = vector.multi_reduction <add>, %218, %cst_94 [1] : vector<16x32xf32> to vector<16xf32>
    %220 = vector.shape_cast %219 : vector<16xf32> to vector<16x1xf32>
    %cst_95 = arith.constant 3.200000e+01 : f32
    %221 = vector.broadcast %cst_95 : f32 to vector<16x1xf32>
    %222 = arith.divf %220, %221 : vector<16x1xf32>
    %223 = vector.broadcast %215 : vector<16x1xf32> to vector<16x32xf32>
    %224 = arith.subf %211, %223 : vector<16x32xf32>
    %cst_96 = arith.constant 9.99999974E-6 : f32
    %225 = vector.broadcast %cst_96 : f32 to vector<16x1xf32>
    %226 = arith.addf %222, %225 : vector<16x1xf32>
    %227 = math.rsqrt %226 : vector<16x1xf32>
    %228 = vector.broadcast %227 : vector<16x1xf32> to vector<16x32xf32>
    %229 = arith.mulf %224, %228 : vector<16x32xf32>
    %230 = vector.broadcast %4 : vector<1x32xf32> to vector<16x32xf32>
    %231 = arith.mulf %229, %230 : vector<16x32xf32>
    %232 = vector.broadcast %5 : vector<1x32xf32> to vector<16x32xf32>
    %233 = arith.addf %231, %232 : vector<16x32xf32>
    %c0_97 = arith.constant 0 : index
    %c256 = arith.constant 256 : index
    %234 = vector.load %arg4[%c0_97, %c256] : memref<32x320xf32, #tpu.memory_space<vmem>>, vector<32x64xf32>
    %cst_98 = arith.constant dense<0.000000e+00> : vector<16x64xf32>
    %235 = tpu.matmul %233, %234, %cst_98 {dimension_numbers = #tpu.dot_dimension_numbers<[1], [0], [0], [1], [0, 0, 1, 1], [], []>} : vector<16x32xf32>, vector<32x64xf32>, vector<16x64xf32> -> vector<16x64xf32>
    %c0_99 = arith.constant 0 : index
    %c256_100 = arith.constant 256 : index
    %236 = vector.load %arg5[%c0_99, %c256_100] : memref<1x320xf32, #tpu.memory_space<vmem>>, vector<1x64xf32>
    %237 = vector.broadcast %236 : vector<1x64xf32> to vector<16x64xf32>
    %238 = arith.addf %235, %237 : vector<16x64xf32>
    %cst_101 = arith.constant 0.000000e+00 : f32
    %239 = vector.broadcast %cst_101 : f32 to vector<16x64xf32>
    %240 = arith.maximumf %238, %239 : vector<16x64xf32>
    %cst_102 = arith.constant dense<0.000000e+00> : vector<16x32xf32>
    %241 = tpu.matmul %240, %0, %cst_102 {dimension_numbers = #tpu.dot_dimension_numbers<[1], [0], [0], [1], [0, 0, 1, 1], [], []>} : vector<16x64xf32>, vector<64x32xf32>, vector<16x32xf32> -> vector<16x32xf32>
    %242 = vector.broadcast %1 : vector<1x32xf32> to vector<16x32xf32>
    %243 = arith.addf %241, %242 : vector<16x32xf32>
    %244 = arith.addf %233, %243 : vector<16x32xf32>
    %cst_103 = arith.constant dense<0.000000e+00> : vector<16xf32>
    %245 = vector.multi_reduction <add>, %244, %cst_103 [1] : vector<16x32xf32> to vector<16xf32>
    %246 = vector.shape_cast %245 : vector<16xf32> to vector<16x1xf32>
    %cst_104 = arith.constant 3.200000e+01 : f32
    %247 = vector.broadcast %cst_104 : f32 to vector<16x1xf32>
    %248 = arith.divf %246, %247 : vector<16x1xf32>
    %249 = vector.broadcast %248 : vector<16x1xf32> to vector<16x32xf32>
    %250 = arith.subf %244, %249 : vector<16x32xf32>
    %251 = arith.mulf %250, %250 : vector<16x32xf32>
    %cst_105 = arith.constant dense<0.000000e+00> : vector<16xf32>
    %252 = vector.multi_reduction <add>, %251, %cst_105 [1] : vector<16x32xf32> to vector<16xf32>
    %253 = vector.shape_cast %252 : vector<16xf32> to vector<16x1xf32>
    %cst_106 = arith.constant 3.200000e+01 : f32
    %254 = vector.broadcast %cst_106 : f32 to vector<16x1xf32>
    %255 = arith.divf %253, %254 : vector<16x1xf32>
    %256 = vector.broadcast %248 : vector<16x1xf32> to vector<16x32xf32>
    %257 = arith.subf %244, %256 : vector<16x32xf32>
    %cst_107 = arith.constant 9.99999974E-6 : f32
    %258 = vector.broadcast %cst_107 : f32 to vector<16x1xf32>
    %259 = arith.addf %255, %258 : vector<16x1xf32>
    %260 = math.rsqrt %259 : vector<16x1xf32>
    %261 = vector.broadcast %260 : vector<16x1xf32> to vector<16x32xf32>
    %262 = arith.mulf %257, %261 : vector<16x32xf32>
    %263 = vector.broadcast %6 : vector<1x32xf32> to vector<16x32xf32>
    %264 = arith.mulf %262, %263 : vector<16x32xf32>
    %265 = vector.broadcast %7 : vector<1x32xf32> to vector<16x32xf32>
    %266 = arith.addf %264, %265 : vector<16x32xf32>
    %c0_108 = arith.constant 0 : index
    %c0_109 = arith.constant 0 : index
    %c0_110 = arith.constant 0 : index
    %267 = vector.load %arg8[%c0_108, %c0_109, %c0_110] : memref<16x2x32xf32, #tpu.memory_space<vmem>>, vector<16x1x32xf32>
    %268 = vector.shape_cast %267 : vector<16x1x32xf32> to vector<16x32xf32>
    %269 = vector.shape_cast %266 : vector<16x32xf32> to vector<16x1x32xf32>
    tpu.vector_store %arg8[%c0_108, %c0_109, %c0_110], %269 {strides = array<i32>} : memref<16x2x32xf32, #tpu.memory_space<vmem>>, vector<16x1x32xf32>,
    %c0_111 = arith.constant 0 : index
    %c1_112 = arith.constant 1 : index
    %c0_113 = arith.constant 0 : index
    %270 = vector.load %arg0[%c0_111, %c1_112, %c0_113] : memref<16x2x32xf32, #tpu.memory_space<vmem>>, vector<16x1x32xf32>
    %271 = vector.shape_cast %270 : vector<16x1x32xf32> to vector<16x32xf32>
    %c0_114 = arith.constant 0 : index
    %c1_115 = arith.constant 1 : index
    %c0_116 = arith.constant 0 : index
    %272 = vector.load %arg1[%c0_114, %c1_115, %c0_116] : memref<16x2x32xf32, #tpu.memory_space<vmem>>, vector<16x1x32xf32>
    %273 = vector.shape_cast %272 : vector<16x1x32xf32> to vector<16x32xf32>
    %c0_117 = arith.constant 0 : index
    %c1_118 = arith.constant 1 : index
    %c0_119 = arith.constant 0 : index
    %274 = vector.load %arg2[%c0_117, %c1_118, %c0_119] : memref<16x2x32xf32, #tpu.memory_space<vmem>>, vector<16x1x32xf32>
    %275 = vector.shape_cast %274 : vector<16x1x32xf32> to vector<16x32xf32>
    %c0_120 = arith.constant 0 : index
    %c1_121 = arith.constant 1 : index
    %c0_122 = arith.constant 0 : index
    %276 = vector.load %arg3[%c0_120, %c1_121, %c0_122] : memref<16x2x32xf32, #tpu.memory_space<vmem>>, vector<16x1x32xf32>
    %277 = vector.shape_cast %276 : vector<16x1x32xf32> to vector<16x32xf32>
    %278 = arith.addf %271, %275 : vector<16x32xf32>
    %c0_123 = arith.constant 0 : index
    %c0_124 = arith.constant 0 : index
    %279 = vector.load %arg4[%c0_123, %c0_124] : memref<32x320xf32, #tpu.memory_space<vmem>>, vector<32x64xf32>
    %cst_125 = arith.constant dense<0.000000e+00> : vector<16x64xf32>
    %280 = tpu.matmul %278, %279, %cst_125 {dimension_numbers = #tpu.dot_dimension_numbers<[1], [0], [0], [1], [0, 0, 1, 1], [], []>} : vector<16x32xf32>, vector<32x64xf32>, vector<16x64xf32> -> vector<16x64xf32>
    %c0_126 = arith.constant 0 : index
    %c0_127 = arith.constant 0 : index
    %281 = vector.load %arg5[%c0_126, %c0_127] : memref<1x320xf32, #tpu.memory_space<vmem>>, vector<1x64xf32>
    %282 = vector.broadcast %281 : vector<1x64xf32> to vector<16x64xf32>
    %283 = arith.addf %280, %282 : vector<16x64xf32>
    %c0_128 = arith.constant 0 : index
    %c64_129 = arith.constant 64 : index
    %284 = vector.load %arg4[%c0_128, %c64_129] : memref<32x320xf32, #tpu.memory_space<vmem>>, vector<32x32xf32>
    %cst_130 = arith.constant dense<0.000000e+00> : vector<16x32xf32>
    %285 = tpu.matmul %271, %284, %cst_130 {dimension_numbers = #tpu.dot_dimension_numbers<[1], [0], [0], [1], [0, 0, 1, 1], [], []>} : vector<16x32xf32>, vector<32x32xf32>, vector<16x32xf32> -> vector<16x32xf32>
    %c0_131 = arith.constant 0 : index
    %c64_132 = arith.constant 64 : index
    %286 = vector.load %arg5[%c0_131, %c64_132] : memref<1x320xf32, #tpu.memory_space<vmem>>, vector<1x32xf32>
    %287 = vector.broadcast %286 : vector<1x32xf32> to vector<16x32xf32>
    %288 = arith.addf %285, %287 : vector<16x32xf32>
    %289 = vector.extract_strided_slice %283 {offsets = [0, 0], sizes = [16, 32], strides = [1, 1]} : vector<16x64xf32> to vector<16x32xf32>
    %290 = vector.extract_strided_slice %283 {offsets = [0, 32], sizes = [16, 32], strides = [1, 1]} : vector<16x64xf32> to vector<16x32xf32>
    %c0_133 = arith.constant 0 : index
    %c96_134 = arith.constant 96 : index
    %291 = vector.load %arg4[%c0_133, %c96_134] : memref<32x320xf32, #tpu.memory_space<vmem>>, vector<32x32xf32>
    %292 = vector.extract_strided_slice %289 {offsets = [0, 0], sizes = [16, 8], strides = [1, 1]} : vector<16x32xf32> to vector<16x8xf32>
    %293 = vector.extract_strided_slice %290 {offsets = [0, 0], sizes = [16, 8], strides = [1, 1]} : vector<16x32xf32> to vector<16x8xf32>
    %cst_135 = arith.constant dense<0.000000e+00> : vector<16x16xf32>
    %294 = tpu.matmul %292, %293, %cst_135 {dimension_numbers = #tpu.dot_dimension_numbers<[1], [1], [0], [0], [0, 0, 1, 0], [], []>} : vector<16x8xf32>, vector<16x8xf32>, vector<16x16xf32> -> vector<16x16xf32>
    %cst_136 = arith.constant dense<0xFF800000> : vector<16xf32>
    %295 = vector.multi_reduction <maximumf>, %294, %cst_136 [1] : vector<16x16xf32> to vector<16xf32>
    %296 = vector.shape_cast %295 : vector<16xf32> to vector<16x1xf32>
    %297 = vector.broadcast %296 : vector<16x1xf32> to vector<16x16xf32>
    %298 = arith.subf %294, %297 : vector<16x16xf32>
    %299 = math.exp %298 : vector<16x16xf32>
    %cst_137 = arith.constant dense<0.000000e+00> : vector<16xf32>
    %300 = vector.multi_reduction <add>, %299, %cst_137 [1] : vector<16x16xf32> to vector<16xf32>
    %301 = vector.shape_cast %300 : vector<16xf32> to vector<16x1xf32>
    %302 = vector.broadcast %301 : vector<16x1xf32> to vector<16x16xf32>
    %303 = arith.divf %299, %302 : vector<16x16xf32>
    %304 = vector.extract_strided_slice %288 {offsets = [0, 0], sizes = [16, 8], strides = [1, 1]} : vector<16x32xf32> to vector<16x8xf32>
    %cst_138 = arith.constant dense<0.000000e+00> : vector<16x8xf32>
    %305 = tpu.matmul %303, %304, %cst_138 {dimension_numbers = #tpu.dot_dimension_numbers<[1], [0], [0], [1], [0, 0, 1, 1], [], []>} : vector<16x16xf32>, vector<16x8xf32>, vector<16x8xf32> -> vector<16x8xf32>
    %306 = vector.extract_strided_slice %291 {offsets = [0, 0], sizes = [8, 32], strides = [1, 1]} : vector<32x32xf32> to vector<8x32xf32>
    %cst_139 = arith.constant dense<0.000000e+00> : vector<16x32xf32>
    %307 = tpu.matmul %305, %306, %cst_139 {dimension_numbers = #tpu.dot_dimension_numbers<[1], [0], [0], [1], [0, 0, 1, 1], [], []>} : vector<16x8xf32>, vector<8x32xf32>, vector<16x32xf32> -> vector<16x32xf32>
    %308 = vector.extract_strided_slice %289 {offsets = [0, 8], sizes = [16, 8], strides = [1, 1]} : vector<16x32xf32> to vector<16x8xf32>
    %309 = vector.extract_strided_slice %290 {offsets = [0, 8], sizes = [16, 8], strides = [1, 1]} : vector<16x32xf32> to vector<16x8xf32>
    %cst_140 = arith.constant dense<0.000000e+00> : vector<16x16xf32>
    %310 = tpu.matmul %308, %309, %cst_140 {dimension_numbers = #tpu.dot_dimension_numbers<[1], [1], [0], [0], [0, 0, 1, 0], [], []>} : vector<16x8xf32>, vector<16x8xf32>, vector<16x16xf32> -> vector<16x16xf32>
    %cst_141 = arith.constant dense<0xFF800000> : vector<16xf32>
    %311 = vector.multi_reduction <maximumf>, %310, %cst_141 [1] : vector<16x16xf32> to vector<16xf32>
    %312 = vector.shape_cast %311 : vector<16xf32> to vector<16x1xf32>
    %313 = vector.broadcast %312 : vector<16x1xf32> to vector<16x16xf32>
    %314 = arith.subf %310, %313 : vector<16x16xf32>
    %315 = math.exp %314 : vector<16x16xf32>
    %cst_142 = arith.constant dense<0.000000e+00> : vector<16xf32>
    %316 = vector.multi_reduction <add>, %315, %cst_142 [1] : vector<16x16xf32> to vector<16xf32>
    %317 = vector.shape_cast %316 : vector<16xf32> to vector<16x1xf32>
    %318 = vector.broadcast %317 : vector<16x1xf32> to vector<16x16xf32>
    %319 = arith.divf %315, %318 : vector<16x16xf32>
    %320 = vector.extract_strided_slice %288 {offsets = [0, 8], sizes = [16, 8], strides = [1, 1]} : vector<16x32xf32> to vector<16x8xf32>
    %cst_143 = arith.constant dense<0.000000e+00> : vector<16x8xf32>
    %321 = tpu.matmul %319, %320, %cst_143 {dimension_numbers = #tpu.dot_dimension_numbers<[1], [0], [0], [1], [0, 0, 1, 1], [], []>} : vector<16x16xf32>, vector<16x8xf32>, vector<16x8xf32> -> vector<16x8xf32>
    %322 = vector.extract_strided_slice %291 {offsets = [8, 0], sizes = [8, 32], strides = [1, 1]} : vector<32x32xf32> to vector<8x32xf32>
    %cst_144 = arith.constant dense<0.000000e+00> : vector<16x32xf32>
    %323 = tpu.matmul %321, %322, %cst_144 {dimension_numbers = #tpu.dot_dimension_numbers<[1], [0], [0], [1], [0, 0, 1, 1], [], []>} : vector<16x8xf32>, vector<8x32xf32>, vector<16x32xf32> -> vector<16x32xf32>
    %324 = arith.addf %307, %323 : vector<16x32xf32>
    %325 = vector.extract_strided_slice %289 {offsets = [0, 16], sizes = [16, 8], strides = [1, 1]} : vector<16x32xf32> to vector<16x8xf32>
    %326 = vector.extract_strided_slice %290 {offsets = [0, 16], sizes = [16, 8], strides = [1, 1]} : vector<16x32xf32> to vector<16x8xf32>
    %cst_145 = arith.constant dense<0.000000e+00> : vector<16x16xf32>
    %327 = tpu.matmul %325, %326, %cst_145 {dimension_numbers = #tpu.dot_dimension_numbers<[1], [1], [0], [0], [0, 0, 1, 0], [], []>} : vector<16x8xf32>, vector<16x8xf32>, vector<16x16xf32> -> vector<16x16xf32>
    %cst_146 = arith.constant dense<0xFF800000> : vector<16xf32>
    %328 = vector.multi_reduction <maximumf>, %327, %cst_146 [1] : vector<16x16xf32> to vector<16xf32>
    %329 = vector.shape_cast %328 : vector<16xf32> to vector<16x1xf32>
    %330 = vector.broadcast %329 : vector<16x1xf32> to vector<16x16xf32>
    %331 = arith.subf %327, %330 : vector<16x16xf32>
    %332 = math.exp %331 : vector<16x16xf32>
    %cst_147 = arith.constant dense<0.000000e+00> : vector<16xf32>
    %333 = vector.multi_reduction <add>, %332, %cst_147 [1] : vector<16x16xf32> to vector<16xf32>
    %334 = vector.shape_cast %333 : vector<16xf32> to vector<16x1xf32>
    %335 = vector.broadcast %334 : vector<16x1xf32> to vector<16x16xf32>
    %336 = arith.divf %332, %335 : vector<16x16xf32>
    %337 = vector.extract_strided_slice %288 {offsets = [0, 16], sizes = [16, 8], strides = [1, 1]} : vector<16x32xf32> to vector<16x8xf32>
    %cst_148 = arith.constant dense<0.000000e+00> : vector<16x8xf32>
    %338 = tpu.matmul %336, %337, %cst_148 {dimension_numbers = #tpu.dot_dimension_numbers<[1], [0], [0], [1], [0, 0, 1, 1], [], []>} : vector<16x16xf32>, vector<16x8xf32>, vector<16x8xf32> -> vector<16x8xf32>
    %339 = vector.extract_strided_slice %291 {offsets = [16, 0], sizes = [8, 32], strides = [1, 1]} : vector<32x32xf32> to vector<8x32xf32>
    %cst_149 = arith.constant dense<0.000000e+00> : vector<16x32xf32>
    %340 = tpu.matmul %338, %339, %cst_149 {dimension_numbers = #tpu.dot_dimension_numbers<[1], [0], [0], [1], [0, 0, 1, 1], [], []>} : vector<16x8xf32>, vector<8x32xf32>, vector<16x32xf32> -> vector<16x32xf32>
    %341 = arith.addf %324, %340 : vector<16x32xf32>
    %342 = vector.extract_strided_slice %289 {offsets = [0, 24], sizes = [16, 8], strides = [1, 1]} : vector<16x32xf32> to vector<16x8xf32>
    %343 = vector.extract_strided_slice %290 {offsets = [0, 24], sizes = [16, 8], strides = [1, 1]} : vector<16x32xf32> to vector<16x8xf32>
    %cst_150 = arith.constant dense<0.000000e+00> : vector<16x16xf32>
    %344 = tpu.matmul %342, %343, %cst_150 {dimension_numbers = #tpu.dot_dimension_numbers<[1], [1], [0], [0], [0, 0, 1, 0], [], []>} : vector<16x8xf32>, vector<16x8xf32>, vector<16x16xf32> -> vector<16x16xf32>
    %cst_151 = arith.constant dense<0xFF800000> : vector<16xf32>
    %345 = vector.multi_reduction <maximumf>, %344, %cst_151 [1] : vector<16x16xf32> to vector<16xf32>
    %346 = vector.shape_cast %345 : vector<16xf32> to vector<16x1xf32>
    %347 = vector.broadcast %346 : vector<16x1xf32> to vector<16x16xf32>
    %348 = arith.subf %344, %347 : vector<16x16xf32>
    %349 = math.exp %348 : vector<16x16xf32>
    %cst_152 = arith.constant dense<0.000000e+00> : vector<16xf32>
    %350 = vector.multi_reduction <add>, %349, %cst_152 [1] : vector<16x16xf32> to vector<16xf32>
    %351 = vector.shape_cast %350 : vector<16xf32> to vector<16x1xf32>
    %352 = vector.broadcast %351 : vector<16x1xf32> to vector<16x16xf32>
    %353 = arith.divf %349, %352 : vector<16x16xf32>
    %354 = vector.extract_strided_slice %288 {offsets = [0, 24], sizes = [16, 8], strides = [1, 1]} : vector<16x32xf32> to vector<16x8xf32>
    %cst_153 = arith.constant dense<0.000000e+00> : vector<16x8xf32>
    %355 = tpu.matmul %353, %354, %cst_153 {dimension_numbers = #tpu.dot_dimension_numbers<[1], [0], [0], [1], [0, 0, 1, 1], [], []>} : vector<16x16xf32>, vector<16x8xf32>, vector<16x8xf32> -> vector<16x8xf32>
    %356 = vector.extract_strided_slice %291 {offsets = [24, 0], sizes = [8, 32], strides = [1, 1]} : vector<32x32xf32> to vector<8x32xf32>
    %cst_154 = arith.constant dense<0.000000e+00> : vector<16x32xf32>
    %357 = tpu.matmul %355, %356, %cst_154 {dimension_numbers = #tpu.dot_dimension_numbers<[1], [0], [0], [1], [0, 0, 1, 1], [], []>} : vector<16x8xf32>, vector<8x32xf32>, vector<16x32xf32> -> vector<16x32xf32>
    %358 = arith.addf %341, %357 : vector<16x32xf32>
    %c0_155 = arith.constant 0 : index
    %c96_156 = arith.constant 96 : index
    %359 = vector.load %arg5[%c0_155, %c96_156] : memref<1x320xf32, #tpu.memory_space<vmem>>, vector<1x32xf32>
    %360 = vector.broadcast %359 : vector<1x32xf32> to vector<16x32xf32>
    %361 = arith.addf %358, %360 : vector<16x32xf32>
    %362 = arith.addf %271, %361 : vector<16x32xf32>
    %cst_157 = arith.constant dense<0.000000e+00> : vector<16xf32>
    %363 = vector.multi_reduction <add>, %362, %cst_157 [1] : vector<16x32xf32> to vector<16xf32>
    %364 = vector.shape_cast %363 : vector<16xf32> to vector<16x1xf32>
    %cst_158 = arith.constant 3.200000e+01 : f32
    %365 = vector.broadcast %cst_158 : f32 to vector<16x1xf32>
    %366 = arith.divf %364, %365 : vector<16x1xf32>
    %367 = vector.broadcast %366 : vector<16x1xf32> to vector<16x32xf32>
    %368 = arith.subf %362, %367 : vector<16x32xf32>
    %369 = arith.mulf %368, %368 : vector<16x32xf32>
    %cst_159 = arith.constant dense<0.000000e+00> : vector<16xf32>
    %370 = vector.multi_reduction <add>, %369, %cst_159 [1] : vector<16x32xf32> to vector<16xf32>
    %371 = vector.shape_cast %370 : vector<16xf32> to vector<16x1xf32>
    %cst_160 = arith.constant 3.200000e+01 : f32
    %372 = vector.broadcast %cst_160 : f32 to vector<16x1xf32>
    %373 = arith.divf %371, %372 : vector<16x1xf32>
    %374 = vector.broadcast %366 : vector<16x1xf32> to vector<16x32xf32>
    %375 = arith.subf %362, %374 : vector<16x32xf32>
    %cst_161 = arith.constant 9.99999974E-6 : f32
    %376 = vector.broadcast %cst_161 : f32 to vector<16x1xf32>
    %377 = arith.addf %373, %376 : vector<16x1xf32>
    %378 = math.rsqrt %377 : vector<16x1xf32>
    %379 = vector.broadcast %378 : vector<16x1xf32> to vector<16x32xf32>
    %380 = arith.mulf %375, %379 : vector<16x32xf32>
    %381 = vector.broadcast %2 : vector<1x32xf32> to vector<16x32xf32>
    %382 = arith.mulf %380, %381 : vector<16x32xf32>
    %383 = vector.broadcast %3 : vector<1x32xf32> to vector<16x32xf32>
    %384 = arith.addf %382, %383 : vector<16x32xf32>
    %385 = arith.addf %384, %275 : vector<16x32xf32>
    %c0_162 = arith.constant 0 : index
    %c128_163 = arith.constant 128 : index
    %386 = vector.load %arg4[%c0_162, %c128_163] : memref<32x320xf32, #tpu.memory_space<vmem>>, vector<32x32xf32>
    %cst_164 = arith.constant dense<0.000000e+00> : vector<16x32xf32>
    %387 = tpu.matmul %385, %386, %cst_164 {dimension_numbers = #tpu.dot_dimension_numbers<[1], [0], [0], [1], [0, 0, 1, 1], [], []>} : vector<16x32xf32>, vector<32x32xf32>, vector<16x32xf32> -> vector<16x32xf32>
    %c0_165 = arith.constant 0 : index
    %c128_166 = arith.constant 128 : index
    %388 = vector.load %arg5[%c0_165, %c128_166] : memref<1x320xf32, #tpu.memory_space<vmem>>, vector<1x32xf32>
    %389 = vector.broadcast %388 : vector<1x32xf32> to vector<16x32xf32>
    %390 = arith.addf %387, %389 : vector<16x32xf32>
    %391 = arith.addf %273, %277 : vector<16x32xf32>
    %c0_167 = arith.constant 0 : index
    %c160_168 = arith.constant 160 : index
    %392 = vector.load %arg4[%c0_167, %c160_168] : memref<32x320xf32, #tpu.memory_space<vmem>>, vector<32x32xf32>
    %cst_169 = arith.constant dense<0.000000e+00> : vector<16x32xf32>
    %393 = tpu.matmul %391, %392, %cst_169 {dimension_numbers = #tpu.dot_dimension_numbers<[1], [0], [0], [1], [0, 0, 1, 1], [], []>} : vector<16x32xf32>, vector<32x32xf32>, vector<16x32xf32> -> vector<16x32xf32>
    %c0_170 = arith.constant 0 : index
    %c160_171 = arith.constant 160 : index
    %394 = vector.load %arg5[%c0_170, %c160_171] : memref<1x320xf32, #tpu.memory_space<vmem>>, vector<1x32xf32>
    %395 = vector.broadcast %394 : vector<1x32xf32> to vector<16x32xf32>
    %396 = arith.addf %393, %395 : vector<16x32xf32>
    %c0_172 = arith.constant 0 : index
    %c192_173 = arith.constant 192 : index
    %397 = vector.load %arg4[%c0_172, %c192_173] : memref<32x320xf32, #tpu.memory_space<vmem>>, vector<32x32xf32>
    %cst_174 = arith.constant dense<0.000000e+00> : vector<16x32xf32>
    %398 = tpu.matmul %273, %397, %cst_174 {dimension_numbers = #tpu.dot_dimension_numbers<[1], [0], [0], [1], [0, 0, 1, 1], [], []>} : vector<16x32xf32>, vector<32x32xf32>, vector<16x32xf32> -> vector<16x32xf32>
    %c0_175 = arith.constant 0 : index
    %c192_176 = arith.constant 192 : index
    %399 = vector.load %arg5[%c0_175, %c192_176] : memref<1x320xf32, #tpu.memory_space<vmem>>, vector<1x32xf32>
    %400 = vector.broadcast %399 : vector<1x32xf32> to vector<16x32xf32>
    %401 = arith.addf %398, %400 : vector<16x32xf32>
    %c0_177 = arith.constant 0 : index
    %c224_178 = arith.constant 224 : index
    %402 = vector.load %arg4[%c0_177, %c224_178] : memref<32x320xf32, #tpu.memory_space<vmem>>, vector<32x32xf32>
    %403 = vector.extract_strided_slice %390 {offsets = [0, 0], sizes = [16, 8], strides = [1, 1]} : vector<16x32xf32> to vector<16x8xf32>
    %404 = vector.extract_strided_slice %396 {offsets = [0, 0], sizes = [16, 8], strides = [1, 1]} : vector<16x32xf32> to vector<16x8xf32>
    %cst_179 = arith.constant dense<0.000000e+00> : vector<16x16xf32>
    %405 = tpu.matmul %403, %404, %cst_179 {dimension_numbers = #tpu.dot_dimension_numbers<[1], [1], [0], [0], [0, 0, 1, 0], [], []>} : vector<16x8xf32>, vector<16x8xf32>, vector<16x16xf32> -> vector<16x16xf32>
    %cst_180 = arith.constant dense<0xFF800000> : vector<16xf32>
    %406 = vector.multi_reduction <maximumf>, %405, %cst_180 [1] : vector<16x16xf32> to vector<16xf32>
    %407 = vector.shape_cast %406 : vector<16xf32> to vector<16x1xf32>
    %408 = vector.broadcast %407 : vector<16x1xf32> to vector<16x16xf32>
    %409 = arith.subf %405, %408 : vector<16x16xf32>
    %410 = math.exp %409 : vector<16x16xf32>
    %cst_181 = arith.constant dense<0.000000e+00> : vector<16xf32>
    %411 = vector.multi_reduction <add>, %410, %cst_181 [1] : vector<16x16xf32> to vector<16xf32>
    %412 = vector.shape_cast %411 : vector<16xf32> to vector<16x1xf32>
    %413 = vector.broadcast %412 : vector<16x1xf32> to vector<16x16xf32>
    %414 = arith.divf %410, %413 : vector<16x16xf32>
    %415 = vector.extract_strided_slice %401 {offsets = [0, 0], sizes = [16, 8], strides = [1, 1]} : vector<16x32xf32> to vector<16x8xf32>
    %cst_182 = arith.constant dense<0.000000e+00> : vector<16x8xf32>
    %416 = tpu.matmul %414, %415, %cst_182 {dimension_numbers = #tpu.dot_dimension_numbers<[1], [0], [0], [1], [0, 0, 1, 1], [], []>} : vector<16x16xf32>, vector<16x8xf32>, vector<16x8xf32> -> vector<16x8xf32>
    %417 = vector.extract_strided_slice %402 {offsets = [0, 0], sizes = [8, 32], strides = [1, 1]} : vector<32x32xf32> to vector<8x32xf32>
    %cst_183 = arith.constant dense<0.000000e+00> : vector<16x32xf32>
    %418 = tpu.matmul %416, %417, %cst_183 {dimension_numbers = #tpu.dot_dimension_numbers<[1], [0], [0], [1], [0, 0, 1, 1], [], []>} : vector<16x8xf32>, vector<8x32xf32>, vector<16x32xf32> -> vector<16x32xf32>
    %419 = vector.extract_strided_slice %390 {offsets = [0, 8], sizes = [16, 8], strides = [1, 1]} : vector<16x32xf32> to vector<16x8xf32>
    %420 = vector.extract_strided_slice %396 {offsets = [0, 8], sizes = [16, 8], strides = [1, 1]} : vector<16x32xf32> to vector<16x8xf32>
    %cst_184 = arith.constant dense<0.000000e+00> : vector<16x16xf32>
    %421 = tpu.matmul %419, %420, %cst_184 {dimension_numbers = #tpu.dot_dimension_numbers<[1], [1], [0], [0], [0, 0, 1, 0], [], []>} : vector<16x8xf32>, vector<16x8xf32>, vector<16x16xf32> -> vector<16x16xf32>
    %cst_185 = arith.constant dense<0xFF800000> : vector<16xf32>
    %422 = vector.multi_reduction <maximumf>, %421, %cst_185 [1] : vector<16x16xf32> to vector<16xf32>
    %423 = vector.shape_cast %422 : vector<16xf32> to vector<16x1xf32>
    %424 = vector.broadcast %423 : vector<16x1xf32> to vector<16x16xf32>
    %425 = arith.subf %421, %424 : vector<16x16xf32>
    %426 = math.exp %425 : vector<16x16xf32>
    %cst_186 = arith.constant dense<0.000000e+00> : vector<16xf32>
    %427 = vector.multi_reduction <add>, %426, %cst_186 [1] : vector<16x16xf32> to vector<16xf32>
    %428 = vector.shape_cast %427 : vector<16xf32> to vector<16x1xf32>
    %429 = vector.broadcast %428 : vector<16x1xf32> to vector<16x16xf32>
    %430 = arith.divf %426, %429 : vector<16x16xf32>
    %431 = vector.extract_strided_slice %401 {offsets = [0, 8], sizes = [16, 8], strides = [1, 1]} : vector<16x32xf32> to vector<16x8xf32>
    %cst_187 = arith.constant dense<0.000000e+00> : vector<16x8xf32>
    %432 = tpu.matmul %430, %431, %cst_187 {dimension_numbers = #tpu.dot_dimension_numbers<[1], [0], [0], [1], [0, 0, 1, 1], [], []>} : vector<16x16xf32>, vector<16x8xf32>, vector<16x8xf32> -> vector<16x8xf32>
    %433 = vector.extract_strided_slice %402 {offsets = [8, 0], sizes = [8, 32], strides = [1, 1]} : vector<32x32xf32> to vector<8x32xf32>
    %cst_188 = arith.constant dense<0.000000e+00> : vector<16x32xf32>
    %434 = tpu.matmul %432, %433, %cst_188 {dimension_numbers = #tpu.dot_dimension_numbers<[1], [0], [0], [1], [0, 0, 1, 1], [], []>} : vector<16x8xf32>, vector<8x32xf32>, vector<16x32xf32> -> vector<16x32xf32>
    %435 = arith.addf %418, %434 : vector<16x32xf32>
    %436 = vector.extract_strided_slice %390 {offsets = [0, 16], sizes = [16, 8], strides = [1, 1]} : vector<16x32xf32> to vector<16x8xf32>
    %437 = vector.extract_strided_slice %396 {offsets = [0, 16], sizes = [16, 8], strides = [1, 1]} : vector<16x32xf32> to vector<16x8xf32>
    %cst_189 = arith.constant dense<0.000000e+00> : vector<16x16xf32>
    %438 = tpu.matmul %436, %437, %cst_189 {dimension_numbers = #tpu.dot_dimension_numbers<[1], [1], [0], [0], [0, 0, 1, 0], [], []>} : vector<16x8xf32>, vector<16x8xf32>, vector<16x16xf32> -> vector<16x16xf32>
    %cst_190 = arith.constant dense<0xFF800000> : vector<16xf32>
    %439 = vector.multi_reduction <maximumf>, %438, %cst_190 [1] : vector<16x16xf32> to vector<16xf32>
    %440 = vector.shape_cast %439 : vector<16xf32> to vector<16x1xf32>
    %441 = vector.broadcast %440 : vector<16x1xf32> to vector<16x16xf32>
    %442 = arith.subf %438, %441 : vector<16x16xf32>
    %443 = math.exp %442 : vector<16x16xf32>
    %cst_191 = arith.constant dense<0.000000e+00> : vector<16xf32>
    %444 = vector.multi_reduction <add>, %443, %cst_191 [1] : vector<16x16xf32> to vector<16xf32>
    %445 = vector.shape_cast %444 : vector<16xf32> to vector<16x1xf32>
    %446 = vector.broadcast %445 : vector<16x1xf32> to vector<16x16xf32>
    %447 = arith.divf %443, %446 : vector<16x16xf32>
    %448 = vector.extract_strided_slice %401 {offsets = [0, 16], sizes = [16, 8], strides = [1, 1]} : vector<16x32xf32> to vector<16x8xf32>
    %cst_192 = arith.constant dense<0.000000e+00> : vector<16x8xf32>
    %449 = tpu.matmul %447, %448, %cst_192 {dimension_numbers = #tpu.dot_dimension_numbers<[1], [0], [0], [1], [0, 0, 1, 1], [], []>} : vector<16x16xf32>, vector<16x8xf32>, vector<16x8xf32> -> vector<16x8xf32>
    %450 = vector.extract_strided_slice %402 {offsets = [16, 0], sizes = [8, 32], strides = [1, 1]} : vector<32x32xf32> to vector<8x32xf32>
    %cst_193 = arith.constant dense<0.000000e+00> : vector<16x32xf32>
    %451 = tpu.matmul %449, %450, %cst_193 {dimension_numbers = #tpu.dot_dimension_numbers<[1], [0], [0], [1], [0, 0, 1, 1], [], []>} : vector<16x8xf32>, vector<8x32xf32>, vector<16x32xf32> -> vector<16x32xf32>
    %452 = arith.addf %435, %451 : vector<16x32xf32>
    %453 = vector.extract_strided_slice %390 {offsets = [0, 24], sizes = [16, 8], strides = [1, 1]} : vector<16x32xf32> to vector<16x8xf32>
    %454 = vector.extract_strided_slice %396 {offsets = [0, 24], sizes = [16, 8], strides = [1, 1]} : vector<16x32xf32> to vector<16x8xf32>
    %cst_194 = arith.constant dense<0.000000e+00> : vector<16x16xf32>
    %455 = tpu.matmul %453, %454, %cst_194 {dimension_numbers = #tpu.dot_dimension_numbers<[1], [1], [0], [0], [0, 0, 1, 0], [], []>} : vector<16x8xf32>, vector<16x8xf32>, vector<16x16xf32> -> vector<16x16xf32>
    %cst_195 = arith.constant dense<0xFF800000> : vector<16xf32>
    %456 = vector.multi_reduction <maximumf>, %455, %cst_195 [1] : vector<16x16xf32> to vector<16xf32>
    %457 = vector.shape_cast %456 : vector<16xf32> to vector<16x1xf32>
    %458 = vector.broadcast %457 : vector<16x1xf32> to vector<16x16xf32>
    %459 = arith.subf %455, %458 : vector<16x16xf32>
    %460 = math.exp %459 : vector<16x16xf32>
    %cst_196 = arith.constant dense<0.000000e+00> : vector<16xf32>
    %461 = vector.multi_reduction <add>, %460, %cst_196 [1] : vector<16x16xf32> to vector<16xf32>
    %462 = vector.shape_cast %461 : vector<16xf32> to vector<16x1xf32>
    %463 = vector.broadcast %462 : vector<16x1xf32> to vector<16x16xf32>
    %464 = arith.divf %460, %463 : vector<16x16xf32>
    %465 = vector.extract_strided_slice %401 {offsets = [0, 24], sizes = [16, 8], strides = [1, 1]} : vector<16x32xf32> to vector<16x8xf32>
    %cst_197 = arith.constant dense<0.000000e+00> : vector<16x8xf32>
    %466 = tpu.matmul %464, %465, %cst_197 {dimension_numbers = #tpu.dot_dimension_numbers<[1], [0], [0], [1], [0, 0, 1, 1], [], []>} : vector<16x16xf32>, vector<16x8xf32>, vector<16x8xf32> -> vector<16x8xf32>
    %467 = vector.extract_strided_slice %402 {offsets = [24, 0], sizes = [8, 32], strides = [1, 1]} : vector<32x32xf32> to vector<8x32xf32>
    %cst_198 = arith.constant dense<0.000000e+00> : vector<16x32xf32>
    %468 = tpu.matmul %466, %467, %cst_198 {dimension_numbers = #tpu.dot_dimension_numbers<[1], [0], [0], [1], [0, 0, 1, 1], [], []>} : vector<16x8xf32>, vector<8x32xf32>, vector<16x32xf32> -> vector<16x32xf32>
    %469 = arith.addf %452, %468 : vector<16x32xf32>
    %c0_199 = arith.constant 0 : index
    %c224_200 = arith.constant 224 : index
    %470 = vector.load %arg5[%c0_199, %c224_200] : memref<1x320xf32, #tpu.memory_space<vmem>>, vector<1x32xf32>
    %471 = vector.broadcast %470 : vector<1x32xf32> to vector<16x32xf32>
    %472 = arith.addf %469, %471 : vector<16x32xf32>
    %473 = arith.addf %384, %472 : vector<16x32xf32>
    %cst_201 = arith.constant dense<0.000000e+00> : vector<16xf32>
    %474 = vector.multi_reduction <add>, %473, %cst_201 [1] : vector<16x32xf32> to vector<16xf32>
    %475 = vector.shape_cast %474 : vector<16xf32> to vector<16x1xf32>
    %cst_202 = arith.constant 3.200000e+01 : f32
    %476 = vector.broadcast %cst_202 : f32 to vector<16x1xf32>
    %477 = arith.divf %475, %476 : vector<16x1xf32>
    %478 = vector.broadcast %477 : vector<16x1xf32> to vector<16x32xf32>
    %479 = arith.subf %473, %478 : vector<16x32xf32>
    %480 = arith.mulf %479, %479 : vector<16x32xf32>
    %cst_203 = arith.constant dense<0.000000e+00> : vector<16xf32>
    %481 = vector.multi_reduction <add>, %480, %cst_203 [1] : vector<16x32xf32> to vector<16xf32>
    %482 = vector.shape_cast %481 : vector<16xf32> to vector<16x1xf32>
    %cst_204 = arith.constant 3.200000e+01 : f32
    %483 = vector.broadcast %cst_204 : f32 to vector<16x1xf32>
    %484 = arith.divf %482, %483 : vector<16x1xf32>
    %485 = vector.broadcast %477 : vector<16x1xf32> to vector<16x32xf32>
    %486 = arith.subf %473, %485 : vector<16x32xf32>
    %cst_205 = arith.constant 9.99999974E-6 : f32
    %487 = vector.broadcast %cst_205 : f32 to vector<16x1xf32>
    %488 = arith.addf %484, %487 : vector<16x1xf32>
    %489 = math.rsqrt %488 : vector<16x1xf32>
    %490 = vector.broadcast %489 : vector<16x1xf32> to vector<16x32xf32>
    %491 = arith.mulf %486, %490 : vector<16x32xf32>
    %492 = vector.broadcast %4 : vector<1x32xf32> to vector<16x32xf32>
    %493 = arith.mulf %491, %492 : vector<16x32xf32>
    %494 = vector.broadcast %5 : vector<1x32xf32> to vector<16x32xf32>
    %495 = arith.addf %493, %494 : vector<16x32xf32>
    %c0_206 = arith.constant 0 : index
    %c256_207 = arith.constant 256 : index
    %496 = vector.load %arg4[%c0_206, %c256_207] : memref<32x320xf32, #tpu.memory_space<vmem>>, vector<32x64xf32>
    %cst_208 = arith.constant dense<0.000000e+00> : vector<16x64xf32>
    %497 = tpu.matmul %495, %496, %cst_208 {dimension_numbers = #tpu.dot_dimension_numbers<[1], [0], [0], [1], [0, 0, 1, 1], [], []>} : vector<16x32xf32>, vector<32x64xf32>, vector<16x64xf32> -> vector<16x64xf32>
    %c0_209 = arith.constant 0 : index
    %c256_210 = arith.constant 256 : index
    %498 = vector.load %arg5[%c0_209, %c256_210] : memref<1x320xf32, #tpu.memory_space<vmem>>, vector<1x64xf32>
    %499 = vector.broadcast %498 : vector<1x64xf32> to vector<16x64xf32>
    %500 = arith.addf %497, %499 : vector<16x64xf32>
    %cst_211 = arith.constant 0.000000e+00 : f32
    %501 = vector.broadcast %cst_211 : f32 to vector<16x64xf32>
    %502 = arith.maximumf %500, %501 : vector<16x64xf32>
    %cst_212 = arith.constant dense<0.000000e+00> : vector<16x32xf32>
    %503 = tpu.matmul %502, %0, %cst_212 {dimension_numbers = #tpu.dot_dimension_numbers<[1], [0], [0], [1], [0, 0, 1, 1], [], []>} : vector<16x64xf32>, vector<64x32xf32>, vector<16x32xf32> -> vector<16x32xf32>
    %504 = vector.broadcast %1 : vector<1x32xf32> to vector<16x32xf32>
    %505 = arith.addf %503, %504 : vector<16x32xf32>
    %506 = arith.addf %495, %505 : vector<16x32xf32>
    %cst_213 = arith.constant dense<0.000000e+00> : vector<16xf32>
    %507 = vector.multi_reduction <add>, %506, %cst_213 [1] : vector<16x32xf32> to vector<16xf32>
    %508 = vector.shape_cast %507 : vector<16xf32> to vector<16x1xf32>
    %cst_214 = arith.constant 3.200000e+01 : f32
    %509 = vector.broadcast %cst_214 : f32 to vector<16x1xf32>
    %510 = arith.divf %508, %509 : vector<16x1xf32>
    %511 = vector.broadcast %510 : vector<16x1xf32> to vector<16x32xf32>
    %512 = arith.subf %506, %511 : vector<16x32xf32>
    %513 = arith.mulf %512, %512 : vector<16x32xf32>
    %cst_215 = arith.constant dense<0.000000e+00> : vector<16xf32>
    %514 = vector.multi_reduction <add>, %513, %cst_215 [1] : vector<16x32xf32> to vector<16xf32>
    %515 = vector.shape_cast %514 : vector<16xf32> to vector<16x1xf32>
    %cst_216 = arith.constant 3.200000e+01 : f32
    %516 = vector.broadcast %cst_216 : f32 to vector<16x1xf32>
    %517 = arith.divf %515, %516 : vector<16x1xf32>
    %518 = vector.broadcast %510 : vector<16x1xf32> to vector<16x32xf32>
    %519 = arith.subf %506, %518 : vector<16x32xf32>
    %cst_217 = arith.constant 9.99999974E-6 : f32
    %520 = vector.broadcast %cst_217 : f32 to vector<16x1xf32>
    %521 = arith.addf %517, %520 : vector<16x1xf32>
    %522 = math.rsqrt %521 : vector<16x1xf32>
    %523 = vector.broadcast %522 : vector<16x1xf32> to vector<16x32xf32>
    %524 = arith.mulf %519, %523 : vector<16x32xf32>
    %525 = vector.broadcast %6 : vector<1x32xf32> to vector<16x32xf32>
    %526 = arith.mulf %524, %525 : vector<16x32xf32>
    %527 = vector.broadcast %7 : vector<1x32xf32> to vector<16x32xf32>
    %528 = arith.addf %526, %527 : vector<16x32xf32>
    %c0_218 = arith.constant 0 : index
    %c1_219 = arith.constant 1 : index
    %c0_220 = arith.constant 0 : index
    %529 = vector.load %arg8[%c0_218, %c1_219, %c0_220] : memref<16x2x32xf32, #tpu.memory_space<vmem>>, vector<16x1x32xf32>
    %530 = vector.shape_cast %529 : vector<16x1x32xf32> to vector<16x32xf32>
    %531 = vector.shape_cast %528 : vector<16x32xf32> to vector<16x1x32xf32>
    tpu.vector_store %arg8[%c0_218, %c1_219, %c0_220], %531 {strides = array<i32>} : memref<16x2x32xf32, #tpu.memory_space<vmem>>, vector<16x1x32xf32>,
    return
  }
}

</mosaic_0001>

<bundles_post_ra>
// kernel: transformer_decoder_layer.1
= control target key start
LH: loop header
LB: loop body
LE: loop exit
PB: predicated region body
PF: predicated region fallthrough
CT: control target
= control target key end

     0   :  { %13 = vsyncpa [#allocation3], 0  ;;  %s13229_s0 = inlined_call_operand.hbm [shape: f32[16,2,32], index: 0, kind: input, shape index: {}]   ;;  %s13230_s1 = inlined_call_operand.hbm [shape: f32[16,2,32], index: 1, kind: input, shape index: {}]   ;;  %s13231_s2 = inlined_call_operand.hbm [shape: f32[16,2,32], index: 2, kind: input, shape index: {}]   ;;  %s13232_s3 = inlined_call_operand.hbm [shape: f32[16,2,32], index: 3, kind: input, shape index: {}]   ;;  %s13233_s4 = inlined_call_operand.vmem [shape: f32[32,320], index: 4, kind: input, shape index: {}]   ;;  %s13234_s5 = inlined_call_operand.vmem [shape: f32[1,320], index: 5, kind: input, shape index: {}]   ;;  %s13235_s6 = inlined_call_operand.vmem [shape: f32[64,32], index: 6, kind: input, shape index: {}]   ;;  %s13236_s7 = inlined_call_operand.vmem [shape: f32[7,32], index: 7, kind: input, shape index: {}]   ;;  %s13237_s8 = inlined_call_operand.hbm [shape: f32[16,2,32], index: 8, kind: output, shape index: {}]  }
   0x1   :  { %14 = vsyncpa [#allocation6], 0 }
   0x2   :  { %15 = vsyncpa [#allocation9], 0 }
   0x3   :  { %16 = vsyncpa [#allocation4], 0  ;;  %s10346_s27 = smov [#allocation5]   ;;  %s10347_s29 = smov [#allocation2]  }
   0x4   :  { %s34_s28 = sshll.u32 %s10346_s27, 4  ;;  %s22_s30 = sshll.u32 %s10347_s29, 4  ;;  %s35_s28 = int_to_ptr.vmem [resolvable:$true] %s34_s28  ;;  %s10406_s30 = int_to_ptr.vmem [resolvable:$true] %s22_s30 }
   0x5   :  { %s10228_s11 = scalar_lea.hbm %s13230_s1, 512 }
   0x6   :  { %p10229_p0 = scmp.ne.s32.totalorder %s13230_s1, %s10228_s11  ;;  %p10232_p1 = scmp.lt.u32.totalorder %s10228_s11, %s13230_s1 }
   0x8   :  { %p10234_p2 = pnand %p10232_p1, %p10229_p0 }
   0xa   :  { %10237 = shalt.err (!%p10234_p2)
}
   0xb   :  { %s10238_s16 = scalar_lea.vmem %s35_s28, 512  ;;  %p10243_p4 = scmp.lt.s32.totalorder %s35_s28, %s35_s28 }
   0xc   :  { %p10239_p3 = scmp.ne.s32.totalorder %s35_s28, %s10238_s16  ;;  %p10244_p5 = scmp.lt.s32.totalorder %s10238_s16, %s10238_s16 }
   0xe   :  { %p10245_p6 = por %p10244_p5, %p10243_p4 }
  0x10   :  { %p10246_p7 = pnand %p10245_p6, %p10239_p3 }
  0x12   :  { %10249 = shalt.err (!%p10246_p7)
}
  0x13   :  { %s10348_s17 = smov 32   ;;  %s10349_s18 = smov 2  }
  0x14   :  { %40 = dma.hbm_to_vmem [thread:$0]  %s13230_s1, 512, %s35_s28, [#allocation6], %s10348_s17, %s10348_s17, %s10349_s18  }
  0x15   :  { %s10250_s23 = scalar_lea.hbm %s13229_s0, 512 }
  0x16   :  { %p10251_p8 = scmp.ne.s32.totalorder %s13229_s0, %s10250_s23  ;;  %p10254_p9 = scmp.lt.u32.totalorder %s10250_s23, %s13229_s0 }
  0x18   :  { %p10256_p10 = pnand %p10254_p9, %p10251_p8 }
  0x1a   :  { %10259 = shalt.err (!%p10256_p10)
}
  0x1b   :  { %s10260_s29 = scalar_lea.vmem %s10406_s30, 512  ;;  %p10265_p12 = scmp.lt.s32.totalorder %s10406_s30, %s10406_s30 }
  0x1c   :  { %p10261_p11 = scmp.ne.s32.totalorder %s10406_s30, %s10260_s29  ;;  %p10266_p13 = scmp.lt.s32.totalorder %s10260_s29, %s10260_s29 }
  0x1e   :  { %p10267_p0 = por %p10266_p13, %p10265_p12 }
  0x20   :  { %p10268_p1 = pnand %p10267_p0, %p10261_p11 }
  0x22   :  { %10271 = shalt.err (!%p10268_p1)
}
  0x23   :  { %28 = dma.hbm_to_vmem [thread:$0]  %s13229_s0, 512, %s10406_s30, [#allocation3], %s10348_s17, %s10348_s17, %s10349_s18  }
  0x24   :  { %s10350_s9 = smov [#allocation7]   ;;  %s10351_s11 = smov [#allocation8]  }
  0x25   :  { %s46_s10 = sshll.u32 %s10350_s9, 4  ;;  %s58_s12 = sshll.u32 %s10351_s11, 4  ;;  %s47_s10 = int_to_ptr.vmem [resolvable:$true] %s46_s10  ;;  %s10443_s12 = int_to_ptr.vmem [resolvable:$true] %s58_s12 }
  0x26   :  { %s10272_s15 = scalar_lea.hbm %s13231_s2, 512 }
  0x27   :  { %p10273_p2 = scmp.ne.s32.totalorder %s13231_s2, %s10272_s15  ;;  %p10276_p3 = scmp.lt.u32.totalorder %s10272_s15, %s13231_s2 }
  0x29   :  { %p10278_p4 = pnand %p10276_p3, %p10273_p2 }
  0x2b   :  { %10281 = shalt.err (!%p10278_p4)
}
  0x2c   :  { %s10282_s0 = scalar_lea.vmem %s47_s10, 512  ;;  %p10287_p6 = scmp.lt.s32.totalorder %s47_s10, %s47_s10 }
  0x2d   :  { %p10283_p5 = scmp.ne.s32.totalorder %s47_s10, %s10282_s0  ;;  %p10288_p7 = scmp.lt.s32.totalorder %s10282_s0, %s10282_s0 }
  0x2f   :  { %p10289_p8 = por %p10288_p7, %p10287_p6 }
  0x31   :  { %p10290_p9 = pnand %p10289_p8, %p10283_p5 }
  0x33   :  { %10293 = shalt.err (!%p10290_p9)
}
  0x34   :  { %52 = dma.hbm_to_vmem [thread:$0]  %s13231_s2, 512, %s47_s10, [#allocation6], %s10348_s17, %s10348_s17, %s10349_s18  }
  0x35   :  { %s10294_s25 = scalar_lea.hbm %s13232_s3, 512 }
  0x36   :  { %p10295_p10 = scmp.ne.s32.totalorder %s13232_s3, %s10294_s25  ;;  %p10298_p11 = scmp.lt.u32.totalorder %s10294_s25, %s13232_s3 }
  0x38   :  { %p10300_p12 = pnand %p10298_p11, %p10295_p10 }
  0x3a   :  { %10303 = shalt.err (!%p10300_p12)
}
  0x3b   :  { %s10304_s28 = scalar_lea.vmem %s10443_s12, 512  ;;  %p10309_p0 = scmp.lt.s32.totalorder %s10443_s12, %s10443_s12 }
  0x3c   :  { %p10305_p13 = scmp.ne.s32.totalorder %s10443_s12, %s10304_s28  ;;  %p10310_p1 = scmp.lt.s32.totalorder %s10304_s28, %s10304_s28 }
  0x3e   :  { %p10311_p2 = por %p10310_p1, %p10309_p0 }
  0x40   :  { %p10312_p3 = pnand %p10311_p2, %p10305_p13 }
  0x42   :  { %10315 = shalt.err (!%p10312_p3)
}
  0x43   :  { %64 = dma.hbm_to_vmem [thread:$0]  %s13232_s3, 512, %s10443_s12, [#allocation9], %s10348_s17, %s10348_s17, %s10349_s18  }
  0x44   :  { %10338 = dma.done.wait [#allocation3], 512  }
  0x45   :  { %10339 = vsyncadd [#allocation3], 4294966784 }
  0x46   :  { %10340 = dma.done.wait [#allocation6], 1024  }
  0x47   :  { %10341 = vsyncadd [#allocation6], 4294966272 }
  0x48   :  { %10342 = dma.done.wait [#allocation9], 512  }
  0x49   :  { %10343 = vsyncadd [#allocation9], 4294966784  ;;  %v10483_v0 = vld [vmem:[%s13233_s4] sm:$0xff]  ;;  %v10488_v1 = vld [vmem:[%s13233_s4 + $0x18] sm:$0xff]  ;;  %vm208_vm0 = vcmask 1041409   ;;  %vm211_vm1 = vcmask 1042434  }
  0x4a   :  { %v10493_v2 = vld [vmem:[%s13233_s4 + $0x30] sm:$0xff]  ;;  %vm214_vm2 = vcmask 1043459   ;;  %v9517_v3 = vpack.c.bf16 %v10488_v1, %v10483_v0  ;;  %v10500_v4 = vld [vmem:[%s13233_s4 + $0x48] sm:$0xff]  ;;  %v10502_v5 = vld [vmem:[#allocation2] sm:$0x1]  ;;  %vm217_vm3 = vcmask 1044484  }
  0x4b   :  { %v10504_v6 = vld [vmem:[#allocation2 + $0x2] sm:$0x1]  ;;  %v9521_v7 = vpack.c.bf16 %v10500_v4, %v10493_v2  ;;  %v10508_v8 = vld [vmem:[#allocation2 + $0x4] sm:$0x1]  ;;  %v10510_v9 = vld [vmem:[#allocation2 + $0x6] sm:$0x1] }
  0x4c   :  { %v10512_v10 = vld [vmem:[#allocation2 + $0x8] sm:$0x1]  ;;  %vm220_vm4 = vcmask 1045509   ;;  %9518 = vmatprep.subr.bf16.mxu1 %v9517_v3  ;;  %v10514_v11 = vld [vmem:[#allocation2 + $0xa] sm:$0x1]  ;;  %vm223_vm5 = vcmask 1046534  }
  0x4d   :  { %v10516_v12 = vld [vmem:[#allocation2 + $0xc] sm:$0x1]  ;;  %v10518_v13 = vld [vmem:[#allocation2 + $0xe] sm:$0x1]  ;;  %9520 = vmatpush3.bf16.msra.mxu1 %v9517_v3  ;;  %v132_v14 = vld [vmem:[#allocation7] sm:$0x1] }
  0x4e   :  { %v133_v15 = vld [vmem:[#allocation7 + $0x2] sm:$0x1]  ;;  %v134_v16 = vld [vmem:[#allocation7 + $0x4] sm:$0x1]  ;;  %vm226_vm6 = vcmask 1047559   ;;  %9522 = vmatprep.subr.bf16.mxu1 %v9521_v7  ;;  %v164_v20 = vadd.f32 %v132_v14, %v10502_v5  ;;  %vm242_vm7 = vcmask 261120  }
  0x4f   :  { %v135_v17 = vld [vmem:[#allocation7 + $0x6] sm:$0x1]  ;;  %v136_v18 = vld [vmem:[#allocation7 + $0x8] sm:$0x1]  ;;  %v137_v19 = vld [vmem:[#allocation7 + $0xa] sm:$0x1]  ;;  %v165_v21 = vadd.f32 %v133_v15, %v10504_v6  ;;  %v166_v22 = vadd.f32 %v134_v16, %v10508_v8 }
  0x50   :  { %v138_v23 = vld [vmem:[#allocation7 + $0xc] sm:$0x1]  ;;  %v139_v24 = vld [vmem:[#allocation7 + $0xe] sm:$0x1]  ;;  %v167_v25 = vadd.f32 %v135_v17, %v10510_v9  ;;  %v168_v26 = vadd.f32 %v136_v18, %v10512_v10  ;;  %v169_v27 = vadd.f32 %v137_v19, %v10514_v11  ;;  %v10526_v28 = vld [vmem:[#allocation2 + $0x10] sm:$0x1] }
  0x51   :  { %v170_v29 = vadd.f32 %v138_v23, %v10516_v12  ;;  %v171_v30 = vadd.f32 %v139_v24, %v10518_v13  ;;  %v207_v31 = vrot.slane %v165_v21, 7  ;;  %v210_v32 = vrot.slane %v166_v22, 6  ;;  %v10530_v33 = vld [vmem:[#allocation2 + $0x12] sm:$0x1]  ;;  %v10532_v34 = vld [vmem:[#allocation2 + $0x14] sm:$0x1]  ;;  %9524 = vmatpush3.bf16.msra.mxu1 %v9521_v7 }
  0x52   :  { %v213_v35 = vrot.slane %v167_v25, 5  ;;  %v216_v36 = vrot.slane %v168_v26, 4  ;;  %v219_v37 = vrot.slane %v169_v27, 3  ;;  %v10534_v38 = vld [vmem:[#allocation2 + $0x16] sm:$0x1]  ;;  %vm470_vm8 = vcmask 64512  }
  0x53   :  { %v209_v39 = vsel %vm208_vm0, %v207_v31, %v164_v20  ;;  %v222_v40 = vrot.slane %v170_v29, 2  ;;  %v225_v41 = vrot.slane %v171_v30, 1  ;;  %v10537_v42 = vld [vmem:[#allocation2 + $0x18] sm:$0x1]  ;;  %v10539_v43 = vld [vmem:[#allocation2 + $0x1a] sm:$0x1]  ;;  %vm10595_vm9 = vmpackc.low %vm470_vm8, %vm470_vm8 }
  0x54   :  { %v212_v44 = vsel %vm211_vm1, %v210_v32, %v209_v39  ;;  %v10542_v45 = vld [vmem:[#allocation2 + $0x1c] sm:$0x1]  ;;  %v10544_v46 = vld [vmem:[#allocation2 + $0x1e] sm:$0x1]  ;;  %v140_v47 = vld [vmem:[#allocation7 + $0x10] sm:$0x1] }
  0x55   :  { %v215_v48 = vsel %vm214_vm2, %v213_v35, %v212_v44  ;;  %v141_v49 = vld [vmem:[#allocation7 + $0x12] sm:$0x1]  ;;  %v142_v50 = vld [vmem:[#allocation7 + $0x14] sm:$0x1]  ;;  %v143_v51 = vld [vmem:[#allocation7 + $0x16] sm:$0x1]  ;;  %v172_v52 = vadd.f32 %v140_v47, %v10526_v28 }
  0x56   :  { %v218_v53 = vsel %vm217_vm3, %v216_v36, %v215_v48  ;;  %v144_v54 = vld [vmem:[#allocation7 + $0x18] sm:$0x1]  ;;  %v145_v55 = vld [vmem:[#allocation7 + $0x1a] sm:$0x1]  ;;  %v146_v56 = vld [vmem:[#allocation7 + $0x1c] sm:$0x1]  ;;  %v173_v57 = vadd.f32 %v141_v49, %v10530_v33  ;;  %v174_v58 = vadd.f32 %v142_v50, %v10532_v34  ;;  %v175_v59 = vadd.f32 %v143_v51, %v10534_v38 }
  0x57   :  { %v221_v60 = vsel %vm220_vm4, %v219_v37, %v218_v53  ;;  %v147_v61 = vld [vmem:[#allocation7 + $0x1e] sm:$0x1]  ;;  %v176_v62 = vadd.f32 %v144_v54, %v10537_v42  ;;  %v177_v63 = vadd.f32 %v145_v55, %v10539_v43  ;;  %v178_v3 = vadd.f32 %v146_v56, %v10542_v45  ;;  %v10571_v31 = vld [vmem:[%s13234_s5] ss:$0 sm:$0xff]  ;;  %s10352_s21 = smov 96   ;;  %s10353_s0 = smov 64  }
  0x58   :  { %v224_v7 = vsel %vm223_vm5, %v222_v40, %v221_v60  ;;  %v179_v14 = vadd.f32 %v147_v61, %v10544_v46  ;;  %v228_v15 = vrot.slane %v173_v57, 7  ;;  %v230_v16 = vrot.slane %v174_v58, 6  ;;  %s10354_s30 = smov 88   ;;  %s10355_s22 = smov 120  }
  0x59   :  { %v227_v17 = vsel %vm226_vm6, %v225_v41, %v224_v7  ;;  %v232_v18 = vrot.slane %v175_v59, 5  ;;  %v234_v19 = vrot.slane %v176_v62, 4  ;;  %v236_v21 = vrot.slane %v177_v63, 3  ;;  %s10356_s23 = smov 80   ;;  %s10357_s24 = smov 112  }
  0x5a   :  { %9051 = vmatprep.mubr.msk.f32.mxu1 %vm242_vm7, %v227_v17  ;;  %v229_v20 = vsel %vm208_vm0, %v228_v15, %v172_v52  ;;  %v238_v23 = vrot.slane %v178_v3, 2  ;;  %v240_v25 = vrot.slane %v179_v14, 1  ;;  %v9854_v40 = vpack.i.bf16 %v10500_v4, %v10493_v2  ;;  %s10358_s25 = smov 104   ;;  %s10359_s26 = smov 72  }
  0x5b   :  { %v231_v22 = vsel %vm211_vm1, %v230_v16, %v229_v20  ;;  %v9849_v41 = vpack.i.bf16 %v10488_v1, %v10483_v0  ;;  %v338_v53 = vrot.slane %v10504_v6, 7  ;;  %v340_v54 = vrot.slane %v10508_v8, 6 }
  0x5c   :  { %v233_v24 = vsel %vm214_vm2, %v232_v18, %v231_v22  ;;  %9855 = vrot.lane.b32.xlu1 %v9854_v40, %s10353_s0  ;;  %v342_v55 = vrot.slane %v10510_v9, 5  ;;  %v344_v56 = vrot.slane %v10512_v10, 4  ;;  %v346_v62 = vrot.slane %v10514_v11, 3 }
  0x5d   :  { %v235_v26 = vsel %vm217_vm3, %v234_v19, %v233_v24  ;;  %v339_v61 = vsel %vm208_vm0, %v338_v53, %v10502_v5  ;;  %v348_v63 = vrot.slane %v10516_v12, 2  ;;  %v350_v3 = vrot.slane %v10518_v13, 1 }
  0x5e   :  { %v237_v27 = vsel %vm220_vm4, %v236_v21, %v235_v26  ;;  %v341_v15 = vsel %vm211_vm1, %v340_v54, %v339_v61  ;;  %v352_v16 = vrot.slane %v10530_v33, 7  ;;  %v354_v18 = vrot.slane %v10532_v34, 6 }
  0x5f   :  { %v239_v29 = vsel %vm223_vm5, %v238_v23, %v237_v27  ;;  %v343_v17 = vsel %vm214_vm2, %v342_v55, %v341_v15  ;;  %v356_v19 = vrot.slane %v10534_v38, 5  ;;  %v358_v20 = vrot.slane %v10537_v42, 4 }
  0x60   :  { %v241_v30 = vsel %vm226_vm6, %v240_v25, %v239_v29  ;;  %v345_v21 = vsel %vm217_vm3, %v344_v56, %v343_v17  ;;  %v353_v22 = vsel %vm208_vm0, %v352_v16, %v10526_v28  ;;  %v360_v23 = vrot.slane %v10539_v43, 3 }
  0x61   :  { %9052 = vmatmul.mubr.msk.f32.vlgmr.msra.gmra.mrb[0].mxu1 %vm242_vm7, %v241_v30  ;;  %v347_v24 = vsel %vm220_vm4, %v346_v62, %v345_v21  ;;  %v355_v25 = vsel %vm211_vm1, %v354_v18, %v353_v22  ;;  %v362_v26 = vrot.slane %v10542_v45, 2  ;;  %v364_v30 = vrot.slane %v10544_v46, 1 }
  0x62   :  { %v349_v27 = vsel %vm223_vm5, %v348_v63, %v347_v24  ;;  %v357_v29 = vsel %vm214_vm2, %v356_v19, %v355_v25  ;;  %vm554_vm10 = vcmask 130048   ;;  %vm3953_vm11 = vcmask 523264  }
  0x63   :  { %vm4347_vm12 = vcmask 253952  }
  0xce   :  { %v9856_v52 = vpop.permute.xlu1 %9855 }
  0xcf   :  { %v9858_v59 = vunpack.i.h.bf16 %v9856_v52  ;;  %v9857_v60 = vunpack.i.l.bf16 %v9856_v52 }
  0xd1   :  { %v9529_v14 = vpack.c.bf16 %v9858_v59, %v9857_v60 }
 0x134   :  { %v9053_v32 = vpop.f32.mrb[0].mxu1 }
 0x135   :  { %v10574_v35 = vadd.f32 %v9053_v32, %v10571_v31  ;;  %v313_v36 = vpop.f32.mrb[1].mxu1  ;;  %v351_v32 = vsel %vm226_vm6, %v350_v3, %v349_v27 }
 0x136   :  { %v10577_v37 = vadd.f32 %v10571_v31, %v313_v36  ;;  %v359_v36 = vsel %vm217_vm3, %v358_v20, %v357_v29  ;;  %9062 = vmatprep.mubr.msk.f32.mxu1 %vm242_vm7, %v351_v32 }
 0x137   :  { %v361_v40 = vsel %vm220_vm4, %v360_v23, %v359_v36 }
 0x138   :  { %9069 = vmatprep.mubr.msk.f32.mxu0 %vm470_vm8, %v10577_v37  ;;  %v10583_v39 = vpack.i.bf16 %v10574_v35, %v10577_v37 }
 0x13a   :  { %9845 = vrot.lane.b32.xlu0 %v10583_v39, %s10352_s21 }
 0x13e   :  { %9850 = vrot.lane.b32.xlu0 %v9849_v41, %s10353_s0  ;;  %v363_v41 = vsel %vm223_vm5, %v362_v26, %v361_v40 }
 0x1ac   :  { %v9846_v44 = vpop.permute.xlu0 %9845 }
 0x1ad   :  { %v9848_v47 = vunpack.i.h.bf16 %v9846_v44  ;;  %v9847_v48 = vunpack.i.l.bf16 %v9846_v44  ;;  %v365_v44 = vsel %vm226_vm6, %v364_v30, %v363_v41 }
 0x1af   :  { %v9533_v50 = vpack.c.bf16 %v9848_v47, %v9847_v48 }
 0x1b0   :  { %v9851_v51 = vpop.permute.xlu0 %9850 }
 0x1b1   :  { %9535 = vmatprep.subr.msk.bf16.mxu0 %vm10595_vm9, %v9533_v50  ;;  %v9853_v57 = vunpack.i.h.bf16 %v9851_v51  ;;  %v9852_v58 = vunpack.i.l.bf16 %v9851_v51 }
 0x1b2   :  { %9538 = vmatpush3.bf16.xpose.msk.msra.mxu0 %vm10595_vm9, %v9533_v50 }
 0x1b3   :  { %v9525_v7 = vpack.c.bf16 %v9853_v57, %v9852_v58 }
 0x1b5   :  { %9526 = vmatprep.subr.bf16.mxu1 %v9525_v7 }
 0x1b6   :  { %9528 = vmatpush3.bf16.msra.mxu1 %v9525_v7 }
 0x1b7   :  { %9530 = vmatprep.subr.bf16.mxu1 %v9529_v14 }
 0x1b9   :  { %9070 = vmatmul.mubr.msk.f32.vlgmr.msra.gmra.mrb[0].mxu0 %vm470_vm8, %v10574_v35 }
 0x1ba   :  { %9532 = vmatpush3.bf16.msra.mxu1 %v9529_v14 }
 0x1bd   :  { %9063 = vmatmul.mubr.msk.f32.vlgmr.msra.gmra.mrb[2].mxu1 %vm242_vm7, %v365_v44 }
 0x28c   :  { %v9071_v47 = vpop.f32.mrb[0].mxu0 }
 0x28d   :  { %v545_v48 = vpop.f32.mrb[1].mxu0  ;;  %v558_v50 = vsel %vm554_vm10, %v9071_v47, -inf }
 0x28e   :  { %559 = vmax.xlane.f32.xlu0 %v558_v50  ;;  %v555_v51 = vsel %vm554_vm10, %v545_v48, -inf }
 0x28f   :  { %556 = vmax.xlane.f32.xlu1 %v555_v51 }
 0x290   :  { %v9064_v62 = vpop.f32.mrb[2].mxu1 }
 0x291   :  { %v455_v63 = vpop.f32.mrb[3].mxu1 }
 0x31b   :  { %v560_v52 = vpop.xlane.xlu0 %559 }
 0x31c   :  { %v562_v53 = vsub.f32 %v9071_v47, %v560_v52  ;;  %v557_v54 = vpop.xlane.xlu1 %556 }
 0x31d   :  { %v561_v55 = vsub.f32 %v545_v48, %v557_v54 }
 0x31e   :  { %v565_v56 = vmul.f32 1.442695, %v562_v53 }
 0x31f   :  { %v563_v57 = vmul.f32 1.442695, %v561_v55 }
 0x320   :  { %10034 = vpow2.f32 %v565_v56 }
 0x321   :  { %10036 = vpow2.f32 %v563_v57 }
 0x32a   :  { %v10035_v58 = vpop.eup %10034 }
 0x32b   :  { %v10037_v59 = vpop.eup %10036  ;;  %v570_v60 = vsel %vm554_vm10, %v10035_v58, 0.0 }
 0x32c   :  { %571 = vadd.xlane.f32.xlu1 %v570_v60  ;;  %v567_v61 = vsel %vm554_vm10, %v10037_v59, 0.0 }
 0x32d   :  { %568 = vadd.xlane.f32.xlu0 %v567_v61 }
 0x33d   :  { %9860 = vrot.lane.b32.xlu1 %v10583_v39, %s10354_s30 }
 0x341   :  { %658 = vrot.lane.b32.xlu1 %v10577_v37, %s10355_s22 }
 0x343   :  { %382 = vrot.lane.b32.xlu0 %v10571_v31, %s10353_s0 }
 0x345   :  { %9865 = vrot.lane.b32.xlu1 %v10583_v39, %s10356_s23 }
 0x347   :  { %660 = vrot.lane.b32.xlu0 %v10574_v35, %s10355_s22 }
 0x349   :  { %1030 = vrot.lane.b32.xlu1 %v10574_v35, %s10357_s24 }
 0x34b   :  { %1028 = vrot.lane.b32.xlu0 %v10577_v37, %s10357_s24 }
 0x3b9   :  { %v572_v3 = vpop.xlane.xlu1 %571 }
 0x3ba   :  { %10038 = vrcp.f32 %v572_v3  ;;  %v569_v7 = vpop.xlane.xlu0 %568 }
 0x3bb   :  { %10040 = vrcp.f32 %v569_v7 }
 0x3bd   :  { %v9861_v14 = vpop.permute.xlu1 %9860 }
 0x3be   :  { %v383_v15 = vpop.permute.xlu0 %382  ;;  %v9863_v16 = vunpack.i.h.bf16 %v9861_v14  ;;  %v9862_v17 = vunpack.i.l.bf16 %v9861_v14 }
 0x3bf   :  { %v456_v18 = vadd.f32 %v455_v63, %v383_v15  ;;  %v461_v19 = vadd.f32 %v9064_v62, %v383_v15 }
 0x3c0   :  { %v9543_v23 = vpack.c.bf16 %v9863_v16, %v9862_v17 }
 0x3c1   :  { %v659_v20 = vpop.permute.xlu1 %658  ;;  %v9539_v21 = vpack.c.bf16 %v461_v19, %v456_v18  ;;  %v10655_v22 = vpack.i.bf16 %v461_v19, %v456_v18 }
 0x3c2   :  { %v661_v40 = vpop.permute.xlu0 %660 }
 0x3c3   :  { %9540 = vmatprep.subr.bf16.mxu1 %v9539_v21 }
 0x3c4   :  { %v10039_v24 = vpop.eup %10038  ;;  %9542 = vmatpush3.bf16.msra.mxu1 %v9539_v21 }
 0x3c5   :  { %v10041_v25 = vpop.eup %10040  ;;  %v9866_v26 = vpop.permute.xlu1 %9865  ;;  %9545 = vmatprep.subr.msk.bf16.mxu1 %vm10595_vm9, %v9543_v23  ;;  %v576_v29 = vmul.f32 %v10039_v24, %v10035_v58 }
 0x3c6   :  { %v574_v27 = vmul.f32 %v10041_v25, %v10037_v59  ;;  %v9868_v30 = vunpack.i.h.bf16 %v9866_v26  ;;  %v9867_v32 = vunpack.i.l.bf16 %v9866_v26  ;;  %v1029_v41 = vpop.permute.xlu0 %1028 }
 0x3c8   :  { %9076 = vmatprep.mubr.msk.f32.mxu1 %vm554_vm10, %v574_v27  ;;  %v9553_v36 = vpack.c.bf16 %v9868_v30, %v9867_v32 }
 0x3c9   :  { %9077 = vmatmul.mubr.msk.f32.vlgmr.msra.gmra.mrb[4].mxu1 %vm554_vm10, %v576_v29  ;;  %v1031_v44 = vpop.permute.xlu1 %1030 }
 0x3ca   :  { %9083 = vmatprep.mubr.msk.f32.mxu1 %vm470_vm8, %v659_v20 }
 0x3cd   :  { %9548 = vmatpush3.bf16.xpose.msk.msra.mxu1 %vm10595_vm9, %v9543_v23 }
 0x3ce   :  { %9555 = vmatprep.subr.msk.bf16.mxu1 %vm10595_vm9, %v9553_v36 }
 0x3d4   :  { %9084 = vmatmul.mubr.msk.f32.vlgmr.msra.gmra.mrb[6].mxu1 %vm470_vm8, %v661_v40 }
 0x3d5   :  { %9558 = vmatpush3.bf16.xpose.msk.msra.mxu1 %vm10595_vm9, %v9553_v36  ;;  %9107 = vmatprep.mubr.msk.f32.mxu1 %vm470_vm8, %v1029_v41 }
 0x3dc   :  { %9108 = vmatmul.mubr.msk.f32.vlgmr.msra.gmra.mrb[8].mxu1 %vm470_vm8, %v1031_v44 }
 0x49c   :  { %v10671_v47 = vpop.f32.mrb[4].mxu1 }
 0x49d   :  { %v10673_v48 = vpop.f32.mrb[5].mxu1 }
 0x4a7   :  { %v9085_v50 = vpop.f32.mrb[6].mxu1 }
 0x4a8   :  { %v740_v51 = vpop.f32.mrb[7].mxu1  ;;  %v752_v52 = vsel %vm554_vm10, %v9085_v50, -inf }
 0x4a9   :  { %753 = vmax.xlane.f32.xlu1 %v752_v52  ;;  %v749_v53 = vsel %vm554_vm10, %v740_v51, -inf }
 0x4aa   :  { %750 = vmax.xlane.f32.xlu0 %v749_v53 }
 0x4af   :  { %v9109_v54 = vpop.f32.mrb[8].mxu1 }
 0x4b0   :  { %v10677_v55 = vpop.f32.mrb[9].mxu1  ;;  %v1122_v56 = vsel %vm554_vm10, %v9109_v54, -inf }
 0x4b1   :  { %v1119_v23 = vsel %vm554_vm10, %v10677_v55, -inf }
 0x4ba   :  { %9870 = vrot.lane.b32.xlu1 %v10655_v22, %s10355_s22 }
 0x4be   :  { %1314 = vrot.lane.b32.xlu1 %v10577_v37, %s10358_s25 }
 0x4c2   :  { %1316 = vrot.lane.b32.xlu1 %v10574_v35, %s10358_s25 }
 0x4e6   :  { %1123 = vmax.xlane.f32.xlu1 %v1122_v56 }
 0x4f7   :  { %860 = vrot.lane.b32.xlu1 %v10488_v1, %s10348_s17 }
 0x4fb   :  { %9880 = vrot.lane.b32.xlu1 %v10655_v22, %s10357_s24 }
 0x536   :  { %v754_v57 = vpop.xlane.xlu1 %753 }
 0x537   :  { %v756_v58 = vsub.f32 %v9085_v50, %v754_v57  ;;  %v751_v59 = vpop.xlane.xlu0 %750 }
 0x538   :  { %v755_v60 = vsub.f32 %v740_v51, %v751_v59 }
 0x539   :  { %v759_v61 = vmul.f32 1.442695, %v756_v58 }
 0x53a   :  { %v757_v62 = vmul.f32 1.442695, %v755_v60  ;;  %v9871_v63 = vpop.permute.xlu1 %9870 }
 0x53b   :  { %v9873_v37 = vunpack.i.h.bf16 %v9871_v63  ;;  %v9872_v3 = vunpack.i.l.bf16 %v9871_v63 }
 0x53c   :  { %10042 = vpow2.f32 %v757_v62 }
 0x53d   :  { %v9549_v35 = vpack.c.bf16 %v9873_v37, %v9872_v3  ;;  %10044 = vpow2.f32 %v759_v61 }
 0x53e   :  { %v1315_v7 = vpop.permute.xlu1 %1314 }
 0x53f   :  { %9550 = vmatprep.subr.bf16.mxu0 %v9549_v35  ;;  %9126 = vmatprep.mubr.msk.f32.mxu1 %vm470_vm8, %v1315_v7 }
 0x540   :  { %9552 = vmatpush3.bf16.msra.mxu0 %v9549_v35 }
 0x542   :  { %v1317_v17 = vpop.permute.xlu1 %1316 }
 0x546   :  { %v10043_v1 = vpop.eup %10042 }
 0x547   :  { %v761_v14 = vsel %vm554_vm10, %v10043_v1, 0.0  ;;  %v10045_v15 = vpop.eup %10044 }
 0x548   :  { %762 = vadd.xlane.f32.xlu0 %v761_v14  ;;  %v764_v16 = vsel %vm554_vm10, %v10045_v15, 0.0 }
 0x54c   :  { %765 = vadd.xlane.f32.xlu0 %v764_v16 }
 0x562   :  { %9875 = vrot.lane.b32.xlu0 %v10583_v39, %s10359_s26 }
 0x573   :  { %v1124_v18 = vpop.xlane.xlu1 %1123 }
 0x574   :  { %v1126_v19 = vsub.f32 %v9109_v54, %v1124_v18 }
 0x576   :  { %v1129_v20 = vmul.f32 1.442695, %v1126_v19 }
 0x577   :  { %v861_v21 = vpop.permute.xlu1 %860 }
 0x578   :  { %10046 = vpow2.f32 %v1129_v20  ;;  %9093 = vmatprep.subr.mxu0 %v861_v21 }
 0x57b   :  { %v9881_v59 = vpop.permute.xlu1 %9880 }
 0x57c   :  { %v9883_v60 = vunpack.i.h.bf16 %v9881_v59  ;;  %v9882_v61 = vunpack.i.l.bf16 %v9881_v59 }
 0x57e   :  { %v9559_v37 = vpack.c.bf16 %v9883_v60, %v9882_v61 }
 0x581   :  { %1120 = vmax.xlane.f32.xlu0 %v1119_v23 }
 0x582   :  { %v10047_v24 = vpop.eup %10046 }
 0x583   :  { %v1134_v25 = vsel %vm554_vm10, %v10047_v24, 0.0 }
 0x585   :  { %1135 = vadd.xlane.f32.xlu0 %v1134_v25 }
 0x5d5   :  { %v763_v26 = vpop.xlane.xlu0 %762 }
 0x5d6   :  { %10048 = vrcp.f32 %v763_v26 }
 0x5d9   :  { %v766_v27 = vpop.xlane.xlu0 %765 }
 0x5da   :  { %10050 = vrcp.f32 %v766_v27 }
 0x5dd   :  { %v9876_v39 = vpop.permute.xlu0 %9875 }
 0x5de   :  { %v9878_v29 = vunpack.i.h.bf16 %v9876_v39  ;;  %v9877_v30 = vunpack.i.l.bf16 %v9876_v39 }
 0x5e0   :  { %v10049_v32 = vpop.eup %10048  ;;  %v9563_v36 = vpack.c.bf16 %v9878_v29, %v9877_v30 }
 0x5e1   :  { %v768_v40 = vmul.f32 %v10049_v32, %v10043_v1 }
 0x5e2   :  { %9565 = vmatprep.subr.msk.bf16.mxu1 %vm10595_vm9, %v9563_v36 }
 0x5e3   :  { %9090 = vmatprep.mubr.msk.f32.mxu0 %vm554_vm10, %v768_v40  ;;  %9568 = vmatpush3.bf16.xpose.msk.msra.mxu1 %vm10595_vm9, %v9563_v36 }
 0x5e4   :  { %v10051_v41 = vpop.eup %10050 }
 0x5e5   :  { %v770_v44 = vmul.f32 %v10051_v41, %v10045_v15 }
 0x5e7   :  { %9091 = vmatmul.mubr.msk.f32.vlgmr.msra.gmra.mrb[2].mxu0 %vm554_vm10, %v770_v44 }
 0x5e8   :  { %9094 = vmatpush3.msra.mxu0 %v861_v21 }
 0x5ea   :  { %9127 = vmatmul.mubr.msk.f32.vlgmr.msra.gmra.mrb[10].mxu1 %vm470_vm8, %v1317_v17 }
 0x60e   :  { %v1121_v50 = vpop.xlane.xlu0 %1120 }
 0x60f   :  { %v1125_v51 = vsub.f32 %v10677_v55, %v1121_v50 }
 0x611   :  { %v1127_v52 = vmul.f32 1.442695, %v1125_v51 }
 0x612   :  { %v1136_v56 = vpop.xlane.xlu0 %1135 }
 0x613   :  { %10052 = vpow2.f32 %v1127_v52 }
 0x61d   :  { %v10053_v53 = vpop.eup %10052 }
 0x61e   :  { %v1131_v54 = vsel %vm554_vm10, %v10053_v53, 0.0 }
 0x61f   :  { %1132 = vadd.xlane.f32.xlu0 %v1131_v54 }
 0x635   :  { %944 = vrot.lane.b32.xlu0 %v10483_v0, %s10348_s17 }
 0x6ac   :  { %v1133_v57 = vpop.xlane.xlu0 %1132 }
 0x6ad   :  { %10054 = vrcp.f32 %v1133_v57 }
 0x6ae   :  { %10056 = vrcp.f32 %v1136_v56 }
 0x6b0   :  { %v945_v58 = vpop.permute.xlu0 %944 }
 0x6b1   :  { %9098 = vmatprep.subr.mxu0 %v945_v58 }
 0x6b7   :  { %v10055_v7 = vpop.eup %10054 }
 0x6b8   :  { %v10057_v1 = vpop.eup %10056  ;;  %v1138_v14 = vmul.f32 %v10055_v7, %v10053_v53 }
 0x6b9   :  { %v1140_v15 = vmul.f32 %v10057_v1, %v10047_v24 }
 0x6ba   :  { %v9092_v62 = vpop.f32.mrb[2].mxu0 }
 0x6bb   :  { %v851_v55 = vpop.f32.mrb[3].mxu0 }
 0x6bc   :  { %9095 = vmatprep.mubr.msk.f32.mxu0 %vm470_vm8, %v851_v55 }
 0x6bd   :  { %9096 = vmatmul.mubr.msk.f32.vlgmr.msra.gmra.mrb[4].mxu0 %vm470_vm8, %v9092_v62  ;;  %v9128_v63 = vpop.f32.mrb[10].mxu1 }
 0x6be   :  { %9099 = vmatpush3.msra.mxu0 %v945_v58  ;;  %9100 = vmatprep.mubr.msk.f32.mxu0 %vm470_vm8, %v10673_v48  ;;  %v1396_v0 = vpop.f32.mrb[11].mxu1  ;;  %v1408_v3 = vsel %vm554_vm10, %v9128_v63, -inf }
 0x6bf   :  { %9560 = vmatprep.subr.bf16.mxu0 %v9559_v37  ;;  %1409 = vmax.xlane.f32.xlu0 %v1408_v3  ;;  %v1405_v35 = vsel %vm554_vm10, %v1396_v0, -inf }
 0x6c0   :  { %1406 = vmax.xlane.f32.xlu1 %v1405_v35 }
 0x6c5   :  { %9101 = vmatmul.mubr.msk.f32.vlgmr.msra.gmra.mrb[4].mxu0 %vm470_vm8, %v10671_v47 }
 0x6c6   :  { %9562 = vmatpush3.bf16.msra.mxu0 %v9559_v37  ;;  %9114 = vmatprep.mubr.msk.f32.mxu0 %vm554_vm10, %v1138_v14 }
 0x6c9   :  { %9115 = vmatmul.mubr.msk.f32.vlgmr.msra.gmra.mrb[6].mxu0 %vm554_vm10, %v1140_v15 }
 0x74c   :  { %v1410_v48 = vpop.xlane.xlu0 %1409 }
 0x74d   :  { %v1412_v16 = vsub.f32 %v9128_v63, %v1410_v48  ;;  %v1407_v17 = vpop.xlane.xlu1 %1406 }
 0x74e   :  { %v1411_v18 = vsub.f32 %v1396_v0, %v1407_v17 }
 0x74f   :  { %v1415_v19 = vmul.f32 1.442695, %v1412_v16 }
 0x750   :  { %v1413_v20 = vmul.f32 1.442695, %v1411_v18 }
 0x751   :  { %10058 = vpow2.f32 %v1415_v19 }
 0x752   :  { %10060 = vpow2.f32 %v1413_v20 }
 0x75b   :  { %v10059_v21 = vpop.eup %10058 }
 0x75c   :  { %v10061_v23 = vpop.eup %10060  ;;  %v1420_v25 = vsel %vm554_vm10, %v10059_v21, 0.0 }
 0x75d   :  { %1421 = vadd.xlane.f32.xlu1 %v1420_v25  ;;  %v1417_v47 = vsel %vm554_vm10, %v10061_v23, 0.0 }
 0x75e   :  { %1418 = vadd.xlane.f32.xlu0 %v1417_v47 }
 0x76e   :  { %9885 = vrot.lane.b32.xlu1 %v10655_v22, %s10358_s25 }
 0x772   :  { %1514 = vrot.lane.b32.xlu1 %v10500_v4, %s10348_s17 }
 0x774   :  { %1228 = vrot.lane.b32.xlu0 %v10493_v2, %s10348_s17 }
 0x778   :  { %1600 = vrot.lane.b32.xlu0 %v10571_v31, %s10348_s17 }
 0x79c   :  { %v9116_v24 = vpop.f32.mrb[6].mxu0 }
 0x79d   :  { %v1219_v26 = vpop.f32.mrb[7].mxu0 }
 0x79e   :  { %9119 = vmatprep.mubr.msk.f32.mxu0 %vm470_vm8, %v1219_v26 }
 0x7ea   :  { %v1422_v27 = vpop.xlane.xlu1 %1421 }
 0x7eb   :  { %10062 = vrcp.f32 %v1422_v27  ;;  %v1419_v39 = vpop.xlane.xlu0 %1418 }
 0x7ec   :  { %10064 = vrcp.f32 %v1419_v39 }
 0x7ee   :  { %v9886_v29 = vpop.permute.xlu1 %9885 }
 0x7ef   :  { %v9888_v30 = vunpack.i.h.bf16 %v9886_v29  ;;  %v9887_v22 = vunpack.i.l.bf16 %v9886_v29  ;;  %v1229_v32 = vpop.permute.xlu0 %1228 }
 0x7f0   :  { %9117 = vmatprep.subr.mxu0 %v1229_v32 }
 0x7f1   :  { %9118 = vmatpush3.msra.mxu0 %v1229_v32  ;;  %v9569_v4 = vpack.c.bf16 %v9888_v30, %v9887_v22 }
 0x7f2   :  { %9120 = vmatmul.mubr.msk.f32.vlgmr.msra.gmra.mrb[4].mxu0 %vm470_vm8, %v9116_v24  ;;  %v1515_v2 = vpop.permute.xlu1 %1514 }
 0x7f3   :  { %9570 = vmatprep.subr.bf16.mxu0 %v9569_v4  ;;  %v1601_v51 = vpop.permute.xlu0 %1600 }
 0x7f4   :  { %9572 = vmatpush3.bf16.msra.mxu0 %v9569_v4 }
 0x7f5   :  { %v10063_v31 = vpop.eup %10062  ;;  %9136 = vmatprep.subr.mxu0 %v1515_v2 }
 0x7f6   :  { %v10065_v36 = vpop.eup %10064  ;;  %v1426_v41 = vmul.f32 %v10063_v31, %v10059_v21 }
 0x7f7   :  { %v1424_v40 = vmul.f32 %v10065_v36, %v10061_v23 }
 0x7f9   :  { %9133 = vmatprep.mubr.msk.f32.mxu0 %vm554_vm10, %v1424_v40 }
 0x7fa   :  { %9134 = vmatmul.mubr.msk.f32.vlgmr.msra.gmra.mrb[8].mxu0 %vm554_vm10, %v1426_v41 }
 0x7fb   :  { %9137 = vmatpush3.msra.mxu0 %v1515_v2 }
 0x8cd   :  { %v9135_v44 = vpop.f32.mrb[8].mxu0 }
 0x8ce   :  { %v1505_v50 = vpop.f32.mrb[9].mxu0 }
 0x8cf   :  { %9138 = vmatprep.mubr.msk.f32.mxu0 %vm470_vm8, %v1505_v50 }
 0x8d0   :  { %9139 = vmatmul.mubr.msk.f32.vlgmr.msra.gmra.mrb[4].mxu0 %vm470_vm8, %v9135_v44 }
 0x9a3   :  { %v9140_v52 = vpop.f32.mrb[4].mxu0 }
 0x9a4   :  { %v1604_v53 = vadd.f32 %v9140_v52, %v1601_v51  ;;  %v1589_v54 = vpop.f32.mrb[5].mxu0 }
 0x9a5   :  { %v1603_v56 = vadd.f32 %v1601_v51, %v1589_v54 }
 0x9a6   :  { %v1614_v57 = vrot.slane %v1604_v53, 1  ;;  %v1615_v58 = vrot.slane %v1604_v53, 2  ;;  %v1616_v59 = vrot.slane %v1604_v53, 3  ;;  %v1617_v60 = vrot.slane %v1604_v53, 4 }
 0x9a7   :  { %v1618_v61 = vrot.slane %v1604_v53, 5  ;;  %v1619_v62 = vrot.slane %v1604_v53, 6  ;;  %v1620_v55 = vrot.slane %v1604_v53, 7  ;;  %v1645_v35 = vadd.f32 %v1604_v53, %v10526_v28 }
 0x9a8   :  { %v10736_v63 = vadd.f32 %v1614_v57, %v10530_v33  ;;  %v10739_v37 = vadd.f32 %v1615_v58, %v10532_v34  ;;  %v10742_v0 = vadd.f32 %v1616_v59, %v10534_v38  ;;  %v10745_v3 = vadd.f32 %v1617_v60, %v10537_v42 }
 0x9a9   :  { %v10749_v7 = vadd.f32 %v1618_v61, %v10539_v43  ;;  %v10752_v1 = vadd.f32 %v1619_v62, %v10542_v45  ;;  %v10755_v33 = vadd.f32 %v1620_v55, %v10544_v46  ;;  %v1607_v38 = vrot.slane %v1603_v56, 1 }
 0x9aa   :  { %v1683_v34 = vrot.slane %v10736_v63, 7  ;;  %v1685_v14 = vrot.slane %v10739_v37, 6  ;;  %v1687_v15 = vrot.slane %v10742_v0, 5  ;;  %v1689_v42 = vrot.slane %v10745_v3, 4 }
 0x9ab   :  { %v1691_v28 = vrot.slane %v10749_v7, 3  ;;  %v1608_v48 = vrot.slane %v1603_v56, 2  ;;  %v1609_v16 = vrot.slane %v1603_v56, 3  ;;  %v1610_v45 = vrot.slane %v1603_v56, 4 }
 0x9ac   :  { %v1684_v43 = vsel %vm208_vm0, %v1683_v34, %v1645_v35  ;;  %v1611_v17 = vrot.slane %v1603_v56, 5  ;;  %v1693_v18 = vrot.slane %v10752_v1, 2  ;;  %v1612_v19 = vrot.slane %v1603_v56, 6 }
 0x9ad   :  { %v1686_v46 = vsel %vm211_vm1, %v1685_v14, %v1684_v43  ;;  %v1613_v20 = vrot.slane %v1603_v56, 7  ;;  %v10767_v23 = vadd.f32 %v1607_v38, %v10504_v6  ;;  %v10770_v25 = vadd.f32 %v1608_v48, %v10508_v8 }
 0x9ae   :  { %v1688_v21 = vsel %vm214_vm2, %v1687_v15, %v1686_v46  ;;  %v10773_v47 = vadd.f32 %v1609_v16, %v10510_v9  ;;  %v1695_v26 = vrot.slane %v10755_v33, 1  ;;  %v10778_v27 = vadd.f32 %v1603_v56, %v10502_v5 }
 0x9af   :  { %v1690_v24 = vsel %vm217_vm3, %v1689_v42, %v1688_v21  ;;  %v10781_v39 = vadd.f32 %v1610_v45, %v10512_v10  ;;  %v10785_v6 = vadd.f32 %v1611_v17, %v10514_v11  ;;  %v1669_v8 = vrot.slane %v10767_v23, 7 }
 0x9b0   :  { %v1692_v29 = vsel %vm220_vm4, %v1691_v28, %v1690_v24  ;;  %v1671_v9 = vrot.slane %v10770_v25, 6  ;;  %v10791_v22 = vadd.f32 %v1612_v19, %v10516_v12  ;;  %v10795_v32 = vadd.f32 %v1613_v20, %v10518_v13 }
 0x9b1   :  { %v1694_v30 = vsel %vm223_vm5, %v1693_v18, %v1692_v29  ;;  %v1670_v10 = vsel %vm208_vm0, %v1669_v8, %v10778_v27  ;;  %v1673_v11 = vrot.slane %v10773_v47, 5  ;;  %v1675_v31 = vrot.slane %v10781_v39, 4 }
 0x9b2   :  { %v1696_v5 = vsel %vm226_vm6, %v1695_v26, %v1694_v30  ;;  %v1672_v2 = vsel %vm211_vm1, %v1671_v9, %v1670_v10  ;;  %v1677_v36 = vrot.slane %v10785_v6, 3  ;;  %v1679_v13 = vrot.slane %v10791_v22, 2 }
 0x9b3   :  { %v1702_v4 = vsel %vm242_vm7, %v1696_v5, 0.0  ;;  %v1674_v12 = vsel %vm214_vm2, %v1673_v11, %v1672_v2  ;;  %v1681_v44 = vrot.slane %v10795_v32, 1 }
 0x9b4   :  { %1703 = vadd.xlane.f32.xlu0 %v1702_v4  ;;  %v1676_v40 = vsel %vm217_vm3, %v1675_v31, %v1674_v12 }
 0x9b5   :  { %v1678_v41 = vsel %vm220_vm4, %v1677_v36, %v1676_v40 }
 0x9b6   :  { %v1680_v50 = vsel %vm223_vm5, %v1679_v13, %v1678_v41 }
 0x9b7   :  { %v1682_v51 = vsel %vm226_vm6, %v1681_v44, %v1680_v50 }
 0x9b8   :  { %v1699_v52 = vsel %vm242_vm7, %v1682_v51, 0.0 }
 0x9b9   :  { %1700 = vadd.xlane.f32.xlu1 %v1699_v52 }
 0xa41   :  { %v1704_v53 = vpop.xlane.xlu0 %1703 }
 0xa42   :  { %v1707_v54 = vmul.f32 0.03125, %v1704_v53 }
 0xa44   :  { %v1717_v56 = vrot.slane %v1707_v54, 1  ;;  %v1718_v57 = vrot.slane %v1707_v54, 2  ;;  %v1719_v58 = vrot.slane %v1707_v54, 3  ;;  %v1720_v59 = vrot.slane %v1707_v54, 4 }
 0xa45   :  { %v1721_v60 = vrot.slane %v1707_v54, 5  ;;  %v1722_v61 = vrot.slane %v1707_v54, 6  ;;  %v1723_v62 = vrot.slane %v1707_v54, 7  ;;  %v10812_v55 = vsub.f32 %v1645_v35, %v1707_v54 }
 0xa46   :  { %v10815_v34 = vsub.f32 %v10736_v63, %v1717_v56  ;;  %v10818_v14 = vsub.f32 %v10739_v37, %v1718_v57  ;;  %v10821_v38 = vsub.f32 %v10742_v0, %v1719_v58  ;;  %v10824_v15 = vsub.f32 %v10745_v3, %v1720_v59  ;;  %v1701_v42 = vpop.xlane.xlu1 %1700 }
 0xa47   :  { %v10827_v28 = vsub.f32 %v10749_v7, %v1721_v60  ;;  %v10830_v48 = vsub.f32 %v10752_v1, %v1722_v61  ;;  %v10833_v35 = vsub.f32 %v10755_v33, %v1723_v62  ;;  %v1706_v63 = vmul.f32 0.03125, %v1701_v42 }
 0xa48   :  { %v1765_v37 = vmul.f32 %v10815_v34, %v10815_v34  ;;  %v1766_v0 = vmul.f32 %v10818_v14, %v10818_v14  ;;  %v1767_v3 = vmul.f32 %v10821_v38, %v10821_v38  ;;  %v1764_v7 = vmul.f32 %v10812_v55, %v10812_v55 }
 0xa49   :  { %v1768_v1 = vmul.f32 %v10824_v15, %v10824_v15  ;;  %v1769_v33 = vmul.f32 %v10827_v28, %v10827_v28  ;;  %v1770_v43 = vmul.f32 %v10830_v48, %v10830_v48  ;;  %v1771_v16 = vmul.f32 %v10833_v35, %v10833_v35 }
 0xa4a   :  { %v1802_v45 = vrot.slane %v1765_v37, 7  ;;  %v1804_v17 = vrot.slane %v1766_v0, 6  ;;  %v1710_v46 = vrot.slane %v1706_v63, 1  ;;  %v1806_v18 = vrot.slane %v1767_v3, 5 }
 0xa4b   :  { %v1808_v19 = vrot.slane %v1768_v1, 4  ;;  %v1810_v20 = vrot.slane %v1769_v33, 3  ;;  %v1812_v21 = vrot.slane %v1770_v43, 2  ;;  %v1711_v26 = vrot.slane %v1706_v63, 2  ;;  %v10910_v43 = vld [vmem:[%s13233_s4 + $0x38] sm:$0xff] }
 0xa4c   :  { %v1803_v24 = vsel %vm208_vm0, %v1802_v45, %v1764_v7  ;;  %v1712_v29 = vrot.slane %v1706_v63, 3  ;;  %v1713_v8 = vrot.slane %v1706_v63, 4  ;;  %v1714_v30 = vrot.slane %v1706_v63, 5 }
 0xa4d   :  { %v1805_v9 = vsel %vm211_vm1, %v1804_v17, %v1803_v24  ;;  %v1715_v5 = vrot.slane %v1706_v63, 6  ;;  %v1716_v10 = vrot.slane %v1706_v63, 7  ;;  %v10855_v4 = vsub.f32 %v10778_v27, %v1706_v63  ;;  %v10926_v17 = vld [vmem:[%s13233_s4 + $0x8] sm:$0xff]  ;;  %v10945_v24 = vld [vmem:[#allocation5 + $0x6] sm:$0x1] }
 0xa4e   :  { %v1807_v11 = vsel %vm214_vm2, %v1806_v18, %v1805_v9  ;;  %v10858_v2 = vsub.f32 %v10767_v23, %v1710_v46  ;;  %v10861_v31 = vsub.f32 %v10770_v25, %v1711_v26  ;;  %v10865_v36 = vsub.f32 %v10773_v47, %v1712_v29  ;;  %v10931_v46 = vld [vmem:[%s13233_s4 + $0x20] sm:$0xff]  ;;  %v10947_v26 = vld [vmem:[#allocation5 + $0x8] sm:$0x1]  ;;  %v10949_v29 = vld [vmem:[#allocation5 + $0xa] sm:$0x1] }
 0xa4f   :  { %v1809_v12 = vsel %vm217_vm3, %v1808_v19, %v1807_v11  ;;  %v10868_v40 = vsub.f32 %v10781_v39, %v1713_v8  ;;  %v10871_v13 = vsub.f32 %v10785_v6, %v1714_v30  ;;  %v1814_v41 = vrot.slane %v1771_v16, 1  ;;  %v10915_v16 = vld [vmem:[%s13233_s4 + $0x50] sm:$0xff]  ;;  %v10939_v19 = vld [vmem:[#allocation5] sm:$0x1]  ;;  %v10951_v8 = vld [vmem:[#allocation5 + $0xc] sm:$0x1] }
 0xa50   :  { %v1811_v27 = vsel %vm220_vm4, %v1810_v20, %v1809_v12  ;;  %v10875_v23 = vsub.f32 %v10791_v22, %v1715_v5  ;;  %v10878_v25 = vsub.f32 %v10795_v32, %v1716_v10  ;;  %v1757_v47 = vmul.f32 %v10858_v2, %v10858_v2  ;;  %v10941_v20 = vld [vmem:[#allocation5 + $0x2] sm:$0x1]  ;;  %v10953_v9 = vld [vmem:[#allocation5 + $0xe] sm:$0x1]  ;;  %v148_v30 = vld [vmem:[#allocation8] sm:$0x1] }
 0xa51   :  { %v1813_v44 = vsel %vm223_vm5, %v1812_v21, %v1811_v27  ;;  %v1758_v39 = vmul.f32 %v10861_v31, %v10861_v31  ;;  %v1759_v6 = vmul.f32 %v10865_v36, %v10865_v36  ;;  %v1756_v22 = vmul.f32 %v10855_v4, %v10855_v4  ;;  %v10943_v21 = vld [vmem:[#allocation5 + $0x4] sm:$0x1]  ;;  %v149_v5 = vld [vmem:[#allocation8 + $0x2] sm:$0x1]  ;;  %v151_v11 = vld [vmem:[#allocation8 + $0x6] sm:$0x1] }
 0xa52   :  { %v1815_v50 = vsel %vm226_vm6, %v1814_v41, %v1813_v44  ;;  %v1760_v32 = vmul.f32 %v10868_v40, %v10868_v40  ;;  %v1761_v52 = vmul.f32 %v10871_v13, %v10871_v13  ;;  %v1788_v53 = vrot.slane %v1757_v47, 7  ;;  %v150_v10 = vld [vmem:[#allocation8 + $0x4] sm:$0x1]  ;;  %v152_v41 = vld [vmem:[#allocation8 + $0x8] sm:$0x1] }
 0xa53   :  { %v1821_v51 = vsel %vm242_vm7, %v1815_v50, 0.0  ;;  %v1790_v54 = vrot.slane %v1758_v39, 6  ;;  %v1762_v56 = vmul.f32 %v10875_v23, %v10875_v23  ;;  %v1763_v57 = vmul.f32 %v10878_v25, %v10878_v25  ;;  %v153_v44 = vld [vmem:[#allocation8 + $0xa] sm:$0x1]  ;;  %v154_v47 = vld [vmem:[#allocation8 + $0xc] sm:$0x1] }
 0xa54   :  { %1822 = vadd.xlane.f32.xlu1 %v1821_v51  ;;  %v1789_v58 = vsel %vm208_vm0, %v1788_v53, %v1756_v22  ;;  %v1792_v59 = vrot.slane %v1759_v6, 5  ;;  %v1794_v61 = vrot.slane %v1760_v32, 4  ;;  %v1796_v42 = vrot.slane %v1761_v52, 3  ;;  %v155_v32 = vld [vmem:[#allocation8 + $0xe] sm:$0x1] }
 0xa55   :  { %v1791_v60 = vsel %vm211_vm1, %v1790_v54, %v1789_v58  ;;  %v1798_v37 = vrot.slane %v1762_v56, 2  ;;  %v1800_v3 = vrot.slane %v1763_v57, 1  ;;  %v10919_v45 = vpack.i.bf16 %v10915_v16, %v10910_v43 }
 0xa56   :  { %v1793_v62 = vsel %vm214_vm2, %v1792_v59, %v1791_v60  ;;  %v10935_v18 = vpack.i.bf16 %v10931_v46, %v10926_v17  ;;  %v9573_v12 = vpack.c.bf16 %v10931_v46, %v10926_v17  ;;  %v9577_v27 = vpack.c.bf16 %v10915_v16, %v10910_v43 }
 0xa57   :  { %v1795_v63 = vsel %vm217_vm3, %v1794_v61, %v1793_v62  ;;  %v2068_v39 = vadd.f32 %v148_v30, %v10939_v19  ;;  %v2069_v6 = vadd.f32 %v149_v5, %v10941_v20  ;;  %v2070_v50 = vadd.f32 %v150_v10, %v10943_v21  ;;  %v10982_v30 = vld [vmem:[#allocation5 + $0x12] sm:$0x1]  ;;  %v10984_v10 = vld [vmem:[#allocation5 + $0x14] sm:$0x1] }
 0xa58   :  { %v1797_v0 = vsel %vm220_vm4, %v1796_v42, %v1795_v63  ;;  %v2071_v22 = vadd.f32 %v151_v11, %v10945_v24  ;;  %v2072_v51 = vadd.f32 %v152_v41, %v10947_v26  ;;  %v2073_v52 = vadd.f32 %v153_v44, %v10949_v29  ;;  %9574 = vmatprep.subr.bf16.mxu1 %v9573_v12  ;;  %v157_v5 = vld [vmem:[#allocation8 + $0x12] sm:$0x1]  ;;  %v158_v11 = vld [vmem:[#allocation8 + $0x14] sm:$0x1]  ;;  %v156_v41 = vld [vmem:[#allocation8 + $0x10] sm:$0x1] }
 0xa59   :  { %v1799_v7 = vsel %vm223_vm5, %v1798_v37, %v1797_v0  ;;  %v2074_v53 = vadd.f32 %v154_v47, %v10951_v8  ;;  %v2075_v54 = vadd.f32 %v155_v32, %v10953_v9  ;;  %v2100_v56 = vrot.slane %v2069_v6, 7  ;;  %9576 = vmatpush3.bf16.msra.mxu1 %v9573_v12  ;;  %v10989_v44 = vld [vmem:[#allocation5 + $0x16] sm:$0x1]  ;;  %v160_v32 = vld [vmem:[#allocation8 + $0x18] sm:$0x1] }
 0xa5a   :  { %v1801_v1 = vsel %vm226_vm6, %v1800_v3, %v1799_v7  ;;  %v2102_v57 = vrot.slane %v2070_v50, 6  ;;  %v2104_v58 = vrot.slane %v2071_v22, 5  ;;  %v2106_v59 = vrot.slane %v2072_v51, 4  ;;  %9578 = vmatprep.subr.bf16.mxu1 %v9577_v27  ;;  %v159_v47 = vld [vmem:[#allocation8 + $0x16] sm:$0x1] }
 0xa5b   :  { %v1818_v33 = vsel %vm242_vm7, %v1801_v1, 0.0  ;;  %v2101_v60 = vsel %vm208_vm0, %v2100_v56, %v2068_v39  ;;  %v2108_v61 = vrot.slane %v2073_v52, 3  ;;  %v2110_v42 = vrot.slane %v2074_v53, 2  ;;  %v10993_v22 = vld [vmem:[#allocation5 + $0x18] sm:$0x1] }
 0xa5c   :  { %1819 = vadd.xlane.f32.xlu0 %v1818_v33  ;;  %v2103_v62 = vsel %vm211_vm1, %v2102_v57, %v2101_v60  ;;  %v2112_v37 = vrot.slane %v2075_v54, 1  ;;  %v10978_v33 = vld [vmem:[%s13234_s5 + $0x1] ss:$0 sm:$0xff]  ;;  %v2077_v12 = vadd.f32 %v157_v5, %v10982_v30  ;;  %v2078_v39 = vadd.f32 %v158_v11, %v10984_v10  ;;  %v10997_v57 = vld [vmem:[#allocation5 + $0x1a] sm:$0x1] }
 0xa5d   :  { %v2105_v63 = vsel %vm214_vm2, %v2104_v58, %v2103_v62  ;;  %9580 = vmatpush3.bf16.msra.mxu1 %v9577_v27  ;;  %v10987_v27 = vld [vmem:[#allocation5 + $0x10] sm:$0x1]  ;;  %v2079_v51 = vadd.f32 %v159_v47, %v10989_v44  ;;  %v161_v58 = vld [vmem:[#allocation8 + $0x1a] sm:$0x1]  ;;  %v11006_v5 = vld [vmem:[#allocation5 + $0x1e] sm:$0x1] }
 0xa5e   :  { %v2107_v0 = vsel %vm217_vm3, %v2106_v59, %v2105_v63  ;;  %v2076_v6 = vadd.f32 %v156_v41, %v10987_v27  ;;  %v2114_v50 = vrot.slane %v2077_v12, 7  ;;  %v2116_v52 = vrot.slane %v2078_v39, 6  ;;  %v162_v63 = vld [vmem:[#allocation8 + $0x1c] sm:$0x1]  ;;  %v163_v11 = vld [vmem:[#allocation8 + $0x1e] sm:$0x1] }
 0xa5f   :  { %v2109_v3 = vsel %vm220_vm4, %v2108_v61, %v2107_v0  ;;  %v2080_v59 = vadd.f32 %v160_v32, %v10993_v22  ;;  %v2118_v60 = vrot.slane %v2079_v51, 5  ;;  %v2083_v32 = vadd.f32 %v163_v11, %v11006_v5 }
 0xa60   :  { %v2111_v7 = vsel %vm223_vm5, %v2110_v42, %v2109_v3  ;;  %v2115_v54 = vsel %vm208_vm0, %v2114_v50, %v2076_v6  ;;  %v11001_v42 = vld [vmem:[#allocation5 + $0x1c] sm:$0x1] }
 0xa61   :  { %v2113_v1 = vsel %vm226_vm6, %v2112_v37, %v2111_v7  ;;  %v2117_v62 = vsel %vm211_vm1, %v2116_v52, %v2115_v54  ;;  %v2081_v37 = vadd.f32 %v161_v58, %v10997_v57  ;;  %v2120_v0 = vrot.slane %v2080_v59, 4 }
 0xa62   :  { %9160 = vmatprep.mubr.msk.f32.mxu0 %vm242_vm7, %v2113_v1  ;;  %v2119_v3 = vsel %vm214_vm2, %v2118_v60, %v2117_v62  ;;  %v2082_v7 = vadd.f32 %v162_v63, %v11001_v42  ;;  %v2126_v62 = vrot.slane %v2083_v32, 1 }
 0xa63   :  { %v2122_v12 = vrot.slane %v2081_v37, 3  ;;  %v2121_v47 = vsel %vm217_vm3, %v2120_v0, %v2119_v3 }
 0xa64   :  { %v2124_v51 = vrot.slane %v2082_v7, 2  ;;  %v8643_v7 = vld [vmem:[%s13236_s7 + $0x1] ss:$0 sm:$0xff] }
 0xa65   :  { %9895 = vrot.lane.b32.xlu1 %v10919_v45, %s10352_s21 }
 0xa69   :  { %2144 = vrot.lane.b32.xlu1 %v10978_v33, %s10352_s21 }
 0xa6d   :  { %9905 = vrot.lane.b32.xlu1 %v10919_v45, %s10353_s0 }
 0xa72   :  { %9890 = vrot.lane.b32.xlu0 %v10935_v18, %s10352_s21 }
 0xa76   :  { %9900 = vrot.lane.b32.xlu0 %v10935_v18, %s10353_s0 }
 0xae1   :  { %v1823_v53 = vpop.xlane.xlu1 %1822 }
 0xae2   :  { %v1825_v56 = vmul.f32 0.03125, %v1823_v53  ;;  %v2123_v53 = vsel %vm220_vm4, %v2122_v12, %v2121_v47 }
 0xae4   :  { %v1827_v61 = vadd.f32 1e-05, %v1825_v56 }
 0xae5   :  { %v9896_v1 = vpop.permute.xlu1 %9895 }
 0xae6   :  { %10066 = vrsqrt.f32 %v1827_v61  ;;  %v9898_v6 = vunpack.i.h.bf16 %v9896_v1  ;;  %v9897_v50 = vunpack.i.l.bf16 %v9896_v1  ;;  %v2125_v61 = vsel %vm223_vm5, %v2124_v51, %v2123_v53 }
 0xae8   :  { %v9585_v60 = vpack.c.bf16 %v9898_v6, %v9897_v50 }
 0xae9   :  { %v1820_v41 = vpop.xlane.xlu0 %1819 }
 0xaea   :  { %v1824_v39 = vmul.f32 0.03125, %v1820_v41 }
 0xaec   :  { %v1826_v52 = vadd.f32 1e-05, %v1824_v39 }
 0xaed   :  { %v9891_v54 = vpop.permute.xlu0 %9890 }
 0xaee   :  { %10068 = vrsqrt.f32 %v1826_v52  ;;  %v9893_v56 = vunpack.i.h.bf16 %v9891_v54  ;;  %v9892_v58 = vunpack.i.l.bf16 %v9891_v54 }
 0xaf0   :  { %v10067_v59 = vpop.eup %10066  ;;  %v9581_v63 = vpack.c.bf16 %v9893_v56, %v9892_v58 }
 0xaf1   :  { %v1839_v37 = vrot.slane %v10067_v59, 1  ;;  %v1840_v0 = vrot.slane %v10067_v59, 2  ;;  %v1841_v3 = vrot.slane %v10067_v59, 3  ;;  %v1842_v1 = vrot.slane %v10067_v59, 4 }
 0xaf2   :  { %v1843_v11 = vrot.slane %v10067_v59, 5  ;;  %v1844_v12 = vrot.slane %v10067_v59, 6  ;;  %v1845_v41 = vrot.slane %v10067_v59, 7  ;;  %9582 = vmatprep.subr.bf16.mxu0 %v9581_v63  ;;  %v1870_v47 = vmul.f32 %v10067_v59, %v10812_v55  ;;  %v11026_v55 = vld [vmem:[%s13236_s7 + $0x2] ss:$0 sm:$0xff] }
 0xaf3   :  { %v1871_v39 = vmul.f32 %v1839_v37, %v10815_v34  ;;  %v1872_v6 = vmul.f32 %v1840_v0, %v10818_v14  ;;  %v1873_v50 = vmul.f32 %v1841_v3, %v10821_v38  ;;  %9584 = vmatpush3.bf16.msra.mxu0 %v9581_v63  ;;  %v1874_v32 = vmul.f32 %v1842_v1, %v10824_v15 }
 0xaf4   :  { %v1875_v51 = vmul.f32 %v1843_v11, %v10827_v28  ;;  %v1876_v52 = vmul.f32 %v1844_v12, %v10830_v48  ;;  %v1877_v53 = vmul.f32 %v1845_v41, %v10833_v35  ;;  %9586 = vmatprep.subr.bf16.mxu0 %v9585_v60  ;;  %v1890_v34 = vmul.f32 %v8643_v7, %v1870_v47 }
 0xaf5   :  { %v1891_v54 = vmul.f32 %v8643_v7, %v1871_v39  ;;  %v1892_v14 = vmul.f32 %v8643_v7, %v1872_v6  ;;  %v1893_v56 = vmul.f32 %v8643_v7, %v1873_v50  ;;  %v1894_v38 = vmul.f32 %v8643_v7, %v1874_v32 }
 0xaf6   :  { %v1895_v58 = vmul.f32 %v8643_v7, %v1875_v51  ;;  %v1896_v59 = vmul.f32 %v8643_v7, %v1876_v52  ;;  %v2127_v15 = vsel %vm226_vm6, %v2126_v62, %v2125_v61  ;;  %v1897_v28 = vmul.f32 %v8643_v7, %v1877_v53 }
 0xaf7   :  { %9588 = vmatpush3.bf16.msra.mxu0 %v9585_v60  ;;  %v11030_v48 = vadd.f32 %v11026_v55, %v1890_v34  ;;  %v11033_v35 = vadd.f32 %v11026_v55, %v1891_v54  ;;  %v11036_v63 = vadd.f32 %v11026_v55, %v1892_v14  ;;  %v11039_v0 = vadd.f32 %v11026_v55, %v1893_v56 }
 0xaf8   :  { %v10069_v37 = vpop.eup %10068  ;;  %v11042_v3 = vadd.f32 %v11026_v55, %v1894_v38  ;;  %v11045_v61 = vadd.f32 %v11026_v55, %v1895_v58  ;;  %v11048_v60 = vadd.f32 %v11026_v55, %v1896_v59 }
 0xaf9   :  { %v1832_v62 = vrot.slane %v10069_v37, 1  ;;  %v1833_v1 = vrot.slane %v10069_v37, 2  ;;  %v1834_v11 = vrot.slane %v10069_v37, 3  ;;  %v1835_v12 = vrot.slane %v10069_v37, 4 }
 0xafa   :  { %9161 = vmatmul.mubr.msk.f32.vlgmr.msra.gmra.mrb[10].mxu0 %vm242_vm7, %v2127_v15  ;;  %v1836_v41 = vrot.slane %v10069_v37, 5  ;;  %v1837_v47 = vrot.slane %v10069_v37, 6  ;;  %v1838_v39 = vrot.slane %v10069_v37, 7  ;;  %v1862_v6 = vmul.f32 %v10069_v37, %v10855_v4 }
 0xafb   :  { %v1863_v50 = vmul.f32 %v1832_v62, %v10858_v2  ;;  %v1864_v32 = vmul.f32 %v1833_v1, %v10861_v31  ;;  %v1865_v51 = vmul.f32 %v1834_v11, %v10865_v36  ;;  %v1866_v52 = vmul.f32 %v1835_v12, %v10868_v40  ;;  %v10186_v62 = vld [vmem:[#allocation7 + $0x12] sm:$0x1]  ;;  %v10187_v11 = vld [vmem:[#allocation7 + $0x2] sm:$0x1] }
 0xafc   :  { %v1867_v53 = vmul.f32 %v1836_v41, %v10871_v13  ;;  %v1868_v34 = vmul.f32 %v1837_v47, %v10875_v23  ;;  %v1869_v54 = vmul.f32 %v1838_v39, %v10878_v25  ;;  %v1882_v14 = vmul.f32 %v8643_v7, %v1862_v6  ;;  %v10188_v41 = vld [vmem:[#allocation7 + $0x4] sm:$0x1]  ;;  %v10189_v39 = vld [vmem:[#allocation7 + $0x6] sm:$0x1] }
 0xafd   :  { %v1883_v56 = vmul.f32 %v8643_v7, %v1863_v50  ;;  %v1884_v38 = vmul.f32 %v8643_v7, %v1864_v32  ;;  %v1885_v58 = vmul.f32 %v8643_v7, %v1865_v51  ;;  %v1886_v59 = vmul.f32 %v8643_v7, %v1866_v52  ;;  %v10190_v50 = vld [vmem:[#allocation7 + $0x8] sm:$0x1]  ;;  %v10191_v51 = vld [vmem:[#allocation7 + $0xa] sm:$0x1] }
 0xafe   :  { %v1887_v4 = vmul.f32 %v8643_v7, %v1867_v53  ;;  %v1888_v15 = vmul.f32 %v8643_v7, %v1868_v34  ;;  %v1889_v2 = vmul.f32 %v8643_v7, %v1869_v54  ;;  %v11060_v31 = vadd.f32 %v11026_v55, %v1882_v14  ;;  %v10192_v34 = vld [vmem:[#allocation7 + $0x10] sm:$0x1]  ;;  %v10193_v14 = vld [vmem:[#allocation7 + $0x14] sm:$0x1] }
 0xaff   :  { %v11063_v36 = vadd.f32 %v11026_v55, %v1883_v56  ;;  %v11066_v40 = vadd.f32 %v11026_v55, %v1884_v38  ;;  %v11069_v13 = vadd.f32 %v11026_v55, %v1885_v58  ;;  %v11072_v23 = vadd.f32 %v11026_v55, %v1886_v59  ;;  %v10194_v38 = vld [vmem:[#allocation7] sm:$0x1] }
 0xb00   :  { %v11075_v25 = vadd.f32 %v11026_v55, %v1887_v4  ;;  %v11078_v7 = vadd.f32 %v11026_v55, %v1888_v15  ;;  %v11081_v37 = vadd.f32 %v11026_v55, %v1889_v2  ;;  %v1927_v1 = vadd.f32 %v10186_v62, %v11033_v35  ;;  %v10195_v15 = vld [vmem:[#allocation7 + $0x16] sm:$0x1]  ;;  %v10196_v62 = vld [vmem:[#allocation7 + $0xc] sm:$0x1] }
 0xb01   :  { %v1919_v12 = vadd.f32 %v10187_v11, %v11063_v36  ;;  %v1920_v47 = vadd.f32 %v10188_v41, %v11066_v40  ;;  %v1921_v6 = vadd.f32 %v10189_v39, %v11069_v13  ;;  %v1922_v32 = vadd.f32 %v10190_v50, %v11072_v23  ;;  %v10197_v41 = vld [vmem:[#allocation7 + $0xe] sm:$0x1]  ;;  %v10198_v39 = vld [vmem:[#allocation7 + $0x18] sm:$0x1] }
 0xb02   :  { %13270 = vst [vmem:[#allocation15_spill] sm:$0xff] %v11075_v25  ;;  %13271 = vst [vmem:[#allocation16_spill] sm:$0xff] %v11078_v7  ;;  %v1923_v52 = vadd.f32 %v10191_v51, %v11075_v25  ;;  %v11090_v53 = vadd.f32 %v11026_v55, %v1897_v28  ;;  %v1926_v54 = vadd.f32 %v10192_v34, %v11030_v48  ;;  %v10200_v25 = vld [vmem:[#allocation7 + $0x1c] sm:$0x1] }
 0xb03   :  { %13272 = vst [vmem:[#allocation17_spill] sm:$0xff] %v11081_v37  ;;  %v1928_v56 = vadd.f32 %v10193_v14, %v11036_v63  ;;  %v1918_v58 = vadd.f32 %v10194_v38, %v11060_v31  ;;  %v1961_v59 = vrot.slane %v1919_v12, 7  ;;  %v1963_v4 = vrot.slane %v1920_v47, 6  ;;  %v10199_v14 = vld [vmem:[#allocation7 + $0x1a] sm:$0x1] }
 0xb04   :  { %v1929_v2 = vadd.f32 %v10195_v15, %v11039_v0  ;;  %v1924_v11 = vadd.f32 %v10196_v62, %v11078_v7  ;;  %v1925_v55 = vadd.f32 %v10197_v41, %v11081_v37  ;;  %v1965_v28 = vrot.slane %v1921_v6, 5  ;;  %v10201_v6 = vld [vmem:[#allocation7 + $0x1e] sm:$0x1] }
 0xb05   :  { %v1930_v50 = vadd.f32 %v10198_v39, %v11042_v3  ;;  %v1962_v51 = vsel %vm208_vm0, %v1961_v59, %v1918_v58  ;;  %v1967_v34 = vrot.slane %v1922_v32, 4  ;;  %v1931_v12 = vadd.f32 %v10199_v14, %v11045_v61 }
 0xb06   :  { %v1975_v47 = vrot.slane %v1927_v1, 7  ;;  %v1964_v38 = vsel %vm211_vm1, %v1963_v4, %v1962_v51  ;;  %v1969_v15 = vrot.slane %v1923_v52, 3  ;;  %v1932_v62 = vadd.f32 %v10200_v25, %v11048_v60 }
 0xb07   :  { %v1977_v7 = vrot.slane %v1928_v56, 6  ;;  %v1966_v41 = vsel %vm214_vm2, %v1965_v28, %v1964_v38  ;;  %v1933_v37 = vadd.f32 %v10201_v6, %v11090_v53  ;;  %v1979_v58 = vrot.slane %v1929_v2, 5 }
 0xb08   :  { %v1976_v39 = vsel %vm208_vm0, %v1975_v47, %v1926_v54  ;;  %v1968_v32 = vsel %vm217_vm3, %v1967_v34, %v1966_v41  ;;  %v1971_v59 = vrot.slane %v1924_v11, 2  ;;  %v1981_v14 = vrot.slane %v1930_v50, 4 }
 0xb09   :  { %v1978_v1 = vsel %vm211_vm1, %v1977_v7, %v1976_v39  ;;  %v1970_v52 = vsel %vm220_vm4, %v1969_v15, %v1968_v32  ;;  %v1973_v4 = vrot.slane %v1925_v55, 1  ;;  %v1983_v56 = vrot.slane %v1931_v12, 3  ;;  %v2145_v55 = vpop.permute.xlu1 %2144  ;;  %v9901_v39 = vpop.permute.xlu0 %9900 }
 0xb0a   :  { %v1980_v25 = vsel %vm214_vm2, %v1979_v58, %v1978_v1  ;;  %v1972_v28 = vsel %vm223_vm5, %v1971_v59, %v1970_v52  ;;  %v1985_v38 = vrot.slane %v1932_v62, 2  ;;  %v1987_v34 = vrot.slane %v1933_v37, 1 }
 0xb0b   :  { %v1982_v51 = vsel %vm217_vm3, %v1981_v14, %v1980_v25  ;;  %v1974_v54 = vsel %vm226_vm6, %v1973_v4, %v1972_v28  ;;  %v2242_v32 = vrot.slane %v10941_v20, 7  ;;  %v2244_v59 = vrot.slane %v10943_v21, 6 }
 0xb0c   :  { %v1984_v2 = vsel %vm220_vm4, %v1983_v56, %v1982_v51  ;;  %9149 = vmatprep.mubr.msk.f32.mxu1 %vm242_vm7, %v1974_v54  ;;  %v2246_v1 = vrot.slane %v10945_v24, 5  ;;  %v2248_v14 = vrot.slane %v10947_v26, 4  ;;  %v9903_v52 = vunpack.i.h.bf16 %v9901_v39 }
 0xb0d   :  { %v1986_v7 = vsel %vm223_vm5, %v1985_v38, %v1984_v2  ;;  %v9906_v58 = vpop.permute.xlu1 %9905  ;;  %v9902_v4 = vunpack.i.l.bf16 %v9901_v39  ;;  %v2243_v28 = vsel %vm208_vm0, %v2242_v32, %v10939_v19  ;;  %v2250_v51 = vrot.slane %v10949_v29, 3 }
 0xb0e   :  { %v1988_v11 = vsel %vm226_vm6, %v1987_v34, %v1986_v7  ;;  %v9908_v25 = vunpack.i.h.bf16 %v9906_v58  ;;  %v9907_v56 = vunpack.i.l.bf16 %v9906_v58  ;;  %v2252_v38 = vrot.slane %v10951_v8, 2 }
 0xb0f   :  { %9150 = vmatmul.mubr.msk.f32.vlgmr.msra.gmra.mrb[12].mxu1 %vm242_vm7, %v1988_v11  ;;  %v2254_v54 = vrot.slane %v10953_v9, 1  ;;  %v9589_v20 = vpack.c.bf16 %v9903_v52, %v9902_v4  ;;  %v2245_v21 = vsel %vm211_vm1, %v2244_v59, %v2243_v28  ;;  %v2256_v24 = vrot.slane %v10982_v30, 7 }
 0xb10   :  { %v9593_v2 = vpack.c.bf16 %v9908_v25, %v9907_v56  ;;  %v2247_v26 = vsel %vm214_vm2, %v2246_v1, %v2245_v21  ;;  %v2258_v34 = vrot.slane %v10984_v10, 6  ;;  %v2260_v7 = vrot.slane %v10989_v44, 5 }
 0xb11   :  { %v2262_v19 = vrot.slane %v10993_v22, 4  ;;  %9590 = vmatprep.subr.bf16.mxu1 %v9589_v20  ;;  %v2249_v29 = vsel %vm217_vm3, %v2248_v14, %v2247_v26  ;;  %v2257_v8 = vsel %vm208_vm0, %v2256_v24, %v10987_v27  ;;  %v2264_v9 = vrot.slane %v10997_v57, 3 }
 0xb12   :  { %9592 = vmatpush3.bf16.msra.mxu1 %v9589_v20  ;;  %v2251_v11 = vsel %vm220_vm4, %v2250_v51, %v2249_v29  ;;  %v2259_v30 = vsel %vm211_vm1, %v2258_v34, %v2257_v8  ;;  %v2268_v22 = vrot.slane %v11006_v5, 1 }
 0xb13   :  { %9594 = vmatprep.subr.bf16.mxu1 %v9593_v2  ;;  %v2253_v10 = vsel %vm223_vm5, %v2252_v38, %v2251_v11  ;;  %v2261_v44 = vsel %vm214_vm2, %v2260_v7, %v2259_v30 }
 0xb14   :  { %v2263_v27 = vsel %vm217_vm3, %v2262_v19, %v2261_v44 }
 0xb15   :  { %v2265_v57 = vsel %vm220_vm4, %v2264_v9, %v2263_v27 }
 0xb16   :  { %9596 = vmatpush3.bf16.msra.mxu1 %v9593_v2 }
 0xbcd   :  { %v9162_v50 = vpop.f32.mrb[10].mxu0 }
 0xbce   :  { %v2223_v12 = vadd.f32 %v9162_v50, %v2145_v55  ;;  %v2217_v47 = vpop.f32.mrb[11].mxu0  ;;  %v2255_v50 = vsel %vm226_vm6, %v2254_v54, %v2253_v10 }
 0xbcf   :  { %v2218_v15 = vadd.f32 %v2217_v47, %v2145_v55  ;;  %v2266_v55 = vrot.slane %v11001_v42, 2  ;;  %9171 = vmatprep.mubr.msk.f32.mxu1 %vm242_vm7, %v2255_v50 }
 0xbd1   :  { %v9597_v37 = vpack.c.bf16 %v2223_v12, %v2218_v15  ;;  %v11122_v62 = vpack.i.bf16 %v2223_v12, %v2218_v15  ;;  %v2267_v12 = vsel %vm223_vm5, %v2266_v55, %v2265_v57 }
 0xbd2   :  { %v2269_v42 = vsel %vm226_vm6, %v2268_v22, %v2267_v12 }
 0xbd3   :  { %9599 = vmatprep.subr.msk.bf16.mxu0 %vm10595_vm9, %v9597_v37  ;;  %9172 = vmatmul.mubr.msk.f32.vlgmr.msra.gmra.mrb[14].mxu1 %vm242_vm7, %v2269_v42 }
 0xbd4   :  { %9602 = vmatpush3.bf16.xpose.msk.msra.mxu0 %vm10595_vm9, %v9597_v37 }
 0xbe2   :  { %v9151_v41 = vpop.f32.mrb[12].mxu1 }
 0xbe3   :  { %v2059_v6 = vpop.f32.mrb[13].mxu1  ;;  %v11132_v45 = vadd.f32 %v9151_v41, %v10978_v33 }
 0xbe4   :  { %v11129_v18 = vadd.f32 %v10978_v33, %v2059_v6 }
 0xbe6   :  { %9178 = vmatprep.mubr.msk.f32.mxu0 %vm470_vm8, %v11129_v18 }
 0xbe7   :  { %9179 = vmatmul.mubr.msk.f32.vlgmr.msra.gmra.mrb[12].mxu0 %vm470_vm8, %v11132_v45 }
 0xca6   :  { %v9173_v56 = vpop.f32.mrb[14].mxu1 }
 0xca7   :  { %v2355_v51 = vpop.f32.mrb[15].mxu1 }
 0xcba   :  { %v9180_v47 = vpop.f32.mrb[12].mxu0 }
 0xcbb   :  { %v2442_v15 = vpop.f32.mrb[13].mxu0  ;;  %v2454_v37 = vsel %vm554_vm10, %v9180_v47, -inf }
 0xcbc   :  { %2455 = vmax.xlane.f32.xlu1 %v2454_v37  ;;  %v2451_v5 = vsel %vm554_vm10, %v2442_v15, -inf }
 0xcbd   :  { %2452 = vmax.xlane.f32.xlu0 %v2451_v5 }
 0xccd   :  { %2282 = vrot.lane.b32.xlu1 %v10978_v33, %s10353_s0 }
 0xcd1   :  { %2554 = vrot.lane.b32.xlu1 %v11129_v18, %s10355_s22 }
 0xcd5   :  { %2556 = vrot.lane.b32.xlu1 %v11132_v45, %s10355_s22 }
 0xcd9   :  { %2924 = vrot.lane.b32.xlu1 %v11129_v18, %s10357_s24 }
 0xd49   :  { %v2456_v41 = vpop.xlane.xlu1 %2455 }
 0xd4a   :  { %v2458_v6 = vsub.f32 %v9180_v47, %v2456_v41  ;;  %v2453_v39 = vpop.xlane.xlu0 %2452 }
 0xd4b   :  { %v2457_v58 = vsub.f32 %v2442_v15, %v2453_v39 }
 0xd4c   :  { %v2461_v32 = vmul.f32 1.442695, %v2458_v6 }
 0xd4d   :  { %v2459_v59 = vmul.f32 1.442695, %v2457_v58  ;;  %v2283_v25 = vpop.permute.xlu1 %2282 }
 0xd4e   :  { %10070 = vpow2.f32 %v2461_v32  ;;  %v2361_v28 = vadd.f32 %v9173_v56, %v2283_v25  ;;  %v2356_v38 = vadd.f32 %v2355_v51, %v2283_v25 }
 0xd4f   :  { %10072 = vpow2.f32 %v2459_v59 }
 0xd50   :  { %v9603_v54 = vpack.c.bf16 %v2361_v28, %v2356_v38  ;;  %v11182_v20 = vpack.i.bf16 %v2361_v28, %v2356_v38 }
 0xd51   :  { %v2555_v9 = vpop.permute.xlu1 %2554 }
 0xd52   :  { %9604 = vmatprep.subr.bf16.mxu1 %v9603_v54 }
 0xd53   :  { %9606 = vmatpush3.bf16.msra.mxu1 %v9603_v54 }
 0xd55   :  { %v2557_v22 = vpop.permute.xlu1 %2556 }
 0xd58   :  { %v10071_v1 = vpop.eup %10070 }
 0xd59   :  { %v2466_v14 = vsel %vm554_vm10, %v10071_v1, 0.0  ;;  %v10073_v52 = vpop.eup %10072  ;;  %v2925_v50 = vpop.permute.xlu1 %2924 }
 0xd5a   :  { %2467 = vadd.xlane.f32.xlu0 %v2466_v14  ;;  %v2463_v4 = vsel %vm554_vm10, %v10073_v52, 0.0 }
 0xd5e   :  { %2464 = vadd.xlane.f32.xlu0 %v2463_v4 }
 0xd74   :  { %9910 = vrot.lane.b32.xlu0 %v11122_v62, %s10355_s22 }
 0xd78   :  { %9915 = vrot.lane.b32.xlu0 %v11122_v62, %s10357_s24 }
 0xd7c   :  { %2926 = vrot.lane.b32.xlu0 %v11132_v45, %s10357_s24 }
 0xde7   :  { %v2468_v2 = vpop.xlane.xlu0 %2467 }
 0xde8   :  { %10074 = vrcp.f32 %v2468_v2 }
 0xdeb   :  { %v2465_v21 = vpop.xlane.xlu0 %2464 }
 0xdec   :  { %10076 = vrcp.f32 %v2465_v21 }
 0xdef   :  { %v9911_v24 = vpop.permute.xlu0 %9910 }
 0xdf0   :  { %v9913_v26 = vunpack.i.h.bf16 %v9911_v24  ;;  %v9912_v34 = vunpack.i.l.bf16 %v9911_v24 }
 0xdf2   :  { %v9607_v7 = vpack.c.bf16 %v9913_v26, %v9912_v34  ;;  %v10075_v29 = vpop.eup %10074 }
 0xdf3   :  { %v9916_v19 = vpop.permute.xlu0 %9915  ;;  %v2472_v10 = vmul.f32 %v10075_v29, %v10071_v1 }
 0xdf4   :  { %9609 = vmatprep.subr.msk.bf16.mxu1 %vm10595_vm9, %v9607_v7  ;;  %v9918_v11 = vunpack.i.h.bf16 %v9916_v19  ;;  %v9917_v30 = vunpack.i.l.bf16 %v9916_v19 }
 0xdf6   :  { %v10077_v8 = vpop.eup %10076  ;;  %v9617_v44 = vpack.c.bf16 %v9918_v11, %v9917_v30 }
 0xdf7   :  { %v2470_v55 = vmul.f32 %v10077_v8, %v10073_v52  ;;  %v2927_v27 = vpop.permute.xlu0 %2926 }
 0xdf9   :  { %9185 = vmatprep.mubr.msk.f32.mxu1 %vm554_vm10, %v2470_v55 }
 0xdfa   :  { %9186 = vmatmul.mubr.msk.f32.vlgmr.msra.gmra.mrb[16].mxu1 %vm554_vm10, %v2472_v10 }
 0xdfb   :  { %9612 = vmatpush3.bf16.xpose.msk.msra.mxu1 %vm10595_vm9, %v9607_v7  ;;  %9192 = vmatprep.mubr.msk.f32.mxu1 %vm470_vm8, %v2555_v9 }
 0xdfc   :  { %9619 = vmatprep.subr.msk.bf16.mxu1 %vm10595_vm9, %v9617_v44 }
 0xe02   :  { %9193 = vmatmul.mubr.msk.f32.vlgmr.msra.gmra.mrb[18].mxu1 %vm470_vm8, %v2557_v22 }
 0xe03   :  { %9622 = vmatpush3.bf16.xpose.msk.msra.mxu1 %vm10595_vm9, %v9617_v44  ;;  %9216 = vmatprep.mubr.msk.f32.mxu1 %vm470_vm8, %v2925_v50 }
 0xe0a   :  { %9217 = vmatmul.mubr.msk.f32.vlgmr.msra.gmra.mrb[20].mxu1 %vm470_vm8, %v2927_v27 }
 0xecd   :  { %v11204_v57 = vpop.f32.mrb[16].mxu1 }
 0xece   :  { %v11206_v12 = vpop.f32.mrb[17].mxu1 }
 0xed5   :  { %v9194_v42 = vpop.f32.mrb[18].mxu1 }
 0xed6   :  { %v2636_v47 = vpop.f32.mrb[19].mxu1  ;;  %v2648_v15 = vsel %vm554_vm10, %v9194_v42, -inf }
 0xed7   :  { %2649 = vmax.xlane.f32.xlu0 %v2648_v15  ;;  %v2645_v37 = vsel %vm554_vm10, %v2636_v47, -inf }
 0xed8   :  { %2646 = vmax.xlane.f32.xlu1 %v2645_v37 }
 0xedd   :  { %v9218_v5 = vpop.f32.mrb[20].mxu1 }
 0xede   :  { %v3006_v41 = vpop.f32.mrb[21].mxu1  ;;  %v3018_v28 = vsel %vm554_vm10, %v9218_v5, -inf }
 0xedf   :  { %v3015_v56 = vsel %vm554_vm10, %v3006_v41, -inf }
 0xf64   :  { %v2650_v6 = vpop.xlane.xlu0 %2649 }
 0xf65   :  { %v2652_v39 = vsub.f32 %v9194_v42, %v2650_v6  ;;  %v2647_v58 = vpop.xlane.xlu1 %2646 }
 0xf66   :  { %v2651_v32 = vsub.f32 %v2636_v47, %v2647_v58 }
 0xf67   :  { %v2655_v59 = vmul.f32 1.442695, %v2652_v39 }
 0xf68   :  { %v2653_v1 = vmul.f32 1.442695, %v2651_v32 }
 0xf69   :  { %10078 = vpow2.f32 %v2655_v59 }
 0xf6a   :  { %10080 = vpow2.f32 %v2653_v1 }
 0xf73   :  { %v10079_v14 = vpop.eup %10078 }
 0xf74   :  { %v10081_v52 = vpop.eup %10080  ;;  %v2660_v4 = vsel %vm554_vm10, %v10079_v14, 0.0 }
 0xf75   :  { %2661 = vadd.xlane.f32.xlu1 %v2660_v4  ;;  %v2657_v25 = vsel %vm554_vm10, %v10081_v52, 0.0 }
 0xf76   :  { %2658 = vadd.xlane.f32.xlu0 %v2657_v25 }
 0xf86   :  { %9925 = vrot.lane.b32.xlu1 %v11122_v62, %s10358_s25 }
 0xf8a   :  { %3210 = vrot.lane.b32.xlu1 %v11129_v18, %s10358_s25 }
 0xf8c   :  { %9920 = vrot.lane.b32.xlu0 %v11182_v20, %s10355_s22 }
 0xf90   :  { %3212 = vrot.lane.b32.xlu0 %v11132_v45, %s10358_s25 }
 0xfae   :  { %3016 = vmax.xlane.f32.xlu1 %v3015_v56 }
 0xfaf   :  { %3019 = vmax.xlane.f32.xlu0 %v3018_v28 }
0x1002   :  { %v2662_v51 = vpop.xlane.xlu1 %2661 }
0x1003   :  { %10082 = vrcp.f32 %v2662_v51  ;;  %v2659_v38 = vpop.xlane.xlu0 %2658 }
0x1004   :  { %10084 = vrcp.f32 %v2659_v38 }
0x1006   :  { %v9926_v62 = vpop.permute.xlu1 %9925 }
0x1007   :  { %v9928_v54 = vunpack.i.h.bf16 %v9926_v62  ;;  %v9927_v2 = vunpack.i.l.bf16 %v9926_v62  ;;  %v9921_v18 = vpop.permute.xlu0 %9920 }
0x1008   :  { %v9923_v21 = vunpack.i.h.bf16 %v9921_v18  ;;  %v9922_v24 = vunpack.i.l.bf16 %v9921_v18 }
0x1009   :  { %v9627_v26 = vpack.c.bf16 %v9928_v54, %v9927_v2 }
0x100a   :  { %v3211_v34 = vpop.permute.xlu1 %3210  ;;  %v9613_v7 = vpack.c.bf16 %v9923_v21, %v9922_v24 }
0x100b   :  { %9629 = vmatprep.subr.msk.bf16.mxu1 %vm10595_vm9, %v9627_v26  ;;  %9235 = vmatprep.mubr.msk.f32.mxu1 %vm470_vm8, %v3211_v34  ;;  %v3213_v9 = vpop.permute.xlu0 %3212 }
0x100c   :  { %9614 = vmatprep.subr.bf16.mxu0 %v9613_v7  ;;  %9632 = vmatpush3.bf16.xpose.msk.msra.mxu1 %vm10595_vm9, %v9627_v26 }
0x100d   :  { %v10083_v45 = vpop.eup %10082  ;;  %9616 = vmatpush3.bf16.msra.mxu0 %v9613_v7 }
0x100e   :  { %v10085_v19 = vpop.eup %10084  ;;  %v2666_v8 = vmul.f32 %v10083_v45, %v10079_v14 }
0x100f   :  { %v2664_v29 = vmul.f32 %v10085_v19, %v10081_v52 }
0x1011   :  { %9199 = vmatprep.mubr.msk.f32.mxu0 %vm554_vm10, %v2664_v29 }
0x1012   :  { %9200 = vmatmul.mubr.msk.f32.vlgmr.msra.gmra.mrb[14].mxu0 %vm554_vm10, %v2666_v8 }
0x1013   :  { %9236 = vmatmul.mubr.msk.f32.vlgmr.msra.gmra.mrb[22].mxu1 %vm470_vm8, %v3213_v9 }
0x103b   :  { %v3017_v11 = vpop.xlane.xlu1 %3016 }
0x103c   :  { %v3021_v30 = vsub.f32 %v3006_v41, %v3017_v11  ;;  %v3020_v55 = vpop.xlane.xlu0 %3019 }
0x103d   :  { %v3022_v10 = vsub.f32 %v9218_v5, %v3020_v55 }
0x103e   :  { %v3023_v44 = vmul.f32 1.442695, %v3021_v30 }
0x103f   :  { %v3025_v22 = vmul.f32 1.442695, %v3022_v10 }
0x1040   :  { %10086 = vpow2.f32 %v3023_v44 }
0x1041   :  { %10088 = vpow2.f32 %v3025_v22 }
0x104a   :  { %v10087_v50 = vpop.eup %10086 }
0x104b   :  { %v10089_v27 = vpop.eup %10088  ;;  %v3027_v42 = vsel %vm554_vm10, %v10087_v50, 0.0 }
0x104c   :  { %3028 = vadd.xlane.f32.xlu0 %v3027_v42  ;;  %v3030_v47 = vsel %vm554_vm10, %v10089_v27, 0.0 }
0x104d   :  { %3031 = vadd.xlane.f32.xlu1 %v3030_v47 }
0x105e   :  { %2840 = vrot.lane.b32.xlu1 %v10926_v17, %s10348_s17 }
0x1062   :  { %9930 = vrot.lane.b32.xlu1 %v11182_v20, %s10357_s24  ;;  %2756 = vrot.lane.b32.xlu0 %v10931_v46, %s10348_s17 }
0x10d9   :  { %v3029_v15 = vpop.xlane.xlu0 %3028 }
0x10da   :  { %v3032_v37 = vpop.xlane.xlu1 %3031  ;;  %10090 = vrcp.f32 %v3029_v15 }
0x10db   :  { %10092 = vrcp.f32 %v3032_v37 }
0x10dd   :  { %v2757_v5 = vpop.permute.xlu0 %2756 }
0x10de   :  { %v2841_v41 = vpop.permute.xlu1 %2840  ;;  %9202 = vmatprep.subr.mxu0 %v2757_v5 }
0x10df   :  { %9203 = vmatpush3.msra.mxu0 %v2757_v5 }
0x10e0   :  { %9207 = vmatprep.subr.mxu0 %v2841_v41 }
0x10e2   :  { %v9931_v6 = vpop.permute.xlu1 %9930 }
0x10e3   :  { %v9933_v39 = vunpack.i.h.bf16 %v9931_v6  ;;  %v9932_v58 = vunpack.i.l.bf16 %v9931_v6 }
0x10e4   :  { %v10091_v4 = vpop.eup %10090 }
0x10e5   :  { %v9201_v32 = vpop.f32.mrb[14].mxu0  ;;  %v9623_v14 = vpack.c.bf16 %v9933_v39, %v9932_v58  ;;  %v10093_v25 = vpop.eup %10092  ;;  %v3034_v56 = vmul.f32 %v10091_v4, %v10087_v50 }
0x10e6   :  { %v2747_v17 = vpop.f32.mrb[15].mxu0  ;;  %v9237_v59 = vpop.f32.mrb[22].mxu1  ;;  %v3036_v28 = vmul.f32 %v10093_v25, %v10089_v27 }
0x10e7   :  { %9204 = vmatprep.mubr.msk.f32.mxu0 %vm470_vm8, %v2747_v17  ;;  %v3292_v1 = vpop.f32.mrb[23].mxu1  ;;  %v3304_v46 = vsel %vm554_vm10, %v9237_v59, -inf }
0x10e8   :  { %9205 = vmatmul.mubr.msk.f32.vlgmr.msra.gmra.mrb[16].mxu0 %vm470_vm8, %v9201_v32  ;;  %3305 = vmax.xlane.f32.xlu1 %v3304_v46  ;;  %v3301_v52 = vsel %vm554_vm10, %v3292_v1, -inf }
0x10e9   :  { %9208 = vmatpush3.msra.mxu0 %v2841_v41  ;;  %9209 = vmatprep.mubr.msk.f32.mxu0 %vm470_vm8, %v11206_v12 }
0x10ea   :  { %9624 = vmatprep.subr.bf16.mxu0 %v9623_v14  ;;  %3302 = vmax.xlane.f32.xlu0 %v3301_v52 }
0x10f0   :  { %9210 = vmatmul.mubr.msk.f32.vlgmr.msra.gmra.mrb[16].mxu0 %vm470_vm8, %v11204_v57 }
0x10f1   :  { %9626 = vmatpush3.bf16.msra.mxu0 %v9623_v14  ;;  %9223 = vmatprep.mubr.msk.f32.mxu0 %vm554_vm10, %v3034_v56 }
0x10f4   :  { %9224 = vmatmul.mubr.msk.f32.vlgmr.msra.gmra.mrb[18].mxu0 %vm554_vm10, %v3036_v28 }
0x10f9   :  { %3124 = vrot.lane.b32.xlu1 %v10910_v43, %s10348_s17 }
0x10fd   :  { %3410 = vrot.lane.b32.xlu1 %v10915_v16, %s10348_s17 }
0x1101   :  { %3496 = vrot.lane.b32.xlu1 %v10978_v33, %s10348_s17 }
0x1175   :  { %v3306_v12 = vpop.xlane.xlu1 %3305 }
0x1176   :  { %v3308_v51 = vsub.f32 %v9237_v59, %v3306_v12 }
0x1177   :  { %v3303_v38 = vpop.xlane.xlu0 %3302 }
0x1178   :  { %v3311_v62 = vmul.f32 1.442695, %v3308_v51  ;;  %v3307_v57 = vsub.f32 %v3292_v1, %v3303_v38 }
0x1179   :  { %v3125_v54 = vpop.permute.xlu1 %3124 }
0x117a   :  { %10094 = vpow2.f32 %v3311_v62  ;;  %v3309_v2 = vmul.f32 1.442695, %v3307_v57  ;;  %9226 = vmatprep.subr.mxu0 %v3125_v54 }
0x117b   :  { %9227 = vmatpush3.msra.mxu0 %v3125_v54 }
0x117c   :  { %10096 = vpow2.f32 %v3309_v2 }
0x117d   :  { %v3411_v8 = vpop.permute.xlu1 %3410 }
0x1181   :  { %v3497_v44 = vpop.permute.xlu1 %3496 }
0x1184   :  { %v10095_v18 = vpop.eup %10094 }
0x1185   :  { %v3316_v43 = vsel %vm554_vm10, %v10095_v18, 0.0 }
0x1186   :  { %v10097_v21 = vpop.eup %10096  ;;  %3317 = vadd.xlane.f32.xlu0 %v3316_v43 }
0x1187   :  { %v3313_v16 = vsel %vm554_vm10, %v10097_v21, 0.0 }
0x118a   :  { %3314 = vadd.xlane.f32.xlu0 %v3313_v16 }
0x11a0   :  { %9935 = vrot.lane.b32.xlu0 %v11182_v20, %s10358_s25 }
0x11c7   :  { %v9225_v33 = vpop.f32.mrb[18].mxu0 }
0x11c8   :  { %v3115_v24 = vpop.f32.mrb[19].mxu0 }
0x11c9   :  { %9228 = vmatprep.mubr.msk.f32.mxu0 %vm470_vm8, %v3115_v24  ;;  %v13273_v24 = vld [vmem:[#allocation15_spill] sm:$0xff] }
0x11ca   :  { %9229 = vmatmul.mubr.msk.f32.vlgmr.msra.gmra.mrb[16].mxu0 %vm470_vm8, %v9225_v33 }
0x1213   :  { %v3318_v26 = vpop.xlane.xlu0 %3317 }
0x1214   :  { %10098 = vrcp.f32 %v3318_v26 }
0x1217   :  { %v3315_v34 = vpop.xlane.xlu0 %3314 }
0x1218   :  { %10100 = vrcp.f32 %v3315_v34 }
0x121b   :  { %v9936_v7 = vpop.permute.xlu0 %9935 }
0x121c   :  { %v9938_v45 = vunpack.i.h.bf16 %v9936_v7  ;;  %v9937_v19 = vunpack.i.l.bf16 %v9936_v7 }
0x121e   :  { %v9633_v29 = vpack.c.bf16 %v9938_v45, %v9937_v19  ;;  %v10099_v9 = vpop.eup %10098  ;;  %v13274_v45 = vld [vmem:[#allocation16_spill] sm:$0xff]  ;;  %v13275_v19 = vld [vmem:[#allocation17_spill] sm:$0xff] }
0x121f   :  { %v3322_v30 = vmul.f32 %v10099_v9, %v10095_v18 }
0x1220   :  { %9634 = vmatprep.subr.bf16.mxu0 %v9633_v29 }
0x1221   :  { %9636 = vmatpush3.bf16.msra.mxu0 %v9633_v29 }
0x1222   :  { %v10101_v11 = vpop.eup %10100  ;;  %9245 = vmatprep.subr.mxu0 %v3411_v8 }
0x1223   :  { %v3320_v20 = vmul.f32 %v10101_v11, %v10097_v21 }
0x1225   :  { %9242 = vmatprep.mubr.msk.f32.mxu0 %vm554_vm10, %v3320_v20 }
0x1226   :  { %9243 = vmatmul.mubr.msk.f32.vlgmr.msra.gmra.mrb[20].mxu0 %vm554_vm10, %v3322_v30 }
0x1227   :  { %9246 = vmatpush3.msra.mxu0 %v3411_v8 }
0x12f9   :  { %v9244_v55 = vpop.f32.mrb[20].mxu0 }
0x12fa   :  { %v3401_v10 = vpop.f32.mrb[21].mxu0 }
0x12fb   :  { %9247 = vmatprep.mubr.msk.f32.mxu0 %vm470_vm8, %v3401_v10 }
0x12fc   :  { %9248 = vmatmul.mubr.msk.f32.vlgmr.msra.gmra.mrb[16].mxu0 %vm470_vm8, %v9244_v55 }
0x13cf   :  { %v9249_v22 = vpop.f32.mrb[16].mxu0 }
0x13d0   :  { %v3500_v50 = vadd.f32 %v9249_v22, %v3497_v44  ;;  %v3485_v27 = vpop.f32.mrb[17].mxu0 }
0x13d1   :  { %v3499_v42 = vadd.f32 %v3497_v44, %v3485_v27 }
0x13d2   :  { %v3510_v47 = vrot.slane %v3500_v50, 1  ;;  %v3511_v15 = vrot.slane %v3500_v50, 2  ;;  %v3512_v37 = vrot.slane %v3500_v50, 3  ;;  %v3513_v5 = vrot.slane %v3500_v50, 4 }
0x13d3   :  { %v3514_v41 = vrot.slane %v3500_v50, 5  ;;  %v3515_v6 = vrot.slane %v3500_v50, 6  ;;  %v3516_v39 = vrot.slane %v3500_v50, 7  ;;  %v3541_v1 = vadd.f32 %v3500_v50, %v11030_v48 }
0x13d4   :  { %v11265_v58 = vadd.f32 %v3510_v47, %v11033_v35  ;;  %v11268_v32 = vadd.f32 %v3511_v15, %v11036_v63  ;;  %v11271_v17 = vadd.f32 %v3512_v37, %v11039_v0  ;;  %v11274_v59 = vadd.f32 %v3513_v5, %v11042_v3 }
0x13d5   :  { %v11278_v46 = vadd.f32 %v3514_v41, %v11045_v61  ;;  %v11281_v14 = vadd.f32 %v3515_v6, %v11048_v60  ;;  %v11284_v35 = vadd.f32 %v3516_v39, %v11090_v53  ;;  %v3503_v0 = vrot.slane %v3499_v42, 1 }
0x13d6   :  { %v3579_v63 = vrot.slane %v11265_v58, 7  ;;  %v3581_v52 = vrot.slane %v11268_v32, 6  ;;  %v3583_v4 = vrot.slane %v11271_v17, 5  ;;  %v3585_v3 = vrot.slane %v11274_v59, 4 }
0x13d7   :  { %v3587_v48 = vrot.slane %v11278_v46, 3  ;;  %v3504_v25 = vrot.slane %v3499_v42, 2  ;;  %v3505_v56 = vrot.slane %v3499_v42, 3  ;;  %v3506_v60 = vrot.slane %v3499_v42, 4 }
0x13d8   :  { %v3580_v61 = vsel %vm208_vm0, %v3579_v63, %v3541_v1  ;;  %v3507_v28 = vrot.slane %v3499_v42, 5  ;;  %v3589_v12 = vrot.slane %v11281_v14, 2  ;;  %v3508_v51 = vrot.slane %v3499_v42, 6 }
0x13d9   :  { %v3582_v53 = vsel %vm211_vm1, %v3581_v52, %v3580_v61  ;;  %v3509_v38 = vrot.slane %v3499_v42, 7  ;;  %v3534_v57 = vadd.f32 %v3503_v0, %v11063_v36  ;;  %v3535_v54 = vadd.f32 %v3504_v25, %v11066_v40 }
0x13da   :  { %v3584_v62 = vsel %vm214_vm2, %v3583_v4, %v3582_v53  ;;  %v3536_v2 = vadd.f32 %v3505_v56, %v11069_v13  ;;  %v3591_v43 = vrot.slane %v11284_v35, 1  ;;  %v3533_v21 = vadd.f32 %v3499_v42, %v11060_v31 }
0x13db   :  { %v3586_v18 = vsel %vm217_vm3, %v3585_v3, %v3584_v62  ;;  %v3537_v16 = vadd.f32 %v3506_v60, %v11072_v23  ;;  %v3538_v26 = vadd.f32 %v3507_v28, %v13273_v24  ;;  %v3565_v34 = vrot.slane %v3534_v57, 7 }
0x13dc   :  { %v3588_v33 = vsel %vm220_vm4, %v3587_v48, %v3586_v18  ;;  %v3567_v7 = vrot.slane %v3535_v54, 6  ;;  %v3539_v40 = vadd.f32 %v3508_v51, %v13274_v45  ;;  %v3540_v29 = vadd.f32 %v3509_v38, %v13275_v19 }
0x13dd   :  { %v3590_v36 = vsel %vm223_vm5, %v3589_v12, %v3588_v33  ;;  %v3566_v8 = vsel %vm208_vm0, %v3565_v34, %v3533_v21  ;;  %v3569_v9 = vrot.slane %v3536_v2, 5  ;;  %v3571_v11 = vrot.slane %v3537_v16, 4 }
0x13de   :  { %v3592_v13 = vsel %vm226_vm6, %v3591_v43, %v3590_v36  ;;  %v3568_v23 = vsel %vm211_vm1, %v3567_v7, %v3566_v8  ;;  %v3573_v30 = vrot.slane %v3538_v26, 3  ;;  %v3575_v10 = vrot.slane %v3539_v40, 2 }
0x13df   :  { %v3598_v31 = vsel %vm242_vm7, %v3592_v13, 0.0  ;;  %v3570_v20 = vsel %vm214_vm2, %v3569_v9, %v3568_v23  ;;  %v3577_v22 = vrot.slane %v3540_v29, 1 }
0x13e0   :  { %3599 = vadd.xlane.f32.xlu1 %v3598_v31  ;;  %v3572_v55 = vsel %vm217_vm3, %v3571_v11, %v3570_v20 }
0x13e1   :  { %v3574_v44 = vsel %vm220_vm4, %v3573_v30, %v3572_v55 }
0x13e2   :  { %v3576_v50 = vsel %vm223_vm5, %v3575_v10, %v3574_v44 }
0x13e3   :  { %v3578_v27 = vsel %vm226_vm6, %v3577_v22, %v3576_v50 }
0x13e4   :  { %v3595_v42 = vsel %vm242_vm7, %v3578_v27, 0.0 }
0x13e5   :  { %3596 = vadd.xlane.f32.xlu0 %v3595_v42 }
0x146d   :  { %v3600_v47 = vpop.xlane.xlu1 %3599 }
0x146e   :  { %v3602_v15 = vmul.f32 0.03125, %v3600_v47 }
0x1470   :  { %v3612_v37 = vrot.slane %v3602_v15, 1  ;;  %v3613_v5 = vrot.slane %v3602_v15, 2  ;;  %v3614_v41 = vrot.slane %v3602_v15, 3  ;;  %v3615_v6 = vrot.slane %v3602_v15, 4 }
0x1471   :  { %v3616_v39 = vrot.slane %v3602_v15, 5  ;;  %v3617_v63 = vrot.slane %v3602_v15, 6  ;;  %v3618_v52 = vrot.slane %v3602_v15, 7  ;;  %v11320_v3 = vsub.f32 %v3541_v1, %v3602_v15 }
0x1472   :  { %v11318_v0 = vsub.f32 %v11265_v58, %v3612_v37  ;;  %v3597_v4 = vpop.xlane.xlu0 %3596  ;;  %v11323_v25 = vsub.f32 %v11268_v32, %v3613_v5  ;;  %v11326_v61 = vsub.f32 %v11271_v17, %v3614_v41  ;;  %v11329_v56 = vsub.f32 %v11274_v59, %v3615_v6 }
0x1473   :  { %v3601_v48 = vmul.f32 0.03125, %v3597_v4  ;;  %v11332_v60 = vsub.f32 %v11278_v46, %v3616_v39  ;;  %v11335_v28 = vsub.f32 %v11281_v14, %v3617_v63  ;;  %v11338_v58 = vsub.f32 %v11284_v35, %v3618_v52 }
0x1474   :  { %v3660_v1 = vmul.f32 %v11318_v0, %v11318_v0  ;;  %v3659_v24 = vmul.f32 %v11320_v3, %v11320_v3  ;;  %v3661_v34 = vmul.f32 %v11323_v25, %v11323_v25  ;;  %v3663_v7 = vmul.f32 %v11329_v56, %v11329_v56 }
0x1475   :  { %v3605_v32 = vrot.slane %v3601_v48, 1  ;;  %v3606_v53 = vrot.slane %v3601_v48, 2  ;;  %v3607_v12 = vrot.slane %v3601_v48, 3  ;;  %v3608_v17 = vrot.slane %v3601_v48, 4 }
0x1476   :  { %v3609_v51 = vrot.slane %v3601_v48, 5  ;;  %v3610_v38 = vrot.slane %v3601_v48, 6  ;;  %v3611_v59 = vrot.slane %v3601_v48, 7  ;;  %v11342_v62 = vsub.f32 %v3533_v21, %v3601_v48 }
0x1477   :  { %v11344_v46 = vsub.f32 %v3534_v57, %v3605_v32  ;;  %v11346_v18 = vsub.f32 %v3535_v54, %v3606_v53  ;;  %v11348_v14 = vsub.f32 %v3536_v2, %v3607_v12  ;;  %v11350_v35 = vsub.f32 %v3537_v16, %v3608_v17 }
0x1478   :  { %v11352_v43 = vsub.f32 %v3538_v26, %v3609_v51  ;;  %v11354_v33 = vsub.f32 %v3539_v40, %v3610_v38  ;;  %v11360_v21 = vsub.f32 %v3540_v29, %v3611_v59  ;;  %v3662_v26 = vmul.f32 %v11326_v61, %v11326_v61  ;;  %v3813_v38 = vld [vmem:[%s13233_s4 + $0x10] sm:$0xff]  ;;  %v3814_v59 = vld [vmem:[%s13233_s4 + $0x28] sm:$0xff] }
0x1479   :  { %v3652_v57 = vmul.f32 %v11344_v46, %v11344_v46  ;;  %v3653_v54 = vmul.f32 %v11346_v18, %v11346_v18  ;;  %v3654_v2 = vmul.f32 %v11348_v14, %v11348_v14  ;;  %v3655_v16 = vmul.f32 %v11350_v35, %v11350_v35 }
0x147a   :  { %v3697_v36 = vrot.slane %v3660_v1, 7  ;;  %v3651_v45 = vmul.f32 %v11342_v62, %v11342_v62  ;;  %v3656_v40 = vmul.f32 %v11352_v43, %v11352_v43  ;;  %v3657_v29 = vmul.f32 %v11354_v33, %v11354_v33 }
0x147b   :  { %v3683_v13 = vrot.slane %v3652_v57, 7  ;;  %v3685_v19 = vrot.slane %v3653_v54, 6  ;;  %v3664_v8 = vmul.f32 %v11332_v60, %v11332_v60  ;;  %v3665_v9 = vmul.f32 %v11335_v28, %v11335_v28  ;;  %v3816_v57 = vld [vmem:[%s13233_s4 + $0x58] sm:$0xff] }
0x147c   :  { %v3698_v31 = vsel %vm208_vm0, %v3697_v36, %v3659_v24  ;;  %v3658_v23 = vmul.f32 %v11360_v21, %v11360_v21  ;;  %v3687_v20 = vrot.slane %v3654_v2, 5  ;;  %v3699_v30 = vrot.slane %v3661_v34, 6  ;;  %v3815_v24 = vld [vmem:[%s13233_s4 + $0x40] sm:$0xff]  ;;  %v86_v36 = vld [vmem:[%s13235_s6 + $0x8] sm:$0xff] }
0x147d   :  { %v3684_v11 = vsel %vm208_vm0, %v3683_v13, %v3651_v45  ;;  %v3689_v10 = vrot.slane %v3655_v16, 4  ;;  %v3666_v44 = vmul.f32 %v11338_v58, %v11338_v58  ;;  %v3701_v22 = vrot.slane %v3662_v26, 5  ;;  %v11419_v2 = vld [vmem:[%s13233_s4] sm:$0xff]  ;;  %v11424_v16 = vld [vmem:[%s13233_s4 + $0x18] sm:$0xff]  ;;  %v87_v45 = vld [vmem:[%s13235_s6 + $0x10] sm:$0xff] }
0x147e   :  { %v3686_v55 = vsel %vm211_vm1, %v3685_v19, %v3684_v11  ;;  %v3691_v27 = vrot.slane %v3656_v40, 3  ;;  %v3700_v42 = vsel %vm211_vm1, %v3699_v30, %v3698_v31  ;;  %v3703_v47 = vrot.slane %v3663_v7, 4  ;;  %v85_v7 = vld [vmem:[%s13235_s6] sm:$0xff]  ;;  %v88_v40 = vld [vmem:[%s13235_s6 + $0x18] sm:$0xff] }
0x147f   :  { %v3688_v50 = vsel %vm214_vm2, %v3687_v20, %v3686_v55  ;;  %v3693_v37 = vrot.slane %v3657_v29, 2  ;;  %v3702_v5 = vsel %vm214_vm2, %v3701_v22, %v3700_v42  ;;  %v3705_v41 = vrot.slane %v3664_v8, 3  ;;  %v89_v29 = vld [vmem:[%s13235_s6 + $0x20] sm:$0xff]  ;;  %v90_v8 = vld [vmem:[%s13235_s6 + $0x28] sm:$0xff] }
0x1480   :  { %v3690_v15 = vsel %vm217_vm3, %v3689_v10, %v3688_v50  ;;  %v3695_v39 = vrot.slane %v3658_v23, 1  ;;  %v3704_v63 = vsel %vm217_vm3, %v3703_v47, %v3702_v5  ;;  %v3707_v52 = vrot.slane %v3665_v9, 2  ;;  %v11461_v31 = vld [vmem:[#allocation2 + $0x3] sm:$0x1]  ;;  %v11463_v11 = vld [vmem:[#allocation2 + $0x5] sm:$0x1] }
0x1481   :  { %v3692_v6 = vsel %vm220_vm4, %v3691_v27, %v3690_v15  ;;  %v3706_v48 = vsel %vm220_vm4, %v3705_v41, %v3704_v63  ;;  %v3709_v53 = vrot.slane %v3666_v44, 1  ;;  %v9637_v34 = vpack.c.bf16 %v3814_v59, %v3813_v38  ;;  %v4397_v23 = vld [vmem:[#allocation7 + $0x3] sm:$0x1]  ;;  %v4398_v20 = vld [vmem:[#allocation7 + $0x5] sm:$0x1] }
0x1482   :  { %v3694_v4 = vsel %vm223_vm5, %v3693_v37, %v3692_v6  ;;  %v3708_v32 = vsel %vm223_vm5, %v3707_v52, %v3706_v48  ;;  %v9641_v54 = vpack.c.bf16 %v3816_v57, %v3815_v24  ;;  %v11428_v26 = vpack.c.bf16 %v11424_v16, %v11419_v2  ;;  %v11466_v55 = vld [vmem:[#allocation2 + $0x1] sm:$0x1]  ;;  %v11468_v22 = vld [vmem:[#allocation2 + $0x7] sm:$0x1]  ;;  %v11472_v5 = vld [vmem:[#allocation2 + $0x9] sm:$0x1] }
0x1483   :  { %v3696_v1 = vsel %vm226_vm6, %v3695_v39, %v3694_v4  ;;  %v3710_v17 = vsel %vm226_vm6, %v3709_v53, %v3708_v32  ;;  %9638 = vmatprep.subr.bf16.mxu1 %v9637_v34  ;;  %v11443_v13 = vpack.c.bf16 %v86_v36, %v85_v7  ;;  %v11445_v19 = vpack.c.bf16 %v88_v40, %v87_v45  ;;  %v4396_v10 = vld [vmem:[#allocation7 + $0x1] sm:$0x1]  ;;  %v4399_v50 = vld [vmem:[#allocation7 + $0x7] sm:$0x1]  ;;  %v4400_v41 = vld [vmem:[#allocation7 + $0x9] sm:$0x1] }
0x1484   :  { %v3713_v12 = vsel %vm242_vm7, %v3696_v1, 0.0  ;;  %v3716_v51 = vsel %vm242_vm7, %v3710_v17, 0.0  ;;  %9640 = vmatpush3.bf16.msra.mxu1 %v9637_v34  ;;  %v11456_v9 = vpack.c.bf16 %v90_v8, %v89_v29  ;;  %v4429_v30 = vadd.f32 %v4397_v23, %v11461_v31  ;;  %v11475_v52 = vld [vmem:[#allocation2 + $0x13] sm:$0x1]  ;;  %v11478_v32 = vld [vmem:[#allocation2 + $0xb] sm:$0x1] }
0x1485   :  { %3714 = vadd.xlane.f32.xlu0 %v3713_v12  ;;  %9642 = vmatprep.subr.bf16.mxu1 %v9641_v54  ;;  %13276 = vst [vmem:[#allocation15_spill] sm:$0xff] %v11443_v13  ;;  %13277 = vst [vmem:[#allocation16_spill] sm:$0xff] %v11445_v19  ;;  %v4430_v27 = vadd.f32 %v4398_v20, %v11463_v11  ;;  %v4428_v47 = vadd.f32 %v4396_v10, %v11466_v55  ;;  %v4405_v4 = vld [vmem:[#allocation7 + $0x13] sm:$0x1]  ;;  %v4401_v53 = vld [vmem:[#allocation7 + $0xb] sm:$0x1] }
0x1486   :  { %9646 = vmatprep.subr.bf16.mxu0 %v11443_v13  ;;  %13278 = vst [vmem:[#allocation17_spill] sm:$0xff] %v11456_v9  ;;  %v4471_v15 = vrot.slane %v4429_v30, 7  ;;  %v4431_v6 = vadd.f32 %v4399_v50, %v11468_v22  ;;  %v4432_v12 = vadd.f32 %v4400_v41, %v11472_v5  ;;  %v11481_v38 = vld [vmem:[#allocation2 + $0x11] sm:$0x1]  ;;  %v4437_v59 = vadd.f32 %v4405_v4, %v11475_v52  ;;  %v11485_v34 = vld [vmem:[#allocation2 + $0x15] sm:$0x1] }
0x1487   :  { %9648 = vmatpush3.bf16.msra.mxu0 %v11443_v13  ;;  %v4473_v63 = vrot.slane %v4430_v27, 6  ;;  %v4404_v57 = vld [vmem:[#allocation7 + $0x11] sm:$0x1]  ;;  %v11487_v7 = vld [vmem:[#allocation2 + $0xd] sm:$0x1]  ;;  %v11492_v40 = vadd.f32 %v4401_v53, %v11478_v32 }
0x1488   :  { %9644 = vmatpush3.bf16.msra.mxu1 %v9641_v54  ;;  %9650 = vmatprep.subr.bf16.mxu0 %v11445_v19  ;;  %v4472_v1 = vsel %vm208_vm0, %v4471_v15, %v4428_v47  ;;  %v4406_v54 = vld [vmem:[#allocation7 + $0x15] sm:$0x1]  ;;  %v11489_v36 = vld [vmem:[#allocation2 + $0xf] sm:$0x1]  ;;  %v4402_v45 = vld [vmem:[#allocation7 + $0xd] sm:$0x1]  ;;  %v4436_v30 = vadd.f32 %v4404_v57, %v11481_v38 }
0x1489   :  { %3717 = vadd.xlane.f32.xlu0 %v3716_v51  ;;  %9662 = vmatprep.subr.bf16.mxu1 %v11428_v26  ;;  %v4475_v51 = vrot.slane %v4431_v6, 5  ;;  %v4474_v24 = vsel %vm211_vm1, %v4473_v63, %v4472_v1  ;;  %v4477_v29 = vrot.slane %v4432_v12, 4  ;;  %v4403_v8 = vld [vmem:[#allocation7 + $0xf] sm:$0x1]  ;;  %v11495_v20 = vld [vmem:[#allocation2 + $0x17] sm:$0x1]  ;;  %v11499_v10 = vadd.f32 %v4406_v54, %v11485_v34 }
0x148a   :  { %v11501_v50 = vld [vmem:[#allocation2 + $0x19] sm:$0x1]  ;;  %v4407_v27 = vld [vmem:[#allocation7 + $0x17] sm:$0x1]  ;;  %v11504_v47 = vadd.f32 %v4402_v45, %v11487_v7  ;;  %v11507_v15 = vadd.f32 %v4403_v8, %v11489_v36  ;;  %v11526_v1 = vld [vmem:[%s13236_s7 + $0x3] ss:$0 sm:$0xff] }
0x148b   :  { %9652 = vmatpush3.bf16.msra.mxu0 %v11445_v19  ;;  %v4476_v23 = vsel %vm214_vm2, %v4475_v51, %v4474_v24  ;;  %v11532_v45 = vld [vmem:[%s13236_s7 + $0x4] ss:$0 sm:$0xff] }
0x148c   :  { %9654 = vmatprep.subr.bf16.mxu0 %v11456_v9 }
0x148f   :  { %9656 = vmatpush3.bf16.msra.mxu0 %v11456_v9 }
0x1512   :  { %v3715_v44 = vpop.xlane.xlu0 %3714 }
0x1513   :  { %v3719_v42 = vmul.f32 0.03125, %v3715_v44  ;;  %v4485_v44 = vrot.slane %v4437_v59, 7 }
0x1515   :  { %v3721_v37 = vadd.f32 1e-05, %v3719_v42  ;;  %v4408_v42 = vld [vmem:[#allocation7 + $0x19] sm:$0x1]  ;;  %v11520_v4 = vsel %vm208_vm0, %v4485_v44, %v4436_v30 }
0x1516   :  { %v3718_v39 = vpop.xlane.xlu0 %3717  ;;  %v11517_v63 = vadd.f32 %v4408_v42, %v11501_v50 }
0x1517   :  { %10102 = vrsqrt.f32 %v3721_v37  ;;  %v3720_v48 = vmul.f32 0.03125, %v3718_v39  ;;  %v11510_v37 = vsel %vm217_vm3, %v4477_v29, %v4476_v23  ;;  %v11514_v39 = vadd.f32 %v4407_v27, %v11495_v20 }
0x1519   :  { %v3722_v17 = vadd.f32 1e-05, %v3720_v48 }
0x151b   :  { %10104 = vrsqrt.f32 %v3722_v17 }
0x1521   :  { %v10103_v6 = vpop.eup %10102 }
0x1522   :  { %v3727_v53 = vrot.slane %v10103_v6, 1  ;;  %v3728_v12 = vrot.slane %v10103_v6, 2  ;;  %v3729_v17 = vrot.slane %v10103_v6, 3  ;;  %v3730_v51 = vrot.slane %v10103_v6, 4 }
0x1523   :  { %v3731_v59 = vrot.slane %v10103_v6, 5  ;;  %v3732_v24 = vrot.slane %v10103_v6, 6  ;;  %v3733_v57 = vrot.slane %v10103_v6, 7  ;;  %v3757_v54 = vmul.f32 %v10103_v6, %v11342_v62 }
0x1524   :  { %v3758_v29 = vmul.f32 %v3727_v53, %v11344_v46  ;;  %v3759_v8 = vmul.f32 %v3728_v12, %v11346_v18  ;;  %v3760_v23 = vmul.f32 %v3729_v17, %v11348_v14  ;;  %v3761_v30 = vmul.f32 %v3730_v51, %v11350_v35 }
0x1525   :  { %v3762_v44 = vmul.f32 %v3731_v59, %v11352_v43  ;;  %v3763_v27 = vmul.f32 %v3732_v24, %v11354_v33  ;;  %v3764_v42 = vmul.f32 %v3733_v57, %v11360_v21  ;;  %v3777_v62 = vmul.f32 %v11526_v1, %v3757_v54  ;;  %v10105_v6 = vpop.eup %10104 }
0x1526   :  { %v3778_v41 = vmul.f32 %v11526_v1, %v3758_v29  ;;  %v3779_v48 = vmul.f32 %v11526_v1, %v3759_v8  ;;  %v3780_v46 = vmul.f32 %v11526_v1, %v3760_v23  ;;  %v3781_v18 = vmul.f32 %v11526_v1, %v3761_v30 }
0x1527   :  { %v3782_v14 = vmul.f32 %v11526_v1, %v3762_v44  ;;  %v3783_v35 = vmul.f32 %v11526_v1, %v3763_v27  ;;  %v3784_v43 = vmul.f32 %v11526_v1, %v3764_v42  ;;  %v11550_v33 = vadd.f32 %v11532_v45, %v3777_v62 }
0x1528   :  { %v11553_v21 = vadd.f32 %v11532_v45, %v3778_v41  ;;  %v11556_v53 = vadd.f32 %v11532_v45, %v3779_v48  ;;  %v11559_v12 = vadd.f32 %v11532_v45, %v3780_v46  ;;  %v11562_v17 = vadd.f32 %v11532_v45, %v3781_v18 }
0x1529   :  { %13279 = vst [vmem:[#allocation18_spill] sm:$0xff] %v11550_v33  ;;  %v11565_v51 = vadd.f32 %v11532_v45, %v3782_v14  ;;  %v11568_v59 = vadd.f32 %v11532_v45, %v3783_v35  ;;  %v11571_v24 = vadd.f32 %v11532_v45, %v3784_v43  ;;  %v3734_v41 = vrot.slane %v10105_v6, 1 }
0x152a   :  { %13280 = vst [vmem:[#allocation19_spill] sm:$0xff] %v11553_v21  ;;  %13281 = vst [vmem:[#allocation20_spill] sm:$0xff] %v11556_v53  ;;  %v3840_v57 = vrot.slane %v11553_v21, 7  ;;  %v3842_v48 = vrot.slane %v11556_v53, 6  ;;  %v3844_v54 = vrot.slane %v11559_v12, 5  ;;  %v3846_v29 = vrot.slane %v11562_v17, 4 }
0x152b   :  { %13282 = vst [vmem:[#allocation21_spill] sm:$0xff] %v11559_v12  ;;  %13283 = vst [vmem:[#allocation22_spill] sm:$0xff] %v11562_v17  ;;  %v3848_v8 = vrot.slane %v11565_v51, 3  ;;  %v3850_v23 = vrot.slane %v11568_v59, 2  ;;  %v3852_v30 = vrot.slane %v11571_v24, 1  ;;  %v3735_v44 = vrot.slane %v10105_v6, 2 }
0x152c   :  { %13284 = vst [vmem:[#allocation23_spill] sm:$0xff] %v11565_v51  ;;  %13285 = vst [vmem:[#allocation24_spill] sm:$0xff] %v11568_v59  ;;  %v3841_v27 = vsel %vm208_vm0, %v3840_v57, %v11550_v33  ;;  %v3736_v42 = vrot.slane %v10105_v6, 3  ;;  %v3737_v62 = vrot.slane %v10105_v6, 4  ;;  %v3738_v46 = vrot.slane %v10105_v6, 5 }
0x152d   :  { %13286 = vst [vmem:[#allocation25_spill] sm:$0xff] %v11571_v24  ;;  %v3843_v18 = vsel %vm211_vm1, %v3842_v48, %v3841_v27  ;;  %v3739_v14 = vrot.slane %v10105_v6, 6  ;;  %v3740_v35 = vrot.slane %v10105_v6, 7  ;;  %v3765_v43 = vmul.f32 %v10105_v6, %v11320_v3 }
0x152e   :  { %v3845_v17 = vsel %vm214_vm2, %v3844_v54, %v3843_v18  ;;  %v3766_v51 = vmul.f32 %v3734_v41, %v11318_v0  ;;  %v3767_v59 = vmul.f32 %v3735_v44, %v11323_v25  ;;  %v3768_v24 = vmul.f32 %v3736_v42, %v11326_v61  ;;  %v11600_v41 = vld [vmem:[#allocation2 + $0x1b] sm:$0x1] }
0x152f   :  { %v3847_v12 = vsel %vm217_vm3, %v3846_v29, %v3845_v17  ;;  %v3769_v57 = vmul.f32 %v3737_v62, %v11329_v56  ;;  %v3770_v33 = vmul.f32 %v3738_v46, %v11332_v60  ;;  %v3771_v48 = vmul.f32 %v3739_v14, %v11335_v28  ;;  %v4409_v60 = vld [vmem:[#allocation7 + $0x1b] sm:$0x1]  ;;  %v11634_v46 = vld [vmem:[#allocation2 + $0x1d] sm:$0x1] }
0x1530   :  { %v3849_v27 = vsel %vm220_vm4, %v3848_v8, %v3847_v12  ;;  %v3772_v3 = vmul.f32 %v3740_v35, %v11338_v58  ;;  %v3785_v6 = vmul.f32 %v11526_v1, %v3765_v43  ;;  %v3786_v0 = vmul.f32 %v11526_v1, %v3766_v51 }
0x1531   :  { %v3851_v25 = vsel %vm223_vm5, %v3850_v23, %v3849_v27  ;;  %v3787_v61 = vmul.f32 %v11526_v1, %v3767_v59  ;;  %v3788_v17 = vmul.f32 %v11526_v1, %v3768_v24  ;;  %v3789_v56 = vmul.f32 %v11526_v1, %v3769_v57 }
0x1532   :  { %v3853_v28 = vsel %vm226_vm6, %v3852_v30, %v3851_v25  ;;  %v3790_v12 = vmul.f32 %v11526_v1, %v3770_v33  ;;  %v3791_v58 = vmul.f32 %v11526_v1, %v3771_v48  ;;  %v4489_v54 = vrot.slane %v11514_v39, 5  ;;  %v11662_v25 = vld [vmem:[%s13233_s4 + $0x30] sm:$0xff] }
0x1533   :  { %9258 = vmatprep.mubr.msk.f32.mxu1 %vm242_vm7, %v3853_v28  ;;  %v3792_v51 = vmul.f32 %v11526_v1, %v3772_v3  ;;  %v11609_v59 = vadd.f32 %v11532_v45, %v3786_v0  ;;  %v11612_v24 = vadd.f32 %v11532_v45, %v3787_v61  ;;  %v11615_v29 = vadd.f32 %v11532_v45, %v3788_v17  ;;  %v11667_v61 = vld [vmem:[%s13233_s4 + $0x48] sm:$0xff] }
0x1534   :  { %v11618_v8 = vadd.f32 %v11532_v45, %v3789_v56  ;;  %v4481_v33 = vrot.slane %v11504_v47, 2  ;;  %v4441_v39 = vadd.f32 %v4409_v60, %v11600_v41  ;;  %v13291_v23 = vrot.slane %v11499_v10, 6  ;;  %v4410_v47 = vld [vmem:[#allocation7 + $0x1d] sm:$0x1] }
0x1535   :  { %13287 = vst [vmem:[#allocation26_spill] sm:$0xff] %v11609_v59  ;;  %13288 = vst [vmem:[#allocation27_spill] sm:$0xff] %v11612_v24  ;;  %v11627_v30 = vadd.f32 %v11532_v45, %v3785_v6  ;;  %v11630_v44 = vadd.f32 %v11532_v45, %v3790_v12  ;;  %v3854_v42 = vrot.slane %v11609_v59, 7  ;;  %v3856_v62 = vrot.slane %v11612_v24, 6  ;;  %v11654_v6 = vld [vmem:[#allocation2 + $0x1f] sm:$0x1] }
0x1536   :  { %13289 = vst [vmem:[#allocation28_spill] sm:$0xff] %v11615_v29  ;;  %13290 = vst [vmem:[#allocation29_spill] sm:$0xff] %v11618_v8  ;;  %v4488_v1 = vsel %vm211_vm1, %v13291_v23, %v11520_v4  ;;  %v11637_v18 = vadd.f32 %v11532_v45, %v3791_v58  ;;  %v13295_v10 = vrot.slane %v11492_v40, 3  ;;  %v4491_v14 = vrot.slane %v11517_v63, 4  ;;  %v4426_v24 = vld [vmem:[#allocation8 + $0x1d] sm:$0x1] }
0x1537   :  { %13292 = vst [vmem:[#allocation30_spill] sm:$0xff] %v11627_v30  ;;  %13293 = vst [vmem:[#allocation31_spill] sm:$0xff] %v11630_v44  ;;  %v11645_v35 = vadd.f32 %v11532_v45, %v3792_v51  ;;  %v3855_v43 = vsel %vm208_vm0, %v3854_v42, %v11627_v30  ;;  %v3858_v57 = vrot.slane %v11615_v29, 5  ;;  %v4490_v48 = vsel %vm214_vm2, %v4489_v54, %v4488_v1 }
0x1538   :  { %13294 = vst [vmem:[#allocation32_spill] sm:$0xff] %v11637_v18  ;;  %v4480_v4 = vsel %vm220_vm4, %v13295_v10, %v11510_v37  ;;  %v3857_v27 = vsel %vm211_vm1, %v3856_v62, %v3855_v43  ;;  %v3860_v3 = vrot.slane %v11618_v8, 4  ;;  %v4483_v40 = vrot.slane %v11507_v15, 1  ;;  %v4411_v37 = vld [vmem:[#allocation7 + $0x1f] sm:$0x1] }
0x1539   :  { %13296 = vst [vmem:[#allocation33_spill] sm:$0xff] %v11645_v35  ;;  %v4442_v63 = vadd.f32 %v4410_v47, %v11634_v46  ;;  %v3859_v45 = vsel %vm214_vm2, %v3858_v57, %v3857_v27  ;;  %v3862_v0 = vrot.slane %v11630_v44, 3  ;;  %v4482_v15 = vsel %vm223_vm5, %v4481_v33, %v4480_v4  ;;  %v91_v4 = vld [vmem:[%s13235_s6 + $0x30] sm:$0xff]  ;;  %v8686_v43 = vld [vmem:[%s13234_s5 + $0x2] ss:$0 sm:$0xff] }
0x153a   :  { %v4493_v17 = vrot.slane %v4441_v39, 3  ;;  %v3861_v56 = vsel %vm217_vm3, %v3860_v3, %v3859_v45  ;;  %v3864_v60 = vrot.slane %v11637_v18, 2  ;;  %v4492_v28 = vsel %vm217_vm3, %v4491_v14, %v4490_v48  ;;  %v92_v14 = vld [vmem:[%s13235_s6 + $0x38] sm:$0xff] }
0x153b   :  { %v3863_v12 = vsel %vm220_vm4, %v3862_v0, %v3861_v56  ;;  %v3866_v58 = vrot.slane %v11645_v35, 1  ;;  %v4443_v54 = vadd.f32 %v4411_v37, %v11654_v6  ;;  %v9665_v23 = vpack.c.bf16 %v11667_v61, %v11662_v25 }
0x153c   :  { %v3865_v51 = vsel %vm223_vm5, %v3864_v60, %v3863_v12  ;;  %v4484_v33 = vsel %vm226_vm6, %v4483_v40, %v4482_v15  ;;  %v4495_v39 = vrot.slane %v4442_v63, 2  ;;  %v4494_v42 = vsel %vm220_vm4, %v4493_v17, %v4492_v28  ;;  %v11705_v63 = vld [vmem:[%s13234_s5] ss:$0 sm:$0xff] }
0x153d   :  { %v3867_v1 = vsel %vm226_vm6, %v3866_v58, %v3865_v51  ;;  %v4497_v62 = vrot.slane %v4443_v54, 1  ;;  %v9944_v60 = vpack.i.bf16 %v11424_v16, %v11419_v2  ;;  %v9949_v28 = vpack.i.bf16 %v11667_v61, %v11662_v25 }
0x153e   :  { %9259 = vmatmul.mubr.msk.f32.vlgmr.msra.gmra.mrb[24].mxu1 %vm242_vm7, %v3867_v1  ;;  %v4496_v47 = vsel %vm223_vm5, %v4495_v39, %v4494_v42  ;;  %v4594_v42 = vrot.slane %v11461_v31, 7 }
0x153f   :  { %9664 = vmatpush3.bf16.msra.mxu1 %v11428_v26  ;;  %9288 = vmatprep.mubr.msk.f32.mxu1 %vm242_vm7, %v4484_v33  ;;  %v4498_v10 = vsel %vm226_vm6, %v4497_v62, %v4496_v47  ;;  %v11694_v26 = vpack.c.bf16 %v92_v14, %v91_v4  ;;  %v4596_v62 = vrot.slane %v11463_v11, 6  ;;  %v4598_v47 = vrot.slane %v11468_v22, 5 }
0x1540   :  { %9666 = vmatprep.subr.bf16.mxu1 %v9665_v23  ;;  %9945 = vrot.lane.b32.xlu0 %v9944_v60, %s10353_s0  ;;  %v4608_v22 = vrot.slane %v11475_v52, 7 }
0x1541   :  { %13297 = vst [vmem:[#allocation34_spill] sm:$0xff] %v11694_v26  ;;  %9658 = vmatprep.subr.bf16.mxu0 %v11694_v26 }
0x1542   :  { %9660 = vmatpush3.bf16.msra.mxu0 %v11694_v26  ;;  %v4609_v60 = vsel %vm208_vm0, %v4608_v22, %v11481_v38 }
0x1543   :  { %9668 = vmatpush3.bf16.msra.mxu1 %v9665_v23 }
0x1546   :  { %9289 = vmatmul.mubr.msk.f32.vlgmr.msra.gmra.mrb[26].mxu1 %vm242_vm7, %v4498_v10  ;;  %v4600_v10 = vrot.slane %v11472_v5, 4 }
0x15b2   :  { %v9946_v39 = vpop.permute.xlu0 %9945 }
0x15b3   :  { %v9948_v4 = vunpack.i.h.bf16 %v9946_v39  ;;  %v9947_v14 = vunpack.i.l.bf16 %v9946_v39 }
0x15b5   :  { %v9669_v31 = vpack.c.bf16 %v9948_v4, %v9947_v14 }
0x15b7   :  { %9670 = vmatprep.subr.bf16.mxu1 %v9669_v31 }
0x15b8   :  { %9672 = vmatpush3.bf16.msra.mxu1 %v9669_v31 }
0x1611   :  { %v9260_v57 = vpop.f32.mrb[24].mxu1 }
0x1612   :  { %v3944_v48 = vadd.f32 %v9260_v57, %v8686_v43  ;;  %v3938_v27 = vpop.f32.mrb[25].mxu1 }
0x1613   :  { %v3939_v3 = vadd.f32 %v8686_v43, %v3938_v27  ;;  %v4602_v27 = vrot.slane %v11478_v32, 3 }
0x1614   :  { %v3948_v37 = vmax.f32 %v3944_v48, 0.0  ;;  %v4595_v48 = vsel %vm208_vm0, %v4594_v42, %v11466_v55  ;;  %v4614_v55 = vrot.slane %v11501_v50, 4 }
0x1615   :  { %v3947_v40 = vmax.f32 %v3939_v3, 0.0  ;;  %v4604_v3 = vrot.slane %v11487_v7, 2  ;;  %v4597_v11 = vsel %vm211_vm1, %v4596_v62, %v4595_v48 }
0x1616   :  { %v4599_v5 = vsel %vm214_vm2, %v4598_v47, %v4597_v11 }
0x1617   :  { %9277 = vmatprep.mubr.msk.f32.mxu0 %vm3953_vm11, %v3947_v40  ;;  %v4606_v40 = vrot.slane %v11489_v36, 1  ;;  %v4601_v32 = vsel %vm217_vm3, %v4600_v10, %v4599_v5 }
0x1618   :  { %9278 = vmatmul.mubr.msk.f32.vlgmr.msra.gmra.mrb[22].mxu0 %vm3953_vm11, %v3948_v37 }
0x1619   :  { %v9290_v45 = vpop.f32.mrb[26].mxu1 }
0x161a   :  { %v11709_v0 = vadd.f32 %v9290_v45, %v11705_v63  ;;  %v4569_v15 = vpop.f32.mrb[27].mxu1  ;;  %v4610_v45 = vrot.slane %v11485_v34, 6 }
0x161b   :  { %v11712_v17 = vadd.f32 %v11705_v63, %v4569_v15  ;;  %v4612_v15 = vrot.slane %v11495_v20, 5 }
0x161d   :  { %9306 = vmatprep.mubr.msk.f32.mxu0 %vm470_vm8, %v11712_v17  ;;  %v11718_v56 = vpack.i.bf16 %v11709_v0, %v11712_v17 }
0x161f   :  { %9940 = vrot.lane.b32.xlu1 %v11718_v56, %s10352_s21 }
0x1623   :  { %9950 = vrot.lane.b32.xlu1 %v9949_v28, %s10353_s0  ;;  %v4616_v28 = vrot.slane %v11600_v41, 3 }
0x1691   :  { %v9941_v12 = vpop.permute.xlu1 %9940 }
0x1692   :  { %v9943_v58 = vunpack.i.h.bf16 %v9941_v12  ;;  %v9942_v54 = vunpack.i.l.bf16 %v9941_v12  ;;  %v4603_v12 = vsel %vm220_vm4, %v4602_v27, %v4601_v32 }
0x1694   :  { %v9677_v51 = vpack.c.bf16 %v9943_v58, %v9942_v54  ;;  %v4611_v58 = vsel %vm211_vm1, %v4610_v45, %v4609_v60  ;;  %v4618_v54 = vrot.slane %v11634_v46, 2 }
0x1695   :  { %v9951_v1 = vpop.permute.xlu1 %9950  ;;  %v4613_v39 = vsel %vm214_vm2, %v4612_v15, %v4611_v58 }
0x1696   :  { %9679 = vmatprep.subr.msk.bf16.mxu0 %vm10595_vm9, %v9677_v51  ;;  %v9953_v43 = vunpack.i.h.bf16 %v9951_v1  ;;  %v9952_v57 = vunpack.i.l.bf16 %v9951_v1  ;;  %v4620_v1 = vrot.slane %v11654_v6, 1  ;;  %v4615_v62 = vsel %vm217_vm3, %v4614_v55, %v4613_v39 }
0x1697   :  { %9682 = vmatpush3.bf16.xpose.msk.msra.mxu0 %vm10595_vm9, %v9677_v51  ;;  %v4605_v51 = vsel %vm223_vm5, %v4604_v3, %v4603_v12  ;;  %v4617_v47 = vsel %vm220_vm4, %v4616_v28, %v4615_v62 }
0x1698   :  { %v9673_v37 = vpack.c.bf16 %v9953_v43, %v9952_v57  ;;  %v4607_v42 = vsel %vm226_vm6, %v4606_v40, %v4605_v51  ;;  %v4619_v10 = vsel %vm223_vm5, %v4618_v54, %v4617_v47 }
0x1699   :  { %9299 = vmatprep.mubr.msk.f32.mxu1 %vm242_vm7, %v4607_v42  ;;  %v4621_v4 = vsel %vm226_vm6, %v4620_v1, %v4619_v10 }
0x169a   :  { %9674 = vmatprep.subr.bf16.mxu1 %v9673_v37 }
0x169b   :  { %9676 = vmatpush3.bf16.msra.mxu1 %v9673_v37 }
0x169e   :  { %9307 = vmatmul.mubr.msk.f32.vlgmr.msra.gmra.mrb[24].mxu0 %vm470_vm8, %v11709_v0  ;;  %9300 = vmatmul.mubr.msk.f32.vlgmr.msra.gmra.mrb[28].mxu1 %vm242_vm7, %v4621_v4 }
0x16eb   :  { %v11734_v23 = vpop.f32.mrb[22].mxu0 }
0x16ec   :  { %13298 = vst [vmem:[#allocation35_spill] sm:$0xff] %v11734_v23  ;;  %v11736_v33 = vpop.f32.mrb[23].mxu0  ;;  %v4427_v23 = vld [vmem:[#allocation8 + $0x1f] sm:$0x1] }
0x16ed   :  { %13299 = vst [vmem:[#allocation36_spill] sm:$0xff] %v11736_v33 }
0x1771   :  { %v9308_v14 = vpop.f32.mrb[24].mxu0  ;;  %v9301_v55 = vpop.f32.mrb[28].mxu1 }
0x1772   :  { %v4800_v43 = vpop.f32.mrb[25].mxu0  ;;  %v4812_v57 = vsel %vm554_vm10, %v9308_v14, -inf  ;;  %v4711_v32 = vpop.f32.mrb[29].mxu1 }
0x1773   :  { %4813 = vmax.xlane.f32.xlu0 %v4812_v57  ;;  %v4809_v48 = vsel %vm554_vm10, %v4800_v43, -inf }
0x1774   :  { %4810 = vmax.xlane.f32.xlu1 %v4809_v48 }
0x1800   :  { %v4814_v27 = vpop.xlane.xlu0 %4813 }
0x1801   :  { %v4816_v3 = vsub.f32 %v9308_v14, %v4814_v27  ;;  %v4811_v40 = vpop.xlane.xlu1 %4810 }
0x1802   :  { %v4815_v31 = vsub.f32 %v4800_v43, %v4811_v40 }
0x1803   :  { %v4819_v11 = vmul.f32 1.442695, %v4816_v3 }
0x1804   :  { %v4817_v37 = vmul.f32 1.442695, %v4815_v31 }
0x1805   :  { %10106 = vpow2.f32 %v4819_v11 }
0x1806   :  { %10108 = vpow2.f32 %v4817_v37 }
0x180f   :  { %v10107_v22 = vpop.eup %10106 }
0x1810   :  { %v10109_v5 = vpop.eup %10108  ;;  %v4824_v45 = vsel %vm554_vm10, %v10107_v22, 0.0 }
0x1811   :  { %4825 = vadd.xlane.f32.xlu1 %v4824_v45  ;;  %v4821_v15 = vsel %vm554_vm10, %v10109_v5, 0.0 }
0x1812   :  { %4822 = vadd.xlane.f32.xlu0 %v4821_v15 }
0x1822   :  { %9955 = vrot.lane.b32.xlu1 %v11718_v56, %s10354_s30 }
0x1826   :  { %4912 = vrot.lane.b32.xlu1 %v11712_v17, %s10355_s22 }
0x1828   :  { %4638 = vrot.lane.b32.xlu0 %v11705_v63, %s10353_s0 }
0x182a   :  { %9960 = vrot.lane.b32.xlu1 %v11718_v56, %s10356_s23 }
0x182c   :  { %4914 = vrot.lane.b32.xlu0 %v11709_v0, %s10355_s22 }
0x182e   :  { %5284 = vrot.lane.b32.xlu1 %v11709_v0, %s10357_s24 }
0x1830   :  { %5282 = vrot.lane.b32.xlu0 %v11712_v17, %s10357_s24 }
0x189e   :  { %v4826_v60 = vpop.xlane.xlu1 %4825 }
0x189f   :  { %10110 = vrcp.f32 %v4826_v60  ;;  %v4823_v28 = vpop.xlane.xlu0 %4822 }
0x18a0   :  { %10112 = vrcp.f32 %v4823_v28 }
0x18a2   :  { %v9956_v12 = vpop.permute.xlu1 %9955 }
0x18a3   :  { %v4639_v58 = vpop.permute.xlu0 %4638  ;;  %v9958_v54 = vunpack.i.h.bf16 %v9956_v12  ;;  %v9957_v51 = vunpack.i.l.bf16 %v9956_v12 }
0x18a4   :  { %v4712_v39 = vadd.f32 %v4711_v32, %v4639_v58  ;;  %v4717_v1 = vadd.f32 %v9301_v55, %v4639_v58 }
0x18a5   :  { %v9687_v10 = vpack.c.bf16 %v9958_v54, %v9957_v51 }
0x18a6   :  { %v4913_v42 = vpop.permute.xlu1 %4912  ;;  %v9683_v62 = vpack.c.bf16 %v4717_v1, %v4712_v39  ;;  %v11788_v47 = vpack.i.bf16 %v4717_v1, %v4712_v39 }
0x18a7   :  { %v4915_v31 = vpop.permute.xlu0 %4914 }
0x18a8   :  { %9684 = vmatprep.subr.bf16.mxu1 %v9683_v62 }
0x18a9   :  { %v10111_v4 = vpop.eup %10110  ;;  %9686 = vmatpush3.bf16.msra.mxu1 %v9683_v62 }
0x18aa   :  { %v10113_v14 = vpop.eup %10112  ;;  %v9961_v43 = vpop.permute.xlu1 %9960  ;;  %9689 = vmatprep.subr.msk.bf16.mxu1 %vm10595_vm9, %v9687_v10  ;;  %v4830_v48 = vmul.f32 %v10111_v4, %v10107_v22 }
0x18ab   :  { %v4828_v57 = vmul.f32 %v10113_v14, %v10109_v5  ;;  %v9963_v27 = vunpack.i.h.bf16 %v9961_v43  ;;  %v9962_v3 = vunpack.i.l.bf16 %v9961_v43  ;;  %v5283_v11 = vpop.permute.xlu0 %5282 }
0x18ad   :  { %9313 = vmatprep.mubr.msk.f32.mxu1 %vm554_vm10, %v4828_v57  ;;  %v9697_v40 = vpack.c.bf16 %v9963_v27, %v9962_v3 }
0x18ae   :  { %9314 = vmatmul.mubr.msk.f32.vlgmr.msra.gmra.mrb[30].mxu1 %vm554_vm10, %v4830_v48  ;;  %v5285_v37 = vpop.permute.xlu1 %5284 }
0x18af   :  { %9320 = vmatprep.mubr.msk.f32.mxu1 %vm470_vm8, %v4913_v42 }
0x18b2   :  { %9692 = vmatpush3.bf16.xpose.msk.msra.mxu1 %vm10595_vm9, %v9687_v10 }
0x18b3   :  { %9699 = vmatprep.subr.msk.bf16.mxu1 %vm10595_vm9, %v9697_v40 }
0x18b9   :  { %9321 = vmatmul.mubr.msk.f32.vlgmr.msra.gmra.mrb[32].mxu1 %vm470_vm8, %v4915_v31 }
0x18ba   :  { %9702 = vmatpush3.bf16.xpose.msk.msra.mxu1 %vm10595_vm9, %v9697_v40  ;;  %9344 = vmatprep.mubr.msk.f32.mxu1 %vm470_vm8, %v5283_v11 }
0x18c1   :  { %9345 = vmatmul.mubr.msk.f32.vlgmr.msra.gmra.mrb[34].mxu1 %vm470_vm8, %v5285_v37 }
0x1981   :  { %v11804_v22 = vpop.f32.mrb[30].mxu1 }
0x1982   :  { %v11806_v5 = vpop.f32.mrb[31].mxu1 }
0x198c   :  { %v9322_v45 = vpop.f32.mrb[32].mxu1 }
0x198d   :  { %v4994_v15 = vpop.f32.mrb[33].mxu1  ;;  %v5006_v55 = vsel %vm554_vm10, %v9322_v45, -inf }
0x198e   :  { %5007 = vmax.xlane.f32.xlu1 %v5006_v55  ;;  %v5003_v32 = vsel %vm554_vm10, %v4994_v15, -inf }
0x198f   :  { %5004 = vmax.xlane.f32.xlu0 %v5003_v32 }
0x1994   :  { %v9346_v60 = vpop.f32.mrb[34].mxu1 }
0x1995   :  { %v11810_v28 = vpop.f32.mrb[35].mxu1  ;;  %v5376_v12 = vsel %vm554_vm10, %v9346_v60, -inf }
0x1996   :  { %v5373_v11 = vsel %vm554_vm10, %v11810_v28, -inf }
0x199f   :  { %9965 = vrot.lane.b32.xlu1 %v11788_v47, %s10355_s22 }
0x19a3   :  { %5568 = vrot.lane.b32.xlu1 %v11712_v17, %s10358_s25 }
0x19a7   :  { %5570 = vrot.lane.b32.xlu1 %v11709_v0, %s10358_s25 }
0x19cb   :  { %5377 = vmax.xlane.f32.xlu1 %v5376_v12 }
0x19dc   :  { %5114 = vrot.lane.b32.xlu1 %v11424_v16, %s10348_s17 }
0x19e0   :  { %9975 = vrot.lane.b32.xlu1 %v11788_v47, %s10357_s24 }
0x1a1b   :  { %v5008_v58 = vpop.xlane.xlu1 %5007 }
0x1a1c   :  { %v5010_v54 = vsub.f32 %v9322_v45, %v5008_v58  ;;  %v5005_v51 = vpop.xlane.xlu0 %5004 }
0x1a1d   :  { %v5009_v39 = vsub.f32 %v4994_v15, %v5005_v51 }
0x1a1e   :  { %v5013_v1 = vmul.f32 1.442695, %v5010_v54 }
0x1a1f   :  { %v5011_v42 = vmul.f32 1.442695, %v5009_v39  ;;  %v9966_v62 = vpop.permute.xlu1 %9965 }
0x1a20   :  { %v9968_v17 = vunpack.i.h.bf16 %v9966_v62  ;;  %v9967_v10 = vunpack.i.l.bf16 %v9966_v62 }
0x1a21   :  { %10114 = vpow2.f32 %v5011_v42 }
0x1a22   :  { %v9693_v0 = vpack.c.bf16 %v9968_v17, %v9967_v10  ;;  %10116 = vpow2.f32 %v5013_v1 }
0x1a23   :  { %v5569_v4 = vpop.permute.xlu1 %5568 }
0x1a24   :  { %9694 = vmatprep.subr.bf16.mxu0 %v9693_v0  ;;  %9363 = vmatprep.mubr.msk.f32.mxu1 %vm470_vm8, %v5569_v4 }
0x1a25   :  { %9696 = vmatpush3.bf16.msra.mxu0 %v9693_v0 }
0x1a27   :  { %v5571_v48 = vpop.permute.xlu1 %5570 }
0x1a2b   :  { %v10115_v16 = vpop.eup %10114 }
0x1a2c   :  { %v5015_v14 = vsel %vm554_vm10, %v10115_v16, 0.0  ;;  %v10117_v43 = vpop.eup %10116 }
0x1a2d   :  { %5016 = vadd.xlane.f32.xlu0 %v5015_v14  ;;  %v5018_v57 = vsel %vm554_vm10, %v10117_v43, 0.0 }
0x1a31   :  { %5019 = vadd.xlane.f32.xlu0 %v5018_v57 }
0x1a47   :  { %9970 = vrot.lane.b32.xlu0 %v11718_v56, %s10359_s26 }
0x1a58   :  { %v5378_v27 = vpop.xlane.xlu1 %5377 }
0x1a59   :  { %v5380_v3 = vsub.f32 %v9346_v60, %v5378_v27 }
0x1a5b   :  { %v5383_v40 = vmul.f32 1.442695, %v5380_v3 }
0x1a5c   :  { %v5115_v31 = vpop.permute.xlu1 %5114 }
0x1a5d   :  { %10118 = vpow2.f32 %v5383_v40  ;;  %9330 = vmatprep.subr.mxu0 %v5115_v31 }
0x1a60   :  { %v9976_v14 = vpop.permute.xlu1 %9975 }
0x1a61   :  { %v9977_v57 = vunpack.i.l.bf16 %v9976_v14 }
0x1a66   :  { %5374 = vmax.xlane.f32.xlu0 %v5373_v11 }
0x1a67   :  { %v10119_v37 = vpop.eup %10118 }
0x1a68   :  { %v5388_v45 = vsel %vm554_vm10, %v10119_v37, 0.0 }
0x1a6a   :  { %5389 = vadd.xlane.f32.xlu0 %v5388_v45 }
0x1aba   :  { %v5017_v15 = vpop.xlane.xlu0 %5016 }
0x1abb   :  { %10120 = vrcp.f32 %v5017_v15 }
0x1abe   :  { %v5020_v55 = vpop.xlane.xlu0 %5019 }
0x1abf   :  { %10122 = vrcp.f32 %v5020_v55 }
0x1ac2   :  { %v9971_v56 = vpop.permute.xlu0 %9970 }
0x1ac3   :  { %v9973_v32 = vunpack.i.h.bf16 %v9971_v56  ;;  %v9972_v12 = vunpack.i.l.bf16 %v9971_v56 }
0x1ac5   :  { %v10121_v60 = vpop.eup %10120  ;;  %v9707_v58 = vpack.c.bf16 %v9973_v32, %v9972_v12 }
0x1ac6   :  { %v5022_v54 = vmul.f32 %v10121_v60, %v10115_v16 }
0x1ac7   :  { %9709 = vmatprep.subr.msk.bf16.mxu1 %vm10595_vm9, %v9707_v58 }
0x1ac8   :  { %9327 = vmatprep.mubr.msk.f32.mxu0 %vm554_vm10, %v5022_v54  ;;  %9712 = vmatpush3.bf16.xpose.msk.msra.mxu1 %vm10595_vm9, %v9707_v58 }
0x1ac9   :  { %v10123_v51 = vpop.eup %10122 }
0x1aca   :  { %v5024_v39 = vmul.f32 %v10123_v51, %v10117_v43  ;;  %v9978_v43 = vunpack.i.h.bf16 %v9976_v14 }
0x1acc   :  { %9328 = vmatmul.mubr.msk.f32.vlgmr.msra.gmra.mrb[26].mxu0 %vm554_vm10, %v5024_v39  ;;  %v9703_v27 = vpack.c.bf16 %v9978_v43, %v9977_v57 }
0x1acd   :  { %9331 = vmatpush3.msra.mxu0 %v5115_v31 }
0x1acf   :  { %9364 = vmatmul.mubr.msk.f32.vlgmr.msra.gmra.mrb[36].mxu1 %vm470_vm8, %v5571_v48 }
0x1af3   :  { %v5375_v1 = vpop.xlane.xlu0 %5374 }
0x1af4   :  { %v5379_v42 = vsub.f32 %v11810_v28, %v5375_v1 }
0x1af6   :  { %v5381_v62 = vmul.f32 1.442695, %v5379_v42 }
0x1af7   :  { %v5390_v0 = vpop.xlane.xlu0 %5389 }
0x1af8   :  { %10124 = vpow2.f32 %v5381_v62 }
0x1b02   :  { %v10125_v17 = vpop.eup %10124 }
0x1b03   :  { %v5385_v10 = vsel %vm554_vm10, %v10125_v17, 0.0 }
0x1b04   :  { %5386 = vadd.xlane.f32.xlu0 %v5385_v10 }
0x1b1a   :  { %5198 = vrot.lane.b32.xlu0 %v11419_v2, %s10348_s17 }
0x1b91   :  { %v5387_v4 = vpop.xlane.xlu0 %5386 }
0x1b92   :  { %10126 = vrcp.f32 %v5387_v4 }
0x1b93   :  { %10128 = vrcp.f32 %v5390_v0 }
0x1b95   :  { %v5199_v16 = vpop.permute.xlu0 %5198 }
0x1b96   :  { %9335 = vmatprep.subr.mxu0 %v5199_v16 }
0x1b9c   :  { %v10127_v11 = vpop.eup %10126 }
0x1b9d   :  { %v10129_v45 = vpop.eup %10128  ;;  %v5392_v15 = vmul.f32 %v10127_v11, %v10125_v17 }
0x1b9e   :  { %v5394_v55 = vmul.f32 %v10129_v45, %v10119_v37 }
0x1b9f   :  { %v9329_v48 = vpop.f32.mrb[26].mxu0 }
0x1ba0   :  { %v5105_v28 = vpop.f32.mrb[27].mxu0 }
0x1ba1   :  { %9332 = vmatprep.mubr.msk.f32.mxu0 %vm470_vm8, %v5105_v28 }
0x1ba2   :  { %9333 = vmatmul.mubr.msk.f32.vlgmr.msra.gmra.mrb[28].mxu0 %vm470_vm8, %v9329_v48  ;;  %v9365_v3 = vpop.f32.mrb[36].mxu1 }
0x1ba3   :  { %9336 = vmatpush3.msra.mxu0 %v5199_v16  ;;  %9337 = vmatprep.mubr.msk.f32.mxu0 %vm470_vm8, %v11806_v5  ;;  %v5650_v2 = vpop.f32.mrb[37].mxu1  ;;  %v5662_v40 = vsel %vm554_vm10, %v9365_v3, -inf }
0x1ba4   :  { %9704 = vmatprep.subr.bf16.mxu0 %v9703_v27  ;;  %5663 = vmax.xlane.f32.xlu0 %v5662_v40  ;;  %v5659_v31 = vsel %vm554_vm10, %v5650_v2, -inf }
0x1ba5   :  { %5660 = vmax.xlane.f32.xlu1 %v5659_v31 }
0x1baa   :  { %9338 = vmatmul.mubr.msk.f32.vlgmr.msra.gmra.mrb[28].mxu0 %vm470_vm8, %v11804_v22 }
0x1bab   :  { %9706 = vmatpush3.bf16.msra.mxu0 %v9703_v27  ;;  %9351 = vmatprep.mubr.msk.f32.mxu0 %vm554_vm10, %v5392_v15 }
0x1bae   :  { %9352 = vmatmul.mubr.msk.f32.vlgmr.msra.gmra.mrb[30].mxu0 %vm554_vm10, %v5394_v55 }
0x1c31   :  { %v5664_v5 = vpop.xlane.xlu0 %5663 }
0x1c32   :  { %v5666_v56 = vsub.f32 %v9365_v3, %v5664_v5  ;;  %v5661_v32 = vpop.xlane.xlu1 %5660 }
0x1c33   :  { %v5665_v12 = vsub.f32 %v5650_v2, %v5661_v32 }
0x1c34   :  { %v5669_v60 = vmul.f32 1.442695, %v5666_v56 }
0x1c35   :  { %v5667_v58 = vmul.f32 1.442695, %v5665_v12 }
0x1c36   :  { %10130 = vpow2.f32 %v5669_v60 }
0x1c37   :  { %10132 = vpow2.f32 %v5667_v58 }
0x1c40   :  { %v10131_v54 = vpop.eup %10130 }
0x1c41   :  { %v10133_v51 = vpop.eup %10132  ;;  %v5674_v39 = vsel %vm554_vm10, %v10131_v54, 0.0 }
0x1c42   :  { %5675 = vadd.xlane.f32.xlu1 %v5674_v39  ;;  %v5671_v22 = vsel %vm554_vm10, %v10133_v51, 0.0 }
0x1c43   :  { %5672 = vadd.xlane.f32.xlu0 %v5671_v22 }
0x1c53   :  { %9980 = vrot.lane.b32.xlu1 %v11788_v47, %s10358_s25 }
0x1c57   :  { %5768 = vrot.lane.b32.xlu1 %v11667_v61, %s10348_s17 }
0x1c59   :  { %5482 = vrot.lane.b32.xlu0 %v11662_v25, %s10348_s17 }
0x1c5d   :  { %5854 = vrot.lane.b32.xlu0 %v11705_v63, %s10348_s17 }
0x1c81   :  { %v9353_v37 = vpop.f32.mrb[30].mxu0 }
0x1c82   :  { %v5473_v1 = vpop.f32.mrb[31].mxu0 }
0x1c83   :  { %9356 = vmatprep.mubr.msk.f32.mxu0 %vm470_vm8, %v5473_v1 }
0x1ccf   :  { %v5676_v42 = vpop.xlane.xlu1 %5675 }
0x1cd0   :  { %10134 = vrcp.f32 %v5676_v42  ;;  %v5673_v62 = vpop.xlane.xlu0 %5672 }
0x1cd1   :  { %10136 = vrcp.f32 %v5673_v62 }
0x1cd3   :  { %v9981_v17 = vpop.permute.xlu1 %9980 }
0x1cd4   :  { %v9983_v10 = vunpack.i.h.bf16 %v9981_v17  ;;  %v9982_v47 = vunpack.i.l.bf16 %v9981_v17  ;;  %v5483_v0 = vpop.permute.xlu0 %5482 }
0x1cd5   :  { %9354 = vmatprep.subr.mxu0 %v5483_v0 }
0x1cd6   :  { %v9713_v61 = vpack.c.bf16 %v9983_v10, %v9982_v47  ;;  %9355 = vmatpush3.msra.mxu0 %v5483_v0  ;;  %v10202_v0 = vld [vmem:[#allocation2 + $0x3] sm:$0x1] }
0x1cd7   :  { %9357 = vmatmul.mubr.msk.f32.vlgmr.msra.gmra.mrb[28].mxu0 %vm470_vm8, %v9353_v37  ;;  %v5769_v25 = vpop.permute.xlu1 %5768 }
0x1cd8   :  { %9714 = vmatprep.subr.bf16.mxu0 %v9713_v61  ;;  %v5855_v48 = vpop.permute.xlu0 %5854 }
0x1cd9   :  { %9716 = vmatpush3.bf16.msra.mxu0 %v9713_v61 }
0x1cda   :  { %v10135_v63 = vpop.eup %10134  ;;  %9373 = vmatprep.subr.mxu0 %v5769_v25 }
0x1cdb   :  { %v10137_v4 = vpop.eup %10136  ;;  %v5680_v14 = vmul.f32 %v10135_v63, %v10131_v54 }
0x1cdc   :  { %v5678_v16 = vmul.f32 %v10137_v4, %v10133_v51  ;;  %v10204_v4 = vld [vmem:[#allocation2 + $0x7] sm:$0x1] }
0x1cde   :  { %9370 = vmatprep.mubr.msk.f32.mxu0 %vm554_vm10, %v5678_v16 }
0x1cdf   :  { %9371 = vmatmul.mubr.msk.f32.vlgmr.msra.gmra.mrb[32].mxu0 %vm554_vm10, %v5680_v14 }
0x1ce0   :  { %9374 = vmatpush3.msra.mxu0 %v5769_v25  ;;  %v10203_v25 = vld [vmem:[#allocation2 + $0x5] sm:$0x1] }
0x1db2   :  { %v9372_v43 = vpop.f32.mrb[32].mxu0 }
0x1db3   :  { %v5759_v57 = vpop.f32.mrb[33].mxu0 }
0x1db4   :  { %9375 = vmatprep.mubr.msk.f32.mxu0 %vm470_vm8, %v5759_v57  ;;  %v10205_v57 = vld [vmem:[#allocation2 + $0x1] sm:$0x1] }
0x1db5   :  { %9376 = vmatmul.mubr.msk.f32.vlgmr.msra.gmra.mrb[28].mxu0 %vm470_vm8, %v9372_v43 }
0x1e88   :  { %v9377_v28 = vpop.f32.mrb[28].mxu0 }
0x1e89   :  { %v5858_v27 = vadd.f32 %v9377_v28, %v5855_v48  ;;  %v5843_v3 = vpop.f32.mrb[29].mxu0  ;;  %v10206_v28 = vld [vmem:[#allocation2 + $0x9] sm:$0x1] }
0x1e8a   :  { %v5857_v2 = vadd.f32 %v5855_v48, %v5843_v3 }
0x1e8b   :  { %v5868_v40 = vrot.slane %v5858_v27, 1  ;;  %v5869_v31 = vrot.slane %v5858_v27, 2  ;;  %v5870_v11 = vrot.slane %v5858_v27, 3  ;;  %v5871_v45 = vrot.slane %v5858_v27, 4 }
0x1e8c   :  { %v5872_v15 = vrot.slane %v5858_v27, 5  ;;  %v5873_v55 = vrot.slane %v5858_v27, 6  ;;  %v5874_v5 = vrot.slane %v5858_v27, 7  ;;  %v11881_v58 = vadd.f32 %v5858_v27, %v11481_v38 }
0x1e8d   :  { %v11869_v56 = vadd.f32 %v5868_v40, %v11475_v52  ;;  %v11872_v32 = vadd.f32 %v5869_v31, %v11485_v34  ;;  %v11875_v12 = vadd.f32 %v5870_v11, %v11495_v20  ;;  %v11878_v60 = vadd.f32 %v5871_v45, %v11501_v50  ;;  %v10207_v40 = vld [vmem:[#allocation2 + $0xb] sm:$0x1] }
0x1e8e   :  { %v11884_v54 = vadd.f32 %v5872_v15, %v11600_v41  ;;  %v11887_v51 = vadd.f32 %v5873_v55, %v11634_v46  ;;  %v11890_v52 = vadd.f32 %v5874_v5, %v11654_v6  ;;  %v5861_v39 = vrot.slane %v5857_v2, 1 }
0x1e8f   :  { %v5937_v34 = vrot.slane %v11869_v56, 7  ;;  %v5939_v20 = vrot.slane %v11872_v32, 6  ;;  %v5941_v50 = vrot.slane %v11875_v12, 5  ;;  %v5943_v22 = vrot.slane %v11878_v60, 4 }
0x1e90   :  { %v5945_v38 = vrot.slane %v11884_v54, 3  ;;  %v5862_v37 = vrot.slane %v5857_v2, 2  ;;  %v5863_v46 = vrot.slane %v5857_v2, 3  ;;  %v5864_v1 = vrot.slane %v5857_v2, 4 }
0x1e91   :  { %v5938_v41 = vsel %vm208_vm0, %v5937_v34, %v11881_v58  ;;  %v5865_v42 = vrot.slane %v5857_v2, 5  ;;  %v5947_v62 = vrot.slane %v11887_v51, 2  ;;  %v5866_v17 = vrot.slane %v5857_v2, 6 }
0x1e92   :  { %v5940_v6 = vsel %vm211_vm1, %v5939_v20, %v5938_v41  ;;  %v5867_v10 = vrot.slane %v5857_v2, 7  ;;  %v11902_v61 = vadd.f32 %v10202_v0, %v5861_v39  ;;  %v11904_v63 = vadd.f32 %v10203_v25, %v5862_v37 }
0x1e93   :  { %v5942_v47 = vsel %vm214_vm2, %v5941_v50, %v5940_v6  ;;  %v11906_v16 = vadd.f32 %v10204_v4, %v5863_v46  ;;  %v5949_v43 = vrot.slane %v11890_v52, 1  ;;  %v11910_v48 = vadd.f32 %v10205_v57, %v5857_v2 }
0x1e94   :  { %v5944_v14 = vsel %vm217_vm3, %v5943_v22, %v5942_v47  ;;  %v11912_v27 = vadd.f32 %v10206_v28, %v5864_v1  ;;  %v11915_v31 = vadd.f32 %v10207_v40, %v5865_v42  ;;  %v5923_v11 = vrot.slane %v11902_v61, 7 }
0x1e95   :  { %v5946_v3 = vsel %vm220_vm4, %v5945_v38, %v5944_v14  ;;  %v5925_v45 = vrot.slane %v11904_v63, 6  ;;  %v11921_v55 = vadd.f32 %v5866_v17, %v11487_v7  ;;  %v11925_v5 = vadd.f32 %v5867_v10, %v11489_v36 }
0x1e96   :  { %v5948_v15 = vsel %vm223_vm5, %v5947_v62, %v5946_v3  ;;  %v5924_v34 = vsel %vm208_vm0, %v5923_v11, %v11910_v48  ;;  %v5927_v20 = vrot.slane %v11906_v16, 5  ;;  %v5929_v22 = vrot.slane %v11912_v27, 4 }
0x1e97   :  { %v5950_v2 = vsel %vm226_vm6, %v5949_v43, %v5948_v15  ;;  %v5926_v50 = vsel %vm211_vm1, %v5925_v45, %v5924_v34  ;;  %v5931_v38 = vrot.slane %v11915_v31, 3  ;;  %v5933_v36 = vrot.slane %v11921_v55, 2 }
0x1e98   :  { %v5956_v39 = vsel %vm242_vm7, %v5950_v2, 0.0  ;;  %v5928_v7 = vsel %vm214_vm2, %v5927_v20, %v5926_v50  ;;  %v5935_v46 = vrot.slane %v11925_v5, 1 }
0x1e99   :  { %5957 = vadd.xlane.f32.xlu0 %v5956_v39  ;;  %v5930_v37 = vsel %vm217_vm3, %v5929_v22, %v5928_v7 }
0x1e9a   :  { %v5932_v41 = vsel %vm220_vm4, %v5931_v38, %v5930_v37 }
0x1e9b   :  { %v5934_v1 = vsel %vm223_vm5, %v5933_v36, %v5932_v41 }
0x1e9c   :  { %v5936_v42 = vsel %vm226_vm6, %v5935_v46, %v5934_v1 }
0x1e9d   :  { %v5953_v6 = vsel %vm242_vm7, %v5936_v42, 0.0 }
0x1e9e   :  { %5954 = vadd.xlane.f32.xlu1 %v5953_v6 }
0x1f26   :  { %v5958_v62 = vpop.xlane.xlu0 %5957 }
0x1f27   :  { %v5960_v17 = vmul.f32 0.03125, %v5958_v62 }
0x1f29   :  { %v5970_v10 = vrot.slane %v5960_v17, 1  ;;  %v5971_v47 = vrot.slane %v5960_v17, 2  ;;  %v5972_v0 = vrot.slane %v5960_v17, 3  ;;  %v5973_v25 = vrot.slane %v5960_v17, 4 }
0x1f2a   :  { %v5974_v4 = vrot.slane %v5960_v17, 5  ;;  %v5975_v14 = vrot.slane %v5960_v17, 6  ;;  %v5976_v43 = vrot.slane %v5960_v17, 7  ;;  %v11943_v57 = vsub.f32 %v11881_v58, %v5960_v17 }
0x1f2b   :  { %v11946_v28 = vsub.f32 %v11869_v56, %v5970_v10  ;;  %v11949_v3 = vsub.f32 %v11872_v32, %v5971_v47  ;;  %v11952_v40 = vsub.f32 %v11875_v12, %v5972_v0  ;;  %v11955_v11 = vsub.f32 %v11878_v60, %v5973_v25  ;;  %v5955_v45 = vpop.xlane.xlu1 %5954 }
0x1f2c   :  { %v11958_v15 = vsub.f32 %v11884_v54, %v5974_v4  ;;  %v11961_v2 = vsub.f32 %v11887_v51, %v5975_v14  ;;  %v11964_v58 = vsub.f32 %v11890_v52, %v5976_v43  ;;  %v5959_v56 = vmul.f32 0.03125, %v5955_v45 }
0x1f2d   :  { %v6018_v32 = vmul.f32 %v11946_v28, %v11946_v28  ;;  %v6019_v12 = vmul.f32 %v11949_v3, %v11949_v3  ;;  %v6020_v60 = vmul.f32 %v11952_v40, %v11952_v40  ;;  %v6017_v54 = vmul.f32 %v11943_v57, %v11943_v57 }
0x1f2e   :  { %v6021_v51 = vmul.f32 %v11955_v11, %v11955_v11  ;;  %v6022_v52 = vmul.f32 %v11958_v15, %v11958_v15  ;;  %v6023_v34 = vmul.f32 %v11961_v2, %v11961_v2  ;;  %v6024_v20 = vmul.f32 %v11964_v58, %v11964_v58 }
0x1f2f   :  { %v6055_v39 = vrot.slane %v6018_v32, 7  ;;  %v6057_v50 = vrot.slane %v6019_v12, 6  ;;  %v5963_v22 = vrot.slane %v5959_v56, 1  ;;  %v6059_v7 = vrot.slane %v6020_v60, 5 }
0x1f30   :  { %v6061_v38 = vrot.slane %v6021_v51, 4  ;;  %v6063_v37 = vrot.slane %v6022_v52, 3  ;;  %v6065_v36 = vrot.slane %v6023_v34, 2  ;;  %v5964_v46 = vrot.slane %v5959_v56, 2 }
0x1f31   :  { %v6056_v41 = vsel %vm208_vm0, %v6055_v39, %v6017_v54  ;;  %v5965_v1 = vrot.slane %v5959_v56, 3  ;;  %v5966_v42 = vrot.slane %v5959_v56, 4  ;;  %v5967_v62 = vrot.slane %v5959_v56, 5 }
0x1f32   :  { %v6058_v6 = vsel %vm211_vm1, %v6057_v50, %v6056_v41  ;;  %v5968_v17 = vrot.slane %v5959_v56, 6  ;;  %v5969_v10 = vrot.slane %v5959_v56, 7  ;;  %v11986_v0 = vsub.f32 %v11910_v48, %v5959_v56 }
0x1f33   :  { %v6060_v47 = vsel %vm214_vm2, %v6059_v7, %v6058_v6  ;;  %v11989_v25 = vsub.f32 %v11902_v61, %v5963_v22  ;;  %v11992_v4 = vsub.f32 %v11904_v63, %v5964_v46  ;;  %v11996_v43 = vsub.f32 %v11906_v16, %v5965_v1 }
0x1f34   :  { %v6062_v14 = vsel %vm217_vm3, %v6061_v38, %v6060_v47  ;;  %v11999_v45 = vsub.f32 %v11912_v27, %v5966_v42  ;;  %v12002_v32 = vsub.f32 %v11915_v31, %v5967_v62  ;;  %v6067_v56 = vrot.slane %v6024_v20, 1  ;;  %v12046_v47 = vld [vmem:[%s13233_s4 + $0x50] sm:$0xff] }
0x1f35   :  { %v6064_v48 = vsel %vm220_vm4, %v6063_v37, %v6062_v14  ;;  %v12006_v61 = vsub.f32 %v11921_v55, %v5968_v17  ;;  %v12009_v63 = vsub.f32 %v11925_v5, %v5969_v10  ;;  %v6010_v16 = vmul.f32 %v11989_v25, %v11989_v25  ;;  %v12041_v10 = vld [vmem:[%s13233_s4 + $0x38] sm:$0xff] }
0x1f36   :  { %v6066_v12 = vsel %vm223_vm5, %v6065_v36, %v6064_v48  ;;  %v6011_v27 = vmul.f32 %v11992_v4, %v11992_v4  ;;  %v6012_v31 = vmul.f32 %v11996_v43, %v11996_v43  ;;  %v6009_v55 = vmul.f32 %v11986_v0, %v11986_v0  ;;  %v12057_v48 = vld [vmem:[%s13233_s4 + $0x8] sm:$0xff] }
0x1f37   :  { %v6068_v60 = vsel %vm226_vm6, %v6067_v56, %v6066_v12  ;;  %v6013_v5 = vmul.f32 %v11999_v45, %v11999_v45  ;;  %v6014_v51 = vmul.f32 %v12002_v32, %v12002_v32  ;;  %v6041_v52 = vrot.slane %v6010_v16, 7  ;;  %v12062_v56 = vld [vmem:[%s13233_s4 + $0x20] sm:$0xff] }
0x1f38   :  { %v6074_v54 = vsel %vm242_vm7, %v6068_v60, 0.0  ;;  %v6043_v34 = vrot.slane %v6011_v27, 6  ;;  %v6015_v20 = vmul.f32 %v12006_v61, %v12006_v61  ;;  %v6016_v39 = vmul.f32 %v12009_v63, %v12009_v63  ;;  %v12070_v16 = vld [vmem:[#allocation5 + $0x1] sm:$0x1]  ;;  %v12072_v27 = vld [vmem:[#allocation5 + $0x3] sm:$0x1] }
0x1f39   :  { %6075 = vadd.xlane.f32.xlu1 %v6074_v54  ;;  %v6042_v50 = vsel %vm208_vm0, %v6041_v52, %v6009_v55  ;;  %v6045_v22 = vrot.slane %v6012_v31, 5  ;;  %v6047_v38 = vrot.slane %v6013_v5, 4  ;;  %v6049_v36 = vrot.slane %v6014_v51, 3  ;;  %v12074_v31 = vld [vmem:[#allocation5 + $0x5] sm:$0x1] }
0x1f3a   :  { %v6044_v7 = vsel %vm211_vm1, %v6043_v34, %v6042_v50  ;;  %v6051_v46 = vrot.slane %v6015_v20, 2  ;;  %v6053_v42 = vrot.slane %v6016_v39, 1  ;;  %v12050_v14 = vpack.i.bf16 %v12046_v47, %v12041_v10  ;;  %v12076_v60 = vld [vmem:[#allocation5 + $0x7] sm:$0x1]  ;;  %v12078_v55 = vld [vmem:[#allocation5 + $0x9] sm:$0x1] }
0x1f3b   :  { %v6046_v37 = vsel %vm214_vm2, %v6045_v22, %v6044_v7  ;;  %v12066_v12 = vpack.i.bf16 %v12062_v56, %v12057_v48  ;;  %v12080_v5 = vld [vmem:[#allocation5 + $0xb] sm:$0x1]  ;;  %v12082_v54 = vld [vmem:[#allocation5 + $0xd] sm:$0x1]  ;;  %v12084_v51 = vld [vmem:[#allocation5 + $0xf] sm:$0x1]  ;;  %v9717_v50 = vpack.c.bf16 %v12062_v56, %v12057_v48  ;;  %v9721_v22 = vpack.c.bf16 %v12046_v47, %v12041_v10 }
0x1f3c   :  { %v6048_v41 = vsel %vm217_vm3, %v6047_v38, %v6046_v37  ;;  %v4412_v52 = vld [vmem:[#allocation8 + $0x1] sm:$0x1]  ;;  %v4413_v34 = vld [vmem:[#allocation8 + $0x3] sm:$0x1]  ;;  %v4414_v20 = vld [vmem:[#allocation8 + $0x5] sm:$0x1] }
0x1f3d   :  { %v6050_v1 = vsel %vm220_vm4, %v6049_v36, %v6048_v41  ;;  %v4415_v39 = vld [vmem:[#allocation8 + $0x7] sm:$0x1]  ;;  %v4416_v7 = vld [vmem:[#allocation8 + $0x9] sm:$0x1]  ;;  %v4417_v38 = vld [vmem:[#allocation8 + $0xb] sm:$0x1]  ;;  %v6313_v36 = vadd.f32 %v4412_v52, %v12070_v16  ;;  %v6314_v41 = vadd.f32 %v4413_v34, %v12072_v27  ;;  %9718 = vmatprep.subr.bf16.mxu1 %v9717_v50 }
0x1f3e   :  { %v6052_v6 = vsel %vm223_vm5, %v6051_v46, %v6050_v1  ;;  %v4418_v37 = vld [vmem:[#allocation8 + $0xd] sm:$0x1]  ;;  %v6315_v46 = vadd.f32 %v4414_v20, %v12074_v31  ;;  %v6316_v1 = vadd.f32 %v4415_v39, %v12076_v60  ;;  %9720 = vmatpush3.bf16.msra.mxu1 %v9717_v50 }
0x1f3f   :  { %v6054_v62 = vsel %vm226_vm6, %v6053_v42, %v6052_v6  ;;  %v4419_v42 = vld [vmem:[#allocation8 + $0xf] sm:$0x1]  ;;  %v6317_v6 = vadd.f32 %v4416_v7, %v12078_v55  ;;  %v6345_v18 = vrot.slane %v6314_v41, 7  ;;  %9722 = vmatprep.subr.bf16.mxu1 %v9721_v22 }
0x1f40   :  { %v6071_v17 = vsel %vm242_vm7, %v6054_v62, 0.0  ;;  %v6318_v62 = vadd.f32 %v4417_v38, %v12080_v5  ;;  %v6320_v35 = vadd.f32 %v4419_v42, %v12084_v51  ;;  %v6347_v44 = vrot.slane %v6315_v46, 6  ;;  %v4420_v46 = vld [vmem:[#allocation8 + $0x11] sm:$0x1] }
0x1f41   :  { %6072 = vadd.xlane.f32.xlu0 %v6071_v17  ;;  %v6319_v17 = vadd.f32 %v4418_v37, %v12082_v54  ;;  %v6349_v8 = vrot.slane %v6316_v1, 5  ;;  %v6351_v52 = vrot.slane %v6317_v6, 4  ;;  %v6346_v34 = vsel %vm208_vm0, %v6345_v18, %v6313_v36  ;;  %v12109_v18 = vld [vmem:[%s13234_s5 + $0x1] ss:$0 sm:$0xff]  ;;  %v12118_v36 = vld [vmem:[#allocation5 + $0x11] sm:$0x1] }
0x1f42   :  { %v6353_v20 = vrot.slane %v6318_v62, 3  ;;  %v6348_v39 = vsel %vm211_vm1, %v6347_v44, %v6346_v34  ;;  %v6357_v38 = vrot.slane %v6320_v35, 1  ;;  %9724 = vmatpush3.bf16.msra.mxu1 %v9721_v22  ;;  %v4421_v44 = vld [vmem:[#allocation8 + $0x13] sm:$0x1]  ;;  %v12115_v35 = vld [vmem:[#allocation5 + $0x15] sm:$0x1] }
0x1f43   :  { %v6355_v29 = vrot.slane %v6319_v17, 2  ;;  %v6350_v7 = vsel %vm214_vm2, %v6349_v8, %v6348_v39  ;;  %v12113_v8 = vld [vmem:[#allocation5 + $0x13] sm:$0x1]  ;;  %v4422_v22 = vld [vmem:[#allocation8 + $0x15] sm:$0x1]  ;;  %v6321_v17 = vadd.f32 %v4420_v46, %v12118_v36 }
0x1f44   :  { %v6352_v37 = vsel %vm217_vm3, %v6351_v52, %v6350_v7  ;;  %v12120_v1 = vld [vmem:[#allocation5 + $0x17] sm:$0x1]  ;;  %v6323_v62 = vadd.f32 %v4422_v22, %v12115_v35  ;;  %v12124_v34 = vld [vmem:[#allocation5 + $0x19] sm:$0x1] }
0x1f45   :  { %v6354_v42 = vsel %vm220_vm4, %v6353_v20, %v6352_v37  ;;  %v4423_v6 = vld [vmem:[#allocation8 + $0x17] sm:$0x1]  ;;  %v4424_v20 = vld [vmem:[#allocation8 + $0x19] sm:$0x1] }
0x1f46   :  { %v6356_v41 = vsel %vm223_vm5, %v6355_v29, %v6354_v42  ;;  %v6322_v29 = vadd.f32 %v4421_v44, %v12113_v8  ;;  %v6324_v39 = vadd.f32 %v4423_v6, %v12120_v1  ;;  %v6361_v7 = vrot.slane %v6323_v62, 6 }
0x1f47   :  { %v6358_v50 = vsel %vm226_vm6, %v6357_v38, %v6356_v41  ;;  %v12128_v41 = vld [vmem:[#allocation5 + $0x1b] sm:$0x1]  ;;  %v6325_v44 = vadd.f32 %v4424_v20, %v12124_v34 }
0x1f48   :  { %9397 = vmatprep.mubr.msk.f32.mxu0 %vm242_vm7, %v6358_v50  ;;  %v6359_v52 = vrot.slane %v6322_v29, 7  ;;  %v4425_v50 = vld [vmem:[#allocation8 + $0x1b] sm:$0x1]  ;;  %v6363_v30 = vrot.slane %v6324_v39, 5  ;;  %v12132_v29 = vld [vmem:[#allocation5 + $0x1d] sm:$0x1] }
0x1f49   :  { %v6326_v59 = vadd.f32 %v4425_v50, %v12128_v41  ;;  %v6365_v6 = vrot.slane %v6325_v44, 4 }
0x1f4a   :  { %9990 = vrot.lane.b32.xlu1 %v12050_v14, %s10352_s21  ;;  %v6360_v37 = vsel %vm208_vm0, %v6359_v52, %v6321_v17  ;;  %v6327_v17 = vadd.f32 %v4426_v24, %v12132_v29 }
0x1f4b   :  { %v6362_v46 = vsel %vm211_vm1, %v6361_v7, %v6360_v37  ;;  %v6367_v20 = vrot.slane %v6326_v59, 3 }
0x1f4c   :  { %v6364_v62 = vsel %vm214_vm2, %v6363_v30, %v6362_v46  ;;  %v6369_v50 = vrot.slane %v6327_v17, 2 }
0x1f4e   :  { %6389 = vrot.lane.b32.xlu1 %v12109_v18, %s10352_s21 }
0x1f52   :  { %10000 = vrot.lane.b32.xlu1 %v12050_v14, %s10353_s0 }
0x1f57   :  { %9985 = vrot.lane.b32.xlu0 %v12066_v12, %s10352_s21 }
0x1f5b   :  { %9995 = vrot.lane.b32.xlu0 %v12066_v12, %s10353_s0 }
0x1fc6   :  { %v6076_v38 = vpop.xlane.xlu1 %6075 }
0x1fc7   :  { %v6078_v42 = vmul.f32 0.03125, %v6076_v38  ;;  %v12137_v38 = vld [vmem:[#allocation5 + $0x1f] sm:$0x1] }
0x1fc8   :  { %v6328_v21 = vadd.f32 %v4427_v23, %v12137_v38 }
0x1fc9   :  { %v6080_v22 = vadd.f32 1e-05, %v6078_v42  ;;  %v6366_v42 = vsel %vm217_vm3, %v6365_v6, %v6364_v62 }
0x1fca   :  { %v9991_v52 = vpop.permute.xlu1 %9990  ;;  %v6368_v44 = vsel %vm220_vm4, %v6367_v20, %v6366_v42  ;;  %v6371_v9 = vrot.slane %v6328_v21, 1 }
0x1fcb   :  { %10138 = vrsqrt.f32 %v6080_v22  ;;  %v9993_v37 = vunpack.i.h.bf16 %v9991_v52  ;;  %v9992_v53 = vunpack.i.l.bf16 %v9991_v52  ;;  %v6370_v59 = vsel %vm223_vm5, %v6369_v50, %v6368_v44 }
0x1fcd   :  { %v9729_v26 = vpack.c.bf16 %v9993_v37, %v9992_v53 }
0x1fce   :  { %v6073_v39 = vpop.xlane.xlu0 %6072 }
0x1fcf   :  { %v6077_v7 = vmul.f32 0.03125, %v6073_v39 }
0x1fd1   :  { %v6079_v22 = vadd.f32 1e-05, %v6077_v7 }
0x1fd2   :  { %v9986_v30 = vpop.permute.xlu0 %9985 }
0x1fd3   :  { %10140 = vrsqrt.f32 %v6079_v22  ;;  %v9988_v24 = vunpack.i.h.bf16 %v9986_v30  ;;  %v9987_v46 = vunpack.i.l.bf16 %v9986_v30 }
0x1fd5   :  { %v10139_v33 = vpop.eup %10138  ;;  %v9725_v19 = vpack.c.bf16 %v9988_v24, %v9987_v46 }
0x1fd6   :  { %v6092_v6 = vrot.slane %v10139_v33, 1  ;;  %v6093_v62 = vrot.slane %v10139_v33, 2  ;;  %v6094_v39 = vrot.slane %v10139_v33, 3  ;;  %v6095_v52 = vrot.slane %v10139_v33, 4 }
0x1fd7   :  { %v6096_v13 = vrot.slane %v10139_v33, 5  ;;  %v6097_v23 = vrot.slane %v10139_v33, 6  ;;  %v6098_v17 = vrot.slane %v10139_v33, 7  ;;  %9726 = vmatprep.subr.bf16.mxu0 %v9725_v19  ;;  %v6123_v20 = vmul.f32 %v10139_v33, %v11943_v57  ;;  %v10208_v33 = vld [vmem:[%s13236_s7 + $0x1] ss:$0 sm:$0xff] }
0x1fd8   :  { %v6124_v42 = vmul.f32 %v6092_v6, %v11946_v28  ;;  %v6125_v7 = vmul.f32 %v6093_v62, %v11949_v3  ;;  %v6126_v53 = vmul.f32 %v6094_v39, %v11952_v40  ;;  %9728 = vmatpush3.bf16.msra.mxu0 %v9725_v19  ;;  %v6127_v21 = vmul.f32 %v6095_v52, %v11955_v11 }
0x1fd9   :  { %v6128_v37 = vmul.f32 %v6096_v13, %v11958_v15  ;;  %v6129_v50 = vmul.f32 %v6097_v23, %v11961_v2  ;;  %v6130_v22 = vmul.f32 %v6098_v17, %v11964_v58  ;;  %9730 = vmatprep.subr.bf16.mxu0 %v9729_v26  ;;  %v6139_v57 = vmul.f32 %v10208_v33, %v6123_v20  ;;  %v10209_v15 = vld [vmem:[%s13236_s7 + $0x2] ss:$0 sm:$0xff] }
0x1fda   :  { %v6140_v28 = vmul.f32 %v10208_v33, %v6124_v42  ;;  %v6141_v44 = vmul.f32 %v10208_v33, %v6125_v7  ;;  %v6142_v3 = vmul.f32 %v10208_v33, %v6126_v53  ;;  %v6143_v30 = vmul.f32 %v10208_v33, %v6127_v21 }
0x1fdb   :  { %v6144_v40 = vmul.f32 %v10208_v33, %v6128_v37  ;;  %v6145_v19 = vmul.f32 %v10208_v33, %v6129_v50  ;;  %v6372_v11 = vsel %vm226_vm6, %v6371_v9, %v6370_v59  ;;  %v6146_v13 = vmul.f32 %v10208_v33, %v6130_v22 }
0x1fdc   :  { %9732 = vmatpush3.bf16.msra.mxu0 %v9729_v26  ;;  %v12158_v2 = vadd.f32 %v10209_v15, %v6139_v57  ;;  %v12160_v58 = vadd.f32 %v10209_v15, %v6140_v28  ;;  %v12162_v24 = vadd.f32 %v10209_v15, %v6141_v44  ;;  %v12164_v6 = vadd.f32 %v10209_v15, %v6142_v3 }
0x1fdd   :  { %v10141_v46 = vpop.eup %10140  ;;  %v12166_v62 = vadd.f32 %v10209_v15, %v6143_v30  ;;  %v12168_v39 = vadd.f32 %v10209_v15, %v6144_v40  ;;  %v12170_v9 = vadd.f32 %v10209_v15, %v6145_v19 }
0x1fde   :  { %v6085_v26 = vrot.slane %v10141_v46, 1  ;;  %v6086_v59 = vrot.slane %v10141_v46, 2  ;;  %v6087_v52 = vrot.slane %v10141_v46, 3  ;;  %v6088_v23 = vrot.slane %v10141_v46, 4 }
0x1fdf   :  { %9398 = vmatmul.mubr.msk.f32.vlgmr.msra.gmra.mrb[34].mxu0 %vm242_vm7, %v6372_v11  ;;  %v6089_v17 = vrot.slane %v10141_v46, 5  ;;  %v6090_v20 = vrot.slane %v10141_v46, 6  ;;  %v6091_v42 = vrot.slane %v10141_v46, 7  ;;  %v6115_v7 = vmul.f32 %v10141_v46, %v11986_v0 }
0x1fe0   :  { %v6116_v53 = vmul.f32 %v6085_v26, %v11989_v25  ;;  %v6117_v21 = vmul.f32 %v6086_v59, %v11992_v4  ;;  %v6118_v37 = vmul.f32 %v6087_v52, %v11996_v43  ;;  %v6119_v50 = vmul.f32 %v6088_v23, %v11999_v45  ;;  %v10210_v59 = vld [vmem:[#allocation7 + $0x13] sm:$0x1] }
0x1fe1   :  { %v6120_v22 = vmul.f32 %v6089_v17, %v12002_v32  ;;  %v6121_v57 = vmul.f32 %v6090_v20, %v12006_v61  ;;  %v6122_v28 = vmul.f32 %v6091_v42, %v12009_v63  ;;  %v6131_v44 = vmul.f32 %v10208_v33, %v6115_v7  ;;  %v10212_v17 = vld [vmem:[#allocation7 + $0x5] sm:$0x1]  ;;  %v10213_v42 = vld [vmem:[#allocation7 + $0x7] sm:$0x1] }
0x1fe2   :  { %v6132_v3 = vmul.f32 %v10208_v33, %v6116_v53  ;;  %v6133_v30 = vmul.f32 %v10208_v33, %v6117_v21  ;;  %v6134_v40 = vmul.f32 %v10208_v33, %v6118_v37  ;;  %v6135_v19 = vmul.f32 %v10208_v33, %v6119_v50  ;;  %v10214_v53 = vld [vmem:[#allocation7 + $0x9] sm:$0x1]  ;;  %v10215_v37 = vld [vmem:[#allocation7 + $0xb] sm:$0x1] }
0x1fe3   :  { %v6136_v0 = vmul.f32 %v10208_v33, %v6120_v22  ;;  %v6137_v11 = vmul.f32 %v10208_v33, %v6121_v57  ;;  %v6138_v25 = vmul.f32 %v10208_v33, %v6122_v28  ;;  %v12181_v46 = vadd.f32 %v10209_v15, %v6131_v44  ;;  %v10211_v33 = vld [vmem:[#allocation7 + $0x3] sm:$0x1]  ;;  %v10216_v57 = vld [vmem:[#allocation7 + $0x11] sm:$0x1]  ;;  %v10217_v44 = vld [vmem:[#allocation7 + $0x15] sm:$0x1] }
0x1fe4   :  { %v12183_v4 = vadd.f32 %v10209_v15, %v6132_v3  ;;  %v12185_v43 = vadd.f32 %v10209_v15, %v6133_v30  ;;  %v12187_v45 = vadd.f32 %v10209_v15, %v6134_v40  ;;  %v12189_v32 = vadd.f32 %v10209_v15, %v6135_v19  ;;  %v10218_v30 = vld [vmem:[#allocation7 + $0x1] sm:$0x1] }
0x1fe5   :  { %v12191_v61 = vadd.f32 %v10209_v15, %v6136_v0  ;;  %v12193_v63 = vadd.f32 %v10209_v15, %v6137_v11  ;;  %v12195_v26 = vadd.f32 %v10209_v15, %v6138_v25  ;;  %v6172_v52 = vadd.f32 %v10210_v59, %v12160_v58  ;;  %v10219_v11 = vld [vmem:[#allocation7 + $0x17] sm:$0x1]  ;;  %v10220_v59 = vld [vmem:[#allocation7 + $0xd] sm:$0x1] }
0x1fe6   :  { %v6164_v23 = vadd.f32 %v10211_v33, %v12183_v4  ;;  %v6165_v20 = vadd.f32 %v10212_v17, %v12185_v43  ;;  %v6166_v7 = vadd.f32 %v10213_v42, %v12187_v45  ;;  %v6167_v21 = vadd.f32 %v10214_v53, %v12189_v32  ;;  %v10221_v17 = vld [vmem:[#allocation7 + $0xf] sm:$0x1]  ;;  %v10222_v42 = vld [vmem:[#allocation7 + $0x19] sm:$0x1] }
0x1fe7   :  { %13300 = vst [vmem:[#allocation37_spill] sm:$0xff] %v12191_v61  ;;  %13301 = vst [vmem:[#allocation38_spill] sm:$0xff] %v12193_v63  ;;  %v6168_v50 = vadd.f32 %v10215_v37, %v12191_v61  ;;  %v12203_v22 = vadd.f32 %v10209_v15, %v6146_v13  ;;  %v6171_v28 = vadd.f32 %v10216_v57, %v12158_v2  ;;  %v10224_v61 = vld [vmem:[#allocation7 + $0x1d] sm:$0x1] }
0x1fe8   :  { %13302 = vst [vmem:[#allocation39_spill] sm:$0xff] %v12195_v26  ;;  %v6173_v3 = vadd.f32 %v10217_v44, %v12162_v24  ;;  %v6163_v40 = vadd.f32 %v10218_v30, %v12181_v46  ;;  %v6206_v19 = vrot.slane %v6164_v23, 7  ;;  %v6208_v0 = vrot.slane %v6165_v20, 6  ;;  %v10223_v44 = vld [vmem:[#allocation7 + $0x1b] sm:$0x1] }
0x1fe9   :  { %v6174_v25 = vadd.f32 %v10219_v11, %v12164_v6  ;;  %v6169_v33 = vadd.f32 %v10220_v59, %v12193_v63  ;;  %v6170_v13 = vadd.f32 %v10221_v17, %v12195_v26  ;;  %v6210_v15 = vrot.slane %v6166_v7, 5  ;;  %v10225_v7 = vld [vmem:[#allocation7 + $0x1f] sm:$0x1] }
0x1fea   :  { %v6175_v53 = vadd.f32 %v10222_v42, %v12166_v62  ;;  %v6207_v37 = vsel %vm208_vm0, %v6206_v19, %v6163_v40  ;;  %v6212_v57 = vrot.slane %v6167_v21, 4  ;;  %v6176_v23 = vadd.f32 %v10223_v44, %v12168_v39 }
0x1feb   :  { %v6220_v20 = vrot.slane %v6172_v52, 7  ;;  %v6209_v30 = vsel %vm211_vm1, %v6208_v0, %v6207_v37  ;;  %v6214_v11 = vrot.slane %v6168_v50, 3  ;;  %v6177_v59 = vadd.f32 %v10224_v61, %v12170_v9 }
0x1fec   :  { %v6222_v63 = vrot.slane %v6173_v3, 6  ;;  %v6211_v17 = vsel %vm214_vm2, %v6210_v15, %v6209_v30  ;;  %v6178_v26 = vadd.f32 %v10225_v7, %v12203_v22  ;;  %v6224_v40 = vrot.slane %v6174_v25, 5 }
0x1fed   :  { %v6221_v42 = vsel %vm208_vm0, %v6220_v20, %v6171_v28  ;;  %v6213_v21 = vsel %vm217_vm3, %v6212_v57, %v6211_v17  ;;  %v6216_v19 = vrot.slane %v6169_v33, 2  ;;  %v6226_v44 = vrot.slane %v6175_v53, 4 }
0x1fee   :  { %v6223_v52 = vsel %vm211_vm1, %v6222_v63, %v6221_v42  ;;  %v6215_v50 = vsel %vm220_vm4, %v6214_v11, %v6213_v21  ;;  %v6218_v0 = vrot.slane %v6170_v13, 1  ;;  %v6228_v3 = vrot.slane %v6176_v23, 3  ;;  %v6390_v13 = vpop.permute.xlu1 %6389  ;;  %v9996_v42 = vpop.permute.xlu0 %9995 }
0x1fef   :  { %v6225_v61 = vsel %vm214_vm2, %v6224_v40, %v6223_v52  ;;  %v6217_v15 = vsel %vm223_vm5, %v6216_v19, %v6215_v50  ;;  %v6230_v30 = vrot.slane %v6177_v59, 2  ;;  %v6232_v57 = vrot.slane %v6178_v26, 1 }
0x1ff0   :  { %v6227_v37 = vsel %vm217_vm3, %v6226_v44, %v6225_v61  ;;  %v6219_v28 = vsel %vm226_vm6, %v6218_v0, %v6217_v15  ;;  %v6487_v21 = vrot.slane %v12072_v27, 7  ;;  %v6489_v19 = vrot.slane %v12074_v31, 6 }
0x1ff1   :  { %v6229_v25 = vsel %vm220_vm4, %v6228_v3, %v6227_v37  ;;  %9386 = vmatprep.mubr.msk.f32.mxu1 %vm242_vm7, %v6219_v28  ;;  %v6491_v52 = vrot.slane %v12076_v60, 5  ;;  %v6493_v44 = vrot.slane %v12078_v55, 4  ;;  %v9998_v50 = vunpack.i.h.bf16 %v9996_v42 }
0x1ff2   :  { %v6231_v63 = vsel %vm223_vm5, %v6230_v30, %v6229_v25  ;;  %v10001_v40 = vpop.permute.xlu1 %10000  ;;  %v9997_v0 = vunpack.i.l.bf16 %v9996_v42  ;;  %v6488_v15 = vsel %vm208_vm0, %v6487_v21, %v12070_v16  ;;  %v6495_v37 = vrot.slane %v12080_v5, 3 }
0x1ff3   :  { %v6233_v33 = vsel %vm226_vm6, %v6232_v57, %v6231_v63  ;;  %v10003_v61 = vunpack.i.h.bf16 %v10001_v40  ;;  %v10002_v3 = vunpack.i.l.bf16 %v10001_v40  ;;  %v6497_v30 = vrot.slane %v12082_v54, 2 }
0x1ff4   :  { %9387 = vmatmul.mubr.msk.f32.vlgmr.msra.gmra.mrb[38].mxu1 %vm242_vm7, %v6233_v33  ;;  %v6499_v28 = vrot.slane %v12084_v51, 1  ;;  %v9733_v27 = vpack.c.bf16 %v9998_v50, %v9997_v0  ;;  %v6490_v31 = vsel %vm211_vm1, %v6489_v19, %v6488_v15  ;;  %v6501_v60 = vrot.slane %v12113_v8, 7 }
0x1ff5   :  { %v9737_v25 = vpack.c.bf16 %v10003_v61, %v10002_v3  ;;  %v6492_v55 = vsel %vm214_vm2, %v6491_v52, %v6490_v31  ;;  %v6503_v57 = vrot.slane %v12115_v35, 6  ;;  %v6505_v63 = vrot.slane %v12120_v1, 5 }
0x1ff6   :  { %v6507_v16 = vrot.slane %v12124_v34, 4  ;;  %9734 = vmatprep.subr.bf16.mxu1 %v9733_v27  ;;  %v6494_v5 = vsel %vm217_vm3, %v6493_v44, %v6492_v55  ;;  %v6502_v54 = vsel %vm208_vm0, %v6501_v60, %v12118_v36  ;;  %v6509_v51 = vrot.slane %v12128_v41, 3 }
0x1ff7   :  { %9736 = vmatpush3.bf16.msra.mxu1 %v9733_v27  ;;  %v6496_v33 = vsel %vm220_vm4, %v6495_v37, %v6494_v5  ;;  %v6504_v8 = vsel %vm211_vm1, %v6503_v57, %v6502_v54  ;;  %v6513_v34 = vrot.slane %v12137_v38, 1 }
0x1ff8   :  { %9738 = vmatprep.subr.bf16.mxu1 %v9737_v25  ;;  %v6498_v35 = vsel %vm223_vm5, %v6497_v30, %v6496_v33  ;;  %v6506_v1 = vsel %vm214_vm2, %v6505_v63, %v6504_v8 }
0x1ff9   :  { %v6508_v36 = vsel %vm217_vm3, %v6507_v16, %v6506_v1 }
0x1ffa   :  { %v6510_v41 = vsel %vm220_vm4, %v6509_v51, %v6508_v36 }
0x1ffb   :  { %9740 = vmatpush3.bf16.msra.mxu1 %v9737_v25 }
0x20b2   :  { %v9399_v53 = vpop.f32.mrb[34].mxu0 }
0x20b3   :  { %v6468_v23 = vadd.f32 %v9399_v53, %v6390_v13  ;;  %v6462_v20 = vpop.f32.mrb[35].mxu0  ;;  %v6500_v53 = vsel %vm226_vm6, %v6499_v28, %v6498_v35 }
0x20b4   :  { %v6463_v11 = vadd.f32 %v6462_v20, %v6390_v13  ;;  %v6511_v13 = vrot.slane %v12132_v29, 2  ;;  %9408 = vmatprep.mubr.msk.f32.mxu1 %vm242_vm7, %v6500_v53 }
0x20b6   :  { %v9741_v26 = vpack.c.bf16 %v6468_v23, %v6463_v11  ;;  %v12235_v59 = vpack.i.bf16 %v6468_v23, %v6463_v11  ;;  %v6512_v23 = vsel %vm223_vm5, %v6511_v13, %v6510_v41 }
0x20b7   :  { %v6514_v29 = vsel %vm226_vm6, %v6513_v34, %v6512_v23 }
0x20b8   :  { %9743 = vmatprep.subr.msk.bf16.mxu0 %vm10595_vm9, %v9741_v26  ;;  %9409 = vmatmul.mubr.msk.f32.vlgmr.msra.gmra.mrb[40].mxu1 %vm242_vm7, %v6514_v29 }
0x20b9   :  { %9746 = vmatpush3.bf16.xpose.msk.msra.mxu0 %vm10595_vm9, %v9741_v26 }
0x20c7   :  { %v9388_v17 = vpop.f32.mrb[38].mxu1 }
0x20c8   :  { %v6304_v7 = vpop.f32.mrb[39].mxu1  ;;  %v12245_v14 = vadd.f32 %v9388_v17, %v12109_v18 }
0x20c9   :  { %v12242_v12 = vadd.f32 %v12109_v18, %v6304_v7 }
0x20cb   :  { %9415 = vmatprep.mubr.msk.f32.mxu0 %vm470_vm8, %v12242_v12 }
0x20cc   :  { %9416 = vmatmul.mubr.msk.f32.vlgmr.msra.gmra.mrb[36].mxu0 %vm470_vm8, %v12245_v14 }
0x218b   :  { %v9410_v61 = vpop.f32.mrb[40].mxu1 }
0x218c   :  { %v6600_v15 = vpop.f32.mrb[41].mxu1 }
0x219f   :  { %v9417_v20 = vpop.f32.mrb[36].mxu0 }
0x21a0   :  { %v6687_v11 = vpop.f32.mrb[37].mxu0  ;;  %v6699_v26 = vsel %vm554_vm10, %v9417_v20, -inf }
0x21a1   :  { %6700 = vmax.xlane.f32.xlu1 %v6699_v26  ;;  %v6696_v38 = vsel %vm554_vm10, %v6687_v11, -inf }
0x21a2   :  { %6697 = vmax.xlane.f32.xlu0 %v6696_v38 }
0x21b2   :  { %6527 = vrot.lane.b32.xlu1 %v12109_v18, %s10353_s0 }
0x21b6   :  { %6799 = vrot.lane.b32.xlu1 %v12242_v12, %s10355_s22 }
0x21ba   :  { %6801 = vrot.lane.b32.xlu1 %v12245_v14, %s10355_s22 }
0x21be   :  { %7169 = vrot.lane.b32.xlu1 %v12242_v12, %s10357_s24 }
0x222e   :  { %v6701_v17 = vpop.xlane.xlu1 %6700 }
0x222f   :  { %v6703_v7 = vsub.f32 %v9417_v20, %v6701_v17  ;;  %v6698_v42 = vpop.xlane.xlu0 %6697 }
0x2230   :  { %v6702_v40 = vsub.f32 %v6687_v11, %v6698_v42 }
0x2231   :  { %v6706_v21 = vmul.f32 1.442695, %v6703_v7 }
0x2232   :  { %v6704_v19 = vmul.f32 1.442695, %v6702_v40  ;;  %v6528_v3 = vpop.permute.xlu1 %6527 }
0x2233   :  { %10142 = vpow2.f32 %v6706_v21  ;;  %v6606_v37 = vadd.f32 %v9410_v61, %v6528_v3  ;;  %v6601_v30 = vadd.f32 %v6600_v15, %v6528_v3 }
0x2234   :  { %10144 = vpow2.f32 %v6704_v19 }
0x2235   :  { %v9747_v28 = vpack.c.bf16 %v6606_v37, %v6601_v30  ;;  %v12295_v27 = vpack.i.bf16 %v6606_v37, %v6601_v30 }
0x2236   :  { %v6800_v51 = vpop.permute.xlu1 %6799 }
0x2237   :  { %9748 = vmatprep.subr.bf16.mxu1 %v9747_v28 }
0x2238   :  { %9750 = vmatpush3.bf16.msra.mxu1 %v9747_v28 }
0x223a   :  { %v6802_v34 = vpop.permute.xlu1 %6801 }
0x223d   :  { %v10143_v52 = vpop.eup %10142 }
0x223e   :  { %v6711_v44 = vsel %vm554_vm10, %v10143_v52, 0.0  ;;  %v10145_v50 = vpop.eup %10144  ;;  %v7170_v53 = vpop.permute.xlu1 %7169 }
0x223f   :  { %6712 = vadd.xlane.f32.xlu0 %v6711_v44  ;;  %v6708_v0 = vsel %vm554_vm10, %v10145_v50, 0.0 }
0x2243   :  { %6709 = vadd.xlane.f32.xlu0 %v6708_v0 }
0x2259   :  { %10005 = vrot.lane.b32.xlu0 %v12235_v59, %s10355_s22 }
0x225d   :  { %10010 = vrot.lane.b32.xlu0 %v12235_v59, %s10357_s24 }
0x2261   :  { %7171 = vrot.lane.b32.xlu0 %v12245_v14, %s10357_s24 }
0x22cc   :  { %v6713_v25 = vpop.xlane.xlu0 %6712 }
0x22cd   :  { %10146 = vrcp.f32 %v6713_v25 }
0x22d0   :  { %v6710_v31 = vpop.xlane.xlu0 %6709 }
0x22d1   :  { %10148 = vrcp.f32 %v6710_v31 }
0x22d4   :  { %v10006_v60 = vpop.permute.xlu0 %10005 }
0x22d5   :  { %v10008_v55 = vunpack.i.h.bf16 %v10006_v60  ;;  %v10007_v57 = vunpack.i.l.bf16 %v10006_v60 }
0x22d7   :  { %v9751_v63 = vpack.c.bf16 %v10008_v55, %v10007_v57  ;;  %v10147_v5 = vpop.eup %10146 }
0x22d8   :  { %v10011_v16 = vpop.permute.xlu0 %10010  ;;  %v6717_v35 = vmul.f32 %v10147_v5, %v10143_v52 }
0x22d9   :  { %9753 = vmatprep.subr.msk.bf16.mxu1 %vm10595_vm9, %v9751_v63  ;;  %v10013_v33 = vunpack.i.h.bf16 %v10011_v16  ;;  %v10012_v8 = vunpack.i.l.bf16 %v10011_v16 }
0x22db   :  { %v10149_v54 = vpop.eup %10148  ;;  %v9761_v1 = vpack.c.bf16 %v10013_v33, %v10012_v8 }
0x22dc   :  { %v6715_v13 = vmul.f32 %v10149_v54, %v10145_v50  ;;  %v7172_v36 = vpop.permute.xlu0 %7171 }
0x22de   :  { %9422 = vmatprep.mubr.msk.f32.mxu1 %vm554_vm10, %v6715_v13 }
0x22df   :  { %9423 = vmatmul.mubr.msk.f32.vlgmr.msra.gmra.mrb[42].mxu1 %vm554_vm10, %v6717_v35 }
0x22e0   :  { %9756 = vmatpush3.bf16.xpose.msk.msra.mxu1 %vm10595_vm9, %v9751_v63  ;;  %9429 = vmatprep.mubr.msk.f32.mxu1 %vm470_vm8, %v6800_v51 }
0x22e1   :  { %9763 = vmatprep.subr.msk.bf16.mxu1 %vm10595_vm9, %v9761_v1 }
0x22e7   :  { %9430 = vmatmul.mubr.msk.f32.vlgmr.msra.gmra.mrb[44].mxu1 %vm470_vm8, %v6802_v34 }
0x22e8   :  { %9766 = vmatpush3.bf16.xpose.msk.msra.mxu1 %vm10595_vm9, %v9761_v1  ;;  %9453 = vmatprep.mubr.msk.f32.mxu1 %vm470_vm8, %v7170_v53 }
0x22ef   :  { %9454 = vmatmul.mubr.msk.f32.vlgmr.msra.gmra.mrb[46].mxu1 %vm470_vm8, %v7172_v36 }
0x23b2   :  { %v12317_v41 = vpop.f32.mrb[42].mxu1 }
0x23b3   :  { %v12319_v23 = vpop.f32.mrb[43].mxu1 }
0x23ba   :  { %v9431_v29 = vpop.f32.mrb[44].mxu1 }
0x23bb   :  { %v6881_v20 = vpop.f32.mrb[45].mxu1  ;;  %v6893_v11 = vsel %vm554_vm10, %v9431_v29, -inf }
0x23bc   :  { %6894 = vmax.xlane.f32.xlu0 %v6893_v11  ;;  %v6890_v26 = vsel %vm554_vm10, %v6881_v20, -inf }
0x23bd   :  { %6891 = vmax.xlane.f32.xlu1 %v6890_v26 }
0x23c2   :  { %v9455_v38 = vpop.f32.mrb[46].mxu1 }
0x23c3   :  { %v7251_v17 = vpop.f32.mrb[47].mxu1  ;;  %v7263_v15 = vsel %vm554_vm10, %v9455_v38, -inf }
0x23c4   :  { %v7260_v3 = vsel %vm554_vm10, %v7251_v17, -inf }
0x2449   :  { %v6895_v7 = vpop.xlane.xlu0 %6894 }
0x244a   :  { %v6897_v42 = vsub.f32 %v9431_v29, %v6895_v7  ;;  %v6892_v40 = vpop.xlane.xlu1 %6891 }
0x244b   :  { %v6896_v21 = vsub.f32 %v6881_v20, %v6892_v40 }
0x244c   :  { %v6900_v19 = vmul.f32 1.442695, %v6897_v42 }
0x244d   :  { %v6898_v52 = vmul.f32 1.442695, %v6896_v21 }
0x244e   :  { %10150 = vpow2.f32 %v6900_v19 }
0x244f   :  { %10152 = vpow2.f32 %v6898_v52 }
0x2458   :  { %v10151_v44 = vpop.eup %10150 }
0x2459   :  { %v10153_v50 = vpop.eup %10152  ;;  %v6905_v0 = vsel %vm554_vm10, %v10151_v44, 0.0 }
0x245a   :  { %6906 = vadd.xlane.f32.xlu1 %v6905_v0  ;;  %v6902_v61 = vsel %vm554_vm10, %v10153_v50, 0.0 }
0x245b   :  { %6903 = vadd.xlane.f32.xlu0 %v6902_v61 }
0x246b   :  { %10020 = vrot.lane.b32.xlu1 %v12235_v59, %s10358_s25 }
0x246f   :  { %7455 = vrot.lane.b32.xlu1 %v12242_v12, %s10358_s25 }
0x2471   :  { %10015 = vrot.lane.b32.xlu0 %v12295_v27, %s10355_s22 }
0x2475   :  { %7457 = vrot.lane.b32.xlu0 %v12245_v14, %s10358_s25 }
0x2493   :  { %7261 = vmax.xlane.f32.xlu1 %v7260_v3 }
0x2494   :  { %7264 = vmax.xlane.f32.xlu0 %v7263_v15 }
0x24e7   :  { %v6907_v37 = vpop.xlane.xlu1 %6906 }
0x24e8   :  { %10154 = vrcp.f32 %v6907_v37  ;;  %v6904_v30 = vpop.xlane.xlu0 %6903 }
0x24e9   :  { %10156 = vrcp.f32 %v6904_v30 }
0x24eb   :  { %v10021_v59 = vpop.permute.xlu1 %10020 }
0x24ec   :  { %v10023_v28 = vunpack.i.h.bf16 %v10021_v59  ;;  %v10022_v25 = vunpack.i.l.bf16 %v10021_v59  ;;  %v10016_v12 = vpop.permute.xlu0 %10015 }
0x24ed   :  { %v10018_v31 = vunpack.i.h.bf16 %v10016_v12  ;;  %v10017_v60 = vunpack.i.l.bf16 %v10016_v12 }
0x24ee   :  { %v9771_v55 = vpack.c.bf16 %v10023_v28, %v10022_v25 }
0x24ef   :  { %v9757_v57 = vpack.c.bf16 %v10018_v31, %v10017_v60  ;;  %v7456_v63 = vpop.permute.xlu1 %7455 }
0x24f0   :  { %9773 = vmatprep.subr.msk.bf16.mxu1 %vm10595_vm9, %v9771_v55  ;;  %9472 = vmatprep.mubr.msk.f32.mxu1 %vm470_vm8, %v7456_v63  ;;  %v7458_v51 = vpop.permute.xlu0 %7457 }
0x24f1   :  { %9758 = vmatprep.subr.bf16.mxu0 %v9757_v57  ;;  %9776 = vmatpush3.bf16.xpose.msk.msra.mxu1 %vm10595_vm9, %v9771_v55 }
0x24f2   :  { %v10155_v14 = vpop.eup %10154  ;;  %9760 = vmatpush3.bf16.msra.mxu0 %v9757_v57 }
0x24f3   :  { %v10157_v16 = vpop.eup %10156  ;;  %v6911_v54 = vmul.f32 %v10155_v14, %v10151_v44 }
0x24f4   :  { %v6909_v5 = vmul.f32 %v10157_v16, %v10153_v50 }
0x24f6   :  { %9436 = vmatprep.mubr.msk.f32.mxu0 %vm554_vm10, %v6909_v5 }
0x24f7   :  { %9437 = vmatmul.mubr.msk.f32.vlgmr.msra.gmra.mrb[38].mxu0 %vm554_vm10, %v6911_v54 }
0x24f8   :  { %9473 = vmatmul.mubr.msk.f32.vlgmr.msra.gmra.mrb[48].mxu1 %vm470_vm8, %v7458_v51 }
0x2520   :  { %v7262_v33 = vpop.xlane.xlu1 %7261 }
0x2521   :  { %v7266_v8 = vsub.f32 %v7251_v17, %v7262_v33  ;;  %v7265_v13 = vpop.xlane.xlu0 %7264 }
0x2522   :  { %v7267_v35 = vsub.f32 %v9455_v38, %v7265_v13 }
0x2523   :  { %v7268_v1 = vmul.f32 1.442695, %v7266_v8  ;;  %v13303_v8 = vld [vmem:[#allocation15_spill] sm:$0xff] }
0x2524   :  { %v7270_v34 = vmul.f32 1.442695, %v7267_v35 }
0x2525   :  { %10158 = vpow2.f32 %v7268_v1  ;;  %v13304_v1 = vld [vmem:[#allocation16_spill] sm:$0xff] }
0x2526   :  { %10160 = vpow2.f32 %v7270_v34  ;;  %v13305_v34 = vld [vmem:[#allocation17_spill] sm:$0xff] }
0x252f   :  { %v10159_v49 = vpop.eup %10158 }
0x2530   :  { %v10161_v53 = vpop.eup %10160  ;;  %v7272_v36 = vsel %vm554_vm10, %v10159_v49, 0.0 }
0x2531   :  { %7273 = vadd.xlane.f32.xlu0 %v7272_v36  ;;  %v7275_v29 = vsel %vm554_vm10, %v10161_v53, 0.0  ;;  %v13307_v36 = vld [vmem:[#allocation36_spill] sm:$0xff] }
0x2532   :  { %7276 = vadd.xlane.f32.xlu1 %v7275_v29 }
0x2543   :  { %7085 = vrot.lane.b32.xlu1 %v12057_v48, %s10348_s17 }
0x2547   :  { %10025 = vrot.lane.b32.xlu1 %v12295_v27, %s10357_s24  ;;  %7001 = vrot.lane.b32.xlu0 %v12062_v56, %s10348_s17 }
0x25be   :  { %v7274_v20 = vpop.xlane.xlu0 %7273 }
0x25bf   :  { %v7277_v11 = vpop.xlane.xlu1 %7276  ;;  %10162 = vrcp.f32 %v7274_v20 }
0x25c0   :  { %10164 = vrcp.f32 %v7277_v11 }
0x25c2   :  { %v7002_v26 = vpop.permute.xlu0 %7001 }
0x25c3   :  { %v7086_v38 = vpop.permute.xlu1 %7085  ;;  %9439 = vmatprep.subr.mxu0 %v7002_v26 }
0x25c4   :  { %9440 = vmatpush3.msra.mxu0 %v7002_v26  ;;  %v13308_v26 = vld [vmem:[#allocation19_spill] sm:$0xff] }
0x25c5   :  { %9444 = vmatprep.subr.mxu0 %v7086_v38 }
0x25c7   :  { %v10026_v17 = vpop.permute.xlu1 %10025 }
0x25c8   :  { %v10028_v7 = vunpack.i.h.bf16 %v10026_v17  ;;  %v10027_v42 = vunpack.i.l.bf16 %v10026_v17  ;;  %v13309_v17 = vld [vmem:[#allocation20_spill] sm:$0xff] }
0x25c9   :  { %v10163_v50 = vpop.eup %10162 }
0x25ca   :  { %v9438_v40 = vpop.f32.mrb[38].mxu0  ;;  %v9767_v52 = vpack.c.bf16 %v10028_v7, %v10027_v42  ;;  %v10165_v0 = vpop.eup %10164  ;;  %v7279_v61 = vmul.f32 %v10163_v50, %v10159_v49  ;;  %v13306_v49 = vld [vmem:[#allocation34_spill] sm:$0xff] }
0x25cb   :  { %v6992_v48 = vpop.f32.mrb[39].mxu0  ;;  %v9474_v21 = vpop.f32.mrb[48].mxu1  ;;  %v7281_v3 = vmul.f32 %v10165_v0, %v10161_v53  ;;  %v12388_v53 = vld [vmem:[%s13236_s7] ss:$0 sm:$0xff] }
0x25cc   :  { %9441 = vmatprep.mubr.msk.f32.mxu0 %vm470_vm8, %v6992_v48  ;;  %v7537_v19 = vpop.f32.mrb[49].mxu1  ;;  %v7549_v56 = vsel %vm554_vm10, %v9474_v21, -inf  ;;  %v4027_v29 = vadd.f32 %v12388_v53, %v13307_v36  ;;  %v13310_v48 = vld [vmem:[#allocation18_spill] sm:$0xff] }
0x25cd   :  { %9442 = vmatmul.mubr.msk.f32.vlgmr.msra.gmra.mrb[40].mxu0 %vm470_vm8, %v9438_v40  ;;  %7550 = vmax.xlane.f32.xlu1 %v7549_v56  ;;  %v7546_v44 = vsel %vm554_vm10, %v7537_v19, -inf }
0x25ce   :  { %9445 = vmatpush3.msra.mxu0 %v7086_v38  ;;  %9446 = vmatprep.mubr.msk.f32.mxu0 %vm470_vm8, %v12319_v23  ;;  %v4037_v20 = vrot.slane %v4027_v29, 1  ;;  %v4038_v11 = vrot.slane %v4027_v29, 2  ;;  %v4039_v42 = vrot.slane %v4027_v29, 3  ;;  %v4041_v0 = vrot.slane %v4027_v29, 5 }
0x25cf   :  { %9768 = vmatprep.subr.bf16.mxu0 %v9767_v52  ;;  %7547 = vmax.xlane.f32.xlu0 %v7546_v44 }
0x25d0   :  { %v12393_v38 = vadd.f32 %v4037_v20, %v13308_v26  ;;  %v12396_v7 = vadd.f32 %v4038_v11, %v13309_v17 }
0x25d2   :  { %v4099_v40 = vrot.slane %v12393_v38, 7  ;;  %v4101_v56 = vrot.slane %v12396_v7, 6 }
0x25d5   :  { %9447 = vmatmul.mubr.msk.f32.vlgmr.msra.gmra.mrb[40].mxu0 %vm470_vm8, %v12317_v41 }
0x25d6   :  { %9770 = vmatpush3.bf16.msra.mxu0 %v9767_v52  ;;  %9460 = vmatprep.mubr.msk.f32.mxu0 %vm554_vm10, %v7279_v61  ;;  %v13311_v52 = vld [vmem:[#allocation21_spill] sm:$0xff]  ;;  %v4042_v61 = vrot.slane %v4027_v29, 6 }
0x25d7   :  { %v12404_v44 = vadd.f32 %v4039_v42, %v13311_v52 }
0x25d9   :  { %9461 = vmatmul.mubr.msk.f32.vlgmr.msra.gmra.mrb[42].mxu0 %vm554_vm10, %v7281_v3  ;;  %v13312_v3 = vld [vmem:[#allocation22_spill] sm:$0xff] }
0x25de   :  { %7369 = vrot.lane.b32.xlu1 %v12041_v10, %s10348_s17 }
0x25e2   :  { %7655 = vrot.lane.b32.xlu1 %v12046_v47, %s10348_s17 }
0x25e6   :  { %7741 = vrot.lane.b32.xlu1 %v12109_v18, %s10348_s17 }
0x265a   :  { %v7551_v23 = vpop.xlane.xlu1 %7550 }
0x265b   :  { %v7553_v15 = vsub.f32 %v9474_v21, %v7551_v23  ;;  %v12400_v21 = vadd.f32 %v4027_v29, %v13310_v48 }
0x265c   :  { %v7548_v37 = vpop.xlane.xlu0 %7547 }
0x265d   :  { %v7556_v30 = vmul.f32 1.442695, %v7553_v15  ;;  %v7552_v41 = vsub.f32 %v7537_v19, %v7548_v37  ;;  %v4040_v19 = vrot.slane %v4027_v29, 4  ;;  %v4100_v50 = vsel %vm208_vm0, %v4099_v40, %v12400_v21 }
0x265e   :  { %v7370_v59 = vpop.permute.xlu1 %7369  ;;  %v4102_v15 = vsel %vm211_vm1, %v4101_v56, %v4100_v50  ;;  %v4103_v37 = vrot.slane %v12404_v44, 5 }
0x265f   :  { %10166 = vpow2.f32 %v7556_v30  ;;  %v7554_v28 = vmul.f32 1.442695, %v7552_v41  ;;  %9463 = vmatprep.subr.mxu0 %v7370_v59  ;;  %v12409_v23 = vadd.f32 %v4040_v19, %v13312_v3  ;;  %v4043_v41 = vrot.slane %v4027_v29, 7 }
0x2660   :  { %9464 = vmatpush3.msra.mxu0 %v7370_v59  ;;  %v13313_v59 = vld [vmem:[#allocation23_spill] sm:$0xff] }
0x2661   :  { %10168 = vpow2.f32 %v7554_v28  ;;  %v12414_v28 = vadd.f32 %v4041_v0, %v13313_v59 }
0x2662   :  { %v7656_v5 = vpop.permute.xlu1 %7655 }
0x2666   :  { %v7742_v30 = vpop.permute.xlu1 %7741 }
0x2669   :  { %v10167_v25 = vpop.eup %10166 }
0x266a   :  { %v7561_v10 = vsel %vm554_vm10, %v10167_v25, 0.0 }
0x266b   :  { %v10169_v12 = vpop.eup %10168  ;;  %7562 = vadd.xlane.f32.xlu0 %v7561_v10 }
0x266c   :  { %v7558_v47 = vsel %vm554_vm10, %v10169_v12, 0.0 }
0x266f   :  { %7559 = vadd.xlane.f32.xlu0 %v7558_v47 }
0x2685   :  { %10030 = vrot.lane.b32.xlu0 %v12295_v27, %s10358_s25 }
0x26ac   :  { %v9462_v18 = vpop.f32.mrb[42].mxu0 }
0x26ad   :  { %v7360_v31 = vpop.f32.mrb[43].mxu0 }
0x26ae   :  { %9465 = vmatprep.mubr.msk.f32.mxu0 %vm470_vm8, %v7360_v31 }
0x26af   :  { %9466 = vmatmul.mubr.msk.f32.vlgmr.msra.gmra.mrb[40].mxu0 %vm470_vm8, %v9462_v18  ;;  %v4105_v18 = vrot.slane %v12409_v23, 4 }
0x26f8   :  { %v7563_v60 = vpop.xlane.xlu0 %7562 }
0x26f9   :  { %10170 = vrcp.f32 %v7563_v60 }
0x26fc   :  { %v7560_v55 = vpop.xlane.xlu0 %7559 }
0x26fd   :  { %10172 = vrcp.f32 %v7560_v55 }
0x2700   :  { %v10031_v57 = vpop.permute.xlu0 %10030 }
0x2701   :  { %v10033_v63 = vunpack.i.h.bf16 %v10031_v57  ;;  %v10032_v14 = vunpack.i.l.bf16 %v10031_v57  ;;  %v13315_v57 = vld [vmem:[#allocation25_spill] sm:$0xff] }
0x2703   :  { %v9777_v16 = vpack.c.bf16 %v10033_v63, %v10032_v14  ;;  %v10171_v54 = vpop.eup %10170  ;;  %v12422_v63 = vadd.f32 %v4043_v41, %v13315_v57 }
0x2704   :  { %v7567_v33 = vmul.f32 %v10171_v54, %v10167_v25  ;;  %v4104_v25 = vsel %vm214_vm2, %v4103_v37, %v4102_v15 }
0x2705   :  { %9778 = vmatprep.subr.bf16.mxu0 %v9777_v16  ;;  %v4106_v14 = vsel %vm217_vm3, %v4105_v18, %v4104_v25  ;;  %v13317_v18 = vld [vmem:[#allocation38_spill] sm:$0xff] }
0x2706   :  { %9780 = vmatpush3.bf16.msra.mxu0 %v9777_v16  ;;  %v4107_v16 = vrot.slane %v12414_v28, 3 }
0x2707   :  { %v10173_v51 = vpop.eup %10172  ;;  %9482 = vmatprep.subr.mxu0 %v7656_v5 }
0x2708   :  { %v7565_v27 = vmul.f32 %v10173_v51, %v10169_v12  ;;  %v13314_v12 = vld [vmem:[#allocation24_spill] sm:$0xff] }
0x2709   :  { %v12418_v47 = vadd.f32 %v4042_v61, %v13314_v12 }
0x270a   :  { %9479 = vmatprep.mubr.msk.f32.mxu0 %vm554_vm10, %v7565_v27 }
0x270b   :  { %9480 = vmatmul.mubr.msk.f32.vlgmr.msra.gmra.mrb[44].mxu0 %vm554_vm10, %v7567_v33 }
0x270c   :  { %9483 = vmatpush3.msra.mxu0 %v7656_v5 }
0x270d   :  { %9790 = vmatprep.subr.bf16.mxu0 %v13303_v8 }
0x27de   :  { %v9481_v13 = vpop.f32.mrb[44].mxu0 }
0x27df   :  { %v7646_v35 = vpop.f32.mrb[45].mxu0 }
0x27e0   :  { %9484 = vmatprep.mubr.msk.f32.mxu0 %vm470_vm8, %v7646_v35  ;;  %v4109_v35 = vrot.slane %v12418_v47, 2 }
0x27e1   :  { %9485 = vmatmul.mubr.msk.f32.vlgmr.msra.gmra.mrb[40].mxu0 %vm470_vm8, %v9481_v13 }
0x27e2   :  { %9792 = vmatpush3.bf16.msra.mxu0 %v13303_v8 }
0x27e3   :  { %9794 = vmatprep.subr.bf16.mxu0 %v13304_v1 }
0x27e6   :  { %9796 = vmatpush3.bf16.msra.mxu0 %v13304_v1 }
0x27e7   :  { %9798 = vmatprep.subr.bf16.mxu0 %v13305_v34 }
0x27ea   :  { %9800 = vmatpush3.bf16.msra.mxu0 %v13305_v34 }
0x27eb   :  { %9802 = vmatprep.subr.bf16.mxu0 %v13306_v49 }
0x27ee   :  { %9804 = vmatpush3.bf16.msra.mxu0 %v13306_v49 }
0x28b4   :  { %v9486_v10 = vpop.f32.mrb[40].mxu0 }
0x28b5   :  { %v7745_v31 = vadd.f32 %v9486_v10, %v7742_v30  ;;  %v7730_v60 = vpop.f32.mrb[41].mxu0 }
0x28b6   :  { %v7744_v55 = vadd.f32 %v7742_v30, %v7730_v60  ;;  %v4111_v60 = vrot.slane %v12422_v63, 1 }
0x28b7   :  { %v7755_v5 = vrot.slane %v7745_v31, 1  ;;  %v7756_v54 = vrot.slane %v7745_v31, 2  ;;  %v7757_v51 = vrot.slane %v7745_v31, 3  ;;  %v7758_v27 = vrot.slane %v7745_v31, 4 }
0x28b8   :  { %v7759_v33 = vrot.slane %v7745_v31, 5  ;;  %v7760_v8 = vrot.slane %v7745_v31, 6  ;;  %v7761_v13 = vrot.slane %v7745_v31, 7  ;;  %v12440_v29 = vadd.f32 %v7745_v31, %v12158_v2 }
0x28b9   :  { %v12428_v1 = vadd.f32 %v7755_v5, %v12160_v58  ;;  %v12431_v34 = vadd.f32 %v7756_v54, %v12162_v24  ;;  %v12434_v49 = vadd.f32 %v7757_v51, %v12164_v6  ;;  %v12437_v36 = vadd.f32 %v7758_v27, %v12166_v62 }
0x28ba   :  { %v12443_v20 = vadd.f32 %v7759_v33, %v12168_v39  ;;  %v12446_v11 = vadd.f32 %v7760_v8, %v12170_v9  ;;  %v4108_v58 = vsel %vm220_vm4, %v4107_v16, %v4106_v14  ;;  %v12450_v24 = vadd.f32 %v7761_v13, %v12203_v22 }
0x28bb   :  { %v7824_v6 = vrot.slane %v12428_v1, 7  ;;  %v7826_v26 = vrot.slane %v12431_v34, 6  ;;  %v7748_v62 = vrot.slane %v7744_v55, 1  ;;  %v7828_v17 = vrot.slane %v12434_v49, 5 }
0x28bc   :  { %v7830_v2 = vrot.slane %v12437_v36, 4  ;;  %v7832_v39 = vrot.slane %v12443_v20, 3  ;;  %v7749_v42 = vrot.slane %v7744_v55, 2  ;;  %v7750_v40 = vrot.slane %v7744_v55, 3 }
0x28bd   :  { %v7825_v9 = vsel %vm208_vm0, %v7824_v6, %v12440_v29  ;;  %v7751_v48 = vrot.slane %v7744_v55, 4  ;;  %v7752_v19 = vrot.slane %v7744_v55, 5  ;;  %v7834_v56 = vrot.slane %v12446_v11, 2 }
0x28be   :  { %v7827_v22 = vsel %vm211_vm1, %v7826_v26, %v7825_v9  ;;  %v7753_v52 = vrot.slane %v7744_v55, 6  ;;  %v7754_v50 = vrot.slane %v7744_v55, 7  ;;  %v12463_v61 = vadd.f32 %v7748_v62, %v12183_v4  ;;  %v13316_v4 = vld [vmem:[#allocation37_spill] sm:$0xff] }
0x28bf   :  { %v7829_v0 = vsel %vm214_vm2, %v7828_v17, %v7827_v22  ;;  %v12466_v3 = vadd.f32 %v7749_v42, %v12185_v43  ;;  %v12469_v15 = vadd.f32 %v7750_v40, %v12187_v45  ;;  %v7836_v30 = vrot.slane %v12450_v24, 1  ;;  %v13321_v22 = vld [vmem:[#allocation27_spill] sm:$0xff] }
0x28c0   :  { %v7831_v37 = vsel %vm217_vm3, %v7830_v2, %v7829_v0  ;;  %v12474_v41 = vadd.f32 %v7744_v55, %v12181_v46  ;;  %v12477_v59 = vadd.f32 %v7751_v48, %v12189_v32  ;;  %v12481_v10 = vadd.f32 %v7752_v19, %v13316_v4  ;;  %v13318_v55 = vld [vmem:[#allocation39_spill] sm:$0xff]  ;;  %v13320_v48 = vld [vmem:[#allocation26_spill] sm:$0xff]  ;;  %v13323_v4 = vld [vmem:[#allocation28_spill] sm:$0xff] }
0x28c1   :  { %v7833_v25 = vsel %vm220_vm4, %v7832_v39, %v7831_v37  ;;  %v7810_v43 = vrot.slane %v12463_v61, 7  ;;  %v7812_v45 = vrot.slane %v12466_v3, 6  ;;  %v12487_v31 = vadd.f32 %v7753_v52, %v13317_v18  ;;  %v13319_v39 = vld [vmem:[#allocation35_spill] sm:$0xff]  ;;  %v13322_v37 = vld [vmem:[#allocation30_spill] sm:$0xff]  ;;  %v13324_v18 = vld [vmem:[#allocation29_spill] sm:$0xff] }
0x28c2   :  { %v7835_v12 = vsel %vm223_vm5, %v7834_v56, %v7833_v25  ;;  %v4110_v46 = vsel %vm223_vm5, %v4109_v35, %v4108_v58  ;;  %v12493_v57 = vadd.f32 %v7754_v50, %v13318_v55  ;;  %v7814_v16 = vrot.slane %v12469_v15, 5 }
0x28c3   :  { %v7837_v32 = vsel %vm226_vm6, %v7836_v30, %v7835_v12  ;;  %v7811_v14 = vsel %vm208_vm0, %v7810_v43, %v12474_v41  ;;  %v7816_v51 = vrot.slane %v12477_v59, 4  ;;  %v7818_v33 = vrot.slane %v12481_v10, 3 }
0x28c4   :  { %v7843_v5 = vsel %vm242_vm7, %v7837_v32, 0.0  ;;  %v7813_v54 = vsel %vm211_vm1, %v7812_v45, %v7811_v14  ;;  %v4112_v8 = vsel %vm226_vm6, %v4111_v60, %v4110_v46  ;;  %v7820_v35 = vrot.slane %v12487_v31, 2 }
0x28c5   :  { %7844 = vadd.xlane.f32.xlu1 %v7843_v5  ;;  %v7815_v27 = vsel %vm214_vm2, %v7814_v16, %v7813_v54  ;;  %v7822_v6 = vrot.slane %v12493_v57, 1  ;;  %v4129_v62 = vsel %vm242_vm7, %v4112_v8, 0.0  ;;  %v12514_v42 = vadd.f32 %v13319_v39, %v12388_v53  ;;  %v13325_v5 = vld [vmem:[#allocation31_spill] sm:$0xff] }
0x28c6   :  { %v7817_v13 = vsel %vm217_vm3, %v7816_v51, %v7815_v27 }
0x28c7   :  { %v7819_v58 = vsel %vm220_vm4, %v7818_v33, %v7817_v13  ;;  %v4044_v9 = vrot.slane %v12514_v42, 1  ;;  %v4045_v40 = vrot.slane %v12514_v42, 2  ;;  %v4046_v52 = vrot.slane %v12514_v42, 3 }
0x28c8   :  { %v7821_v26 = vsel %vm223_vm5, %v7820_v35, %v7819_v58  ;;  %v4047_v0 = vrot.slane %v12514_v42, 4  ;;  %v12529_v30 = vadd.f32 %v12514_v42, %v13322_v37  ;;  %v4048_v12 = vrot.slane %v12514_v42, 5 }
0x28c9   :  { %v7823_v17 = vsel %vm226_vm6, %v7822_v6, %v7821_v26  ;;  %4130 = vadd.xlane.f32.xlu1 %v4129_v62  ;;  %v12519_v19 = vadd.f32 %v4044_v9, %v13320_v48  ;;  %v12522_v56 = vadd.f32 %v4045_v40, %v13321_v22  ;;  %v12533_v43 = vadd.f32 %v4046_v52, %v13323_v4  ;;  %v13326_v9 = vld [vmem:[#allocation32_spill] sm:$0xff] }
0x28ca   :  { %v7840_v2 = vsel %vm242_vm7, %v7823_v17, 0.0  ;;  %v12539_v46 = vadd.f32 %v4047_v0, %v13324_v18  ;;  %v4049_v16 = vrot.slane %v12514_v42, 6  ;;  %v12545_v54 = vadd.f32 %v4048_v12, %v13325_v5 }
0x28cb   :  { %7841 = vadd.xlane.f32.xlu0 %v7840_v2  ;;  %v4113_v50 = vrot.slane %v12519_v19, 7  ;;  %v4115_v25 = vrot.slane %v12522_v56, 6  ;;  %v4117_v55 = vrot.slane %v12533_v43, 5  ;;  %v4050_v17 = vrot.slane %v12514_v42, 7 }
0x28cc   :  { %v4119_v27 = vrot.slane %v12539_v46, 4  ;;  %v12557_v40 = vadd.f32 %v4049_v16, %v13326_v9 }
0x28cd   :  { %v4114_v45 = vsel %vm208_vm0, %v4113_v50, %v12529_v30 }
0x28ce   :  { %v4116_v60 = vsel %vm211_vm1, %v4115_v25, %v4114_v45 }
0x28cf   :  { %v4118_v51 = vsel %vm214_vm2, %v4117_v55, %v4116_v60 }
0x28d0   :  { %v12560_v48 = vsel %vm217_vm3, %v4119_v27, %v4118_v51 }
0x2952   :  { %v7845_v32 = vpop.xlane.xlu1 %7844 }
0x2953   :  { %v7847_v14 = vmul.f32 0.03125, %v7845_v32 }
0x2955   :  { %v7857_v33 = vrot.slane %v7847_v14, 1  ;;  %v7858_v8 = vrot.slane %v7847_v14, 2  ;;  %v7859_v13 = vrot.slane %v7847_v14, 3  ;;  %v7860_v35 = vrot.slane %v7847_v14, 4 }
0x2956   :  { %v7861_v58 = vrot.slane %v7847_v14, 5  ;;  %v7862_v6 = vrot.slane %v7847_v14, 6  ;;  %v7863_v26 = vrot.slane %v7847_v14, 7  ;;  %v12550_v62 = vsub.f32 %v12440_v29, %v7847_v14 }
0x2957   :  { %v12554_v39 = vsub.f32 %v12428_v1, %v7857_v33  ;;  %v12564_v50 = vsub.f32 %v12431_v34, %v7858_v8  ;;  %v12567_v29 = vsub.f32 %v12434_v49, %v7859_v13  ;;  %v12570_v0 = vsub.f32 %v12437_v36, %v7860_v35 }
0x2958   :  { %v7842_v2 = vpop.xlane.xlu0 %7841  ;;  %v12573_v1 = vsub.f32 %v12443_v20, %v7861_v58  ;;  %v12576_v37 = vsub.f32 %v12446_v11, %v7862_v6  ;;  %v12579_v25 = vsub.f32 %v12450_v24, %v7863_v26  ;;  %v7904_v4 = vmul.f32 %v12550_v62, %v12550_v62 }
0x2959   :  { %v7846_v52 = vmul.f32 0.03125, %v7842_v2  ;;  %v7908_v5 = vmul.f32 %v12570_v0, %v12570_v0 }
0x295a   :  { %v7909_v51 = vmul.f32 %v12573_v1, %v12573_v1  ;;  %v7910_v6 = vmul.f32 %v12576_v37, %v12576_v37 }
0x295b   :  { %v7850_v34 = vrot.slane %v7846_v52, 1  ;;  %v7851_v45 = vrot.slane %v7846_v52, 2  ;;  %v7852_v12 = vrot.slane %v7846_v52, 3  ;;  %v7853_v49 = vrot.slane %v7846_v52, 4 }
0x295c   :  { %v7854_v18 = vrot.slane %v7846_v52, 5  ;;  %v7855_v60 = vrot.slane %v7846_v52, 6  ;;  %v7856_v36 = vrot.slane %v7846_v52, 7  ;;  %v12584_v32 = vsub.f32 %v12474_v41, %v7846_v52 }
0x295d   :  { %v12587_v20 = vsub.f32 %v12463_v61, %v7850_v34  ;;  %v12590_v11 = vsub.f32 %v12466_v3, %v7851_v45  ;;  %v12593_v24 = vsub.f32 %v12469_v15, %v7852_v12  ;;  %v12596_v55 = vsub.f32 %v12477_v59, %v7853_v49 }
0x295e   :  { %v12599_v14 = vsub.f32 %v12481_v10, %v7854_v18  ;;  %v12602_v16 = vsub.f32 %v12487_v31, %v7855_v60  ;;  %v12605_v41 = vsub.f32 %v12493_v57, %v7856_v36  ;;  %v7905_v61 = vmul.f32 %v12554_v39, %v12554_v39 }
0x295f   :  { %v7897_v3 = vmul.f32 %v12587_v20, %v12587_v20  ;;  %v7898_v15 = vmul.f32 %v12590_v11, %v12590_v11  ;;  %v7899_v59 = vmul.f32 %v12593_v24, %v12593_v24  ;;  %v7906_v10 = vmul.f32 %v12564_v50, %v12564_v50 }
0x2960   :  { %v7900_v31 = vmul.f32 %v12596_v55, %v12596_v55  ;;  %v7907_v57 = vmul.f32 %v12567_v29, %v12567_v29  ;;  %v7896_v27 = vmul.f32 %v12584_v32, %v12584_v32  ;;  %v7901_v33 = vmul.f32 %v12599_v14, %v12599_v14 }
0x2961   :  { %v7928_v8 = vrot.slane %v7897_v3, 7  ;;  %v7930_v13 = vrot.slane %v7898_v15, 6  ;;  %v7902_v35 = vmul.f32 %v12602_v16, %v12602_v16  ;;  %v7903_v58 = vmul.f32 %v12605_v41, %v12605_v41 }
0x2962   :  { %v7942_v26 = vrot.slane %v7905_v61, 7  ;;  %v7932_v9 = vrot.slane %v7899_v59, 5  ;;  %v7911_v52 = vmul.f32 %v12579_v25, %v12579_v25  ;;  %v7944_v34 = vrot.slane %v7906_v10, 6 }
0x2963   :  { %v7929_v2 = vsel %vm208_vm0, %v7928_v8, %v7896_v27  ;;  %v7934_v12 = vrot.slane %v7900_v31, 4  ;;  %v7946_v18 = vrot.slane %v7907_v57, 5  ;;  %v7936_v36 = vrot.slane %v7901_v33, 3  ;;  %v13327_v33 = vld [vmem:[#allocation33_spill] sm:$0xff] }
0x2964   :  { %v7931_v45 = vsel %vm211_vm1, %v7930_v13, %v7929_v2  ;;  %v7943_v49 = vsel %vm208_vm0, %v7942_v26, %v7904_v4  ;;  %v7948_v15 = vrot.slane %v7908_v5, 4  ;;  %v7938_v27 = vrot.slane %v7902_v35, 2 }
0x2965   :  { %v7933_v60 = vsel %vm214_vm2, %v7932_v9, %v7931_v45  ;;  %v7945_v3 = vsel %vm211_vm1, %v7944_v34, %v7943_v49  ;;  %v7950_v8 = vrot.slane %v7909_v51, 3  ;;  %v7940_v22 = vrot.slane %v7903_v58, 1  ;;  %v8052_v49 = vld [vmem:[%s13233_s4 + $0x40] sm:$0xff] }
0x2966   :  { %v7935_v61 = vsel %vm217_vm3, %v7934_v12, %v7933_v60  ;;  %v7947_v59 = vsel %vm214_vm2, %v7946_v18, %v7945_v3  ;;  %v7952_v13 = vrot.slane %v7910_v6, 2  ;;  %v12651_v5 = vadd.f32 %v4050_v17, %v13327_v33  ;;  %v8051_v12 = vld [vmem:[%s13233_s4 + $0x28] sm:$0xff]  ;;  %v8053_v60 = vld [vmem:[%s13233_s4 + $0x58] sm:$0xff] }
0x2967   :  { %v7937_v10 = vsel %vm220_vm4, %v7936_v36, %v7935_v61  ;;  %v7949_v31 = vsel %vm217_vm3, %v7948_v15, %v7947_v59  ;;  %v7954_v51 = vrot.slane %v7911_v52, 1  ;;  %v13328_v58 = vrot.slane %v12545_v54, 3 }
0x2968   :  { %v7939_v4 = vsel %vm223_vm5, %v7938_v27, %v7937_v10  ;;  %v7951_v57 = vsel %vm220_vm4, %v7950_v8, %v7949_v31  ;;  %v4123_v9 = vrot.slane %v12557_v40, 2  ;;  %v4125_v17 = vrot.slane %v12651_v5, 1 }
0x2969   :  { %v7941_v35 = vsel %vm226_vm6, %v7940_v22, %v7939_v4  ;;  %v7953_v26 = vsel %vm223_vm5, %v7952_v13, %v7951_v57  ;;  %v4122_v2 = vsel %vm220_vm4, %v13328_v58, %v12560_v48  ;;  %v8050_v48 = vld [vmem:[%s13233_s4 + $0x10] sm:$0xff]  ;;  %v9785_v36 = vpack.c.bf16 %v8053_v60, %v8052_v49 }
0x296a   :  { %v7958_v6 = vsel %vm242_vm7, %v7941_v35, 0.0  ;;  %v7955_v34 = vsel %vm226_vm6, %v7954_v51, %v7953_v26  ;;  %v4124_v42 = vsel %vm223_vm5, %v4123_v9, %v4122_v2  ;;  %v9781_v18 = vpack.c.bf16 %v8051_v12, %v8050_v48 }
0x296b   :  { %7959 = vadd.xlane.f32.xlu0 %v7958_v6  ;;  %v7961_v22 = vsel %vm242_vm7, %v7955_v34, 0.0  ;;  %v4126_v52 = vsel %vm226_vm6, %v4125_v17, %v4124_v42 }
0x296c   :  { %v4132_v45 = vsel %vm242_vm7, %v4126_v52, 0.0  ;;  %9782 = vmatprep.subr.bf16.mxu1 %v9781_v18 }
0x296d   :  { %9784 = vmatpush3.bf16.msra.mxu1 %v9781_v18 }
0x296e   :  { %9786 = vmatprep.subr.bf16.mxu1 %v9785_v36 }
0x296f   :  { %7962 = vadd.xlane.f32.xlu0 %v7961_v22  ;;  %v10226_v22 = vld [vmem:[%s13236_s7 + $0x3] ss:$0 sm:$0xff] }
0x2971   :  { %9788 = vmatpush3.bf16.msra.mxu1 %v9785_v36 }
0x2973   :  { %4133 = vadd.xlane.f32.xlu0 %v4132_v45 }
0x29f8   :  { %v7960_v3 = vpop.xlane.xlu0 %7959 }
0x29f9   :  { %v7964_v15 = vmul.f32 0.03125, %v7960_v3 }
0x29fb   :  { %v7966_v61 = vadd.f32 1e-05, %v7964_v15 }
0x29fc   :  { %v7963_v27 = vpop.xlane.xlu0 %7962 }
0x29fd   :  { %10174 = vrsqrt.f32 %v7966_v61  ;;  %v7965_v59 = vmul.f32 0.03125, %v7963_v27 }
0x29ff   :  { %v7967_v8 = vadd.f32 1e-05, %v7965_v59 }
0x2a01   :  { %10176 = vrsqrt.f32 %v7967_v8 }
0x2a07   :  { %v10175_v10 = vpop.eup %10174 }
0x2a08   :  { %v7972_v31 = vrot.slane %v10175_v10, 1  ;;  %v7973_v13 = vrot.slane %v10175_v10, 2  ;;  %v7974_v4 = vrot.slane %v10175_v10, 3  ;;  %v7975_v57 = vrot.slane %v10175_v10, 4 }
0x2a09   :  { %v7976_v33 = vrot.slane %v10175_v10, 5  ;;  %v7977_v35 = vrot.slane %v10175_v10, 6  ;;  %v7978_v26 = vrot.slane %v10175_v10, 7  ;;  %v8002_v51 = vmul.f32 %v10175_v10, %v12584_v32 }
0x2a0a   :  { %v8003_v58 = vmul.f32 %v7972_v31, %v12587_v20  ;;  %v8004_v2 = vmul.f32 %v7973_v13, %v12590_v11  ;;  %v8005_v6 = vmul.f32 %v7974_v4, %v12593_v24  ;;  %v8006_v9 = vmul.f32 %v7975_v57, %v12596_v55  ;;  %v10227_v55 = vld [vmem:[%s13236_s7 + $0x4] ss:$0 sm:$0xff] }
0x2a0b   :  { %v8007_v34 = vmul.f32 %v7976_v33, %v12599_v14  ;;  %v8008_v42 = vmul.f32 %v7977_v35, %v12602_v16  ;;  %v8009_v17 = vmul.f32 %v7978_v26, %v12605_v41  ;;  %v8018_v52 = vmul.f32 %v10226_v22, %v8002_v51  ;;  %v10177_v32 = vpop.eup %10176 }
0x2a0c   :  { %v8019_v45 = vmul.f32 %v10226_v22, %v8003_v58  ;;  %v8020_v20 = vmul.f32 %v10226_v22, %v8004_v2  ;;  %v8021_v48 = vmul.f32 %v10226_v22, %v8005_v6  ;;  %v8022_v11 = vmul.f32 %v10226_v22, %v8006_v9 }
0x2a0d   :  { %v8023_v12 = vmul.f32 %v10226_v22, %v8007_v34  ;;  %v8024_v24 = vmul.f32 %v10226_v22, %v8008_v42  ;;  %v8025_v49 = vmul.f32 %v10226_v22, %v8009_v17  ;;  %v12693_v14 = vadd.f32 %v10227_v55, %v8018_v52 }
0x2a0e   :  { %v12695_v16 = vadd.f32 %v10227_v55, %v8019_v45  ;;  %v12697_v41 = vadd.f32 %v10227_v55, %v8020_v20  ;;  %v12699_v18 = vadd.f32 %v10227_v55, %v8021_v48  ;;  %v12701_v60 = vadd.f32 %v10227_v55, %v8022_v11 }
0x2a0f   :  { %v12703_v36 = vadd.f32 %v10227_v55, %v8023_v12  ;;  %v12705_v3 = vadd.f32 %v10227_v55, %v8024_v24  ;;  %v12707_v15 = vadd.f32 %v10227_v55, %v8025_v49  ;;  %v7979_v61 = vrot.slane %v10177_v32, 1 }
0x2a10   :  { %v8077_v27 = vrot.slane %v12695_v16, 7  ;;  %v8079_v59 = vrot.slane %v12697_v41, 6  ;;  %v8081_v8 = vrot.slane %v12699_v18, 5  ;;  %v8083_v10 = vrot.slane %v12701_v60, 4 }
0x2a11   :  { %v8085_v31 = vrot.slane %v12703_v36, 3  ;;  %v8087_v13 = vrot.slane %v12705_v3, 2  ;;  %v8089_v4 = vrot.slane %v12707_v15, 1  ;;  %v7980_v57 = vrot.slane %v10177_v32, 2 }
0x2a12   :  { %v8078_v33 = vsel %vm208_vm0, %v8077_v27, %v12693_v14  ;;  %v7981_v35 = vrot.slane %v10177_v32, 3  ;;  %v7982_v26 = vrot.slane %v10177_v32, 4  ;;  %v7983_v51 = vrot.slane %v10177_v32, 5 }
0x2a13   :  { %v8080_v58 = vsel %vm211_vm1, %v8079_v59, %v8078_v33  ;;  %v7984_v2 = vrot.slane %v10177_v32, 6  ;;  %v7985_v6 = vrot.slane %v10177_v32, 7  ;;  %v8010_v9 = vmul.f32 %v10177_v32, %v12550_v62 }
0x2a14   :  { %v8082_v34 = vsel %vm214_vm2, %v8081_v8, %v8080_v58  ;;  %v8011_v42 = vmul.f32 %v7979_v61, %v12554_v39  ;;  %v8012_v17 = vmul.f32 %v7980_v57, %v12564_v50  ;;  %v8013_v52 = vmul.f32 %v7981_v35, %v12567_v29 }
0x2a15   :  { %v8084_v45 = vsel %vm217_vm3, %v8083_v10, %v8082_v34  ;;  %v8014_v20 = vmul.f32 %v7982_v26, %v12570_v0  ;;  %v8015_v48 = vmul.f32 %v7983_v51, %v12573_v1  ;;  %v8016_v11 = vmul.f32 %v7984_v2, %v12576_v37 }
0x2a16   :  { %v8086_v12 = vsel %vm220_vm4, %v8085_v31, %v8084_v45  ;;  %v8017_v62 = vmul.f32 %v7985_v6, %v12579_v25  ;;  %v8026_v32 = vmul.f32 %v10226_v22, %v8010_v9  ;;  %v8027_v24 = vmul.f32 %v10226_v22, %v8011_v42 }
0x2a17   :  { %v8088_v39 = vsel %vm223_vm5, %v8087_v13, %v8086_v12  ;;  %v8028_v49 = vmul.f32 %v10226_v22, %v8012_v17  ;;  %v8029_v50 = vmul.f32 %v10226_v22, %v8013_v52  ;;  %v8030_v61 = vmul.f32 %v10226_v22, %v8014_v20  ;;  %v8770_v52 = vld [vmem:[%s13234_s5 + $0x2] ss:$0 sm:$0xff] }
0x2a18   :  { %v8090_v29 = vsel %vm226_vm6, %v8089_v4, %v8088_v39  ;;  %v8031_v27 = vmul.f32 %v10226_v22, %v8015_v48  ;;  %v8032_v59 = vmul.f32 %v10226_v22, %v8016_v11  ;;  %v8033_v0 = vmul.f32 %v10226_v22, %v8017_v62 }
0x2a19   :  { %9495 = vmatprep.mubr.msk.f32.mxu1 %vm242_vm7, %v8090_v29  ;;  %v12733_v1 = vadd.f32 %v10227_v55, %v8027_v24  ;;  %v12735_v37 = vadd.f32 %v10227_v55, %v8028_v49  ;;  %v12737_v8 = vadd.f32 %v10227_v55, %v8029_v50  ;;  %v12739_v25 = vadd.f32 %v10227_v55, %v8030_v61  ;;  %v4134_v24 = vpop.xlane.xlu0 %4133 }
0x2a1a   :  { %v12741_v10 = vadd.f32 %v10227_v55, %v8026_v32  ;;  %v12743_v31 = vadd.f32 %v10227_v55, %v8031_v27  ;;  %v12747_v57 = vadd.f32 %v10227_v55, %v8032_v59  ;;  %v12749_v33 = vadd.f32 %v10227_v55, %v8033_v0  ;;  %v4131_v32 = vpop.xlane.xlu1 %4130 }
0x2a1b   :  { %v8091_v13 = vrot.slane %v12733_v1, 7  ;;  %v8093_v4 = vrot.slane %v12735_v37, 6  ;;  %v8095_v35 = vrot.slane %v12737_v8, 5  ;;  %v8097_v51 = vrot.slane %v12739_v25, 4 }
0x2a1c   :  { %v8099_v2 = vrot.slane %v12743_v31, 3  ;;  %v8101_v9 = vrot.slane %v12747_v57, 2  ;;  %v8103_v34 = vrot.slane %v12749_v33, 1  ;;  %v4135_v39 = vmul.f32 0.03125, %v4131_v32 }
0x2a1d   :  { %v8092_v22 = vsel %vm208_vm0, %v8091_v13, %v12741_v10  ;;  %v4136_v49 = vmul.f32 0.03125, %v4134_v24 }
0x2a1e   :  { %v8094_v26 = vsel %vm211_vm1, %v8093_v4, %v8092_v22  ;;  %v4139_v50 = vrot.slane %v4135_v39, 1  ;;  %v4140_v29 = vrot.slane %v4135_v39, 2  ;;  %v4141_v13 = vrot.slane %v4135_v39, 3 }
0x2a1f   :  { %v8096_v58 = vsel %vm214_vm2, %v8095_v35, %v8094_v26  ;;  %v4146_v61 = vrot.slane %v4136_v49, 1  ;;  %v4147_v27 = vrot.slane %v4136_v49, 2  ;;  %v4148_v26 = vrot.slane %v4136_v49, 3 }
0x2a20   :  { %v8098_v6 = vsel %vm217_vm3, %v8097_v51, %v8096_v58  ;;  %v12771_v59 = vsub.f32 %v12393_v38, %v4139_v50  ;;  %v12777_v4 = vsub.f32 %v12396_v7, %v4140_v29  ;;  %v12787_v38 = vsub.f32 %v12400_v21, %v4135_v39 }
0x2a21   :  { %v8100_v55 = vsel %vm220_vm4, %v8099_v2, %v8098_v6  ;;  %v12774_v0 = vsub.f32 %v12519_v19, %v4146_v61  ;;  %v12780_v22 = vsub.f32 %v12522_v56, %v4147_v27  ;;  %v12790_v19 = vsub.f32 %v12529_v30, %v4136_v49 }
0x2a22   :  { %v8102_v42 = vsel %vm223_vm5, %v8101_v9, %v8100_v55  ;;  %v4186_v35 = vmul.f32 %v12771_v59, %v12771_v59  ;;  %v4142_v58 = vrot.slane %v4135_v39, 4  ;;  %v12793_v7 = vsub.f32 %v12404_v44, %v4141_v13 }
0x2a23   :  { %v8104_v17 = vsel %vm226_vm6, %v8103_v34, %v8102_v42  ;;  %v4194_v51 = vmul.f32 %v12774_v0, %v12774_v0  ;;  %v4187_v56 = vmul.f32 %v12777_v4, %v12777_v4  ;;  %v4149_v2 = vrot.slane %v4136_v49, 4 }
0x2a24   :  { %9496 = vmatmul.mubr.msk.f32.vlgmr.msra.gmra.mrb[50].mxu1 %vm242_vm7, %v8104_v17  ;;  %v4195_v6 = vmul.f32 %v12780_v22, %v12780_v22  ;;  %v4217_v9 = vrot.slane %v4186_v35, 7  ;;  %v12800_v55 = vsub.f32 %v12533_v43, %v4148_v26  ;;  %v4143_v34 = vrot.slane %v4135_v39, 5 }
0x2a25   :  { %v4231_v21 = vrot.slane %v4194_v51, 7  ;;  %v4150_v42 = vrot.slane %v4136_v49, 5  ;;  %v4185_v30 = vmul.f32 %v12787_v38, %v12787_v38  ;;  %v4193_v44 = vmul.f32 %v12790_v19, %v12790_v19 }
0x2a26   :  { %v12807_v17 = vsub.f32 %v12409_v23, %v4142_v58  ;;  %v12812_v43 = vsub.f32 %v12539_v46, %v4149_v2  ;;  %v4144_v32 = vrot.slane %v4135_v39, 6  ;;  %v12819_v23 = vsub.f32 %v12414_v28, %v4143_v34 }
0x2a27   :  { %v4152_v24 = vrot.slane %v4136_v49, 7  ;;  %v12822_v50 = vsub.f32 %v12545_v54, %v4150_v42  ;;  %v4145_v61 = vrot.slane %v4135_v39, 7 }
0x2a28   :  { %v4189_v46 = vmul.f32 %v12807_v17, %v12807_v17  ;;  %v4197_v13 = vmul.f32 %v12812_v43, %v12812_v43  ;;  %v12838_v54 = vmul.f32 %v12819_v23, %v12819_v23 }
0x2a29   :  { %v12841_v39 = vsub.f32 %v12651_v5, %v4152_v24 }
0x2af7   :  { %v9497_v45 = vpop.f32.mrb[50].mxu1 }
0x2af8   :  { %v8181_v20 = vadd.f32 %v9497_v45, %v8770_v52  ;;  %v8175_v48 = vpop.f32.mrb[51].mxu1  ;;  %v4219_v45 = vrot.slane %v4187_v56, 6  ;;  %v4223_v56 = vrot.slane %v4189_v46, 4 }
0x2af9   :  { %v8176_v11 = vadd.f32 %v8770_v52, %v8175_v48  ;;  %v4188_v52 = vmul.f32 %v12793_v7, %v12793_v7  ;;  %v4233_v48 = vrot.slane %v4195_v6, 6  ;;  %v4237_v6 = vrot.slane %v4197_v13, 4 }
0x2afa   :  { %v8185_v62 = vmax.f32 %v8181_v20, 0.0  ;;  %v4151_v20 = vrot.slane %v4136_v49, 6  ;;  %v12834_v49 = vsub.f32 %v12418_v47, %v4144_v32 }
0x2afb   :  { %v8184_v12 = vmax.f32 %v8176_v11, 0.0  ;;  %v4218_v11 = vsel %vm208_vm0, %v4217_v9, %v4185_v30  ;;  %v4221_v28 = vrot.slane %v4188_v52, 5  ;;  %v12850_v9 = vsub.f32 %v12422_v63, %v4145_v61 }
0x2afc   :  { %v4220_v29 = vsel %vm211_vm1, %v4219_v45, %v4218_v11  ;;  %v12828_v27 = vsub.f32 %v12557_v40, %v4151_v20  ;;  %v4198_v40 = vmul.f32 %v12822_v50, %v12822_v50  ;;  %v12855_v34 = vmul.f32 %v12834_v49, %v12834_v49 }
0x2afd   :  { %9514 = vmatprep.mubr.msk.f32.mxu0 %vm3953_vm11, %v8184_v12  ;;  %v4196_v12 = vmul.f32 %v12800_v55, %v12800_v55  ;;  %v4222_v51 = vsel %vm214_vm2, %v4221_v28, %v4220_v29  ;;  %v4225_v30 = vrot.slane %v12838_v54, 3  ;;  %v12864_v52 = vmul.f32 %v12841_v39, %v12841_v39 }
0x2afe   :  { %9515 = vmatmul.mubr.msk.f32.vlgmr.msra.gmra.mrb[46].mxu0 %vm3953_vm11, %v8185_v62  ;;  %v4232_v62 = vsel %vm208_vm0, %v4231_v21, %v4193_v44  ;;  %v4199_v47 = vmul.f32 %v12828_v27, %v12828_v27  ;;  %v12858_v42 = vsel %vm217_vm3, %v4223_v56, %v4222_v51  ;;  %v4239_v45 = vrot.slane %v4198_v40, 3 }
0x2aff   :  { %v4234_v35 = vsel %vm211_vm1, %v4233_v48, %v4232_v62  ;;  %v4235_v26 = vrot.slane %v4196_v12, 5 }
0x2b00   :  { %v4241_v61 = vrot.slane %v4199_v47, 2 }
0x2b01   :  { %v4236_v58 = vsel %vm214_vm2, %v4235_v26, %v4234_v35 }
0x2b02   :  { %v4238_v63 = vsel %vm217_vm3, %v4237_v6, %v4236_v58 }
0x2bd1   :  { %v9516_v2 = vpop.f32.mrb[46].mxu0 }
0x2bd2   :  { %v8264_v21 = vadd.f32 %v9516_v2, %v12388_v53  ;;  %v8258_v5 = vpop.f32.mrb[47].mxu0 }
0x2bd3   :  { %v8259_v44 = vadd.f32 %v12388_v53, %v8258_v5 }
0x2bd4   :  { %v8276_v20 = vrot.slane %v8264_v21, 1  ;;  %v8277_v48 = vrot.slane %v8264_v21, 2  ;;  %v8278_v11 = vrot.slane %v8264_v21, 3  ;;  %v8279_v12 = vrot.slane %v8264_v21, 4 }
0x2bd5   :  { %v8280_v62 = vrot.slane %v8264_v21, 5  ;;  %v8281_v32 = vrot.slane %v8264_v21, 6  ;;  %v8282_v24 = vrot.slane %v8264_v21, 7  ;;  %v12880_v35 = vadd.f32 %v8264_v21, %v12741_v10 }
0x2bd6   :  { %v12868_v46 = vadd.f32 %v8276_v20, %v12733_v1  ;;  %v12871_v53 = vadd.f32 %v8277_v48, %v12735_v37  ;;  %v12874_v29 = vadd.f32 %v8278_v11, %v12737_v8  ;;  %v12877_v13 = vadd.f32 %v8279_v12, %v12739_v25 }
0x2bd7   :  { %v12883_v28 = vadd.f32 %v8280_v62, %v12743_v31  ;;  %v12886_v26 = vadd.f32 %v8281_v32, %v12747_v57  ;;  %v4240_v1 = vsel %vm220_vm4, %v4239_v45, %v4238_v63  ;;  %v12890_v37 = vadd.f32 %v8282_v24, %v12749_v33 }
0x2bd8   :  { %v8345_v8 = vrot.slane %v12868_v46, 7  ;;  %v8347_v40 = vrot.slane %v12871_v53, 6  ;;  %v8269_v25 = vrot.slane %v8259_v44, 1  ;;  %v8349_v51 = vrot.slane %v12874_v29, 5 }
0x2bd9   :  { %v8351_v10 = vrot.slane %v12877_v13, 4  ;;  %v8353_v31 = vrot.slane %v12883_v28, 3  ;;  %v8270_v58 = vrot.slane %v8259_v44, 2  ;;  %v8271_v56 = vrot.slane %v8259_v44, 3 }
0x2bda   :  { %v8346_v57 = vsel %vm208_vm0, %v8345_v8, %v12880_v35  ;;  %v8272_v2 = vrot.slane %v8259_v44, 4  ;;  %v8273_v47 = vrot.slane %v8259_v44, 5  ;;  %v8355_v6 = vrot.slane %v12886_v26, 2 }
0x2bdb   :  { %v8348_v33 = vsel %vm211_vm1, %v8347_v40, %v8346_v57  ;;  %v8274_v21 = vrot.slane %v8259_v44, 6  ;;  %v8275_v5 = vrot.slane %v8259_v44, 7  ;;  %v12903_v45 = vadd.f32 %v8269_v25, %v12695_v16 }
0x2bdc   :  { %v8350_v63 = vsel %vm214_vm2, %v8349_v51, %v8348_v33  ;;  %v12906_v20 = vadd.f32 %v8270_v58, %v12697_v41  ;;  %v12909_v48 = vadd.f32 %v8271_v56, %v12699_v18  ;;  %v8357_v12 = vrot.slane %v12890_v37, 1 }
0x2bdd   :  { %v8352_v11 = vsel %vm217_vm3, %v8351_v10, %v8350_v63  ;;  %v12914_v62 = vadd.f32 %v8259_v44, %v12693_v14  ;;  %v12917_v32 = vadd.f32 %v8272_v2, %v12701_v60  ;;  %v12921_v16 = vadd.f32 %v8273_v47, %v12703_v36 }
0x2bde   :  { %v8354_v24 = vsel %vm220_vm4, %v8353_v31, %v8352_v11  ;;  %v8331_v41 = vrot.slane %v12903_v45, 7  ;;  %v8333_v18 = vrot.slane %v12906_v20, 6  ;;  %v12927_v40 = vadd.f32 %v8274_v21, %v12705_v3 }
0x2bdf   :  { %v8356_v8 = vsel %vm223_vm5, %v8355_v6, %v8354_v24  ;;  %v4242_v14 = vsel %vm223_vm5, %v4241_v61, %v4240_v1  ;;  %v4243_v44 = vrot.slane %v12864_v52, 1  ;;  %v12933_v25 = vadd.f32 %v8275_v5, %v12707_v15 }
0x2be0   :  { %v8358_v60 = vsel %vm226_vm6, %v8357_v12, %v8356_v8  ;;  %v8332_v36 = vsel %vm208_vm0, %v8331_v41, %v12914_v62  ;;  %v8335_v51 = vrot.slane %v12909_v48, 5  ;;  %v8337_v3 = vrot.slane %v12917_v32, 4 }
0x2be1   :  { %v8364_v10 = vsel %vm242_vm7, %v8358_v60, 0.0  ;;  %v8334_v31 = vsel %vm211_vm1, %v8333_v18, %v8332_v36  ;;  %v4192_v61 = vmul.f32 %v12850_v9, %v12850_v9  ;;  %v8339_v15 = vrot.slane %v12921_v16, 3 }
0x2be2   :  { %8365 = vadd.xlane.f32.xlu0 %v8364_v10  ;;  %v8336_v52 = vsel %vm214_vm2, %v8335_v51, %v8334_v31  ;;  %v4244_v1 = vsel %vm226_vm6, %v4243_v44, %v4242_v14  ;;  %v4226_v58 = vsel %vm220_vm4, %v4225_v30, %v12858_v42  ;;  %v8341_v56 = vrot.slane %v12927_v40, 2 }
0x2be3   :  { %v8338_v57 = vsel %vm217_vm3, %v8337_v3, %v8336_v52  ;;  %v4227_v2 = vrot.slane %v12855_v34, 2  ;;  %v8343_v33 = vrot.slane %v12933_v25, 1  ;;  %v4250_v21 = vsel %vm242_vm7, %v4244_v1, 0.0 }
0x2be4   :  { %v8340_v47 = vsel %vm220_vm4, %v8339_v15, %v8338_v57  ;;  %v4229_v42 = vrot.slane %v4192_v61, 1 }
0x2be5   :  { %v8342_v6 = vsel %vm223_vm5, %v8341_v56, %v8340_v47  ;;  %v4228_v5 = vsel %vm223_vm5, %v4227_v2, %v4226_v58 }
0x2be6   :  { %v8344_v54 = vsel %vm226_vm6, %v8343_v33, %v8342_v6  ;;  %4251 = vadd.xlane.f32.xlu0 %v4250_v21  ;;  %v4230_v63 = vsel %vm226_vm6, %v4229_v42, %v4228_v5 }
0x2be7   :  { %v8361_v30 = vsel %vm242_vm7, %v8344_v54, 0.0  ;;  %v4247_v34 = vsel %vm242_vm7, %v4230_v63, 0.0 }
0x2be8   :  { %8362 = vadd.xlane.f32.xlu1 %v8361_v30 }
0x2bec   :  { %4248 = vadd.xlane.f32.xlu1 %v4247_v34 }
0x2c6f   :  { %v8366_v11 = vpop.xlane.xlu0 %8365 }
0x2c70   :  { %v8368_v12 = vmul.f32 0.03125, %v8366_v11 }
0x2c72   :  { %v8378_v24 = vrot.slane %v8368_v12, 1  ;;  %v8379_v41 = vrot.slane %v8368_v12, 2  ;;  %v8380_v18 = vrot.slane %v8368_v12, 3  ;;  %v8381_v8 = vrot.slane %v8368_v12, 4 }
0x2c73   :  { %v4252_v14 = vpop.xlane.xlu0 %4251  ;;  %v8382_v44 = vrot.slane %v8368_v12, 5  ;;  %v8383_v60 = vrot.slane %v8368_v12, 6  ;;  %v8384_v36 = vrot.slane %v8368_v12, 7  ;;  %v12963_v51 = vsub.f32 %v12880_v35, %v8368_v12 }
0x2c74   :  { %v4254_v10 = vmul.f32 0.03125, %v4252_v14  ;;  %v12966_v31 = vsub.f32 %v12868_v46, %v8378_v24  ;;  %v12969_v3 = vsub.f32 %v12871_v53, %v8379_v41  ;;  %v12972_v61 = vsub.f32 %v12874_v29, %v8380_v18 }
0x2c75   :  { %v8363_v52 = vpop.xlane.xlu1 %8362  ;;  %v12975_v15 = vsub.f32 %v12877_v13, %v8381_v8  ;;  %v12978_v1 = vsub.f32 %v12883_v28, %v8382_v44  ;;  %v12981_v35 = vsub.f32 %v12886_v26, %v8383_v60  ;;  %v12984_v58 = vsub.f32 %v12890_v37, %v8384_v36 }
0x2c76   :  { %v8367_v46 = vmul.f32 0.03125, %v8363_v52  ;;  %v4256_v57 = vadd.f32 1e-05, %v4254_v10  ;;  %v8425_v53 = vmul.f32 %v12963_v51, %v12963_v51  ;;  %v8426_v29 = vmul.f32 %v12966_v31, %v12966_v31 }
0x2c77   :  { %v8427_v13 = vmul.f32 %v12969_v3, %v12969_v3  ;;  %v8428_v28 = vmul.f32 %v12972_v61, %v12972_v61  ;;  %v8429_v26 = vmul.f32 %v12975_v15, %v12975_v15  ;;  %v8430_v37 = vmul.f32 %v12978_v1, %v12978_v1 }
0x2c78   :  { %10178 = vrsqrt.f32 %v4256_v57  ;;  %v8431_v56 = vmul.f32 %v12981_v35, %v12981_v35  ;;  %v8432_v2 = vmul.f32 %v12984_v58, %v12984_v58  ;;  %v8463_v47 = vrot.slane %v8426_v29, 7 }
0x2c79   :  { %v4249_v33 = vpop.xlane.xlu1 %4248  ;;  %v8465_v6 = vrot.slane %v8427_v13, 6  ;;  %v8467_v21 = vrot.slane %v8428_v28, 5  ;;  %v8469_v5 = vrot.slane %v8429_v26, 4  ;;  %v8471_v54 = vrot.slane %v8430_v37, 3 }
0x2c7a   :  { %v4253_v42 = vmul.f32 0.03125, %v4249_v33  ;;  %v8464_v30 = vsel %vm208_vm0, %v8463_v47, %v8425_v53  ;;  %v8473_v63 = vrot.slane %v8431_v56, 2  ;;  %v8475_v34 = vrot.slane %v8432_v2, 1  ;;  %v13061_v47 = vld [vmem:[%s13236_s7 + $0x5] ss:$0 sm:$0xff] }
0x2c7b   :  { %v8466_v11 = vsel %vm211_vm1, %v8465_v6, %v8464_v30  ;;  %v8371_v12 = vrot.slane %v8367_v46, 1  ;;  %v8372_v24 = vrot.slane %v8367_v46, 2  ;;  %v8373_v41 = vrot.slane %v8367_v46, 3 }
0x2c7c   :  { %v4255_v18 = vadd.f32 1e-05, %v4253_v42  ;;  %v8468_v8 = vsel %vm214_vm2, %v8467_v21, %v8466_v11  ;;  %v8374_v14 = vrot.slane %v8367_v46, 4  ;;  %v8375_v44 = vrot.slane %v8367_v46, 5 }
0x2c7d   :  { %v8470_v60 = vsel %vm217_vm3, %v8469_v5, %v8468_v8  ;;  %v8376_v36 = vrot.slane %v8367_v46, 6  ;;  %v8377_v10 = vrot.slane %v8367_v46, 7  ;;  %v13007_v52 = vsub.f32 %v12914_v62, %v8367_v46 }
0x2c7e   :  { %10180 = vrsqrt.f32 %v4255_v18  ;;  %v8472_v57 = vsel %vm220_vm4, %v8471_v54, %v8470_v60  ;;  %v13011_v53 = vsub.f32 %v12903_v45, %v8371_v12  ;;  %v13014_v29 = vsub.f32 %v12906_v20, %v8372_v24 }
0x2c7f   :  { %v8474_v13 = vsel %vm223_vm5, %v8473_v63, %v8472_v57  ;;  %v13018_v28 = vsub.f32 %v12909_v48, %v8373_v41  ;;  %v13021_v26 = vsub.f32 %v12917_v32, %v8374_v14  ;;  %v13024_v62 = vsub.f32 %v12921_v16, %v8375_v44 }
0x2c80   :  { %v8476_v46 = vsel %vm226_vm6, %v8475_v34, %v8474_v13  ;;  %v13028_v45 = vsub.f32 %v12927_v40, %v8376_v36  ;;  %v13032_v37 = vsub.f32 %v12933_v25, %v8377_v10  ;;  %v13036_v48 = vmul.f32 %v13007_v52, %v13007_v52  ;;  %v13067_v34 = vld [vmem:[%s13236_s7 + $0x6] ss:$0 sm:$0xff]  ;;  %s10360_s7 = smov [#allocation10]  }
0x2c81   :  { %v8482_v20 = vsel %vm242_vm7, %v8476_v46, 0.0  ;;  %v13040_v32 = vmul.f32 %v13011_v53, %v13011_v53  ;;  %v13044_v56 = vmul.f32 %v13014_v29, %v13014_v29  ;;  %v13048_v40 = vmul.f32 %v13018_v28, %v13018_v28  ;;  %s8592_s14 = sshll.u32 %s10360_s7, 4  ;;  %s8593_s14 = int_to_ptr.vmem [resolvable:$true] %s8592_s14 }
0x2c82   :  { %v10179_v16 = vpop.eup %10178  ;;  %8483 = vadd.xlane.f32.xlu0 %v8482_v20  ;;  %v13052_v25 = vmul.f32 %v13021_v26, %v13021_v26  ;;  %v13056_v2 = vmul.f32 %v13024_v62, %v13024_v62  ;;  %s10316_s15 = scalar_lea.vmem %s8593_s14, 512  ;;  %p10321_p5 = scmp.lt.s32.totalorder %s8593_s14, %s8593_s14 }
0x2c83   :  { %v4268_v33 = vrot.slane %v10179_v16, 1  ;;  %v4269_v6 = vrot.slane %v10179_v16, 2  ;;  %v4270_v21 = vrot.slane %v10179_v16, 3  ;;  %v4271_v5 = vrot.slane %v10179_v16, 4  ;;  %p10317_p4 = scmp.ne.s32.totalorder %s8593_s14, %s10316_s15  ;;  %p10322_p6 = scmp.lt.s32.totalorder %s10316_s15, %s10316_s15 }
0x2c84   :  { %v4272_v54 = vrot.slane %v10179_v16, 5  ;;  %v4273_v42 = vrot.slane %v10179_v16, 6  ;;  %v4274_v30 = vrot.slane %v10179_v16, 7  ;;  %v4299_v63 = vmul.f32 %v10179_v16, %v12790_v19 }
0x2c85   :  { %v4300_v11 = vmul.f32 %v4268_v33, %v12774_v0  ;;  %v4301_v12 = vmul.f32 %v4269_v6, %v12780_v22  ;;  %v4302_v24 = vmul.f32 %v4270_v21, %v12800_v55  ;;  %v4303_v41 = vmul.f32 %v4271_v5, %v12812_v43  ;;  %p10323_p7 = por %p10322_p6, %p10321_p5 }
0x2c86   :  { %v4304_v18 = vmul.f32 %v4272_v54, %v12822_v50  ;;  %v4305_v8 = vmul.f32 %v4273_v42, %v12828_v27  ;;  %v4306_v14 = vmul.f32 %v4274_v30, %v12841_v39  ;;  %v4319_v19 = vmul.f32 %v13061_v47, %v4299_v63 }
0x2c87   :  { %v4320_v44 = vmul.f32 %v13061_v47, %v4300_v11  ;;  %v4321_v60 = vmul.f32 %v13061_v47, %v4301_v12  ;;  %v4322_v0 = vmul.f32 %v13061_v47, %v4302_v24  ;;  %v4323_v22 = vmul.f32 %v13061_v47, %v4303_v41  ;;  %p10324_p8 = pnand %p10323_p7, %p10317_p4 }
0x2c88   :  { %v10181_v36 = vpop.eup %10180  ;;  %v4324_v55 = vmul.f32 %v13061_v47, %v4304_v18  ;;  %v4325_v43 = vmul.f32 %v13061_v47, %v4305_v8  ;;  %v4326_v50 = vmul.f32 %v13061_v47, %v4306_v14  ;;  %v4339_v27 = vadd.f32 %v13067_v34, %v4319_v19 }
0x2c89   :  { %v4340_v39 = vadd.f32 %v13067_v34, %v4320_v44  ;;  %v4341_v10 = vadd.f32 %v13067_v34, %v4321_v60  ;;  %v4342_v57 = vadd.f32 %v13067_v34, %v4322_v0  ;;  %v4343_v13 = vadd.f32 %v13067_v34, %v4323_v22 }
0x2c8a   :  { %v4344_v46 = vadd.f32 %v13067_v34, %v4324_v55  ;;  %v4345_v20 = vadd.f32 %v13067_v34, %v4325_v43  ;;  %v4346_v16 = vadd.f32 %v13067_v34, %v4326_v50  ;;  %4356 = vst.msk [vmem:[#allocation10 + $0x10] sm:$0x1] %vm4347_vm12, %v4339_v27  ;;  %v4261_v33 = vrot.slane %v10181_v36, 1 }
0x2c8b   :  { %4357 = vst.msk [vmem:[#allocation10 + $0x12] sm:$0x1] %vm4347_vm12, %v4340_v39  ;;  %4358 = vst.msk [vmem:[#allocation10 + $0x14] sm:$0x1] %vm4347_vm12, %v4341_v10  ;;  %v4262_v6 = vrot.slane %v10181_v36, 2  ;;  %v4263_v21 = vrot.slane %v10181_v36, 3  ;;  %v4291_v63 = vmul.f32 %v10181_v36, %v12787_v38  ;;  %v8423_v39 = vmul.f32 %v13028_v45, %v13028_v45 }
0x2c8c   :  { %4359 = vst.msk [vmem:[#allocation10 + $0x16] sm:$0x1] %vm4347_vm12, %v4342_v57  ;;  %4360 = vst.msk [vmem:[#allocation10 + $0x18] sm:$0x1] %vm4347_vm12, %v4343_v13  ;;  %v4264_v5 = vrot.slane %v10181_v36, 4  ;;  %v4265_v54 = vrot.slane %v10181_v36, 5  ;;  %v4292_v11 = vmul.f32 %v4261_v33, %v12771_v59 }
0x2c8d   :  { %4361 = vst.msk [vmem:[#allocation10 + $0x1a] sm:$0x1] %vm4347_vm12, %v4344_v46  ;;  %4362 = vst.msk [vmem:[#allocation10 + $0x1c] sm:$0x1] %vm4347_vm12, %v4345_v20  ;;  %v4266_v42 = vrot.slane %v10181_v36, 6  ;;  %v4267_v30 = vrot.slane %v10181_v36, 7  ;;  %v4293_v12 = vmul.f32 %v4262_v6, %v12777_v4  ;;  %v4294_v24 = vmul.f32 %v4263_v21, %v12793_v7 }
0x2c8e   :  { %4363 = vst.msk [vmem:[#allocation10 + $0x1e] sm:$0x1] %vm4347_vm12, %v4346_v16  ;;  %v4295_v41 = vmul.f32 %v4264_v5, %v12807_v17  ;;  %v4296_v18 = vmul.f32 %v4265_v54, %v12819_v23  ;;  %v4311_v19 = vmul.f32 %v13061_v47, %v4291_v63  ;;  %v4312_v44 = vmul.f32 %v13061_v47, %v4292_v11 }
0x2c8f   :  { %v4297_v8 = vmul.f32 %v4266_v42, %v12834_v49  ;;  %v4298_v14 = vmul.f32 %v4267_v30, %v12850_v9  ;;  %v4313_v38 = vmul.f32 %v13061_v47, %v4293_v12  ;;  %v4314_v59 = vmul.f32 %v13061_v47, %v4294_v24 }
0x2c90   :  { %v4315_v4 = vmul.f32 %v13061_v47, %v4295_v41  ;;  %v4316_v7 = vmul.f32 %v13061_v47, %v4296_v18  ;;  %v4331_v49 = vadd.f32 %v13067_v34, %v4311_v19  ;;  %v4332_v9 = vadd.f32 %v13067_v34, %v4312_v44 }
0x2c91   :  { %v4317_v17 = vmul.f32 %v13061_v47, %v4297_v8  ;;  %v4318_v23 = vmul.f32 %v13061_v47, %v4298_v14  ;;  %v4333_v60 = vadd.f32 %v13067_v34, %v4313_v38  ;;  %v4334_v0 = vadd.f32 %v13067_v34, %v4314_v59 }
0x2c92   :  { %v4335_v22 = vadd.f32 %v13067_v34, %v4315_v4  ;;  %v4336_v36 = vadd.f32 %v13067_v34, %v4316_v7  ;;  %4348 = vst.msk [vmem:[#allocation10] sm:$0x1] %vm4347_vm12, %v4331_v49  ;;  %4349 = vst.msk [vmem:[#allocation10 + $0x2] sm:$0x1] %vm4347_vm12, %v4332_v9  ;;  %v8449_v50 = vrot.slane %v13040_v32, 7  ;;  %v8451_v27 = vrot.slane %v13044_v56, 6 }
0x2c93   :  { %v4337_v55 = vadd.f32 %v13067_v34, %v4317_v17  ;;  %v4338_v43 = vadd.f32 %v13067_v34, %v4318_v23  ;;  %4350 = vst.msk [vmem:[#allocation10 + $0x4] sm:$0x1] %vm4347_vm12, %v4333_v60  ;;  %4351 = vst.msk [vmem:[#allocation10 + $0x6] sm:$0x1] %vm4347_vm12, %v4334_v0  ;;  %v8424_v32 = vmul.f32 %v13032_v37, %v13032_v37  ;;  %v8453_v10 = vrot.slane %v13048_v40, 5 }
0x2c94   :  { %4352 = vst.msk [vmem:[#allocation10 + $0x8] sm:$0x1] %vm4347_vm12, %v4335_v22  ;;  %4353 = vst.msk [vmem:[#allocation10 + $0xa] sm:$0x1] %vm4347_vm12, %v4336_v36  ;;  %v8450_v56 = vsel %vm208_vm0, %v8449_v50, %v13036_v48  ;;  %v8455_v13 = vrot.slane %v13052_v25, 4  ;;  %v8457_v20 = vrot.slane %v13056_v2, 3 }
0x2c95   :  { %4354 = vst.msk [vmem:[#allocation10 + $0xc] sm:$0x1] %vm4347_vm12, %v4337_v55  ;;  %4355 = vst.msk [vmem:[#allocation10 + $0xe] sm:$0x1] %vm4347_vm12, %v4338_v43  ;;  %v8452_v57 = vsel %vm211_vm1, %v8451_v27, %v8450_v56  ;;  %v8459_v33 = vrot.slane %v8423_v39, 2  ;;  %v8461_v21 = vrot.slane %v8424_v32, 1 }
0x2c96   :  { %v8454_v46 = vsel %vm214_vm2, %v8453_v10, %v8452_v57 }
0x2c97   :  { %v8456_v16 = vsel %vm217_vm3, %v8455_v13, %v8454_v46 }
0x2c98   :  { %v8458_v6 = vsel %vm220_vm4, %v8457_v20, %v8456_v16 }
0x2c99   :  { %v8460_v5 = vsel %vm223_vm5, %v8459_v33, %v8458_v6 }
0x2c9a   :  { %v8462_v48 = vsel %vm226_vm6, %v8461_v21, %v8460_v5 }
0x2c9b   :  { %v8479_v40 = vsel %vm242_vm7, %v8462_v48, 0.0 }
0x2c9c   :  { %8480 = vadd.xlane.f32.xlu1 %v8479_v40 }
0x2d0f   :  { %v8484_v54 = vpop.xlane.xlu0 %8483 }
0x2d10   :  { %v8486_v42 = vmul.f32 0.03125, %v8484_v54 }
0x2d12   :  { %v8488_v25 = vadd.f32 1e-05, %v8486_v42 }
0x2d14   :  { %10182 = vrsqrt.f32 %v8488_v25 }
0x2d1e   :  { %v10183_v30 = vpop.eup %10182 }
0x2d1f   :  { %v8500_v63 = vrot.slane %v10183_v30, 1  ;;  %v8501_v2 = vrot.slane %v10183_v30, 2  ;;  %v8502_v11 = vrot.slane %v10183_v30, 3  ;;  %v8503_v12 = vrot.slane %v10183_v30, 4 }
0x2d20   :  { %v8504_v24 = vrot.slane %v10183_v30, 5  ;;  %v8505_v41 = vrot.slane %v10183_v30, 6  ;;  %v8506_v18 = vrot.slane %v10183_v30, 7  ;;  %v8531_v8 = vmul.f32 %v10183_v30, %v12963_v51 }
0x2d21   :  { %v8532_v14 = vmul.f32 %v8500_v63, %v12966_v31  ;;  %v8533_v19 = vmul.f32 %v8501_v2, %v12969_v3  ;;  %v8534_v44 = vmul.f32 %v8502_v11, %v12972_v61  ;;  %v8535_v38 = vmul.f32 %v8503_v12, %v12975_v15 }
0x2d22   :  { %v8536_v59 = vmul.f32 %v8504_v24, %v12978_v1  ;;  %v8537_v4 = vmul.f32 %v8505_v41, %v12981_v35  ;;  %v8538_v7 = vmul.f32 %v8506_v18, %v12984_v58  ;;  %v8547_v17 = vmul.f32 %v13061_v47, %v8531_v8 }
0x2d23   :  { %v8548_v23 = vmul.f32 %v13061_v47, %v8532_v14  ;;  %v8549_v51 = vmul.f32 %v13061_v47, %v8533_v19  ;;  %v8550_v31 = vmul.f32 %v13061_v47, %v8534_v44  ;;  %v8551_v3 = vmul.f32 %v13061_v47, %v8535_v38 }
0x2d24   :  { %v8552_v61 = vmul.f32 %v13061_v47, %v8536_v59  ;;  %v8553_v15 = vmul.f32 %v13061_v47, %v8537_v4  ;;  %v8554_v1 = vmul.f32 %v13061_v47, %v8538_v7  ;;  %v8563_v35 = vadd.f32 %v13067_v34, %v8547_v17 }
0x2d25   :  { %v8564_v58 = vadd.f32 %v13067_v34, %v8548_v23  ;;  %v8565_v49 = vadd.f32 %v13067_v34, %v8549_v51  ;;  %v8566_v9 = vadd.f32 %v13067_v34, %v8550_v31  ;;  %v8567_v60 = vadd.f32 %v13067_v34, %v8551_v3 }
0x2d26   :  { %v8568_v0 = vadd.f32 %v13067_v34, %v8552_v61  ;;  %v8569_v22 = vadd.f32 %v13067_v34, %v8553_v15  ;;  %v8570_v36 = vadd.f32 %v13067_v34, %v8554_v1  ;;  %8579 = vst.msk [vmem:[#allocation10 + $0x11] sm:$0x1] %vm4347_vm12, %v8563_v35 }
0x2d27   :  { %8580 = vst.msk [vmem:[#allocation10 + $0x13] sm:$0x1] %vm4347_vm12, %v8564_v58  ;;  %8581 = vst.msk [vmem:[#allocation10 + $0x15] sm:$0x1] %vm4347_vm12, %v8565_v49 }
0x2d28   :  { %8582 = vst.msk [vmem:[#allocation10 + $0x17] sm:$0x1] %vm4347_vm12, %v8566_v9  ;;  %8583 = vst.msk [vmem:[#allocation10 + $0x19] sm:$0x1] %vm4347_vm12, %v8567_v60 }
0x2d29   :  { %8584 = vst.msk [vmem:[#allocation10 + $0x1b] sm:$0x1] %vm4347_vm12, %v8568_v0  ;;  %8585 = vst.msk [vmem:[#allocation10 + $0x1d] sm:$0x1] %vm4347_vm12, %v8569_v22  ;;  %v8481_v55 = vpop.xlane.xlu1 %8480 }
0x2d2a   :  { %8586 = vst.msk [vmem:[#allocation10 + $0x1f] sm:$0x1] %vm4347_vm12, %v8570_v36  ;;  %v8485_v43 = vmul.f32 0.03125, %v8481_v55 }
0x2d2c   :  { %v8487_v50 = vadd.f32 1e-05, %v8485_v43 }
0x2d2e   :  { %10184 = vrsqrt.f32 %v8487_v50 }
0x2d38   :  { %v10185_v27 = vpop.eup %10184 }
0x2d39   :  { %v8493_v39 = vrot.slane %v10185_v27, 1  ;;  %v8494_v32 = vrot.slane %v10185_v27, 2  ;;  %v8495_v56 = vrot.slane %v10185_v27, 3  ;;  %v8496_v10 = vrot.slane %v10185_v27, 4 }
0x2d3a   :  { %v8497_v57 = vrot.slane %v10185_v27, 5  ;;  %v8498_v13 = vrot.slane %v10185_v27, 6  ;;  %v8499_v46 = vrot.slane %v10185_v27, 7  ;;  %v8523_v20 = vmul.f32 %v10185_v27, %v13007_v52 }
0x2d3b   :  { %v8524_v16 = vmul.f32 %v8493_v39, %v13011_v53  ;;  %v8525_v33 = vmul.f32 %v8494_v32, %v13014_v29  ;;  %v8526_v6 = vmul.f32 %v8495_v56, %v13018_v28  ;;  %v8527_v21 = vmul.f32 %v8496_v10, %v13021_v26 }
0x2d3c   :  { %v8528_v5 = vmul.f32 %v8497_v57, %v13024_v62  ;;  %v8529_v48 = vmul.f32 %v8498_v13, %v13028_v45  ;;  %v8530_v40 = vmul.f32 %v8499_v46, %v13032_v37  ;;  %v8539_v54 = vmul.f32 %v13061_v47, %v8523_v20 }
0x2d3d   :  { %v8540_v42 = vmul.f32 %v13061_v47, %v8524_v16  ;;  %v8541_v52 = vmul.f32 %v13061_v47, %v8525_v33  ;;  %v8542_v53 = vmul.f32 %v13061_v47, %v8526_v6  ;;  %v8543_v29 = vmul.f32 %v13061_v47, %v8527_v21 }
0x2d3e   :  { %v8544_v28 = vmul.f32 %v13061_v47, %v8528_v5  ;;  %v8545_v26 = vmul.f32 %v13061_v47, %v8529_v48  ;;  %v8546_v62 = vmul.f32 %v13061_v47, %v8530_v40  ;;  %v8555_v45 = vadd.f32 %v13067_v34, %v8539_v54 }
0x2d3f   :  { %v8556_v37 = vadd.f32 %v13067_v34, %v8540_v42  ;;  %v8557_v25 = vadd.f32 %v13067_v34, %v8541_v52  ;;  %v8558_v30 = vadd.f32 %v13067_v34, %v8542_v53  ;;  %v8559_v63 = vadd.f32 %v13067_v34, %v8543_v29 }
0x2d40   :  { %v8560_v2 = vadd.f32 %v13067_v34, %v8544_v28  ;;  %v8561_v11 = vadd.f32 %v13067_v34, %v8545_v26  ;;  %v8562_v12 = vadd.f32 %v13067_v34, %v8546_v62  ;;  %8571 = vst.msk [vmem:[#allocation10 + $0x1] sm:$0x1] %vm4347_vm12, %v8555_v45 }
0x2d41   :  { %8572 = vst.msk [vmem:[#allocation10 + $0x3] sm:$0x1] %vm4347_vm12, %v8556_v37  ;;  %8573 = vst.msk [vmem:[#allocation10 + $0x5] sm:$0x1] %vm4347_vm12, %v8557_v25 }
0x2d42   :  { %8574 = vst.msk [vmem:[#allocation10 + $0x7] sm:$0x1] %vm4347_vm12, %v8558_v30  ;;  %8575 = vst.msk [vmem:[#allocation10 + $0x9] sm:$0x1] %vm4347_vm12, %v8559_v63 }
0x2d43   :  { %8576 = vst.msk [vmem:[#allocation10 + $0xb] sm:$0x1] %vm4347_vm12, %v8560_v2  ;;  %8577 = vst.msk [vmem:[#allocation10 + $0xd] sm:$0x1] %vm4347_vm12, %v8561_v11 }
0x2d44   :  { %8578 = vst.msk [vmem:[#allocation10 + $0xf] sm:$0x1] %vm4347_vm12, %v8562_v12 }
0x2d45   :  { %10327 = shalt.err (!%p10324_p8)
}
0x2d46   :  { %s10328_s3 = scalar_lea.hbm %s13237_s8, 512 }
0x2d47   :  { %p10329_p9 = scmp.ne.s32.totalorder %s13237_s8, %s10328_s3  ;;  %p10332_p10 = scmp.lt.u32.totalorder %s10328_s3, %s13237_s8 }
0x2d49   :  { %p10334_p11 = pnand %p10332_p10, %p10329_p9 }
0x2d4b   :  { %10337 = shalt.err (!%p10334_p11)
}
0x2d4c   :  { %8598 = dma.vmem_to_hbm [thread:$0]  %s8593_s14, 512, %s13237_s8, [#allocation4], %s10348_s17, %s10348_s17, %s10349_s18  }
0x2d4d   :  { %10344 = dma.done.wait [#allocation4], 512  }
0x2d4e   :  { %10345 = vsyncadd [#allocation4], 4294966784 }
0x2d4f   :  { %8602 = vsyncpa [#allocation3], 1 }
0x2d50   :  { %8603 = vsyncpa [#allocation6], 1 }
0x2d51   :  { %8604 = vsyncpa [#allocation9], 1 }
0x2d52   :  { %8605 = vsyncpa [#allocation4], 1 }

</bundles_post_ra>
